<compile_context>
chip_gen: v5e
topology: v5e:2x2
jax: 0.10.0
libtpu: 0.0.40
codegen_flags: <defaults>
</compile_context>

<pallas_src>
import functools

import jax
import jax.numpy as jnp
from jax.experimental import pallas as pl
from jax.experimental.pallas import tpu as pltpu

_VMEM_LIMIT = 32 * 1024 * 1024  # safe on v5e (128 MiB phys) and v7x (64 MiB phys)


def _round_up(v, m):
    return ((v + m - 1) // m) * m


# ----------------------------------------------------------------------------
# Kernel 1: fused conv (as one matmul) + bias + ReLU + 2x2 max-pool, gridded
#           over the flattened batch*spatial axis.
# ----------------------------------------------------------------------------
def _conv_pool_kernel(w_ref, b_ref, p_ref, o_ref, *, tm):
    """w: (OC, Kp), b: (OC, 1), p: (Kp, 4*tm) -> o: (OC, tm) lane-dense.

    p lanes [q*tm:(q+1)*tm] hold the im2col patches of pool-window position q
    for this tile's spatial positions; max over q == 2x2 max-pool of the conv
    output (bias constant per row, relu monotone), computed as ONE MXU matmul
    followed by a max over four static 128-aligned lane slices."""
    y = jnp.dot(w_ref[...], p_ref[...], preferred_element_type=jnp.float32)
    r = jnp.maximum(jnp.maximum(y[:, 0 * tm:1 * tm], y[:, 1 * tm:2 * tm]),
                    jnp.maximum(y[:, 2 * tm:3 * tm], y[:, 3 * tm:4 * tm]))
    o_ref[...] = jnp.maximum(r + b_ref[...], 0.0)


def conv_pool(wmat, bias, patches, tm):
    oc, kp = wmat.shape
    mtot = patches.shape[1]
    nt = mtot // (4 * tm)
    kernel = functools.partial(_conv_pool_kernel, tm=tm)
    return pl.pallas_call(
        kernel,
        out_shape=jax.ShapeDtypeStruct((oc, nt * tm), jnp.float32),
        grid_spec=pltpu.PrefetchScalarGridSpec(
            num_scalar_prefetch=0,
            grid=(nt,),
            in_specs=[
                pl.BlockSpec((oc, kp), lambda i: (0, 0)),
                pl.BlockSpec((oc, 1), lambda i: (0, 0)),
                pl.BlockSpec((kp, 4 * tm), lambda i: (0, i)),
            ],
            out_specs=pl.BlockSpec((oc, tm), lambda i: (0, i)),
        ),
        compiler_params=pltpu.CompilerParams(
            dimension_semantics=("parallel",),
            vmem_limit_bytes=_VMEM_LIMIT),
    )(wmat, bias, patches)


def _conv_pool_patches(x, k, kpad, tm_max=512):
    """XLA glue (pure data movement): im2col + 4 pool sub-grids stacked along
    the lane axis, tile-interleaved so each (Kp, 4*tm) block holds one spatial
    tile's four pool positions.  x: NCHW -> (Kp, nt*4*tm)."""
    n, c, h, w = x.shape
    oh, ow = h - k + 1, w - k + 1
    ph, pw = oh // 2, ow // 2
    m = n * ph * pw
    tm = min(tm_max, _round_up(m, 128))
    mpad = _round_up(m, tm)

    cols = [x[:, :, i:i + oh, j:j + ow] for i in range(k) for j in range(k)]
    pat = jnp.stack(cols, axis=2).reshape(n, c * k * k, oh, ow)
    subs = [pat[:, :, di:di + 2 * ph:2, dj:dj + 2 * pw:2]
            for di in (0, 1) for dj in (0, 1)]                    # each (N, K, PH, PW)
    pmat = jnp.stack(subs, axis=0)                                # (4, N, K, PH, PW)
    pmat = pmat.transpose(0, 2, 1, 3, 4).reshape(4, c * k * k, m)  # (4, K, M)
    pmat = jnp.pad(pmat, ((0, 0), (0, kpad - c * k * k), (0, mpad - m)))
    nt = mpad // tm
    pmat = (pmat.reshape(4, kpad, nt, tm)
                .transpose(1, 2, 0, 3)
                .reshape(kpad, nt * 4 * tm))                      # (Kp, nt*4*tm)
    return pmat, ph, pw, m, tm


# ----------------------------------------------------------------------------
# Kernel 2: fc1 = relu(x @ W + b), gridded over output columns (weight stream)
#           bf16 operands, f32 accumulate / bias / relu, bf16 store.
# ----------------------------------------------------------------------------
def _fc_relu_kernel(x_ref, w_ref, b_ref, o_ref):
    y = jnp.dot(x_ref[...], w_ref[...], preferred_element_type=jnp.float32)
    o_ref[...] = jnp.maximum(y + b_ref[...], 0.0).astype(o_ref.dtype)


def fc_relu(x, w, b, tn=1024):
    m, k = x.shape
    _, n = w.shape
    assert n % tn == 0
    return pl.pallas_call(
        _fc_relu_kernel,
        out_shape=jax.ShapeDtypeStruct((m, n), jnp.bfloat16),
        grid_spec=pltpu.PrefetchScalarGridSpec(
            num_scalar_prefetch=0,
            grid=(n // tn,),
            in_specs=[
                pl.BlockSpec((m, k), lambda j: (0, 0)),
                pl.BlockSpec((k, tn), lambda j: (0, j)),
                pl.BlockSpec((1, tn), lambda j: (0, j)),
            ],
            out_specs=pl.BlockSpec((m, tn), lambda j: (0, j)),
        ),
        compiler_params=pltpu.CompilerParams(
            dimension_semantics=("parallel",),
            vmem_limit_bytes=_VMEM_LIMIT),
    )(x, w, b)


# ----------------------------------------------------------------------------
# Kernel 3: fused fc2 (relu) + head, single step (all operands VMEM-resident)
# ----------------------------------------------------------------------------
def _fc2_head_kernel(x_ref, w2_ref, b2_ref, wh_ref, bh_ref, o_ref):
    h = jnp.maximum(
        jnp.dot(x_ref[...], w2_ref[...], preferred_element_type=jnp.float32)
        + b2_ref[...], 0.0)
    o_ref[...] = (jnp.dot(h.astype(wh_ref.dtype), wh_ref[...],
                          preferred_element_type=jnp.float32) + bh_ref[...])


def fc2_head(x, w2, b2, wh, bh):
    # TODO(synk): on v7x (2 TCs) split fc2 output columns across cores once the
    # batch/width grows enough to make a parallel grid axis worthwhile.
    m = x.shape[0]
    nh = wh.shape[1]
    return pl.pallas_call(
        _fc2_head_kernel,
        out_shape=jax.ShapeDtypeStruct((m, nh), jnp.float32),
        compiler_params=pltpu.CompilerParams(
            vmem_limit_bytes=_VMEM_LIMIT),
    )(x, w2, b2, wh, bh)


# ----------------------------------------------------------------------------
# Parameters (PyTorch layout) + one-time kernel-friendly preparation
# ----------------------------------------------------------------------------
def init_params(key, in_channels=3, num_classes=10, dim=800):
    ks = jax.random.split(key, 10)

    def u(k, shape, fan_in):
        bound = 1.0 / float(fan_in) ** 0.5
        return jax.random.uniform(k, shape, jnp.float32, -bound, bound)

    return {
        "c1_w": u(ks[0], (16, in_channels, 5, 5), in_channels * 25),
        "c1_b": u(ks[1], (16,), in_channels * 25),
        "c2_w": u(ks[2], (32, 16, 5, 5), 16 * 25),
        "c2_b": u(ks[3], (32,), 16 * 25),
        "fc1_w": u(ks[4], (2000, dim), dim),
        "fc1_b": u(ks[5], (2000,), dim),
        "fc2_w": u(ks[6], (500, 2000), 2000),
        "fc2_b": u(ks[7], (500,), 2000),
        "head_w": u(ks[8], (num_classes, 500), 500),
        "head_b": u(ks[9], (num_classes,), 500),
    }


def prepare_params(p):
    """One-time conversion (call OUTSIDE the jitted forward): conv weights to
    matmul form (zero-padded K), fc weights pre-transposed, zero-padded and
    cast to bf16; biases stay f32."""
    oc1, ic1 = p["c1_w"].shape[0], p["c1_w"].shape[1]
    oc2 = p["c2_w"].shape[0]
    k1, k2 = ic1 * 25, oc1 * 25                     # 75, 400
    k1p, k2p = _round_up(k1, 128), _round_up(k2, 128)
    d_in = p["fc1_w"].shape[1]                      # 800
    d_inp = _round_up(d_in, 256)                    # 1024 (full 256-wide MXU K passes)
    n1, n1p = p["fc1_w"].shape[0], _round_up(p["fc1_w"].shape[0], 1024)   # 2000 -> 2048
    n2, n2p = p["fc2_w"].shape[0], _round_up(p["fc2_w"].shape[0], 128)    # 500 -> 512
    nc, ncp = p["head_w"].shape[0], _round_up(p["head_w"].shape[0], 128)  # 10 -> 128

    return {
        "c1_w": jnp.pad(p["c1_w"].reshape(oc1, k1), ((0, 0), (0, k1p - k1))),
        "c1_b": p["c1_b"].reshape(oc1, 1),
        "c2_w": jnp.pad(p["c2_w"].reshape(oc2, k2), ((0, 0), (0, k2p - k2))),
        "c2_b": p["c2_b"].reshape(oc2, 1),
        "fc1_w": jnp.pad(p["fc1_w"].T,
                         ((0, d_inp - d_in), (0, n1p - n1))).astype(jnp.bfloat16),
        "fc1_b": jnp.pad(p["fc1_b"], (0, n1p - n1)).reshape(1, n1p),
        "fc2_w": jnp.pad(p["fc2_w"].T,
                         ((0, n1p - n1), (0, n2p - n2))).astype(jnp.bfloat16),
        "fc2_b": jnp.pad(p["fc2_b"], (0, n2p - n2)).reshape(1, n2p),
        "head_w": jnp.pad(p["head_w"].T,
                          ((0, n2p - n2), (0, ncp - nc))).astype(jnp.bfloat16),
        "head_b": jnp.pad(p["head_b"], (0, ncp - nc)).reshape(1, ncp),
    }


# ----------------------------------------------------------------------------
# Forward pass
# ----------------------------------------------------------------------------
def forward(params, x, num_classes=10):
    n = x.shape[0]
    oc1 = params["c1_b"].shape[0]
    oc2 = params["c2_b"].shape[0]

    # conv1 + ReLU + pool (fused, gridded); output channel-major (OC, Mpad)
    p1, ph1, pw1, m1, tm1 = _conv_pool_patches(x, 5, params["c1_w"].shape[1])
    y1 = conv_pool(params["c1_w"], params["c1_b"], p1, tm1)
    a1 = y1[:, :m1].reshape(oc1, n, ph1, pw1).transpose(1, 0, 2, 3)   # (N, 16, 14, 14)

    # conv2 + ReLU + pool
    p2, ph2, pw2, m2, tm2 = _conv_pool_patches(a1, 5, params["c2_w"].shape[1])
    y2 = conv_pool(params["c2_w"], params["c2_b"], p2, tm2)
    a2 = (y2[:, :m2].reshape(oc2, n, ph2, pw2).transpose(1, 0, 2, 3)
            .reshape(n, -1))                                          # (N, 800) torch order

    # pad contraction to fc1's padded K, cast the matmul operand to bf16
    k_fc1 = params["fc1_w"].shape[0]
    a2p = jnp.pad(a2, ((0, 0), (0, k_fc1 - a2.shape[1]))).astype(jnp.bfloat16)

    h1 = fc_relu(a2p, params["fc1_w"], params["fc1_b"], tn=1024)      # (N, 2048) bf16
    logits = fc2_head(h1, params["fc2_w"], params["fc2_b"],
                      params["head_w"], params["head_b"])             # (N, 128) f32
    return logits[:, :num_classes]


# ----------------------------------------------------------------------------
# Pure-JAX reference (f32, default precision, PyTorch-layout params)
# ----------------------------------------------------------------------------
def ref_forward(params, x):
    def conv(x, w, b):
        y = jax.lax.conv_general_dilated(
            x, w, (1, 1), "VALID", dimension_numbers=("NCHW", "OIHW", "NCHW"))
        return jax.nn.relu(y + b[None, :, None, None])

    def pool(x):
        n, c, h, w = x.shape
        return jnp.max(x.reshape(n, c, h // 2, 2, w // 2, 2), axis=(3, 5))

    out = pool(conv(x, params["c1_w"], params["c1_b"]))
    out = pool(conv(out, params["c2_w"], params["c2_b"]))
    out = out.reshape(out.shape[0], -1)
    out = jax.nn.relu(out @ params["fc1_w"].T + params["fc1_b"])
    out = jax.nn.relu(out @ params["fc2_w"].T + params["fc2_b"])
    return out @ params["head_w"].T + params["head_b"]


if __name__ == "__main__":
    key = jax.random.PRNGKey(0)
    kp, kx = jax.random.split(key)
    params = init_params(kp)                      # in_channels=3, classes=10, dim=800
    kparams = prepare_params(params)              # one-time, outside the jitted forward
    x = jax.random.normal(kx, (2, 3, 32, 32), jnp.float32)

    fwd = jax.jit(functools.partial(forward, num_classes=10))
    y = jax.block_until_ready(fwd(kparams, x))
    assert y.shape == (2, 10), y.shape

    y_ref = jax.block_until_ready(jax.jit(ref_forward)(params, x))
    assert jnp.allclose(y, y_ref, atol=2e-2, rtol=2e-2), (
        float(jnp.max(jnp.abs(y - y_ref))))

    print("KERNEL_OK")
</pallas_src>

<mosaic_0001>
module attributes {stable_mosaic.version = 11 : i64} {
  func.func @_conv_pool_kernel(%arg0: i32, %arg1: memref<16x128xf32, #tpu.memory_space<vmem>>, %arg2: memref<16x1xf32, #tpu.memory_space<vmem>>, %arg3: memref<128x2048xf32, #tpu.memory_space<vmem>>, %arg4: memref<16x512xf32, #tpu.memory_space<vmem>>) attributes {dimension_semantics = [#tpu.dimension_semantics<parallel>], iteration_bounds = array<i64: 1>, scalar_prefetch = 0 : i64, scratch_operands = 0 : i64, tpu.core_type = #tpu.core_type<tc>, window_params = [{pipeline_mode = #tpu.pipeline_mode<synchronous>, transform_indices = @transform_0, window_bounds = array<i64: 16, 128>}, {pipeline_mode = #tpu.pipeline_mode<synchronous>, transform_indices = @transform_1, window_bounds = array<i64: 16, 1>}, {transform_indices = @transform_2, window_bounds = array<i64: 128, 2048>}, {transform_indices = @transform_3, window_bounds = array<i64: 16, 512>}]} {
    %c0 = arith.constant 0 : index
    %c0_0 = arith.constant 0 : index
    %0 = vector.load %arg1[%c0, %c0_0] : memref<16x128xf32, #tpu.memory_space<vmem>>, vector<16x128xf32>
    %c0_1 = arith.constant 0 : index
    %c0_2 = arith.constant 0 : index
    %1 = vector.load %arg3[%c0_1, %c0_2] : memref<128x2048xf32, #tpu.memory_space<vmem>>, vector<128x2048xf32>
    %cst = arith.constant dense<0.000000e+00> : vector<16x2048xf32>
    %2 = tpu.matmul %0, %1, %cst {dimension_numbers = #tpu.dot_dimension_numbers<[1], [0], [0], [1], [0, 0, 1, 1], [], []>} : vector<16x128xf32>, vector<128x2048xf32>, vector<16x2048xf32> -> vector<16x2048xf32>
    %3 = vector.extract_strided_slice %2 {offsets = [0, 0], sizes = [16, 512], strides = [1, 1]} : vector<16x2048xf32> to vector<16x512xf32>
    %4 = vector.extract_strided_slice %2 {offsets = [0, 512], sizes = [16, 512], strides = [1, 1]} : vector<16x2048xf32> to vector<16x512xf32>
    %5 = arith.maximumf %3, %4 : vector<16x512xf32>
    %6 = vector.extract_strided_slice %2 {offsets = [0, 1024], sizes = [16, 512], strides = [1, 1]} : vector<16x2048xf32> to vector<16x512xf32>
    %7 = vector.extract_strided_slice %2 {offsets = [0, 1536], sizes = [16, 512], strides = [1, 1]} : vector<16x2048xf32> to vector<16x512xf32>
    %8 = arith.maximumf %6, %7 : vector<16x512xf32>
    %9 = arith.maximumf %5, %8 : vector<16x512xf32>
    %c0_3 = arith.constant 0 : index
    %c0_4 = arith.constant 0 : index
    %10 = vector.load %arg2[%c0_3, %c0_4] : memref<16x1xf32, #tpu.memory_space<vmem>>, vector<16x1xf32>
    %11 = vector.broadcast %10 : vector<16x1xf32> to vector<16x512xf32>
    %12 = arith.addf %9, %11 : vector<16x512xf32>
    %cst_5 = arith.constant 0.000000e+00 : f32
    %13 = vector.broadcast %cst_5 : f32 to vector<16x512xf32>
    %14 = arith.maximumf %12, %13 : vector<16x512xf32>
    %c0_6 = arith.constant 0 : index
    %c0_7 = arith.constant 0 : index
    %15 = vector.load %arg4[%c0_6, %c0_7] : memref<16x512xf32, #tpu.memory_space<vmem>>, vector<16x512xf32>
    tpu.vector_store %arg4[%c0_6, %c0_7], %14 {strides = array<i32>} : memref<16x512xf32, #tpu.memory_space<vmem>>, vector<16x512xf32>,
    return
  }
  func.func @transform_0(%arg0: i32) -> (i32, i32) {
    %c0_i32 = arith.constant 0 : i32
    %c0_i32_0 = arith.constant 0 : i32
    %c0_i32_1 = arith.constant 0 : i32
    return %c0_i32, %c0_i32_0 : i32, i32
  }
  func.func @transform_1(%arg0: i32) -> (i32, i32) {
    %c0_i32 = arith.constant 0 : i32
    %c0_i32_0 = arith.constant 0 : i32
    %c0_i32_1 = arith.constant 0 : i32
    return %c0_i32, %c0_i32_0 : i32, i32
  }
  func.func @transform_2(%arg0: i32) -> (i32, i32) {
    %c0_i32 = arith.constant 0 : i32
    %c0_i32_0 = arith.constant 0 : i32
    return %c0_i32, %arg0 : i32, i32
  }
  func.func @transform_3(%arg0: i32) -> (i32, i32) {
    %c0_i32 = arith.constant 0 : i32
    %c0_i32_0 = arith.constant 0 : i32
    return %c0_i32, %arg0 : i32, i32
  }
}

module attributes {stable_mosaic.version = 11 : i64} {
  func.func @_conv_pool_kernel(%arg0: i32, %arg1: memref<32x512xf32, #tpu.memory_space<vmem>>, %arg2: memref<32x1xf32, #tpu.memory_space<vmem>>, %arg3: memref<512x512xf32, #tpu.memory_space<vmem>>, %arg4: memref<32x128xf32, #tpu.memory_space<vmem>>) attributes {dimension_semantics = [#tpu.dimension_semantics<parallel>], iteration_bounds = array<i64: 1>, scalar_prefetch = 0 : i64, scratch_operands = 0 : i64, tpu.core_type = #tpu.core_type<tc>, window_params = [{pipeline_mode = #tpu.pipeline_mode<synchronous>, transform_indices = @transform_0, window_bounds = array<i64: 32, 512>}, {pipeline_mode = #tpu.pipeline_mode<synchronous>, transform_indices = @transform_1, window_bounds = array<i64: 32, 1>}, {transform_indices = @transform_2, window_bounds = array<i64: 512, 512>}, {transform_indices = @transform_3, window_bounds = array<i64: 32, 128>}]} {
    %c0 = arith.constant 0 : index
    %c0_0 = arith.constant 0 : index
    %0 = vector.load %arg1[%c0, %c0_0] : memref<32x512xf32, #tpu.memory_space<vmem>>, vector<32x512xf32>
    %c0_1 = arith.constant 0 : index
    %c0_2 = arith.constant 0 : index
    %1 = vector.load %arg3[%c0_1, %c0_2] : memref<512x512xf32, #tpu.memory_space<vmem>>, vector<512x512xf32>
    %cst = arith.constant dense<0.000000e+00> : vector<32x512xf32>
    %2 = tpu.matmul %0, %1, %cst {dimension_numbers = #tpu.dot_dimension_numbers<[1], [0], [0], [1], [0, 0, 1, 1], [], []>} : vector<32x512xf32>, vector<512x512xf32>, vector<32x512xf32> -> vector<32x512xf32>
    %3 = vector.extract_strided_slice %2 {offsets = [0, 0], sizes = [32, 128], strides = [1, 1]} : vector<32x512xf32> to vector<32x128xf32>
    %4 = vector.extract_strided_slice %2 {offsets = [0, 128], sizes = [32, 128], strides = [1, 1]} : vector<32x512xf32> to vector<32x128xf32>
    %5 = arith.maximumf %3, %4 : vector<32x128xf32>
    %6 = vector.extract_strided_slice %2 {offsets = [0, 256], sizes = [32, 128], strides = [1, 1]} : vector<32x512xf32> to vector<32x128xf32>
    %7 = vector.extract_strided_slice %2 {offsets = [0, 384], sizes = [32, 128], strides = [1, 1]} : vector<32x512xf32> to vector<32x128xf32>
    %8 = arith.maximumf %6, %7 : vector<32x128xf32>
    %9 = arith.maximumf %5, %8 : vector<32x128xf32>
    %c0_3 = arith.constant 0 : index
    %c0_4 = arith.constant 0 : index
    %10 = vector.load %arg2[%c0_3, %c0_4] : memref<32x1xf32, #tpu.memory_space<vmem>>, vector<32x1xf32>
    %11 = vector.broadcast %10 : vector<32x1xf32> to vector<32x128xf32>
    %12 = arith.addf %9, %11 : vector<32x128xf32>
    %cst_5 = arith.constant 0.000000e+00 : f32
    %13 = vector.broadcast %cst_5 : f32 to vector<32x128xf32>
    %14 = arith.maximumf %12, %13 : vector<32x128xf32>
    %c0_6 = arith.constant 0 : index
    %c0_7 = arith.constant 0 : index
    %15 = vector.load %arg4[%c0_6, %c0_7] : memref<32x128xf32, #tpu.memory_space<vmem>>, vector<32x128xf32>
    tpu.vector_store %arg4[%c0_6, %c0_7], %14 {strides = array<i32>} : memref<32x128xf32, #tpu.memory_space<vmem>>, vector<32x128xf32>,
    return
  }
  func.func @transform_0(%arg0: i32) -> (i32, i32) {
    %c0_i32 = arith.constant 0 : i32
    %c0_i32_0 = arith.constant 0 : i32
    %c0_i32_1 = arith.constant 0 : i32
    return %c0_i32, %c0_i32_0 : i32, i32
  }
  func.func @transform_1(%arg0: i32) -> (i32, i32) {
    %c0_i32 = arith.constant 0 : i32
    %c0_i32_0 = arith.constant 0 : i32
    %c0_i32_1 = arith.constant 0 : i32
    return %c0_i32, %c0_i32_0 : i32, i32
  }
  func.func @transform_2(%arg0: i32) -> (i32, i32) {
    %c0_i32 = arith.constant 0 : i32
    %c0_i32_0 = arith.constant 0 : i32
    return %c0_i32, %arg0 : i32, i32
  }
  func.func @transform_3(%arg0: i32) -> (i32, i32) {
    %c0_i32 = arith.constant 0 : i32
    %c0_i32_0 = arith.constant 0 : i32
    return %c0_i32, %arg0 : i32, i32
  }
}

module attributes {stable_mosaic.version = 11 : i64} {
  func.func @_fc_relu_kernel(%arg0: i32, %arg1: memref<2x1024xbf16, #tpu.memory_space<vmem>>, %arg2: memref<1024x1024xbf16, #tpu.memory_space<vmem>>, %arg3: memref<1x1024xf32, #tpu.memory_space<vmem>>, %arg4: memref<2x1024xbf16, #tpu.memory_space<vmem>>) attributes {dimension_semantics = [#tpu.dimension_semantics<parallel>], iteration_bounds = array<i64: 2>, scalar_prefetch = 0 : i64, scratch_operands = 0 : i64, tpu.core_type = #tpu.core_type<tc>, window_params = [{pipeline_mode = #tpu.pipeline_mode<synchronous>, transform_indices = @transform_0, window_bounds = array<i64: 2, 1024>}, {transform_indices = @transform_1, window_bounds = array<i64: 1024, 1024>}, {transform_indices = @transform_2, window_bounds = array<i64: 1, 1024>}, {transform_indices = @transform_3, window_bounds = array<i64: 2, 1024>}]} {
    %c0 = arith.constant 0 : index
    %c0_0 = arith.constant 0 : index
    %0 = vector.load %arg1[%c0, %c0_0] : memref<2x1024xbf16, #tpu.memory_space<vmem>>, vector<2x1024xbf16>
    %c0_1 = arith.constant 0 : index
    %c0_2 = arith.constant 0 : index
    %1 = vector.load %arg2[%c0_1, %c0_2] : memref<1024x1024xbf16, #tpu.memory_space<vmem>>, vector<1024x1024xbf16>
    %cst = arith.constant dense<0.000000e+00> : vector<2x1024xf32>
    %2 = tpu.matmul %0, %1, %cst {dimension_numbers = #tpu.dot_dimension_numbers<[1], [0], [0], [1], [0, 0, 1, 1], [], []>} : vector<2x1024xbf16>, vector<1024x1024xbf16>, vector<2x1024xf32> -> vector<2x1024xf32>
    %c0_3 = arith.constant 0 : index
    %c0_4 = arith.constant 0 : index
    %3 = vector.load %arg3[%c0_3, %c0_4] : memref<1x1024xf32, #tpu.memory_space<vmem>>, vector<1x1024xf32>
    %4 = vector.broadcast %3 : vector<1x1024xf32> to vector<2x1024xf32>
    %5 = arith.addf %2, %4 : vector<2x1024xf32>
    %cst_5 = arith.constant 0.000000e+00 : f32
    %6 = vector.broadcast %cst_5 : f32 to vector<2x1024xf32>
    %7 = arith.maximumf %5, %6 : vector<2x1024xf32>
    %8 = arith.truncf %7 : vector<2x1024xf32> to vector<2x1024xbf16>
    %c0_6 = arith.constant 0 : index
    %c0_7 = arith.constant 0 : index
    %9 = vector.load %arg4[%c0_6, %c0_7] : memref<2x1024xbf16, #tpu.memory_space<vmem>>, vector<2x1024xbf16>
    tpu.vector_store %arg4[%c0_6, %c0_7], %8 {strides = array<i32>} : memref<2x1024xbf16, #tpu.memory_space<vmem>>, vector<2x1024xbf16>,
    return
  }
  func.func @transform_0(%arg0: i32) -> (i32, i32) {
    %c0_i32 = arith.constant 0 : i32
    %c0_i32_0 = arith.constant 0 : i32
    %c0_i32_1 = arith.constant 0 : i32
    return %c0_i32, %c0_i32_0 : i32, i32
  }
  func.func @transform_1(%arg0: i32) -> (i32, i32) {
    %c0_i32 = arith.constant 0 : i32
    %c0_i32_0 = arith.constant 0 : i32
    return %c0_i32, %arg0 : i32, i32
  }
  func.func @transform_2(%arg0: i32) -> (i32, i32) {
    %c0_i32 = arith.constant 0 : i32
    %c0_i32_0 = arith.constant 0 : i32
    return %c0_i32, %arg0 : i32, i32
  }
  func.func @transform_3(%arg0: i32) -> (i32, i32) {
    %c0_i32 = arith.constant 0 : i32
    %c0_i32_0 = arith.constant 0 : i32
    return %c0_i32, %arg0 : i32, i32
  }
}

module attributes {stable_mosaic.version = 11 : i64} {
  func.func @_fc2_head_kernel(%arg0: memref<2x2048xbf16, #tpu.memory_space<vmem>>, %arg1: memref<2048x512xbf16, #tpu.memory_space<vmem>>, %arg2: memref<1x512xf32, #tpu.memory_space<vmem>>, %arg3: memref<512x128xbf16, #tpu.memory_space<vmem>>, %arg4: memref<1x128xf32, #tpu.memory_space<vmem>>, %arg5: memref<2x128xf32, #tpu.memory_space<vmem>>) attributes {dimension_semantics = [], scalar_prefetch = 0 : i64, scratch_operands = 0 : i64, tpu.core_type = #tpu.core_type<tc>} {
    %c0 = arith.constant 0 : index
    %c0_0 = arith.constant 0 : index
    %0 = vector.load %arg0[%c0, %c0_0] : memref<2x2048xbf16, #tpu.memory_space<vmem>>, vector<2x2048xbf16>
    %c0_1 = arith.constant 0 : index
    %c0_2 = arith.constant 0 : index
    %1 = vector.load %arg1[%c0_1, %c0_2] : memref<2048x512xbf16, #tpu.memory_space<vmem>>, vector<2048x512xbf16>
    %cst = arith.constant dense<0.000000e+00> : vector<2x512xf32>
    %2 = tpu.matmul %0, %1, %cst {dimension_numbers = #tpu.dot_dimension_numbers<[1], [0], [0], [1], [0, 0, 1, 1], [], []>} : vector<2x2048xbf16>, vector<2048x512xbf16>, vector<2x512xf32> -> vector<2x512xf32>
    %c0_3 = arith.constant 0 : index
    %c0_4 = arith.constant 0 : index
    %3 = vector.load %arg2[%c0_3, %c0_4] : memref<1x512xf32, #tpu.memory_space<vmem>>, vector<1x512xf32>
    %4 = vector.broadcast %3 : vector<1x512xf32> to vector<2x512xf32>
    %5 = arith.addf %2, %4 : vector<2x512xf32>
    %cst_5 = arith.constant 0.000000e+00 : f32
    %6 = vector.broadcast %cst_5 : f32 to vector<2x512xf32>
    %7 = arith.maximumf %5, %6 : vector<2x512xf32>
    %8 = arith.truncf %7 : vector<2x512xf32> to vector<2x512xbf16>
    %c0_6 = arith.constant 0 : index
    %c0_7 = arith.constant 0 : index
    %9 = vector.load %arg3[%c0_6, %c0_7] : memref<512x128xbf16, #tpu.memory_space<vmem>>, vector<512x128xbf16>
    %cst_8 = arith.constant dense<0.000000e+00> : vector<2x128xf32>
    %10 = tpu.matmul %8, %9, %cst_8 {dimension_numbers = #tpu.dot_dimension_numbers<[1], [0], [0], [1], [0, 0, 1, 1], [], []>} : vector<2x512xbf16>, vector<512x128xbf16>, vector<2x128xf32> -> vector<2x128xf32>
    %c0_9 = arith.constant 0 : index
    %c0_10 = arith.constant 0 : index
    %11 = vector.load %arg4[%c0_9, %c0_10] : memref<1x128xf32, #tpu.memory_space<vmem>>, vector<1x128xf32>
    %12 = vector.broadcast %11 : vector<1x128xf32> to vector<2x128xf32>
    %13 = arith.addf %10, %12 : vector<2x128xf32>
    %c0_11 = arith.constant 0 : index
    %c0_12 = arith.constant 0 : index
    %14 = vector.load %arg5[%c0_11, %c0_12] : memref<2x128xf32, #tpu.memory_space<vmem>>, vector<2x128xf32>
    tpu.vector_store %arg5[%c0_11, %c0_12], %13 {strides = array<i32>} : memref<2x128xf32, #tpu.memory_space<vmem>>, vector<2x128xf32>,
    return
  }
}

</mosaic_0001>

<bundles_post_ra>
// kernel: forward.4
= control target key start
LH: loop header
LB: loop body
LE: loop exit
PB: predicated region body
PF: predicated region fallthrough
CT: control target
= control target key end

     0   :  { %s1573_s2 = inlined_call_operand.vmem [shape: f32[128,2048], index: 2, kind: input, shape index: {}]   ;;  %s1574_s0 = inlined_call_operand.vmem [shape: f32[16,128], index: 0, kind: input, shape index: {}]   ;;  %s1575_s1 = inlined_call_operand.vmem [shape: f32[16,1], index: 1, kind: input, shape index: {}]   ;;  %s1576_s3 = inlined_call_operand.vmem [shape: f32[16,512], index: 3, kind: output, shape index: {}]  }
   0x1   :  { %v256_v0 = vld [vmem:[%s1573_s2 + $0x780] sm:$0xff]  ;;  %v257_v1 = vld [vmem:[%s1573_s2 + $0x788] sm:$0xff]  ;;  %v258_v2 = vld [vmem:[%s1573_s2 + $0x790] sm:$0xff] }
   0x2   :  { %272 = vmatpush.msra.mxu0 %v256_v0  ;;  %295 = vmatpush.msra.mxu1 %v257_v1  ;;  %v259_v3 = vld [vmem:[%s1573_s2 + $0x798] sm:$0xff]  ;;  %v240_v4 = vld [vmem:[%s1573_s2 + $0x700] sm:$0xff]  ;;  %v241_v5 = vld [vmem:[%s1573_s2 + $0x708] sm:$0xff] }
   0x3   :  { %318 = vmatpush.msra.mxu2 %v258_v2  ;;  %341 = vmatpush.msra.mxu3 %v259_v3  ;;  %v242_v6 = vld [vmem:[%s1573_s2 + $0x710] sm:$0xff]  ;;  %v243_v7 = vld [vmem:[%s1573_s2 + $0x718] sm:$0xff]  ;;  %v224_v8 = vld [vmem:[%s1573_s2 + $0x680] sm:$0xff] }
   0x4   :  { %273 = vmatpush.msra.mxu0 %v240_v4  ;;  %296 = vmatpush.msra.mxu1 %v241_v5  ;;  %v225_v9 = vld [vmem:[%s1573_s2 + $0x688] sm:$0xff]  ;;  %v226_v10 = vld [vmem:[%s1573_s2 + $0x690] sm:$0xff]  ;;  %v227_v11 = vld [vmem:[%s1573_s2 + $0x698] sm:$0xff] }
   0x5   :  { %319 = vmatpush.msra.mxu2 %v242_v6  ;;  %342 = vmatpush.msra.mxu3 %v243_v7  ;;  %v208_v12 = vld [vmem:[%s1573_s2 + $0x600] sm:$0xff]  ;;  %v209_v13 = vld [vmem:[%s1573_s2 + $0x608] sm:$0xff]  ;;  %v210_v14 = vld [vmem:[%s1573_s2 + $0x610] sm:$0xff] }
   0x6   :  { %274 = vmatpush.msra.mxu0 %v224_v8  ;;  %297 = vmatpush.msra.mxu1 %v225_v9  ;;  %v211_v15 = vld [vmem:[%s1573_s2 + $0x618] sm:$0xff]  ;;  %v192_v16 = vld [vmem:[%s1573_s2 + $0x580] sm:$0xff]  ;;  %v193_v17 = vld [vmem:[%s1573_s2 + $0x588] sm:$0xff] }
   0x7   :  { %320 = vmatpush.msra.mxu2 %v226_v10  ;;  %343 = vmatpush.msra.mxu3 %v227_v11  ;;  %v194_v18 = vld [vmem:[%s1573_s2 + $0x590] sm:$0xff]  ;;  %v195_v19 = vld [vmem:[%s1573_s2 + $0x598] sm:$0xff]  ;;  %v176_v20 = vld [vmem:[%s1573_s2 + $0x500] sm:$0xff] }
   0x8   :  { %275 = vmatpush.msra.mxu0 %v208_v12  ;;  %298 = vmatpush.msra.mxu1 %v209_v13  ;;  %v177_v21 = vld [vmem:[%s1573_s2 + $0x508] sm:$0xff]  ;;  %v178_v22 = vld [vmem:[%s1573_s2 + $0x510] sm:$0xff]  ;;  %v179_v23 = vld [vmem:[%s1573_s2 + $0x518] sm:$0xff] }
   0x9   :  { %321 = vmatpush.msra.mxu2 %v210_v14  ;;  %344 = vmatpush.msra.mxu3 %v211_v15  ;;  %v160_v24 = vld [vmem:[%s1573_s2 + $0x480] sm:$0xff]  ;;  %v161_v25 = vld [vmem:[%s1573_s2 + $0x488] sm:$0xff]  ;;  %v162_v26 = vld [vmem:[%s1573_s2 + $0x490] sm:$0xff] }
   0xa   :  { %276 = vmatpush.msra.mxu0 %v192_v16  ;;  %299 = vmatpush.msra.mxu1 %v193_v17  ;;  %v163_v27 = vld [vmem:[%s1573_s2 + $0x498] sm:$0xff]  ;;  %v144_v28 = vld [vmem:[%s1573_s2 + $0x400] sm:$0xff]  ;;  %v145_v29 = vld [vmem:[%s1573_s2 + $0x408] sm:$0xff] }
   0xb   :  { %322 = vmatpush.msra.mxu2 %v194_v18  ;;  %345 = vmatpush.msra.mxu3 %v195_v19  ;;  %v146_v30 = vld [vmem:[%s1573_s2 + $0x410] sm:$0xff]  ;;  %v147_v31 = vld [vmem:[%s1573_s2 + $0x418] sm:$0xff]  ;;  %v128_v32 = vld [vmem:[%s1573_s2 + $0x380] sm:$0xff] }
   0xc   :  { %277 = vmatpush.msra.mxu0 %v176_v20  ;;  %300 = vmatpush.msra.mxu1 %v177_v21  ;;  %v129_v33 = vld [vmem:[%s1573_s2 + $0x388] sm:$0xff]  ;;  %v130_v34 = vld [vmem:[%s1573_s2 + $0x390] sm:$0xff]  ;;  %v131_v35 = vld [vmem:[%s1573_s2 + $0x398] sm:$0xff] }
   0xd   :  { %323 = vmatpush.msra.mxu2 %v178_v22  ;;  %346 = vmatpush.msra.mxu3 %v179_v23  ;;  %v112_v36 = vld [vmem:[%s1573_s2 + $0x300] sm:$0xff]  ;;  %v113_v37 = vld [vmem:[%s1573_s2 + $0x308] sm:$0xff]  ;;  %v114_v38 = vld [vmem:[%s1573_s2 + $0x310] sm:$0xff] }
   0xe   :  { %278 = vmatpush.msra.mxu0 %v160_v24  ;;  %301 = vmatpush.msra.mxu1 %v161_v25  ;;  %v115_v39 = vld [vmem:[%s1573_s2 + $0x318] sm:$0xff]  ;;  %v96_v40 = vld [vmem:[%s1573_s2 + $0x280] sm:$0xff]  ;;  %v97_v41 = vld [vmem:[%s1573_s2 + $0x288] sm:$0xff] }
   0xf   :  { %324 = vmatpush.msra.mxu2 %v162_v26  ;;  %347 = vmatpush.msra.mxu3 %v163_v27  ;;  %v98_v42 = vld [vmem:[%s1573_s2 + $0x290] sm:$0xff]  ;;  %v99_v43 = vld [vmem:[%s1573_s2 + $0x298] sm:$0xff]  ;;  %v80_v44 = vld [vmem:[%s1573_s2 + $0x200] sm:$0xff] }
  0x10   :  { %279 = vmatpush.msra.mxu0 %v144_v28  ;;  %302 = vmatpush.msra.mxu1 %v145_v29  ;;  %v81_v45 = vld [vmem:[%s1573_s2 + $0x208] sm:$0xff]  ;;  %v82_v46 = vld [vmem:[%s1573_s2 + $0x210] sm:$0xff]  ;;  %v83_v47 = vld [vmem:[%s1573_s2 + $0x218] sm:$0xff] }
  0x11   :  { %325 = vmatpush.msra.mxu2 %v146_v30  ;;  %348 = vmatpush.msra.mxu3 %v147_v31  ;;  %v64_v48 = vld [vmem:[%s1573_s2 + $0x180] sm:$0xff]  ;;  %v65_v49 = vld [vmem:[%s1573_s2 + $0x188] sm:$0xff]  ;;  %v66_v50 = vld [vmem:[%s1573_s2 + $0x190] sm:$0xff] }
  0x12   :  { %280 = vmatpush.msra.mxu0 %v128_v32  ;;  %303 = vmatpush.msra.mxu1 %v129_v33  ;;  %v67_v51 = vld [vmem:[%s1573_s2 + $0x198] sm:$0xff]  ;;  %v48_v52 = vld [vmem:[%s1573_s2 + $0x100] sm:$0xff]  ;;  %v49_v53 = vld [vmem:[%s1573_s2 + $0x108] sm:$0xff] }
  0x13   :  { %326 = vmatpush.msra.mxu2 %v130_v34  ;;  %349 = vmatpush.msra.mxu3 %v131_v35  ;;  %v50_v54 = vld [vmem:[%s1573_s2 + $0x110] sm:$0xff]  ;;  %v51_v55 = vld [vmem:[%s1573_s2 + $0x118] sm:$0xff]  ;;  %v32_v56 = vld [vmem:[%s1573_s2 + $0x80] sm:$0xff] }
  0x14   :  { %281 = vmatpush.msra.mxu0 %v112_v36  ;;  %304 = vmatpush.msra.mxu1 %v113_v37  ;;  %v33_v57 = vld [vmem:[%s1573_s2 + $0x88] sm:$0xff]  ;;  %v34_v58 = vld [vmem:[%s1573_s2 + $0x90] sm:$0xff]  ;;  %v35_v59 = vld [vmem:[%s1573_s2 + $0x98] sm:$0xff] }
  0x15   :  { %327 = vmatpush.msra.mxu2 %v114_v38  ;;  %350 = vmatpush.msra.mxu3 %v115_v39  ;;  %v16_v60 = vld [vmem:[%s1573_s2] sm:$0xff]  ;;  %v17_v61 = vld [vmem:[%s1573_s2 + $0x8] sm:$0xff]  ;;  %v18_v62 = vld [vmem:[%s1573_s2 + $0x10] sm:$0xff] }
  0x16   :  { %282 = vmatpush.msra.mxu0 %v96_v40  ;;  %305 = vmatpush.msra.mxu1 %v97_v41  ;;  %v19_v63 = vld [vmem:[%s1573_s2 + $0x18] sm:$0xff]  ;;  %v260_v0 = vld [vmem:[%s1573_s2 + $0x7a0] sm:$0xff]  ;;  %v261_v1 = vld [vmem:[%s1573_s2 + $0x7a8] sm:$0xff] }
  0x17   :  { %328 = vmatpush.msra.mxu2 %v98_v42  ;;  %351 = vmatpush.msra.mxu3 %v99_v43  ;;  %v262_v2 = vld [vmem:[%s1573_s2 + $0x7b0] sm:$0xff]  ;;  %v263_v3 = vld [vmem:[%s1573_s2 + $0x7b8] sm:$0xff]  ;;  %v244_v4 = vld [vmem:[%s1573_s2 + $0x720] sm:$0xff] }
  0x18   :  { %283 = vmatpush.msra.mxu0 %v80_v44  ;;  %306 = vmatpush.msra.mxu1 %v81_v45  ;;  %v245_v5 = vld [vmem:[%s1573_s2 + $0x728] sm:$0xff]  ;;  %v246_v6 = vld [vmem:[%s1573_s2 + $0x730] sm:$0xff]  ;;  %v247_v7 = vld [vmem:[%s1573_s2 + $0x738] sm:$0xff] }
  0x19   :  { %329 = vmatpush.msra.mxu2 %v82_v46  ;;  %352 = vmatpush.msra.mxu3 %v83_v47  ;;  %v228_v8 = vld [vmem:[%s1573_s2 + $0x6a0] sm:$0xff]  ;;  %v229_v9 = vld [vmem:[%s1573_s2 + $0x6a8] sm:$0xff]  ;;  %v230_v10 = vld [vmem:[%s1573_s2 + $0x6b0] sm:$0xff] }
  0x1a   :  { %284 = vmatpush.msra.mxu0 %v64_v48  ;;  %307 = vmatpush.msra.mxu1 %v65_v49  ;;  %v231_v11 = vld [vmem:[%s1573_s2 + $0x6b8] sm:$0xff]  ;;  %v212_v12 = vld [vmem:[%s1573_s2 + $0x620] sm:$0xff]  ;;  %v213_v13 = vld [vmem:[%s1573_s2 + $0x628] sm:$0xff] }
  0x1b   :  { %330 = vmatpush.msra.mxu2 %v66_v50  ;;  %353 = vmatpush.msra.mxu3 %v67_v51  ;;  %v214_v14 = vld [vmem:[%s1573_s2 + $0x630] sm:$0xff]  ;;  %v215_v15 = vld [vmem:[%s1573_s2 + $0x638] sm:$0xff]  ;;  %v196_v16 = vld [vmem:[%s1573_s2 + $0x5a0] sm:$0xff] }
  0x1c   :  { %285 = vmatpush.msra.mxu0 %v48_v52  ;;  %308 = vmatpush.msra.mxu1 %v49_v53  ;;  %v197_v17 = vld [vmem:[%s1573_s2 + $0x5a8] sm:$0xff]  ;;  %v198_v18 = vld [vmem:[%s1573_s2 + $0x5b0] sm:$0xff]  ;;  %v199_v19 = vld [vmem:[%s1573_s2 + $0x5b8] sm:$0xff] }
  0x1d   :  { %331 = vmatpush.msra.mxu2 %v50_v54  ;;  %354 = vmatpush.msra.mxu3 %v51_v55  ;;  %v180_v20 = vld [vmem:[%s1573_s2 + $0x520] sm:$0xff]  ;;  %v181_v21 = vld [vmem:[%s1573_s2 + $0x528] sm:$0xff]  ;;  %v182_v22 = vld [vmem:[%s1573_s2 + $0x530] sm:$0xff] }
  0x1e   :  { %286 = vmatpush.msra.mxu0 %v32_v56  ;;  %309 = vmatpush.msra.mxu1 %v33_v57  ;;  %v183_v23 = vld [vmem:[%s1573_s2 + $0x538] sm:$0xff]  ;;  %v164_v24 = vld [vmem:[%s1573_s2 + $0x4a0] sm:$0xff]  ;;  %v165_v25 = vld [vmem:[%s1573_s2 + $0x4a8] sm:$0xff] }
  0x1f   :  { %332 = vmatpush.msra.mxu2 %v34_v58  ;;  %355 = vmatpush.msra.mxu3 %v35_v59  ;;  %v166_v26 = vld [vmem:[%s1573_s2 + $0x4b0] sm:$0xff]  ;;  %v167_v27 = vld [vmem:[%s1573_s2 + $0x4b8] sm:$0xff]  ;;  %v148_v28 = vld [vmem:[%s1573_s2 + $0x420] sm:$0xff] }
  0x20   :  { %287 = vmatpush.msra.mxu0 %v16_v60  ;;  %310 = vmatpush.msra.mxu1 %v17_v61  ;;  %v149_v29 = vld [vmem:[%s1573_s2 + $0x428] sm:$0xff]  ;;  %v150_v30 = vld [vmem:[%s1573_s2 + $0x430] sm:$0xff]  ;;  %v151_v31 = vld [vmem:[%s1573_s2 + $0x438] sm:$0xff] }
  0x21   :  { %333 = vmatpush.msra.mxu2 %v18_v62  ;;  %356 = vmatpush.msra.mxu3 %v19_v63  ;;  %v1018_v32 = vld [vmem:[%s1574_s0] sm:$0xff]  ;;  %v133_v34 = vld [vmem:[%s1573_s2 + $0x3a8] sm:$0xff]  ;;  %v134_v35 = vld [vmem:[%s1573_s2 + $0x3b0] sm:$0xff] }
  0x22   :  { %364 = vmatpush.msrb.mxu0 %v260_v0  ;;  %387 = vmatpush.msrb.mxu1 %v261_v1  ;;  %v132_v33 = vld [vmem:[%s1573_s2 + $0x3a0] sm:$0xff]  ;;  %v135_v36 = vld [vmem:[%s1573_s2 + $0x3b8] sm:$0xff]  ;;  %v117_v38 = vld [vmem:[%s1573_s2 + $0x328] sm:$0xff] }
  0x23   :  { %410 = vmatpush.msrb.mxu2 %v262_v2  ;;  %433 = vmatpush.msrb.mxu3 %v263_v3  ;;  %v116_v37 = vld [vmem:[%s1573_s2 + $0x320] sm:$0xff]  ;;  %v118_v39 = vld [vmem:[%s1573_s2 + $0x330] sm:$0xff]  ;;  %v119_v40 = vld [vmem:[%s1573_s2 + $0x338] sm:$0xff] }
  0x24   :  { %365 = vmatpush.msrb.mxu0 %v244_v4  ;;  %388 = vmatpush.msrb.mxu1 %v245_v5  ;;  %v100_v41 = vld [vmem:[%s1573_s2 + $0x2a0] sm:$0xff]  ;;  %v101_v42 = vld [vmem:[%s1573_s2 + $0x2a8] sm:$0xff]  ;;  %v102_v43 = vld [vmem:[%s1573_s2 + $0x2b0] sm:$0xff] }
  0x25   :  { %411 = vmatpush.msrb.mxu2 %v246_v6  ;;  %434 = vmatpush.msrb.mxu3 %v247_v7  ;;  %v103_v44 = vld [vmem:[%s1573_s2 + $0x2b8] sm:$0xff]  ;;  %v84_v45 = vld [vmem:[%s1573_s2 + $0x220] sm:$0xff]  ;;  %v85_v46 = vld [vmem:[%s1573_s2 + $0x228] sm:$0xff] }
  0x26   :  { %366 = vmatpush.msrb.mxu0 %v228_v8  ;;  %389 = vmatpush.msrb.mxu1 %v229_v9  ;;  %v86_v47 = vld [vmem:[%s1573_s2 + $0x230] sm:$0xff]  ;;  %v87_v48 = vld [vmem:[%s1573_s2 + $0x238] sm:$0xff]  ;;  %v1075_v49 = vld [vmem:[%s1574_s0 + $0x8] sm:$0xff] }
  0x27   :  { %412 = vmatpush.msrb.mxu2 %v230_v10  ;;  %435 = vmatpush.msrb.mxu3 %v231_v11  ;;  %v68_v50 = vld [vmem:[%s1573_s2 + $0x1a0] sm:$0xff]  ;;  %v69_v51 = vld [vmem:[%s1573_s2 + $0x1a8] sm:$0xff]  ;;  %v70_v52 = vld [vmem:[%s1573_s2 + $0x1b0] sm:$0xff] }
  0x28   :  { %367 = vmatpush.msrb.mxu0 %v212_v12  ;;  %390 = vmatpush.msrb.mxu1 %v213_v13  ;;  %v71_v53 = vld [vmem:[%s1573_s2 + $0x1b8] sm:$0xff]  ;;  %v52_v54 = vld [vmem:[%s1573_s2 + $0x120] sm:$0xff]  ;;  %v53_v55 = vld [vmem:[%s1573_s2 + $0x128] sm:$0xff] }
  0x29   :  { %413 = vmatpush.msrb.mxu2 %v214_v14  ;;  %436 = vmatpush.msrb.mxu3 %v215_v15  ;;  %v54_v56 = vld [vmem:[%s1573_s2 + $0x130] sm:$0xff]  ;;  %v55_v57 = vld [vmem:[%s1573_s2 + $0x138] sm:$0xff]  ;;  %v36_v58 = vld [vmem:[%s1573_s2 + $0xa0] sm:$0xff] }
  0x2a   :  { %368 = vmatpush.msrb.mxu0 %v196_v16  ;;  %391 = vmatpush.msrb.mxu1 %v197_v17  ;;  %v37_v59 = vld [vmem:[%s1573_s2 + $0xa8] sm:$0xff]  ;;  %v38_v60 = vld [vmem:[%s1573_s2 + $0xb0] sm:$0xff]  ;;  %v39_v61 = vld [vmem:[%s1573_s2 + $0xb8] sm:$0xff] }
  0x2b   :  { %414 = vmatpush.msrb.mxu2 %v198_v18  ;;  %437 = vmatpush.msrb.mxu3 %v199_v19  ;;  %v20_v62 = vld [vmem:[%s1573_s2 + $0x20] sm:$0xff]  ;;  %v21_v63 = vld [vmem:[%s1573_s2 + $0x28] sm:$0xff]  ;;  %v22_v0 = vld [vmem:[%s1573_s2 + $0x30] sm:$0xff] }
  0x2c   :  { %369 = vmatpush.msrb.mxu0 %v180_v20  ;;  %392 = vmatpush.msrb.mxu1 %v181_v21  ;;  %v23_v1 = vld [vmem:[%s1573_s2 + $0x38] sm:$0xff]  ;;  %v264_v2 = vld [vmem:[%s1573_s2 + $0x7c0] sm:$0xff]  ;;  %v265_v3 = vld [vmem:[%s1573_s2 + $0x7c8] sm:$0xff] }
  0x2d   :  { %415 = vmatpush.msrb.mxu2 %v182_v22  ;;  %438 = vmatpush.msrb.mxu3 %v183_v23  ;;  %v266_v4 = vld [vmem:[%s1573_s2 + $0x7d0] sm:$0xff]  ;;  %v267_v5 = vld [vmem:[%s1573_s2 + $0x7d8] sm:$0xff]  ;;  %v248_v6 = vld [vmem:[%s1573_s2 + $0x740] sm:$0xff] }
  0x2e   :  { %370 = vmatpush.msrb.mxu0 %v164_v24  ;;  %393 = vmatpush.msrb.mxu1 %v165_v25  ;;  %v249_v7 = vld [vmem:[%s1573_s2 + $0x748] sm:$0xff]  ;;  %v250_v8 = vld [vmem:[%s1573_s2 + $0x750] sm:$0xff]  ;;  %v251_v9 = vld [vmem:[%s1573_s2 + $0x758] sm:$0xff] }
  0x2f   :  { %416 = vmatpush.msrb.mxu2 %v166_v26  ;;  %439 = vmatpush.msrb.mxu3 %v167_v27  ;;  %v232_v10 = vld [vmem:[%s1573_s2 + $0x6c0] sm:$0xff]  ;;  %v233_v11 = vld [vmem:[%s1573_s2 + $0x6c8] sm:$0xff]  ;;  %v234_v12 = vld [vmem:[%s1573_s2 + $0x6d0] sm:$0xff] }
  0x30   :  { %371 = vmatpush.msrb.mxu0 %v148_v28  ;;  %394 = vmatpush.msrb.mxu1 %v149_v29  ;;  %v235_v13 = vld [vmem:[%s1573_s2 + $0x6d8] sm:$0xff]  ;;  %v216_v14 = vld [vmem:[%s1573_s2 + $0x640] sm:$0xff]  ;;  %v217_v15 = vld [vmem:[%s1573_s2 + $0x648] sm:$0xff] }
  0x31   :  { %417 = vmatpush.msrb.mxu2 %v150_v30  ;;  %440 = vmatpush.msrb.mxu3 %v151_v31  ;;  %v218_v16 = vld [vmem:[%s1573_s2 + $0x650] sm:$0xff]  ;;  %v219_v17 = vld [vmem:[%s1573_s2 + $0x658] sm:$0xff]  ;;  %v200_v18 = vld [vmem:[%s1573_s2 + $0x5c0] sm:$0xff] }
  0x32   :  { %334 = vmatmul.f32.vlgmr.msra.gmra.mxu2 %v1018_v32  ;;  %357 = vmatmul.f32.vlgmr.msra.gmra.mxu3 %v1018_v32  ;;  %v201_v19 = vld [vmem:[%s1573_s2 + $0x5c8] sm:$0xff]  ;;  %v202_v20 = vld [vmem:[%s1573_s2 + $0x5d0] sm:$0xff]  ;;  %v203_v21 = vld [vmem:[%s1573_s2 + $0x5d8] sm:$0xff] }
  0x33   :  { %372 = vmatpush.msrb.mxu0 %v132_v33  ;;  %395 = vmatpush.msrb.mxu1 %v133_v34  ;;  %v184_v22 = vld [vmem:[%s1573_s2 + $0x540] sm:$0xff]  ;;  %v185_v23 = vld [vmem:[%s1573_s2 + $0x548] sm:$0xff]  ;;  %v186_v24 = vld [vmem:[%s1573_s2 + $0x550] sm:$0xff] }
  0x34   :  { %418 = vmatpush.msrb.mxu2 %v134_v35  ;;  %441 = vmatpush.msrb.mxu3 %v135_v36  ;;  %v187_v25 = vld [vmem:[%s1573_s2 + $0x558] sm:$0xff]  ;;  %v168_v26 = vld [vmem:[%s1573_s2 + $0x4c0] sm:$0xff]  ;;  %v169_v27 = vld [vmem:[%s1573_s2 + $0x4c8] sm:$0xff] }
  0x35   :  { %373 = vmatpush.msrb.mxu0 %v116_v37  ;;  %396 = vmatpush.msrb.mxu1 %v117_v38  ;;  %v170_v28 = vld [vmem:[%s1573_s2 + $0x4d0] sm:$0xff]  ;;  %v171_v29 = vld [vmem:[%s1573_s2 + $0x4d8] sm:$0xff]  ;;  %v152_v30 = vld [vmem:[%s1573_s2 + $0x440] sm:$0xff] }
  0x36   :  { %419 = vmatpush.msrb.mxu2 %v118_v39  ;;  %442 = vmatpush.msrb.mxu3 %v119_v40  ;;  %v153_v31 = vld [vmem:[%s1573_s2 + $0x448] sm:$0xff]  ;;  %v154_v33 = vld [vmem:[%s1573_s2 + $0x450] sm:$0xff]  ;;  %v155_v34 = vld [vmem:[%s1573_s2 + $0x458] sm:$0xff] }
  0x37   :  { %374 = vmatpush.msrb.mxu0 %v100_v41  ;;  %397 = vmatpush.msrb.mxu1 %v101_v42  ;;  %v136_v35 = vld [vmem:[%s1573_s2 + $0x3c0] sm:$0xff]  ;;  %v137_v36 = vld [vmem:[%s1573_s2 + $0x3c8] sm:$0xff]  ;;  %v138_v37 = vld [vmem:[%s1573_s2 + $0x3d0] sm:$0xff] }
  0x38   :  { %420 = vmatpush.msrb.mxu2 %v102_v43  ;;  %443 = vmatpush.msrb.mxu3 %v103_v44  ;;  %v139_v38 = vld [vmem:[%s1573_s2 + $0x3d8] sm:$0xff]  ;;  %v120_v39 = vld [vmem:[%s1573_s2 + $0x340] sm:$0xff]  ;;  %v121_v40 = vld [vmem:[%s1573_s2 + $0x348] sm:$0xff] }
  0x39   :  { %288 = vmatmul.f32.vlgmr.msra.gmra.mxu0 %v1018_v32  ;;  %311 = vmatmul.f32.vlgmr.msra.gmra.mxu1 %v1018_v32  ;;  %v122_v41 = vld [vmem:[%s1573_s2 + $0x350] sm:$0xff]  ;;  %v123_v42 = vld [vmem:[%s1573_s2 + $0x358] sm:$0xff]  ;;  %v104_v43 = vld [vmem:[%s1573_s2 + $0x2c0] sm:$0xff] }
  0x3a   :  { %375 = vmatpush.msrb.mxu0 %v84_v45  ;;  %398 = vmatpush.msrb.mxu1 %v85_v46  ;;  %v105_v44 = vld [vmem:[%s1573_s2 + $0x2c8] sm:$0xff]  ;;  %v106_v45 = vld [vmem:[%s1573_s2 + $0x2d0] sm:$0xff]  ;;  %v107_v46 = vld [vmem:[%s1573_s2 + $0x2d8] sm:$0xff] }
  0x3b   :  { %421 = vmatpush.msrb.mxu2 %v86_v47  ;;  %444 = vmatpush.msrb.mxu3 %v87_v48  ;;  %v88_v47 = vld [vmem:[%s1573_s2 + $0x240] sm:$0xff]  ;;  %v89_v48 = vld [vmem:[%s1573_s2 + $0x248] sm:$0xff] }
  0x3c   :  { %337 = vmatmul.f32.gmra.mxu2 %v1075_v49  ;;  %360 = vmatmul.f32.gmra.mxu3 %v1075_v49 }
  0x3d   :  { %376 = vmatpush.msrb.mxu0 %v68_v50  ;;  %399 = vmatpush.msrb.mxu1 %v69_v51  ;;  %v90_v50 = vld [vmem:[%s1573_s2 + $0x250] sm:$0xff]  ;;  %v91_v51 = vld [vmem:[%s1573_s2 + $0x258] sm:$0xff] }
  0x3e   :  { %422 = vmatpush.msrb.mxu2 %v70_v52  ;;  %445 = vmatpush.msrb.mxu3 %v71_v53  ;;  %v72_v52 = vld [vmem:[%s1573_s2 + $0x1c0] sm:$0xff]  ;;  %v73_v53 = vld [vmem:[%s1573_s2 + $0x1c8] sm:$0xff] }
  0x3f   :  { %377 = vmatpush.msrb.mxu0 %v52_v54  ;;  %400 = vmatpush.msrb.mxu1 %v53_v55  ;;  %v74_v54 = vld [vmem:[%s1573_s2 + $0x1d0] sm:$0xff]  ;;  %v75_v55 = vld [vmem:[%s1573_s2 + $0x1d8] sm:$0xff] }
  0x40   :  { %423 = vmatpush.msrb.mxu2 %v54_v56  ;;  %446 = vmatpush.msrb.mxu3 %v55_v57  ;;  %v56_v56 = vld [vmem:[%s1573_s2 + $0x140] sm:$0xff]  ;;  %v57_v57 = vld [vmem:[%s1573_s2 + $0x148] sm:$0xff] }
  0x41   :  { %378 = vmatpush.msrb.mxu0 %v36_v58  ;;  %401 = vmatpush.msrb.mxu1 %v37_v59  ;;  %v58_v58 = vld [vmem:[%s1573_s2 + $0x150] sm:$0xff]  ;;  %v59_v59 = vld [vmem:[%s1573_s2 + $0x158] sm:$0xff] }
  0x42   :  { %424 = vmatpush.msrb.mxu2 %v38_v60  ;;  %447 = vmatpush.msrb.mxu3 %v39_v61  ;;  %v40_v60 = vld [vmem:[%s1573_s2 + $0xc0] sm:$0xff]  ;;  %v41_v61 = vld [vmem:[%s1573_s2 + $0xc8] sm:$0xff] }
  0x43   :  { %291 = vmatmul.f32.gmra.mxu0 %v1075_v49  ;;  %314 = vmatmul.f32.gmra.mxu1 %v1075_v49 }
  0x44   :  { %379 = vmatpush.msrb.mxu0 %v20_v62  ;;  %402 = vmatpush.msrb.mxu1 %v21_v63  ;;  %v42_v62 = vld [vmem:[%s1573_s2 + $0xd0] sm:$0xff]  ;;  %v43_v63 = vld [vmem:[%s1573_s2 + $0xd8] sm:$0xff] }
  0x45   :  { %425 = vmatpush.msrb.mxu2 %v22_v0  ;;  %448 = vmatpush.msrb.mxu3 %v23_v1  ;;  %v24_v0 = vld [vmem:[%s1573_s2 + $0x40] sm:$0xff]  ;;  %v25_v1 = vld [vmem:[%s1573_s2 + $0x48] sm:$0xff] }
  0x46   :  { %426 = vmatmul.f32.vlgmr.msrb.gmra.mxu2 %v1018_v32  ;;  %449 = vmatmul.f32.vlgmr.msrb.gmra.mxu3 %v1018_v32 }
  0x47   :  { %456 = vmatpush.msra.mxu0 %v264_v2  ;;  %479 = vmatpush.msra.mxu1 %v265_v3  ;;  %v26_v2 = vld [vmem:[%s1573_s2 + $0x50] sm:$0xff]  ;;  %v27_v3 = vld [vmem:[%s1573_s2 + $0x58] sm:$0xff] }
  0x48   :  { %502 = vmatpush.msra.mxu2 %v266_v4  ;;  %525 = vmatpush.msra.mxu3 %v267_v5  ;;  %v268_v4 = vld [vmem:[%s1573_s2 + $0x7e0] sm:$0xff]  ;;  %v269_v5 = vld [vmem:[%s1573_s2 + $0x7e8] sm:$0xff] }
  0x49   :  { %457 = vmatpush.msra.mxu0 %v248_v6  ;;  %480 = vmatpush.msra.mxu1 %v249_v7  ;;  %v270_v6 = vld [vmem:[%s1573_s2 + $0x7f0] sm:$0xff]  ;;  %v271_v7 = vld [vmem:[%s1573_s2 + $0x7f8] sm:$0xff] }
  0x4a   :  { %503 = vmatpush.msra.mxu2 %v250_v8  ;;  %526 = vmatpush.msra.mxu3 %v251_v9  ;;  %v252_v8 = vld [vmem:[%s1573_s2 + $0x760] sm:$0xff]  ;;  %v253_v9 = vld [vmem:[%s1573_s2 + $0x768] sm:$0xff] }
  0x4b   :  { %458 = vmatpush.msra.mxu0 %v232_v10  ;;  %481 = vmatpush.msra.mxu1 %v233_v11  ;;  %v254_v10 = vld [vmem:[%s1573_s2 + $0x770] sm:$0xff]  ;;  %v255_v11 = vld [vmem:[%s1573_s2 + $0x778] sm:$0xff] }
  0x4c   :  { %504 = vmatpush.msra.mxu2 %v234_v12  ;;  %527 = vmatpush.msra.mxu3 %v235_v13  ;;  %v236_v12 = vld [vmem:[%s1573_s2 + $0x6e0] sm:$0xff]  ;;  %v237_v13 = vld [vmem:[%s1573_s2 + $0x6e8] sm:$0xff] }
  0x4d   :  { %380 = vmatmul.f32.vlgmr.msrb.gmra.mxu0 %v1018_v32  ;;  %403 = vmatmul.f32.vlgmr.msrb.gmra.mxu1 %v1018_v32 }
  0x4e   :  { %459 = vmatpush.msra.mxu0 %v216_v14  ;;  %482 = vmatpush.msra.mxu1 %v217_v15  ;;  %v238_v14 = vld [vmem:[%s1573_s2 + $0x6f0] sm:$0xff]  ;;  %v239_v15 = vld [vmem:[%s1573_s2 + $0x6f8] sm:$0xff] }
  0x4f   :  { %505 = vmatpush.msra.mxu2 %v218_v16  ;;  %528 = vmatpush.msra.mxu3 %v219_v17  ;;  %v220_v16 = vld [vmem:[%s1573_s2 + $0x660] sm:$0xff]  ;;  %v221_v17 = vld [vmem:[%s1573_s2 + $0x668] sm:$0xff] }
  0x50   :  { %460 = vmatpush.msra.mxu0 %v200_v18  ;;  %483 = vmatpush.msra.mxu1 %v201_v19  ;;  %v222_v18 = vld [vmem:[%s1573_s2 + $0x670] sm:$0xff]  ;;  %v223_v19 = vld [vmem:[%s1573_s2 + $0x678] sm:$0xff] }
  0x51   :  { %506 = vmatpush.msra.mxu2 %v202_v20  ;;  %529 = vmatpush.msra.mxu3 %v203_v21  ;;  %v204_v20 = vld [vmem:[%s1573_s2 + $0x5e0] sm:$0xff]  ;;  %v205_v21 = vld [vmem:[%s1573_s2 + $0x5e8] sm:$0xff] }
  0x52   :  { %461 = vmatpush.msra.mxu0 %v184_v22  ;;  %484 = vmatpush.msra.mxu1 %v185_v23  ;;  %v206_v22 = vld [vmem:[%s1573_s2 + $0x5f0] sm:$0xff]  ;;  %v207_v23 = vld [vmem:[%s1573_s2 + $0x5f8] sm:$0xff] }
  0x53   :  { %507 = vmatpush.msra.mxu2 %v186_v24  ;;  %530 = vmatpush.msra.mxu3 %v187_v25  ;;  %v188_v24 = vld [vmem:[%s1573_s2 + $0x560] sm:$0xff]  ;;  %v189_v25 = vld [vmem:[%s1573_s2 + $0x568] sm:$0xff] }
  0x54   :  { %462 = vmatpush.msra.mxu0 %v168_v26  ;;  %485 = vmatpush.msra.mxu1 %v169_v27  ;;  %v190_v26 = vld [vmem:[%s1573_s2 + $0x570] sm:$0xff]  ;;  %v191_v27 = vld [vmem:[%s1573_s2 + $0x578] sm:$0xff] }
  0x55   :  { %508 = vmatpush.msra.mxu2 %v170_v28  ;;  %531 = vmatpush.msra.mxu3 %v171_v29  ;;  %v172_v28 = vld [vmem:[%s1573_s2 + $0x4e0] sm:$0xff]  ;;  %v173_v29 = vld [vmem:[%s1573_s2 + $0x4e8] sm:$0xff] }
  0x56   :  { %463 = vmatpush.msra.mxu0 %v152_v30  ;;  %486 = vmatpush.msra.mxu1 %v153_v31  ;;  %v174_v30 = vld [vmem:[%s1573_s2 + $0x4f0] sm:$0xff]  ;;  %v175_v31 = vld [vmem:[%s1573_s2 + $0x4f8] sm:$0xff] }
  0x57   :  { %509 = vmatpush.msra.mxu2 %v154_v33  ;;  %532 = vmatpush.msra.mxu3 %v155_v34  ;;  %v156_v33 = vld [vmem:[%s1573_s2 + $0x460] sm:$0xff]  ;;  %v157_v34 = vld [vmem:[%s1573_s2 + $0x468] sm:$0xff] }
  0x58   :  { %464 = vmatpush.msra.mxu0 %v136_v35  ;;  %487 = vmatpush.msra.mxu1 %v137_v36  ;;  %v158_v35 = vld [vmem:[%s1573_s2 + $0x470] sm:$0xff]  ;;  %v159_v36 = vld [vmem:[%s1573_s2 + $0x478] sm:$0xff] }
  0x59   :  { %510 = vmatpush.msra.mxu2 %v138_v37  ;;  %533 = vmatpush.msra.mxu3 %v139_v38  ;;  %v140_v37 = vld [vmem:[%s1573_s2 + $0x3e0] sm:$0xff]  ;;  %v141_v38 = vld [vmem:[%s1573_s2 + $0x3e8] sm:$0xff] }
  0x5a   :  { %465 = vmatpush.msra.mxu0 %v120_v39  ;;  %488 = vmatpush.msra.mxu1 %v121_v40  ;;  %v142_v39 = vld [vmem:[%s1573_s2 + $0x3f0] sm:$0xff]  ;;  %v143_v40 = vld [vmem:[%s1573_s2 + $0x3f8] sm:$0xff] }
  0x5b   :  { %511 = vmatpush.msra.mxu2 %v122_v41  ;;  %534 = vmatpush.msra.mxu3 %v123_v42  ;;  %v124_v41 = vld [vmem:[%s1573_s2 + $0x360] sm:$0xff]  ;;  %v125_v42 = vld [vmem:[%s1573_s2 + $0x368] sm:$0xff] }
  0x5c   :  { %466 = vmatpush.msra.mxu0 %v104_v43  ;;  %489 = vmatpush.msra.mxu1 %v105_v44  ;;  %v126_v43 = vld [vmem:[%s1573_s2 + $0x370] sm:$0xff]  ;;  %v127_v44 = vld [vmem:[%s1573_s2 + $0x378] sm:$0xff] }
  0x5d   :  { %512 = vmatpush.msra.mxu2 %v106_v45  ;;  %535 = vmatpush.msra.mxu3 %v107_v46  ;;  %v108_v45 = vld [vmem:[%s1573_s2 + $0x2e0] sm:$0xff]  ;;  %v109_v46 = vld [vmem:[%s1573_s2 + $0x2e8] sm:$0xff] }
  0x5e   :  { %429 = vmatmul.f32.gmra.mxu2 %v1075_v49  ;;  %452 = vmatmul.f32.gmra.mxu3 %v1075_v49 }
  0x5f   :  { %467 = vmatpush.msra.mxu0 %v88_v47  ;;  %490 = vmatpush.msra.mxu1 %v89_v48  ;;  %v110_v47 = vld [vmem:[%s1573_s2 + $0x2f0] sm:$0xff]  ;;  %v111_v48 = vld [vmem:[%s1573_s2 + $0x2f8] sm:$0xff] }
  0x60   :  { %513 = vmatpush.msra.mxu2 %v90_v50  ;;  %536 = vmatpush.msra.mxu3 %v91_v51  ;;  %v92_v50 = vld [vmem:[%s1573_s2 + $0x260] sm:$0xff]  ;;  %v93_v51 = vld [vmem:[%s1573_s2 + $0x268] sm:$0xff] }
  0x61   :  { %468 = vmatpush.msra.mxu0 %v72_v52  ;;  %491 = vmatpush.msra.mxu1 %v73_v53  ;;  %v94_v52 = vld [vmem:[%s1573_s2 + $0x270] sm:$0xff]  ;;  %v95_v53 = vld [vmem:[%s1573_s2 + $0x278] sm:$0xff] }
  0x62   :  { %514 = vmatpush.msra.mxu2 %v74_v54  ;;  %537 = vmatpush.msra.mxu3 %v75_v55  ;;  %v76_v54 = vld [vmem:[%s1573_s2 + $0x1e0] sm:$0xff]  ;;  %v77_v55 = vld [vmem:[%s1573_s2 + $0x1e8] sm:$0xff] }
  0x63   :  { %469 = vmatpush.msra.mxu0 %v56_v56  ;;  %492 = vmatpush.msra.mxu1 %v57_v57  ;;  %v78_v56 = vld [vmem:[%s1573_s2 + $0x1f0] sm:$0xff]  ;;  %v79_v57 = vld [vmem:[%s1573_s2 + $0x1f8] sm:$0xff] }
  0x64   :  { %515 = vmatpush.msra.mxu2 %v58_v58  ;;  %538 = vmatpush.msra.mxu3 %v59_v59  ;;  %v60_v58 = vld [vmem:[%s1573_s2 + $0x160] sm:$0xff]  ;;  %v61_v59 = vld [vmem:[%s1573_s2 + $0x168] sm:$0xff] }
  0x65   :  { %383 = vmatmul.f32.gmra.mxu0 %v1075_v49  ;;  %406 = vmatmul.f32.gmra.mxu1 %v1075_v49 }
  0x66   :  { %470 = vmatpush.msra.mxu0 %v40_v60  ;;  %493 = vmatpush.msra.mxu1 %v41_v61  ;;  %v62_v60 = vld [vmem:[%s1573_s2 + $0x170] sm:$0xff]  ;;  %v63_v61 = vld [vmem:[%s1573_s2 + $0x178] sm:$0xff] }
  0x67   :  { %516 = vmatpush.msra.mxu2 %v42_v62  ;;  %539 = vmatpush.msra.mxu3 %v43_v63  ;;  %v44_v62 = vld [vmem:[%s1573_s2 + $0xe0] sm:$0xff]  ;;  %v45_v63 = vld [vmem:[%s1573_s2 + $0xe8] sm:$0xff] }
  0x68   :  { %471 = vmatpush.msra.mxu0 %v24_v0  ;;  %494 = vmatpush.msra.mxu1 %v25_v1  ;;  %v46_v0 = vld [vmem:[%s1573_s2 + $0xf0] sm:$0xff]  ;;  %v47_v1 = vld [vmem:[%s1573_s2 + $0xf8] sm:$0xff] }
  0x69   :  { %517 = vmatpush.msra.mxu2 %v26_v2  ;;  %540 = vmatpush.msra.mxu3 %v27_v3  ;;  %v28_v2 = vld [vmem:[%s1573_s2 + $0x60] sm:$0xff]  ;;  %v29_v3 = vld [vmem:[%s1573_s2 + $0x68] sm:$0xff] }
  0x6a   :  { %548 = vmatpush.msrb.mxu0 %v268_v4  ;;  %571 = vmatpush.msrb.mxu1 %v269_v5  ;;  %v30_v4 = vld [vmem:[%s1573_s2 + $0x70] sm:$0xff]  ;;  %v31_v5 = vld [vmem:[%s1573_s2 + $0x78] sm:$0xff] }
  0x6b   :  { %594 = vmatpush.msrb.mxu2 %v270_v6  ;;  %617 = vmatpush.msrb.mxu3 %v271_v7  ;;  %v664_v6 = vld [vmem:[%s1575_s1] sm:$0xff]  ;;  %v706_v7 = vmov 0  }
  0x6c   :  { %549 = vmatpush.msrb.mxu0 %v252_v8  ;;  %572 = vmatpush.msrb.mxu1 %v253_v9  ;;  %v665_v8 = vld [vmem:[%s1575_s1 + $0x8] sm:$0xff] }
  0x6d   :  { %595 = vmatpush.msrb.mxu2 %v254_v10  ;;  %618 = vmatpush.msrb.mxu3 %v255_v11 }
  0x6e   :  { %550 = vmatpush.msrb.mxu0 %v236_v12  ;;  %573 = vmatpush.msrb.mxu1 %v237_v13 }
  0x6f   :  { %596 = vmatpush.msrb.mxu2 %v238_v14  ;;  %619 = vmatpush.msrb.mxu3 %v239_v15 }
  0x70   :  { %551 = vmatpush.msrb.mxu0 %v220_v16  ;;  %574 = vmatpush.msrb.mxu1 %v221_v17 }
  0x71   :  { %597 = vmatpush.msrb.mxu2 %v222_v18  ;;  %620 = vmatpush.msrb.mxu3 %v223_v19 }
  0x72   :  { %552 = vmatpush.msrb.mxu0 %v204_v20  ;;  %575 = vmatpush.msrb.mxu1 %v205_v21 }
  0x73   :  { %598 = vmatpush.msrb.mxu2 %v206_v22  ;;  %621 = vmatpush.msrb.mxu3 %v207_v23 }
  0x74   :  { %553 = vmatpush.msrb.mxu0 %v188_v24  ;;  %576 = vmatpush.msrb.mxu1 %v189_v25 }
  0x75   :  { %599 = vmatpush.msrb.mxu2 %v190_v26  ;;  %622 = vmatpush.msrb.mxu3 %v191_v27 }
  0x76   :  { %554 = vmatpush.msrb.mxu0 %v172_v28  ;;  %577 = vmatpush.msrb.mxu1 %v173_v29 }
  0x77   :  { %600 = vmatpush.msrb.mxu2 %v174_v30  ;;  %623 = vmatpush.msrb.mxu3 %v175_v31 }
  0x78   :  { %555 = vmatpush.msrb.mxu0 %v156_v33  ;;  %578 = vmatpush.msrb.mxu1 %v157_v34 }
  0x79   :  { %601 = vmatpush.msrb.mxu2 %v158_v35  ;;  %624 = vmatpush.msrb.mxu3 %v159_v36 }
  0x7a   :  { %472 = vmatmul.f32.vlgmr.msra.gmra.mxu0 %v1018_v32  ;;  %495 = vmatmul.f32.vlgmr.msra.gmra.mxu1 %v1018_v32 }
  0x7b   :  { %518 = vmatmul.f32.vlgmr.msra.gmra.mxu2 %v1018_v32  ;;  %541 = vmatmul.f32.vlgmr.msra.gmra.mxu3 %v1018_v32 }
  0x7c   :  { %556 = vmatpush.msrb.mxu0 %v140_v37  ;;  %579 = vmatpush.msrb.mxu1 %v141_v38 }
  0x7d   :  { %602 = vmatpush.msrb.mxu2 %v142_v39  ;;  %625 = vmatpush.msrb.mxu3 %v143_v40 }
  0x7e   :  { %557 = vmatpush.msrb.mxu0 %v124_v41  ;;  %580 = vmatpush.msrb.mxu1 %v125_v42 }
  0x7f   :  { %603 = vmatpush.msrb.mxu2 %v126_v43  ;;  %626 = vmatpush.msrb.mxu3 %v127_v44 }
  0x80   :  { %558 = vmatpush.msrb.mxu0 %v108_v45  ;;  %581 = vmatpush.msrb.mxu1 %v109_v46 }
  0x81   :  { %604 = vmatpush.msrb.mxu2 %v110_v47  ;;  %627 = vmatpush.msrb.mxu3 %v111_v48 }
  0x82   :  { %559 = vmatpush.msrb.mxu0 %v92_v50  ;;  %582 = vmatpush.msrb.mxu1 %v93_v51 }
  0x83   :  { %605 = vmatpush.msrb.mxu2 %v94_v52  ;;  %628 = vmatpush.msrb.mxu3 %v95_v53 }
  0x84   :  { %475 = vmatmul.f32.gmra.mxu0 %v1075_v49  ;;  %498 = vmatmul.f32.gmra.mxu1 %v1075_v49 }
  0x85   :  { %521 = vmatmul.f32.gmra.mxu2 %v1075_v49  ;;  %544 = vmatmul.f32.gmra.mxu3 %v1075_v49 }
  0x86   :  { %560 = vmatpush.msrb.mxu0 %v76_v54  ;;  %583 = vmatpush.msrb.mxu1 %v77_v55 }
  0x87   :  { %606 = vmatpush.msrb.mxu2 %v78_v56  ;;  %629 = vmatpush.msrb.mxu3 %v79_v57 }
  0x88   :  { %561 = vmatpush.msrb.mxu0 %v60_v58  ;;  %584 = vmatpush.msrb.mxu1 %v61_v59 }
  0x89   :  { %607 = vmatpush.msrb.mxu2 %v62_v60  ;;  %630 = vmatpush.msrb.mxu3 %v63_v61 }
  0x8a   :  { %562 = vmatpush.msrb.mxu0 %v44_v62  ;;  %585 = vmatpush.msrb.mxu1 %v45_v63 }
  0x8b   :  { %608 = vmatpush.msrb.mxu2 %v46_v0  ;;  %631 = vmatpush.msrb.mxu3 %v47_v1 }
  0x8c   :  { %563 = vmatpush.msrb.mxu0 %v28_v2  ;;  %586 = vmatpush.msrb.mxu1 %v29_v3 }
  0x8d   :  { %609 = vmatpush.msrb.mxu2 %v30_v4  ;;  %632 = vmatpush.msrb.mxu3 %v31_v5 }
  0x8e   :  { %564 = vmatmul.f32.vlgmr.msrb.gmra.mxu0 %v1018_v32  ;;  %587 = vmatmul.f32.vlgmr.msrb.gmra.mxu1 %v1018_v32 }
  0x8f   :  { %610 = vmatmul.f32.vlgmr.msrb.gmra.mxu2 %v1018_v32  ;;  %633 = vmatmul.f32.vlgmr.msrb.gmra.mxu3 %v1018_v32 }
  0x90   :  { %705 = vset.pattern.permute.xlu0 %v706_v7 }
  0x91   :  { %668 = vperm.xlu0 %705, %v664_v6  }
  0x96   :  { %567 = vmatmul.f32.gmra.mxu0 %v1075_v49  ;;  %590 = vmatmul.f32.gmra.mxu1 %v1075_v49 }
  0x97   :  { %613 = vmatmul.f32.gmra.mxu2 %v1075_v49  ;;  %636 = vmatmul.f32.gmra.mxu3 %v1075_v49 }
  0x99   :  { %673 = vperm.xlu0 %705, %v665_v8  }
  0xb5   :  { %v335_v11 = vpop.f32.mrf.mxu2  ;;  %v358_v32 = vpop.f32.mrf.mxu3 }
  0xb6   :  { %v289_v9 = vpop.f32.mrf.mxu0  ;;  %v312_v10 = vpop.f32.mrf.mxu1 }
  0xbf   :  { %v1543_v14 = vpop.f32.mrf.mxu2  ;;  %v1545_v15 = vpop.f32.mrf.mxu3 }
  0xc0   :  { %v292_v12 = vpop.f32.mrf.mxu0  ;;  %v315_v13 = vpop.f32.mrf.mxu1 }
  0xc9   :  { %v427_v18 = vpop.f32.mrf.mxu2  ;;  %v450_v19 = vpop.f32.mrf.mxu3 }
  0xca   :  { %v381_v16 = vpop.f32.mrf.mxu0  ;;  %v404_v17 = vpop.f32.mrf.mxu1  ;;  %v642_v47 = vmax.f32 %v335_v11, %v427_v18  ;;  %v643_v48 = vmax.f32 %v358_v32, %v450_v19 }
  0xcb   :  { %v640_v34 = vmax.f32 %v289_v9, %v381_v16  ;;  %v641_v35 = vmax.f32 %v312_v10, %v404_v17 }
  0xe1   :  { %v430_v22 = vpop.f32.mrf.mxu2  ;;  %v453_v23 = vpop.f32.mrf.mxu3 }
  0xe2   :  { %v384_v20 = vpop.f32.mrf.mxu0  ;;  %v407_v21 = vpop.f32.mrf.mxu1  ;;  %v646_v9 = vmax.f32 %v1543_v14, %v430_v22  ;;  %v647_v10 = vmax.f32 %v1545_v15, %v453_v23 }
  0xe3   :  { %v644_v54 = vmax.f32 %v292_v12, %v384_v20  ;;  %v645_v55 = vmax.f32 %v315_v13, %v407_v21 }
  0xf7   :  { %v473_v49 = vpop.f32.mrf.mxu0  ;;  %v496_v24 = vpop.f32.mrf.mxu1 }
  0xfe   :  { %v519_v25 = vpop.f32.mrf.mxu2  ;;  %v542_v26 = vpop.f32.mrf.mxu3 }
 0x101   :  { %v476_v27 = vpop.f32.mrf.mxu0  ;;  %v499_v28 = vpop.f32.mrf.mxu1 }
 0x103   :  { %v669_v38 = vpop.permute.xlu0 %668 }
 0x108   :  { %v522_v29 = vpop.f32.mrf.mxu2  ;;  %v545_v30 = vpop.f32.mrf.mxu3 }
 0x10b   :  { %v565_v31 = vpop.f32.mrf.mxu0  ;;  %v588_v33 = vpop.f32.mrf.mxu1 }
 0x10c   :  { %v648_v36 = vmax.f32 %v473_v49, %v565_v31  ;;  %v649_v37 = vmax.f32 %v496_v24, %v588_v33  ;;  %v674_v0 = vpop.permute.xlu0 %673 }
 0x10e   :  { %v656_v39 = vmax.f32 %v640_v34, %v648_v36  ;;  %v657_v40 = vmax.f32 %v641_v35, %v649_v37 }
 0x110   :  { %v676_v41 = vadd.f32 %v669_v38, %v656_v39  ;;  %v677_v42 = vadd.f32 %v669_v38, %v657_v40 }
 0x112   :  { %v684_v43 = vmax.f32 %v676_v41, 0.0  ;;  %v685_v44 = vmax.f32 %v677_v42, 0.0  ;;  %v611_v45 = vpop.f32.mrf.mxu2  ;;  %v634_v46 = vpop.f32.mrf.mxu3 }
 0x113   :  { %v650_v50 = vmax.f32 %v519_v25, %v611_v45  ;;  %v651_v51 = vmax.f32 %v542_v26, %v634_v46  ;;  %v568_v52 = vpop.f32.mrf.mxu0  ;;  %v591_v53 = vpop.f32.mrf.mxu1 }
 0x114   :  { %692 = vst [vmem:[%s1576_s3] sm:$0xff] %v684_v43  ;;  %v652_v56 = vmax.f32 %v476_v27, %v568_v52  ;;  %v653_v57 = vmax.f32 %v499_v28, %v591_v53 }
 0x115   :  { %693 = vst [vmem:[%s1576_s3 + $0x8] sm:$0xff] %v685_v44  ;;  %v658_v58 = vmax.f32 %v642_v47, %v650_v50  ;;  %v659_v59 = vmax.f32 %v643_v48, %v651_v51 }
 0x116   :  { %v660_v60 = vmax.f32 %v644_v54, %v652_v56  ;;  %v661_v61 = vmax.f32 %v645_v55, %v653_v57 }
 0x117   :  { %v678_v62 = vadd.f32 %v669_v38, %v658_v58  ;;  %v679_v63 = vadd.f32 %v669_v38, %v659_v59 }
 0x118   :  { %v680_v1 = vadd.f32 %v674_v0, %v660_v60  ;;  %v681_v2 = vadd.f32 %v674_v0, %v661_v61 }
 0x119   :  { %v686_v3 = vmax.f32 %v678_v62, 0.0  ;;  %v687_v4 = vmax.f32 %v679_v63, 0.0 }
 0x11a   :  { %v688_v5 = vmax.f32 %v680_v1, 0.0  ;;  %v689_v6 = vmax.f32 %v681_v2, 0.0  ;;  %v614_v7 = vpop.f32.mrf.mxu2  ;;  %v637_v8 = vpop.f32.mrf.mxu3 }
 0x11b   :  { %694 = vst [vmem:[%s1576_s3 + $0x10] sm:$0xff] %v686_v3  ;;  %v654_v11 = vmax.f32 %v522_v29, %v614_v7  ;;  %v655_v32 = vmax.f32 %v545_v30, %v637_v8 }
 0x11c   :  { %695 = vst [vmem:[%s1576_s3 + $0x18] sm:$0xff] %v687_v4 }
 0x11d   :  { %696 = vst [vmem:[%s1576_s3 + $0x20] sm:$0xff] %v688_v5  ;;  %v662_v12 = vmax.f32 %v646_v9, %v654_v11  ;;  %v663_v13 = vmax.f32 %v647_v10, %v655_v32 }
 0x11e   :  { %697 = vst [vmem:[%s1576_s3 + $0x28] sm:$0xff] %v689_v6 }
 0x11f   :  { %v682_v14 = vadd.f32 %v674_v0, %v662_v12  ;;  %v683_v15 = vadd.f32 %v674_v0, %v663_v13 }
 0x121   :  { %v690_v16 = vmax.f32 %v682_v14, 0.0  ;;  %v691_v17 = vmax.f32 %v683_v15, 0.0 }
 0x123   :  { %698 = vst [vmem:[%s1576_s3 + $0x30] sm:$0xff] %v690_v16 }
 0x124   :  { %699 = vst [vmem:[%s1576_s3 + $0x38] sm:$0xff] %v691_v17 }

// kernel: forward.5
= control target key start
LH: loop header
LB: loop body
LE: loop exit
PB: predicated region body
PF: predicated region fallthrough
CT: control target
= control target key end

     0   :  { %s1792_s2 = inlined_call_operand.vmem [shape: f32[512,512], index: 2, kind: input, shape index: {}]   ;;  %s1793_s0 = inlined_call_operand.vmem [shape: f32[32,512], index: 0, kind: input, shape index: {}]   ;;  %s1794_s1 = inlined_call_operand.vmem [shape: f32[32,1], index: 1, kind: input, shape index: {}]   ;;  %s1795_s3 = inlined_call_operand.vmem [shape: f32[32,128], index: 3, kind: output, shape index: {}]  }
   0x1   :  { %v218_v0 = vld [vmem:[%s1792_s2 + $0x5e0] sm:$0xff]  ;;  %v1015_v62 = vld [vmem:[%s1793_s0 + $0x10] sm:$0xff]  ;;  %v1020_v63 = vld [vmem:[%s1793_s0 + $0x18] sm:$0xff] }
   0x2   :  { %v214_v1 = vld [vmem:[%s1792_s2 + $0x5c0] sm:$0xff]  ;;  %344 = vmatpush.msra.mxu2 %v218_v0  ;;  %v219_v0 = vld [vmem:[%s1792_s2 + $0x5e8] sm:$0xff] }
   0x3   :  { %v282_v2 = vld [vmem:[%s1792_s2 + $0x7e0] sm:$0xff] }
   0x4   :  { %373 = vmatpush.msra.mxu3 %v282_v2  ;;  %v90_v3 = vld [vmem:[%s1792_s2 + $0x1e0] sm:$0xff]  ;;  %345 = vmatpush.msra.mxu2 %v214_v1  ;;  %v283_v1 = vld [vmem:[%s1792_s2 + $0x7e8] sm:$0xff] }
   0x5   :  { %v154_v4 = vld [vmem:[%s1792_s2 + $0x3e0] sm:$0xff]  ;;  %286 = vmatpush.msra.mxu0 %v90_v3 }
   0x6   :  { %v210_v5 = vld [vmem:[%s1792_s2 + $0x5a0] sm:$0xff]  ;;  %315 = vmatpush.msra.mxu1 %v154_v4  ;;  %v215_v4 = vld [vmem:[%s1792_s2 + $0x5c8] sm:$0xff] }
   0x7   :  { %v278_v6 = vld [vmem:[%s1792_s2 + $0x7c0] sm:$0xff]  ;;  %346 = vmatpush.msra.mxu2 %v210_v5 }
   0x8   :  { %v86_v7 = vld [vmem:[%s1792_s2 + $0x1c0] sm:$0xff]  ;;  %374 = vmatpush.msra.mxu3 %v278_v6  ;;  %v1047_v6 = vld [vmem:[%s1793_s0 + $0x8] sm:$0xff] }
   0x9   :  { %v150_v8 = vld [vmem:[%s1792_s2 + $0x3c0] sm:$0xff]  ;;  %287 = vmatpush.msra.mxu0 %v86_v7  ;;  %v91_v7 = vld [vmem:[%s1792_s2 + $0x1e8] sm:$0xff] }
   0xa   :  { %v274_v9 = vld [vmem:[%s1792_s2 + $0x7a0] sm:$0xff]  ;;  %316 = vmatpush.msra.mxu1 %v150_v8  ;;  %v155_v8 = vld [vmem:[%s1792_s2 + $0x3e8] sm:$0xff] }
   0xb   :  { %v82_v10 = vld [vmem:[%s1792_s2 + $0x1a0] sm:$0xff]  ;;  %375 = vmatpush.msra.mxu3 %v274_v9  ;;  %v211_v9 = vld [vmem:[%s1792_s2 + $0x5a8] sm:$0xff] }
   0xc   :  { %v206_v11 = vld [vmem:[%s1792_s2 + $0x580] sm:$0xff]  ;;  %288 = vmatpush.msra.mxu0 %v82_v10  ;;  %v279_v10 = vld [vmem:[%s1792_s2 + $0x7c8] sm:$0xff] }
   0xd   :  { %v146_v12 = vld [vmem:[%s1792_s2 + $0x3a0] sm:$0xff]  ;;  %347 = vmatpush.msra.mxu2 %v206_v11  ;;  %v87_v11 = vld [vmem:[%s1792_s2 + $0x1c8] sm:$0xff] }
   0xe   :  { %v270_v13 = vld [vmem:[%s1792_s2 + $0x780] sm:$0xff]  ;;  %317 = vmatpush.msra.mxu1 %v146_v12  ;;  %v151_v12 = vld [vmem:[%s1792_s2 + $0x3c8] sm:$0xff] }
   0xf   :  { %v78_v14 = vld [vmem:[%s1792_s2 + $0x180] sm:$0xff]  ;;  %376 = vmatpush.msra.mxu3 %v270_v13  ;;  %v207_v13 = vld [vmem:[%s1792_s2 + $0x588] sm:$0xff] }
  0x10   :  { %v142_v15 = vld [vmem:[%s1792_s2 + $0x380] sm:$0xff]  ;;  %289 = vmatpush.msra.mxu0 %v78_v14  ;;  %v275_v14 = vld [vmem:[%s1792_s2 + $0x7a8] sm:$0xff] }
  0x11   :  { %v202_v16 = vld [vmem:[%s1792_s2 + $0x560] sm:$0xff]  ;;  %318 = vmatpush.msra.mxu1 %v142_v15  ;;  %v1078_v15 = vld [vmem:[%s1793_s0 + $0x30] sm:$0xff] }
  0x12   :  { %v266_v17 = vld [vmem:[%s1792_s2 + $0x760] sm:$0xff]  ;;  %348 = vmatpush.msra.mxu2 %v202_v16  ;;  %v83_v16 = vld [vmem:[%s1792_s2 + $0x1a8] sm:$0xff] }
  0x13   :  { %v74_v18 = vld [vmem:[%s1792_s2 + $0x160] sm:$0xff]  ;;  %377 = vmatpush.msra.mxu3 %v266_v17  ;;  %v147_v17 = vld [vmem:[%s1792_s2 + $0x3a8] sm:$0xff] }
  0x14   :  { %v138_v19 = vld [vmem:[%s1792_s2 + $0x360] sm:$0xff]  ;;  %290 = vmatpush.msra.mxu0 %v74_v18  ;;  %v203_v18 = vld [vmem:[%s1792_s2 + $0x568] sm:$0xff] }
  0x15   :  { %v198_v20 = vld [vmem:[%s1792_s2 + $0x540] sm:$0xff]  ;;  %319 = vmatpush.msra.mxu1 %v138_v19  ;;  %v271_v19 = vld [vmem:[%s1792_s2 + $0x788] sm:$0xff] }
  0x16   :  { %v262_v21 = vld [vmem:[%s1792_s2 + $0x740] sm:$0xff]  ;;  %349 = vmatpush.msra.mxu2 %v198_v20  ;;  %v1096_v20 = vld [vmem:[%s1793_s0 + $0x38] sm:$0xff] }
  0x17   :  { %v70_v22 = vld [vmem:[%s1792_s2 + $0x140] sm:$0xff]  ;;  %378 = vmatpush.msra.mxu3 %v262_v21  ;;  %v79_v21 = vld [vmem:[%s1792_s2 + $0x188] sm:$0xff] }
  0x18   :  { %v134_v23 = vld [vmem:[%s1792_s2 + $0x340] sm:$0xff]  ;;  %291 = vmatpush.msra.mxu0 %v70_v22  ;;  %v143_v22 = vld [vmem:[%s1792_s2 + $0x388] sm:$0xff] }
  0x19   :  { %v194_v24 = vld [vmem:[%s1792_s2 + $0x520] sm:$0xff]  ;;  %320 = vmatpush.msra.mxu1 %v134_v23  ;;  %v199_v23 = vld [vmem:[%s1792_s2 + $0x548] sm:$0xff] }
  0x1a   :  { %v258_v25 = vld [vmem:[%s1792_s2 + $0x720] sm:$0xff]  ;;  %350 = vmatpush.msra.mxu2 %v194_v24  ;;  %v267_v24 = vld [vmem:[%s1792_s2 + $0x768] sm:$0xff] }
  0x1b   :  { %v66_v26 = vld [vmem:[%s1792_s2 + $0x120] sm:$0xff]  ;;  %379 = vmatpush.msra.mxu3 %v258_v25 }
  0x1c   :  { %v130_v27 = vld [vmem:[%s1792_s2 + $0x320] sm:$0xff]  ;;  %292 = vmatpush.msra.mxu0 %v66_v26  ;;  %v1119_v26 = vld [vmem:[%s1793_s0 + $0x28] sm:$0xff] }
  0x1d   :  { %v190_v28 = vld [vmem:[%s1792_s2 + $0x500] sm:$0xff]  ;;  %321 = vmatpush.msra.mxu1 %v130_v27  ;;  %v75_v27 = vld [vmem:[%s1792_s2 + $0x168] sm:$0xff] }
  0x1e   :  { %v254_v29 = vld [vmem:[%s1792_s2 + $0x700] sm:$0xff]  ;;  %351 = vmatpush.msra.mxu2 %v190_v28  ;;  %v139_v28 = vld [vmem:[%s1792_s2 + $0x368] sm:$0xff] }
  0x1f   :  { %v62_v30 = vld [vmem:[%s1792_s2 + $0x100] sm:$0xff]  ;;  %380 = vmatpush.msra.mxu3 %v254_v29  ;;  %v195_v29 = vld [vmem:[%s1792_s2 + $0x528] sm:$0xff] }
  0x20   :  { %v126_v31 = vld [vmem:[%s1792_s2 + $0x300] sm:$0xff]  ;;  %293 = vmatpush.msra.mxu0 %v62_v30  ;;  %v263_v30 = vld [vmem:[%s1792_s2 + $0x748] sm:$0xff] }
  0x21   :  { %v186_v32 = vld [vmem:[%s1792_s2 + $0x4e0] sm:$0xff]  ;;  %322 = vmatpush.msra.mxu1 %v126_v31  ;;  %v71_v31 = vld [vmem:[%s1792_s2 + $0x148] sm:$0xff] }
  0x22   :  { %v250_v33 = vld [vmem:[%s1792_s2 + $0x6e0] sm:$0xff]  ;;  %352 = vmatpush.msra.mxu2 %v186_v32  ;;  %v135_v32 = vld [vmem:[%s1792_s2 + $0x348] sm:$0xff] }
  0x23   :  { %v58_v34 = vld [vmem:[%s1792_s2 + $0xe0] sm:$0xff]  ;;  %381 = vmatpush.msra.mxu3 %v250_v33  ;;  %v191_v33 = vld [vmem:[%s1792_s2 + $0x508] sm:$0xff] }
  0x24   :  { %v122_v35 = vld [vmem:[%s1792_s2 + $0x2e0] sm:$0xff]  ;;  %294 = vmatpush.msra.mxu0 %v58_v34  ;;  %v259_v34 = vld [vmem:[%s1792_s2 + $0x728] sm:$0xff] }
  0x25   :  { %v182_v36 = vld [vmem:[%s1792_s2 + $0x4c0] sm:$0xff]  ;;  %323 = vmatpush.msra.mxu1 %v122_v35  ;;  %v1150_v35 = vld [vmem:[%s1793_s0 + $0x50] sm:$0xff] }
  0x26   :  { %v246_v37 = vld [vmem:[%s1792_s2 + $0x6c0] sm:$0xff]  ;;  %353 = vmatpush.msra.mxu2 %v182_v36  ;;  %v67_v36 = vld [vmem:[%s1792_s2 + $0x128] sm:$0xff] }
  0x27   :  { %v54_v38 = vld [vmem:[%s1792_s2 + $0xc0] sm:$0xff]  ;;  %382 = vmatpush.msra.mxu3 %v246_v37  ;;  %v131_v37 = vld [vmem:[%s1792_s2 + $0x328] sm:$0xff] }
  0x28   :  { %v118_v39 = vld [vmem:[%s1792_s2 + $0x2c0] sm:$0xff]  ;;  %295 = vmatpush.msra.mxu0 %v54_v38  ;;  %v187_v38 = vld [vmem:[%s1792_s2 + $0x4e8] sm:$0xff] }
  0x29   :  { %v178_v40 = vld [vmem:[%s1792_s2 + $0x4a0] sm:$0xff]  ;;  %324 = vmatpush.msra.mxu1 %v118_v39  ;;  %v255_v39 = vld [vmem:[%s1792_s2 + $0x708] sm:$0xff] }
  0x2a   :  { %v242_v41 = vld [vmem:[%s1792_s2 + $0x6a0] sm:$0xff]  ;;  %354 = vmatpush.msra.mxu2 %v178_v40  ;;  %v1168_v40 = vld [vmem:[%s1793_s0 + $0x58] sm:$0xff] }
  0x2b   :  { %v50_v42 = vld [vmem:[%s1792_s2 + $0xa0] sm:$0xff]  ;;  %383 = vmatpush.msra.mxu3 %v242_v41  ;;  %v63_v41 = vld [vmem:[%s1792_s2 + $0x108] sm:$0xff] }
  0x2c   :  { %v114_v43 = vld [vmem:[%s1792_s2 + $0x2a0] sm:$0xff]  ;;  %296 = vmatpush.msra.mxu0 %v50_v42  ;;  %v127_v42 = vld [vmem:[%s1792_s2 + $0x308] sm:$0xff] }
  0x2d   :  { %v174_v44 = vld [vmem:[%s1792_s2 + $0x480] sm:$0xff]  ;;  %325 = vmatpush.msra.mxu1 %v114_v43  ;;  %v183_v43 = vld [vmem:[%s1792_s2 + $0x4c8] sm:$0xff] }
  0x2e   :  { %v238_v45 = vld [vmem:[%s1792_s2 + $0x680] sm:$0xff]  ;;  %355 = vmatpush.msra.mxu2 %v174_v44  ;;  %v251_v44 = vld [vmem:[%s1792_s2 + $0x6e8] sm:$0xff] }
  0x2f   :  { %v46_v46 = vld [vmem:[%s1792_s2 + $0x80] sm:$0xff]  ;;  %384 = vmatpush.msra.mxu3 %v238_v45 }
  0x30   :  { %v110_v47 = vld [vmem:[%s1792_s2 + $0x280] sm:$0xff]  ;;  %297 = vmatpush.msra.mxu0 %v46_v46  ;;  %v1191_v46 = vld [vmem:[%s1793_s0 + $0x48] sm:$0xff] }
  0x31   :  { %v170_v48 = vld [vmem:[%s1792_s2 + $0x460] sm:$0xff]  ;;  %326 = vmatpush.msra.mxu1 %v110_v47  ;;  %v59_v47 = vld [vmem:[%s1792_s2 + $0xe8] sm:$0xff] }
  0x32   :  { %v234_v49 = vld [vmem:[%s1792_s2 + $0x660] sm:$0xff]  ;;  %356 = vmatpush.msra.mxu2 %v170_v48  ;;  %v123_v48 = vld [vmem:[%s1792_s2 + $0x2e8] sm:$0xff] }
  0x33   :  { %v42_v50 = vld [vmem:[%s1792_s2 + $0x60] sm:$0xff]  ;;  %385 = vmatpush.msra.mxu3 %v234_v49  ;;  %v179_v49 = vld [vmem:[%s1792_s2 + $0x4a8] sm:$0xff] }
  0x34   :  { %v106_v51 = vld [vmem:[%s1792_s2 + $0x260] sm:$0xff]  ;;  %298 = vmatpush.msra.mxu0 %v42_v50  ;;  %v247_v50 = vld [vmem:[%s1792_s2 + $0x6c8] sm:$0xff] }
  0x35   :  { %v166_v52 = vld [vmem:[%s1792_s2 + $0x440] sm:$0xff]  ;;  %327 = vmatpush.msra.mxu1 %v106_v51  ;;  %v55_v51 = vld [vmem:[%s1792_s2 + $0xc8] sm:$0xff] }
  0x36   :  { %v230_v53 = vld [vmem:[%s1792_s2 + $0x640] sm:$0xff]  ;;  %357 = vmatpush.msra.mxu2 %v166_v52  ;;  %v119_v52 = vld [vmem:[%s1792_s2 + $0x2c8] sm:$0xff] }
  0x37   :  { %v38_v54 = vld [vmem:[%s1792_s2 + $0x40] sm:$0xff]  ;;  %386 = vmatpush.msra.mxu3 %v230_v53  ;;  %v175_v53 = vld [vmem:[%s1792_s2 + $0x488] sm:$0xff] }
  0x38   :  { %v102_v55 = vld [vmem:[%s1792_s2 + $0x240] sm:$0xff]  ;;  %299 = vmatpush.msra.mxu0 %v38_v54  ;;  %v243_v54 = vld [vmem:[%s1792_s2 + $0x6a8] sm:$0xff] }
  0x39   :  { %v162_v56 = vld [vmem:[%s1792_s2 + $0x420] sm:$0xff]  ;;  %328 = vmatpush.msra.mxu1 %v102_v55  ;;  %v1222_v55 = vld [vmem:[%s1793_s0 + $0x70] sm:$0xff] }
  0x3a   :  { %v226_v57 = vld [vmem:[%s1792_s2 + $0x620] sm:$0xff]  ;;  %358 = vmatpush.msra.mxu2 %v162_v56  ;;  %v51_v56 = vld [vmem:[%s1792_s2 + $0xa8] sm:$0xff] }
  0x3b   :  { %v34_v58 = vld [vmem:[%s1792_s2 + $0x20] sm:$0xff]  ;;  %387 = vmatpush.msra.mxu3 %v226_v57  ;;  %v115_v57 = vld [vmem:[%s1792_s2 + $0x2a8] sm:$0xff] }
  0x3c   :  { %v98_v59 = vld [vmem:[%s1792_s2 + $0x220] sm:$0xff]  ;;  %300 = vmatpush.msra.mxu0 %v34_v58  ;;  %v171_v58 = vld [vmem:[%s1792_s2 + $0x468] sm:$0xff] }
  0x3d   :  { %v158_v60 = vld [vmem:[%s1792_s2 + $0x400] sm:$0xff]  ;;  %329 = vmatpush.msra.mxu1 %v98_v59  ;;  %v239_v59 = vld [vmem:[%s1792_s2 + $0x688] sm:$0xff] }
  0x3e   :  { %v222_v61 = vld [vmem:[%s1792_s2 + $0x600] sm:$0xff]  ;;  %359 = vmatpush.msra.mxu2 %v158_v60  ;;  %v1240_v60 = vld [vmem:[%s1793_s0 + $0x78] sm:$0xff] }
  0x3f   :  { %388 = vmatpush.msra.mxu3 %v222_v61  ;;  %v30_v2 = vld [vmem:[%s1792_s2] sm:$0xff]  ;;  %360 = vmatmul.f32.vlgmr.msra.gmra.mxu2 %v1015_v62  ;;  %v47_v61 = vld [vmem:[%s1792_s2 + $0x88] sm:$0xff] }
  0x40   :  { %v94_v3 = vld [vmem:[%s1792_s2 + $0x200] sm:$0xff]  ;;  %389 = vmatmul.f32.vlgmr.msra.gmra.mxu3 %v1020_v63  ;;  %460 = vmatpush.msrb.mxu2 %v219_v0  ;;  %v111_v0 = vld [vmem:[%s1792_s2 + $0x288] sm:$0xff] }
  0x41   :  { %v1042_v5 = vld [vmem:[%s1793_s0] sm:$0xff]  ;;  %489 = vmatpush.msrb.mxu3 %v283_v1  ;;  %301 = vmatpush.msra.mxu0 %v30_v2  ;;  %v167_v1 = vld [vmem:[%s1792_s2 + $0x448] sm:$0xff] }
  0x42   :  { %330 = vmatpush.msra.mxu1 %v94_v3  ;;  %461 = vmatpush.msrb.mxu2 %v215_v4  ;;  %v1113_v25 = vld [vmem:[%s1793_s0 + $0x20] sm:$0xff]  ;;  %v235_v2 = vld [vmem:[%s1792_s2 + $0x668] sm:$0xff] }
  0x43   :  { %302 = vmatmul.f32.vlgmr.msra.gmra.mxu0 %v1042_v5  ;;  %331 = vmatmul.f32.vlgmr.msra.gmra.mxu1 %v1047_v6  ;;  %v1185_v45 = vld [vmem:[%s1793_s0 + $0x40] sm:$0xff]  ;;  %v1263_v4 = vld [vmem:[%s1793_s0 + $0x68] sm:$0xff] }
  0x44   :  { %402 = vmatpush.msrb.mxu0 %v91_v7  ;;  %431 = vmatpush.msrb.mxu1 %v155_v8  ;;  %v1257_v3 = vld [vmem:[%s1793_s0 + $0x60] sm:$0xff]  ;;  %v43_v7 = vld [vmem:[%s1792_s2 + $0x68] sm:$0xff] }
  0x45   :  { %462 = vmatpush.msrb.mxu2 %v211_v9  ;;  %490 = vmatpush.msrb.mxu3 %v279_v10  ;;  %v107_v8 = vld [vmem:[%s1792_s2 + $0x268] sm:$0xff] }
  0x46   :  { %403 = vmatpush.msrb.mxu0 %v87_v11  ;;  %432 = vmatpush.msrb.mxu1 %v151_v12  ;;  %v163_v9 = vld [vmem:[%s1792_s2 + $0x428] sm:$0xff] }
  0x47   :  { %463 = vmatpush.msrb.mxu2 %v207_v13  ;;  %491 = vmatpush.msrb.mxu3 %v275_v14  ;;  %v231_v10 = vld [vmem:[%s1792_s2 + $0x648] sm:$0xff] }
  0x48   :  { %363 = vmatmul.f32.gmra.mxu2 %v1078_v15  ;;  %404 = vmatpush.msrb.mxu0 %v83_v16  ;;  %v39_v11 = vld [vmem:[%s1792_s2 + $0x48] sm:$0xff] }
  0x49   :  { %433 = vmatpush.msrb.mxu1 %v147_v17  ;;  %464 = vmatpush.msrb.mxu2 %v203_v18  ;;  %v103_v12 = vld [vmem:[%s1792_s2 + $0x248] sm:$0xff] }
  0x4a   :  { %492 = vmatpush.msrb.mxu3 %v271_v19  ;;  %405 = vmatpush.msrb.mxu0 %v79_v21  ;;  %v159_v13 = vld [vmem:[%s1792_s2 + $0x408] sm:$0xff]  ;;  %v220_v19 = vld [vmem:[%s1792_s2 + $0x5f0] sm:$0xff] }
  0x4b   :  { %392 = vmatmul.f32.gmra.mxu3 %v1096_v20  ;;  %434 = vmatpush.msrb.mxu1 %v143_v22  ;;  %v227_v14 = vld [vmem:[%s1792_s2 + $0x628] sm:$0xff] }
  0x4c   :  { %465 = vmatpush.msrb.mxu2 %v199_v23  ;;  %493 = vmatpush.msrb.mxu3 %v267_v24  ;;  %v35_v16 = vld [vmem:[%s1792_s2 + $0x28] sm:$0xff]  ;;  %v216_v23 = vld [vmem:[%s1792_s2 + $0x5d0] sm:$0xff] }
  0x4d   :  { %305 = vmatmul.f32.gmra.mxu0 %v1113_v25  ;;  %334 = vmatmul.f32.gmra.mxu1 %v1119_v26  ;;  %v99_v17 = vld [vmem:[%s1792_s2 + $0x228] sm:$0xff]  ;;  %v284_v24 = vld [vmem:[%s1792_s2 + $0x7f0] sm:$0xff] }
  0x4e   :  { %406 = vmatpush.msrb.mxu0 %v75_v27  ;;  %435 = vmatpush.msrb.mxu1 %v139_v28  ;;  %v223_v18 = vld [vmem:[%s1792_s2 + $0x608] sm:$0xff]  ;;  %v92_v27 = vld [vmem:[%s1792_s2 + $0x1f0] sm:$0xff] }
  0x4f   :  { %466 = vmatpush.msrb.mxu2 %v195_v29  ;;  %494 = vmatpush.msrb.mxu3 %v263_v30  ;;  %v31_v21 = vld [vmem:[%s1792_s2 + $0x8] sm:$0xff]  ;;  %v156_v28 = vld [vmem:[%s1792_s2 + $0x3f0] sm:$0xff] }
  0x50   :  { %407 = vmatpush.msrb.mxu0 %v71_v31  ;;  %436 = vmatpush.msrb.mxu1 %v135_v32  ;;  %v95_v22 = vld [vmem:[%s1792_s2 + $0x208] sm:$0xff]  ;;  %v212_v29 = vld [vmem:[%s1792_s2 + $0x5b0] sm:$0xff] }
  0x51   :  { %467 = vmatpush.msrb.mxu2 %v191_v33  ;;  %495 = vmatpush.msrb.mxu3 %v259_v34  ;;  %v280_v30 = vld [vmem:[%s1792_s2 + $0x7d0] sm:$0xff] }
  0x52   :  { %366 = vmatmul.f32.gmra.mxu2 %v1150_v35  ;;  %408 = vmatpush.msrb.mxu0 %v67_v36  ;;  %v88_v31 = vld [vmem:[%s1792_s2 + $0x1d0] sm:$0xff] }
  0x53   :  { %437 = vmatpush.msrb.mxu1 %v131_v37  ;;  %468 = vmatpush.msrb.mxu2 %v187_v38  ;;  %v152_v32 = vld [vmem:[%s1792_s2 + $0x3d0] sm:$0xff] }
  0x54   :  { %496 = vmatpush.msrb.mxu3 %v255_v39  ;;  %409 = vmatpush.msrb.mxu0 %v63_v41  ;;  %v208_v33 = vld [vmem:[%s1792_s2 + $0x590] sm:$0xff] }
  0x55   :  { %395 = vmatmul.f32.gmra.mxu3 %v1168_v40  ;;  %438 = vmatpush.msrb.mxu1 %v127_v42  ;;  %v276_v34 = vld [vmem:[%s1792_s2 + $0x7b0] sm:$0xff] }
  0x56   :  { %469 = vmatpush.msrb.mxu2 %v183_v43  ;;  %497 = vmatpush.msrb.mxu3 %v251_v44  ;;  %v84_v36 = vld [vmem:[%s1792_s2 + $0x1b0] sm:$0xff] }
  0x57   :  { %308 = vmatmul.f32.gmra.mxu0 %v1185_v45  ;;  %337 = vmatmul.f32.gmra.mxu1 %v1191_v46  ;;  %v148_v37 = vld [vmem:[%s1792_s2 + $0x3b0] sm:$0xff] }
  0x58   :  { %410 = vmatpush.msrb.mxu0 %v59_v47  ;;  %439 = vmatpush.msrb.mxu1 %v123_v48  ;;  %v204_v38 = vld [vmem:[%s1792_s2 + $0x570] sm:$0xff] }
  0x59   :  { %470 = vmatpush.msrb.mxu2 %v179_v49  ;;  %498 = vmatpush.msrb.mxu3 %v247_v50  ;;  %v272_v39 = vld [vmem:[%s1792_s2 + $0x790] sm:$0xff] }
  0x5a   :  { %411 = vmatpush.msrb.mxu0 %v55_v51  ;;  %440 = vmatpush.msrb.mxu1 %v119_v52  ;;  %v80_v41 = vld [vmem:[%s1792_s2 + $0x190] sm:$0xff] }
  0x5b   :  { %471 = vmatpush.msrb.mxu2 %v175_v53  ;;  %499 = vmatpush.msrb.mxu3 %v243_v54  ;;  %v144_v42 = vld [vmem:[%s1792_s2 + $0x390] sm:$0xff] }
  0x5c   :  { %369 = vmatmul.f32.gmra.mxu2 %v1222_v55  ;;  %412 = vmatpush.msrb.mxu0 %v51_v56  ;;  %v200_v43 = vld [vmem:[%s1792_s2 + $0x550] sm:$0xff] }
  0x5d   :  { %441 = vmatpush.msrb.mxu1 %v115_v57  ;;  %472 = vmatpush.msrb.mxu2 %v171_v58  ;;  %v268_v44 = vld [vmem:[%s1792_s2 + $0x770] sm:$0xff] }
  0x5e   :  { %500 = vmatpush.msrb.mxu3 %v239_v59  ;;  %413 = vmatpush.msrb.mxu0 %v47_v61  ;;  %v76_v47 = vld [vmem:[%s1792_s2 + $0x170] sm:$0xff] }
  0x5f   :  { %398 = vmatmul.f32.gmra.mxu3 %v1240_v60  ;;  %442 = vmatpush.msrb.mxu1 %v111_v0  ;;  %v140_v48 = vld [vmem:[%s1792_s2 + $0x370] sm:$0xff] }
  0x60   :  { %473 = vmatpush.msrb.mxu2 %v167_v1  ;;  %501 = vmatpush.msrb.mxu3 %v235_v2  ;;  %v196_v49 = vld [vmem:[%s1792_s2 + $0x530] sm:$0xff] }
  0x61   :  { %311 = vmatmul.f32.gmra.mxu0 %v1257_v3  ;;  %340 = vmatmul.f32.gmra.mxu1 %v1263_v4  ;;  %v264_v50 = vld [vmem:[%s1792_s2 + $0x750] sm:$0xff] }
  0x62   :  { %414 = vmatpush.msrb.mxu0 %v43_v7  ;;  %443 = vmatpush.msrb.mxu1 %v107_v8  ;;  %v72_v51 = vld [vmem:[%s1792_s2 + $0x150] sm:$0xff] }
  0x63   :  { %474 = vmatpush.msrb.mxu2 %v163_v9  ;;  %502 = vmatpush.msrb.mxu3 %v231_v10  ;;  %v136_v52 = vld [vmem:[%s1792_s2 + $0x350] sm:$0xff] }
  0x64   :  { %415 = vmatpush.msrb.mxu0 %v39_v11  ;;  %444 = vmatpush.msrb.mxu1 %v103_v12  ;;  %v192_v53 = vld [vmem:[%s1792_s2 + $0x510] sm:$0xff] }
  0x65   :  { %475 = vmatpush.msrb.mxu2 %v159_v13  ;;  %503 = vmatpush.msrb.mxu3 %v227_v14  ;;  %v260_v54 = vld [vmem:[%s1792_s2 + $0x730] sm:$0xff] }
  0x66   :  { %416 = vmatpush.msrb.mxu0 %v35_v16  ;;  %445 = vmatpush.msrb.mxu1 %v99_v17  ;;  %v68_v56 = vld [vmem:[%s1792_s2 + $0x130] sm:$0xff] }
  0x67   :  { %476 = vmatmul.f32.vlgmr.msrb.gmra.mxu2 %v1015_v62  ;;  %504 = vmatpush.msrb.mxu3 %v223_v18  ;;  %v132_v57 = vld [vmem:[%s1792_s2 + $0x330] sm:$0xff] }
  0x68   :  { %576 = vmatpush.msra.mxu2 %v220_v19  ;;  %417 = vmatpush.msrb.mxu0 %v31_v21  ;;  %v188_v58 = vld [vmem:[%s1792_s2 + $0x4f0] sm:$0xff] }
  0x69   :  { %446 = vmatpush.msrb.mxu1 %v95_v22  ;;  %505 = vmatmul.f32.vlgmr.msrb.gmra.mxu3 %v1020_v63  ;;  %v256_v59 = vld [vmem:[%s1792_s2 + $0x710] sm:$0xff] }
  0x6a   :  { %577 = vmatpush.msra.mxu2 %v216_v23  ;;  %605 = vmatpush.msra.mxu3 %v284_v24  ;;  %v64_v61 = vld [vmem:[%s1792_s2 + $0x110] sm:$0xff] }
  0x6b   :  { %418 = vmatmul.f32.vlgmr.msrb.gmra.mxu0 %v1042_v5  ;;  %447 = vmatmul.f32.vlgmr.msrb.gmra.mxu1 %v1047_v6  ;;  %v128_v0 = vld [vmem:[%s1792_s2 + $0x310] sm:$0xff] }
  0x6c   :  { %518 = vmatpush.msra.mxu0 %v92_v27  ;;  %547 = vmatpush.msra.mxu1 %v156_v28  ;;  %v184_v1 = vld [vmem:[%s1792_s2 + $0x4d0] sm:$0xff] }
  0x6d   :  { %578 = vmatpush.msra.mxu2 %v212_v29  ;;  %606 = vmatpush.msra.mxu3 %v280_v30  ;;  %v252_v2 = vld [vmem:[%s1792_s2 + $0x6f0] sm:$0xff] }
  0x6e   :  { %519 = vmatpush.msra.mxu0 %v88_v31  ;;  %548 = vmatpush.msra.mxu1 %v152_v32  ;;  %v60_v7 = vld [vmem:[%s1792_s2 + $0xf0] sm:$0xff] }
  0x6f   :  { %579 = vmatpush.msra.mxu2 %v208_v33  ;;  %607 = vmatpush.msra.mxu3 %v276_v34  ;;  %v124_v8 = vld [vmem:[%s1792_s2 + $0x2f0] sm:$0xff] }
  0x70   :  { %479 = vmatmul.f32.gmra.mxu2 %v1078_v15  ;;  %520 = vmatpush.msra.mxu0 %v84_v36  ;;  %v180_v9 = vld [vmem:[%s1792_s2 + $0x4b0] sm:$0xff] }
  0x71   :  { %549 = vmatpush.msra.mxu1 %v148_v37  ;;  %580 = vmatpush.msra.mxu2 %v204_v38  ;;  %v248_v10 = vld [vmem:[%s1792_s2 + $0x6d0] sm:$0xff] }
  0x72   :  { %608 = vmatpush.msra.mxu3 %v272_v39  ;;  %521 = vmatpush.msra.mxu0 %v80_v41  ;;  %v56_v11 = vld [vmem:[%s1792_s2 + $0xd0] sm:$0xff]  ;;  %v221_v39 = vld [vmem:[%s1792_s2 + $0x5f8] sm:$0xff] }
  0x73   :  { %508 = vmatmul.f32.gmra.mxu3 %v1096_v20  ;;  %550 = vmatpush.msra.mxu1 %v144_v42  ;;  %v120_v12 = vld [vmem:[%s1792_s2 + $0x2d0] sm:$0xff] }
  0x74   :  { %581 = vmatpush.msra.mxu2 %v200_v43  ;;  %609 = vmatpush.msra.mxu3 %v268_v44  ;;  %v176_v13 = vld [vmem:[%s1792_s2 + $0x490] sm:$0xff]  ;;  %v217_v43 = vld [vmem:[%s1792_s2 + $0x5d8] sm:$0xff] }
  0x75   :  { %421 = vmatmul.f32.gmra.mxu0 %v1113_v25  ;;  %450 = vmatmul.f32.gmra.mxu1 %v1119_v26  ;;  %v244_v14 = vld [vmem:[%s1792_s2 + $0x6b0] sm:$0xff]  ;;  %v285_v44 = vld [vmem:[%s1792_s2 + $0x7f8] sm:$0xff] }
  0x76   :  { %522 = vmatpush.msra.mxu0 %v76_v47  ;;  %551 = vmatpush.msra.mxu1 %v140_v48  ;;  %v52_v16 = vld [vmem:[%s1792_s2 + $0xb0] sm:$0xff]  ;;  %v93_v47 = vld [vmem:[%s1792_s2 + $0x1f8] sm:$0xff] }
  0x77   :  { %582 = vmatpush.msra.mxu2 %v196_v49  ;;  %610 = vmatpush.msra.mxu3 %v264_v50  ;;  %v116_v17 = vld [vmem:[%s1792_s2 + $0x2b0] sm:$0xff]  ;;  %v157_v48 = vld [vmem:[%s1792_s2 + $0x3f8] sm:$0xff] }
  0x78   :  { %523 = vmatpush.msra.mxu0 %v72_v51  ;;  %552 = vmatpush.msra.mxu1 %v136_v52  ;;  %v172_v18 = vld [vmem:[%s1792_s2 + $0x470] sm:$0xff]  ;;  %v213_v49 = vld [vmem:[%s1792_s2 + $0x5b8] sm:$0xff] }
  0x79   :  { %583 = vmatpush.msra.mxu2 %v192_v53  ;;  %611 = vmatpush.msra.mxu3 %v260_v54  ;;  %v240_v19 = vld [vmem:[%s1792_s2 + $0x690] sm:$0xff]  ;;  %v281_v50 = vld [vmem:[%s1792_s2 + $0x7d8] sm:$0xff] }
  0x7a   :  { %482 = vmatmul.f32.gmra.mxu2 %v1150_v35  ;;  %524 = vmatpush.msra.mxu0 %v68_v56  ;;  %v48_v21 = vld [vmem:[%s1792_s2 + $0x90] sm:$0xff]  ;;  %v89_v51 = vld [vmem:[%s1792_s2 + $0x1d8] sm:$0xff] }
  0x7b   :  { %553 = vmatpush.msra.mxu1 %v132_v57  ;;  %584 = vmatpush.msra.mxu2 %v188_v58  ;;  %v112_v22 = vld [vmem:[%s1792_s2 + $0x290] sm:$0xff]  ;;  %v153_v52 = vld [vmem:[%s1792_s2 + $0x3d8] sm:$0xff] }
  0x7c   :  { %612 = vmatpush.msra.mxu3 %v256_v59  ;;  %525 = vmatpush.msra.mxu0 %v64_v61  ;;  %v168_v23 = vld [vmem:[%s1792_s2 + $0x450] sm:$0xff]  ;;  %v209_v53 = vld [vmem:[%s1792_s2 + $0x598] sm:$0xff] }
  0x7d   :  { %511 = vmatmul.f32.gmra.mxu3 %v1168_v40  ;;  %554 = vmatpush.msra.mxu1 %v128_v0  ;;  %v236_v24 = vld [vmem:[%s1792_s2 + $0x670] sm:$0xff]  ;;  %v277_v54 = vld [vmem:[%s1792_s2 + $0x7b8] sm:$0xff] }
  0x7e   :  { %585 = vmatpush.msra.mxu2 %v184_v1  ;;  %613 = vmatpush.msra.mxu3 %v252_v2  ;;  %v44_v27 = vld [vmem:[%s1792_s2 + $0x70] sm:$0xff]  ;;  %v85_v56 = vld [vmem:[%s1792_s2 + $0x1b8] sm:$0xff] }
  0x7f   :  { %424 = vmatmul.f32.gmra.mxu0 %v1185_v45  ;;  %453 = vmatmul.f32.gmra.mxu1 %v1191_v46  ;;  %v108_v28 = vld [vmem:[%s1792_s2 + $0x270] sm:$0xff]  ;;  %v149_v57 = vld [vmem:[%s1792_s2 + $0x3b8] sm:$0xff] }
  0x80   :  { %526 = vmatpush.msra.mxu0 %v60_v7  ;;  %555 = vmatpush.msra.mxu1 %v124_v8  ;;  %v164_v29 = vld [vmem:[%s1792_s2 + $0x430] sm:$0xff]  ;;  %v205_v58 = vld [vmem:[%s1792_s2 + $0x578] sm:$0xff] }
  0x81   :  { %586 = vmatpush.msra.mxu2 %v180_v9  ;;  %614 = vmatpush.msra.mxu3 %v248_v10  ;;  %v232_v30 = vld [vmem:[%s1792_s2 + $0x650] sm:$0xff]  ;;  %v273_v59 = vld [vmem:[%s1792_s2 + $0x798] sm:$0xff] }
  0x82   :  { %527 = vmatpush.msra.mxu0 %v56_v11  ;;  %556 = vmatpush.msra.mxu1 %v120_v12  ;;  %v40_v31 = vld [vmem:[%s1792_s2 + $0x50] sm:$0xff]  ;;  %v81_v61 = vld [vmem:[%s1792_s2 + $0x198] sm:$0xff] }
  0x83   :  { %587 = vmatpush.msra.mxu2 %v176_v13  ;;  %615 = vmatpush.msra.mxu3 %v244_v14  ;;  %v104_v32 = vld [vmem:[%s1792_s2 + $0x250] sm:$0xff]  ;;  %v145_v0 = vld [vmem:[%s1792_s2 + $0x398] sm:$0xff] }
  0x84   :  { %485 = vmatmul.f32.gmra.mxu2 %v1222_v55  ;;  %528 = vmatpush.msra.mxu0 %v52_v16  ;;  %v160_v33 = vld [vmem:[%s1792_s2 + $0x410] sm:$0xff]  ;;  %v201_v1 = vld [vmem:[%s1792_s2 + $0x558] sm:$0xff] }
  0x85   :  { %557 = vmatpush.msra.mxu1 %v116_v17  ;;  %588 = vmatpush.msra.mxu2 %v172_v18  ;;  %v228_v34 = vld [vmem:[%s1792_s2 + $0x630] sm:$0xff]  ;;  %v269_v2 = vld [vmem:[%s1792_s2 + $0x778] sm:$0xff] }
  0x86   :  { %616 = vmatpush.msra.mxu3 %v240_v19  ;;  %529 = vmatpush.msra.mxu0 %v48_v21  ;;  %v36_v36 = vld [vmem:[%s1792_s2 + $0x30] sm:$0xff]  ;;  %v77_v7 = vld [vmem:[%s1792_s2 + $0x178] sm:$0xff] }
  0x87   :  { %514 = vmatmul.f32.gmra.mxu3 %v1240_v60  ;;  %558 = vmatpush.msra.mxu1 %v112_v22  ;;  %v100_v37 = vld [vmem:[%s1792_s2 + $0x230] sm:$0xff]  ;;  %v141_v8 = vld [vmem:[%s1792_s2 + $0x378] sm:$0xff] }
  0x88   :  { %589 = vmatpush.msra.mxu2 %v168_v23  ;;  %617 = vmatpush.msra.mxu3 %v236_v24  ;;  %v224_v38 = vld [vmem:[%s1792_s2 + $0x610] sm:$0xff]  ;;  %v197_v9 = vld [vmem:[%s1792_s2 + $0x538] sm:$0xff] }
  0x89   :  { %427 = vmatmul.f32.gmra.mxu0 %v1257_v3  ;;  %456 = vmatmul.f32.gmra.mxu1 %v1263_v4  ;;  %v32_v41 = vld [vmem:[%s1792_s2 + $0x10] sm:$0xff]  ;;  %v265_v10 = vld [vmem:[%s1792_s2 + $0x758] sm:$0xff] }
  0x8a   :  { %530 = vmatpush.msra.mxu0 %v44_v27  ;;  %559 = vmatpush.msra.mxu1 %v108_v28  ;;  %v96_v42 = vld [vmem:[%s1792_s2 + $0x210] sm:$0xff]  ;;  %v73_v11 = vld [vmem:[%s1792_s2 + $0x158] sm:$0xff] }
  0x8b   :  { %590 = vmatpush.msra.mxu2 %v164_v29  ;;  %618 = vmatpush.msra.mxu3 %v232_v30  ;;  %v137_v12 = vld [vmem:[%s1792_s2 + $0x358] sm:$0xff] }
  0x8c   :  { %531 = vmatpush.msra.mxu0 %v40_v31  ;;  %560 = vmatpush.msra.mxu1 %v104_v32  ;;  %v193_v13 = vld [vmem:[%s1792_s2 + $0x518] sm:$0xff] }
  0x8d   :  { %591 = vmatpush.msra.mxu2 %v160_v33  ;;  %619 = vmatpush.msra.mxu3 %v228_v34  ;;  %v261_v14 = vld [vmem:[%s1792_s2 + $0x738] sm:$0xff] }
  0x8e   :  { %532 = vmatpush.msra.mxu0 %v36_v36  ;;  %561 = vmatpush.msra.mxu1 %v100_v37  ;;  %v69_v16 = vld [vmem:[%s1792_s2 + $0x138] sm:$0xff] }
  0x8f   :  { %592 = vmatmul.f32.vlgmr.msra.gmra.mxu2 %v1015_v62  ;;  %620 = vmatpush.msra.mxu3 %v224_v38  ;;  %v133_v17 = vld [vmem:[%s1792_s2 + $0x338] sm:$0xff] }
  0x90   :  { %692 = vmatpush.msrb.mxu2 %v221_v39  ;;  %533 = vmatpush.msra.mxu0 %v32_v41  ;;  %v189_v18 = vld [vmem:[%s1792_s2 + $0x4f8] sm:$0xff] }
  0x91   :  { %562 = vmatpush.msra.mxu1 %v96_v42  ;;  %621 = vmatmul.f32.vlgmr.msra.gmra.mxu3 %v1020_v63  ;;  %v257_v19 = vld [vmem:[%s1792_s2 + $0x718] sm:$0xff] }
  0x92   :  { %693 = vmatpush.msrb.mxu2 %v217_v43  ;;  %721 = vmatpush.msrb.mxu3 %v285_v44  ;;  %v65_v21 = vld [vmem:[%s1792_s2 + $0x118] sm:$0xff] }
  0x93   :  { %534 = vmatmul.f32.vlgmr.msra.gmra.mxu0 %v1042_v5  ;;  %563 = vmatmul.f32.vlgmr.msra.gmra.mxu1 %v1047_v6  ;;  %v129_v22 = vld [vmem:[%s1792_s2 + $0x318] sm:$0xff] }
  0x94   :  { %634 = vmatpush.msrb.mxu0 %v93_v47  ;;  %663 = vmatpush.msrb.mxu1 %v157_v48  ;;  %v185_v23 = vld [vmem:[%s1792_s2 + $0x4d8] sm:$0xff] }
  0x95   :  { %694 = vmatpush.msrb.mxu2 %v213_v49  ;;  %722 = vmatpush.msrb.mxu3 %v281_v50  ;;  %v253_v24 = vld [vmem:[%s1792_s2 + $0x6f8] sm:$0xff] }
  0x96   :  { %635 = vmatpush.msrb.mxu0 %v89_v51  ;;  %664 = vmatpush.msrb.mxu1 %v153_v52  ;;  %v61_v27 = vld [vmem:[%s1792_s2 + $0xf8] sm:$0xff] }
  0x97   :  { %695 = vmatpush.msrb.mxu2 %v209_v53  ;;  %723 = vmatpush.msrb.mxu3 %v277_v54  ;;  %v125_v28 = vld [vmem:[%s1792_s2 + $0x2f8] sm:$0xff] }
  0x98   :  { %595 = vmatmul.f32.gmra.mxu2 %v1078_v15  ;;  %636 = vmatpush.msrb.mxu0 %v85_v56  ;;  %v181_v29 = vld [vmem:[%s1792_s2 + $0x4b8] sm:$0xff] }
  0x99   :  { %665 = vmatpush.msrb.mxu1 %v149_v57  ;;  %696 = vmatpush.msrb.mxu2 %v205_v58  ;;  %v249_v30 = vld [vmem:[%s1792_s2 + $0x6d8] sm:$0xff] }
  0x9a   :  { %724 = vmatpush.msrb.mxu3 %v273_v59  ;;  %637 = vmatpush.msrb.mxu0 %v81_v61  ;;  %v57_v31 = vld [vmem:[%s1792_s2 + $0xd8] sm:$0xff] }
  0x9b   :  { %624 = vmatmul.f32.gmra.mxu3 %v1096_v20  ;;  %666 = vmatpush.msrb.mxu1 %v145_v0  ;;  %v121_v32 = vld [vmem:[%s1792_s2 + $0x2d8] sm:$0xff]  ;;  %v762_v0 = vld [vmem:[%s1794_s1] sm:$0xff] }
  0x9c   :  { %697 = vmatpush.msrb.mxu2 %v201_v1  ;;  %725 = vmatpush.msrb.mxu3 %v269_v2  ;;  %v177_v33 = vld [vmem:[%s1792_s2 + $0x498] sm:$0xff]  ;;  %v764_v1 = vld [vmem:[%s1794_s1 + $0x10] sm:$0xff]  ;;  %v805_v2 = vmov 0  }
  0x9d   :  { %537 = vmatmul.f32.gmra.mxu0 %v1113_v25  ;;  %566 = vmatmul.f32.gmra.mxu1 %v1119_v26  ;;  %v245_v34 = vld [vmem:[%s1792_s2 + $0x6b8] sm:$0xff] }
  0x9e   :  { %638 = vmatpush.msrb.mxu0 %v77_v7  ;;  %667 = vmatpush.msrb.mxu1 %v141_v8  ;;  %v53_v36 = vld [vmem:[%s1792_s2 + $0xb8] sm:$0xff] }
  0x9f   :  { %698 = vmatpush.msrb.mxu2 %v197_v9  ;;  %726 = vmatpush.msrb.mxu3 %v265_v10  ;;  %v117_v37 = vld [vmem:[%s1792_s2 + $0x2b8] sm:$0xff] }
  0xa0   :  { %639 = vmatpush.msrb.mxu0 %v73_v11  ;;  %668 = vmatpush.msrb.mxu1 %v137_v12  ;;  %v173_v38 = vld [vmem:[%s1792_s2 + $0x478] sm:$0xff] }
  0xa1   :  { %699 = vmatpush.msrb.mxu2 %v193_v13  ;;  %727 = vmatpush.msrb.mxu3 %v261_v14  ;;  %v241_v39 = vld [vmem:[%s1792_s2 + $0x698] sm:$0xff] }
  0xa2   :  { %598 = vmatmul.f32.gmra.mxu2 %v1150_v35  ;;  %640 = vmatpush.msrb.mxu0 %v69_v16  ;;  %v49_v41 = vld [vmem:[%s1792_s2 + $0x98] sm:$0xff] }
  0xa3   :  { %669 = vmatpush.msrb.mxu1 %v133_v17  ;;  %700 = vmatpush.msrb.mxu2 %v189_v18  ;;  %v113_v42 = vld [vmem:[%s1792_s2 + $0x298] sm:$0xff] }
  0xa4   :  { %728 = vmatpush.msrb.mxu3 %v257_v19  ;;  %641 = vmatpush.msrb.mxu0 %v65_v21  ;;  %v169_v43 = vld [vmem:[%s1792_s2 + $0x458] sm:$0xff] }
  0xa5   :  { %627 = vmatmul.f32.gmra.mxu3 %v1168_v40  ;;  %670 = vmatpush.msrb.mxu1 %v129_v22  ;;  %v237_v44 = vld [vmem:[%s1792_s2 + $0x678] sm:$0xff] }
  0xa6   :  { %701 = vmatpush.msrb.mxu2 %v185_v23  ;;  %729 = vmatpush.msrb.mxu3 %v253_v24  ;;  %v45_v47 = vld [vmem:[%s1792_s2 + $0x78] sm:$0xff] }
  0xa7   :  { %540 = vmatmul.f32.gmra.mxu0 %v1185_v45  ;;  %569 = vmatmul.f32.gmra.mxu1 %v1191_v46  ;;  %v109_v48 = vld [vmem:[%s1792_s2 + $0x278] sm:$0xff] }
  0xa8   :  { %642 = vmatpush.msrb.mxu0 %v61_v27  ;;  %671 = vmatpush.msrb.mxu1 %v125_v28  ;;  %v165_v49 = vld [vmem:[%s1792_s2 + $0x438] sm:$0xff] }
  0xa9   :  { %702 = vmatpush.msrb.mxu2 %v181_v29  ;;  %730 = vmatpush.msrb.mxu3 %v249_v30  ;;  %v233_v50 = vld [vmem:[%s1792_s2 + $0x658] sm:$0xff] }
  0xaa   :  { %643 = vmatpush.msrb.mxu0 %v57_v31  ;;  %672 = vmatpush.msrb.mxu1 %v121_v32  ;;  %v41_v51 = vld [vmem:[%s1792_s2 + $0x58] sm:$0xff] }
  0xab   :  { %703 = vmatpush.msrb.mxu2 %v177_v33  ;;  %731 = vmatpush.msrb.mxu3 %v245_v34  ;;  %v105_v52 = vld [vmem:[%s1792_s2 + $0x258] sm:$0xff] }
  0xac   :  { %601 = vmatmul.f32.gmra.mxu2 %v1222_v55  ;;  %644 = vmatpush.msrb.mxu0 %v53_v36  ;;  %v161_v53 = vld [vmem:[%s1792_s2 + $0x418] sm:$0xff] }
  0xad   :  { %673 = vmatpush.msrb.mxu1 %v117_v37  ;;  %704 = vmatpush.msrb.mxu2 %v173_v38  ;;  %v229_v54 = vld [vmem:[%s1792_s2 + $0x638] sm:$0xff] }
  0xae   :  { %732 = vmatpush.msrb.mxu3 %v241_v39  ;;  %645 = vmatpush.msrb.mxu0 %v49_v41  ;;  %v37_v56 = vld [vmem:[%s1792_s2 + $0x38] sm:$0xff] }
  0xaf   :  { %630 = vmatmul.f32.gmra.mxu3 %v1240_v60  ;;  %674 = vmatpush.msrb.mxu1 %v113_v42  ;;  %v101_v57 = vld [vmem:[%s1792_s2 + $0x238] sm:$0xff] }
  0xb0   :  { %705 = vmatpush.msrb.mxu2 %v169_v43  ;;  %733 = vmatpush.msrb.mxu3 %v237_v44  ;;  %v225_v58 = vld [vmem:[%s1792_s2 + $0x618] sm:$0xff] }
  0xb1   :  { %543 = vmatmul.f32.gmra.mxu0 %v1257_v3  ;;  %572 = vmatmul.f32.gmra.mxu1 %v1263_v4  ;;  %v33_v59 = vld [vmem:[%s1792_s2 + $0x18] sm:$0xff] }
  0xb2   :  { %646 = vmatpush.msrb.mxu0 %v45_v47  ;;  %675 = vmatpush.msrb.mxu1 %v109_v48  ;;  %v97_v61 = vld [vmem:[%s1792_s2 + $0x218] sm:$0xff] }
  0xb3   :  { %706 = vmatpush.msrb.mxu2 %v165_v49  ;;  %734 = vmatpush.msrb.mxu3 %v233_v50 }
  0xb4   :  { %647 = vmatpush.msrb.mxu0 %v41_v51  ;;  %676 = vmatpush.msrb.mxu1 %v105_v52 }
  0xb5   :  { %707 = vmatpush.msrb.mxu2 %v161_v53  ;;  %735 = vmatpush.msrb.mxu3 %v229_v54 }
  0xb6   :  { %648 = vmatpush.msrb.mxu0 %v37_v56  ;;  %677 = vmatpush.msrb.mxu1 %v101_v57 }
  0xb7   :  { %708 = vmatmul.f32.vlgmr.msrb.gmra.mxu2 %v1015_v62  ;;  %736 = vmatpush.msrb.mxu3 %v225_v58 }
  0xb8   :  { %649 = vmatpush.msrb.mxu0 %v33_v59  ;;  %678 = vmatpush.msrb.mxu1 %v97_v61 }
  0xb9   :  { %737 = vmatmul.f32.vlgmr.msrb.gmra.mxu3 %v1020_v63  ;;  %650 = vmatmul.f32.vlgmr.msrb.gmra.mxu0 %v1042_v5  ;;  %v763_v63 = vld [vmem:[%s1794_s1 + $0x8] sm:$0xff]  ;;  %v765_v5 = vld [vmem:[%s1794_s1 + $0x18] sm:$0xff] }
  0xba   :  { %679 = vmatmul.f32.vlgmr.msrb.gmra.mxu1 %v1047_v6  ;;  %803 = vset.pattern.permute.xlu0 %v805_v2 }
  0xbb   :  { %804 = vset.pattern.permute.xlu1 %v805_v2  ;;  %768 = vperm.xlu0 %803, %v762_v0  }
  0xbc   :  { %778 = vperm.xlu1 %804, %v764_v1  }
  0xbf   :  { %711 = vmatmul.f32.gmra.mxu2 %v1078_v15 }
  0xc0   :  { %v303_v62 = vpop.f32.mrf.mxu0  ;;  %v332_v7 = vpop.f32.mrf.mxu1 }
  0xc1   :  { %740 = vmatmul.f32.gmra.mxu3 %v1096_v20  ;;  %653 = vmatmul.f32.gmra.mxu0 %v1113_v25  ;;  %v333_v6 = vadd.f32 %v332_v7, %v303_v62 }
  0xc2   :  { %682 = vmatmul.f32.gmra.mxu1 %v1119_v26  ;;  %v361_v8 = vpop.f32.mrf.mxu2 }
  0xc3   :  { %v390_v9 = vpop.f32.mrf.mxu3  ;;  %773 = vperm.xlu0 %803, %v763_v63   ;;  %v362_v15 = vadd.f32 %v361_v8, %v333_v6 }
  0xc4   :  { %783 = vperm.xlu1 %804, %v765_v5  }
  0xc5   :  { %v1742_v20 = vadd.f32 %v390_v9, %v362_v15 }
  0xc7   :  { %714 = vmatmul.f32.gmra.mxu2 %v1150_v35 }
  0xc9   :  { %743 = vmatmul.f32.gmra.mxu3 %v1168_v40  ;;  %656 = vmatmul.f32.gmra.mxu0 %v1185_v45 }
  0xca   :  { %685 = vmatmul.f32.gmra.mxu1 %v1191_v46  ;;  %v306_v10 = vpop.f32.mrf.mxu0  ;;  %v335_v25 = vpop.f32.mrf.mxu1 }
  0xcb   :  { %v364_v11 = vpop.f32.mrf.mxu2  ;;  %v336_v26 = vadd.f32 %v335_v25, %v306_v10 }
  0xcd   :  { %v365_v12 = vadd.f32 %v364_v11, %v336_v26 }
  0xce   :  { %v393_v13 = vpop.f32.mrf.mxu3 }
  0xcf   :  { %717 = vmatmul.f32.gmra.mxu2 %v1222_v55  ;;  %v1749_v14 = vadd.f32 %v393_v13, %v365_v12 }
  0xd1   :  { %746 = vmatmul.f32.gmra.mxu3 %v1240_v60  ;;  %659 = vmatmul.f32.gmra.mxu0 %v1257_v3 }
  0xd2   :  { %688 = vmatmul.f32.gmra.mxu1 %v1263_v4 }
  0xd4   :  { %v309_v35 = vpop.f32.mrf.mxu0  ;;  %v338_v40 = vpop.f32.mrf.mxu1 }
  0xd5   :  { %v367_v45 = vpop.f32.mrf.mxu2  ;;  %v339_v46 = vadd.f32 %v338_v40, %v309_v35 }
  0xd7   :  { %v368_v16 = vadd.f32 %v367_v45, %v339_v46 }
  0xd8   :  { %v396_v17 = vpop.f32.mrf.mxu3 }
  0xd9   :  { %v1754_v18 = vadd.f32 %v396_v17, %v368_v16 }
  0xde   :  { %v312_v19 = vpop.f32.mrf.mxu0  ;;  %v341_v21 = vpop.f32.mrf.mxu1 }
  0xdf   :  { %v370_v22 = vpop.f32.mrf.mxu2  ;;  %v342_v55 = vadd.f32 %v341_v21, %v312_v19 }
  0xe1   :  { %v371_v23 = vadd.f32 %v370_v22, %v342_v55 }
  0xe2   :  { %v399_v24 = vpop.f32.mrf.mxu3 }
  0xe3   :  { %v1756_v27 = vadd.f32 %v399_v24, %v371_v23 }
  0xe8   :  { %v419_v60 = vpop.f32.mrf.mxu0  ;;  %v448_v3 = vpop.f32.mrf.mxu1 }
  0xe9   :  { %v449_v28 = vadd.f32 %v448_v3, %v419_v60 }
  0xea   :  { %v477_v4 = vpop.f32.mrf.mxu2 }
  0xeb   :  { %v478_v29 = vadd.f32 %v477_v4, %v449_v28 }
  0xec   :  { %v506_v30 = vpop.f32.mrf.mxu3 }
  0xed   :  { %v507_v31 = vadd.f32 %v506_v30, %v478_v29 }
  0xef   :  { %v750_v32 = vmax.f32 %v1742_v20, %v507_v31 }
  0xf2   :  { %v422_v33 = vpop.f32.mrf.mxu0  ;;  %v451_v34 = vpop.f32.mrf.mxu1 }
  0xf3   :  { %v480_v36 = vpop.f32.mrf.mxu2  ;;  %v452_v37 = vadd.f32 %v451_v34, %v422_v33 }
  0xf5   :  { %v481_v38 = vadd.f32 %v480_v36, %v452_v37 }
  0xf6   :  { %v509_v39 = vpop.f32.mrf.mxu3 }
  0xf7   :  { %v1759_v41 = vadd.f32 %v509_v39, %v481_v38 }
  0xf9   :  { %v751_v42 = vmax.f32 %v1749_v14, %v1759_v41 }
  0xfc   :  { %v425_v43 = vpop.f32.mrf.mxu0  ;;  %v454_v44 = vpop.f32.mrf.mxu1 }
  0xfd   :  { %v483_v47 = vpop.f32.mrf.mxu2  ;;  %v455_v48 = vadd.f32 %v454_v44, %v425_v43 }
  0xff   :  { %v484_v49 = vadd.f32 %v483_v47, %v455_v48 }
 0x100   :  { %v512_v50 = vpop.f32.mrf.mxu3 }
 0x101   :  { %v1763_v51 = vadd.f32 %v512_v50, %v484_v49 }
 0x103   :  { %v752_v52 = vmax.f32 %v1754_v18, %v1763_v51 }
 0x106   :  { %v428_v53 = vpop.f32.mrf.mxu0  ;;  %v457_v54 = vpop.f32.mrf.mxu1 }
 0x107   :  { %v486_v56 = vpop.f32.mrf.mxu2  ;;  %v458_v57 = vadd.f32 %v457_v54, %v428_v53 }
 0x109   :  { %v487_v58 = vadd.f32 %v486_v56, %v458_v57 }
 0x10a   :  { %v515_v59 = vpop.f32.mrf.mxu3 }
 0x10b   :  { %v1767_v61 = vadd.f32 %v515_v59, %v487_v58 }
 0x10d   :  { %v753_v0 = vmax.f32 %v1756_v27, %v1767_v61 }
 0x110   :  { %v535_v1 = vpop.f32.mrf.mxu0  ;;  %v564_v2 = vpop.f32.mrf.mxu1 }
 0x111   :  { %v565_v13 = vadd.f32 %v564_v2, %v535_v1 }
 0x112   :  { %v593_v62 = vpop.f32.mrf.mxu2 }
 0x113   :  { %v594_v46 = vadd.f32 %v593_v62, %v565_v13 }
 0x114   :  { %v622_v63 = vpop.f32.mrf.mxu3 }
 0x115   :  { %v623_v21 = vadd.f32 %v622_v63, %v594_v46 }
 0x11a   :  { %v538_v7 = vpop.f32.mrf.mxu0  ;;  %v567_v5 = vpop.f32.mrf.mxu1 }
 0x11b   :  { %v596_v6 = vpop.f32.mrf.mxu2  ;;  %v568_v22 = vadd.f32 %v567_v5, %v538_v7 }
 0x11d   :  { %v597_v4 = vadd.f32 %v596_v6, %v568_v22 }
 0x11e   :  { %v625_v8 = vpop.f32.mrf.mxu3 }
 0x11f   :  { %v626_v36 = vadd.f32 %v625_v8, %v597_v4 }
 0x124   :  { %v541_v9 = vpop.f32.mrf.mxu0  ;;  %v570_v15 = vpop.f32.mrf.mxu1 }
 0x125   :  { %v599_v20 = vpop.f32.mrf.mxu2  ;;  %v571_v37 = vadd.f32 %v570_v15, %v541_v9 }
 0x127   :  { %v600_v50 = vadd.f32 %v599_v20, %v571_v37 }
 0x128   :  { %v628_v10 = vpop.f32.mrf.mxu3 }
 0x129   :  { %v629_v58 = vadd.f32 %v628_v10, %v600_v50 }
 0x12d   :  { %v769_v23 = vpop.permute.xlu0 %768 }
 0x12e   :  { %v544_v25 = vpop.f32.mrf.mxu0  ;;  %v573_v11 = vpop.f32.mrf.mxu1 }
 0x12f   :  { %v602_v26 = vpop.f32.mrf.mxu2  ;;  %v574_v59 = vadd.f32 %v573_v11, %v544_v25  ;;  %v779_v5 = vpop.permute.xlu1 %778 }
 0x131   :  { %v603_v8 = vadd.f32 %v602_v26, %v574_v59 }
 0x132   :  { %v631_v12 = vpop.f32.mrf.mxu3 }
 0x133   :  { %v632_v20 = vadd.f32 %v631_v12, %v603_v8 }
 0x135   :  { %v774_v49 = vpop.permute.xlu0 %773 }
 0x136   :  { %v651_v35 = vpop.f32.mrf.mxu0 }
 0x137   :  { %v680_v40 = vpop.f32.mrf.mxu1  ;;  %v784_v13 = vpop.permute.xlu1 %783 }
 0x138   :  { %v681_v45 = vadd.f32 %v680_v40, %v651_v35 }
 0x13a   :  { %v709_v16 = vpop.f32.mrf.mxu2 }
 0x13b   :  { %v710_v17 = vadd.f32 %v709_v16, %v681_v45 }
 0x13c   :  { %v738_v19 = vpop.f32.mrf.mxu3 }
 0x13d   :  { %v739_v55 = vadd.f32 %v738_v19, %v710_v17 }
 0x13e   :  { %v654_v60 = vpop.f32.mrf.mxu0 }
 0x13f   :  { %v754_v24 = vmax.f32 %v623_v21, %v739_v55  ;;  %v683_v3 = vpop.f32.mrf.mxu1 }
 0x140   :  { %v684_v28 = vadd.f32 %v683_v3, %v654_v60 }
 0x141   :  { %v758_v29 = vmax.f32 %v750_v32, %v754_v24 }
 0x142   :  { %v712_v30 = vpop.f32.mrf.mxu2 }
 0x143   :  { %v786_v31 = vadd.f32 %v769_v23, %v758_v29  ;;  %v713_v33 = vadd.f32 %v712_v30, %v684_v28 }
 0x144   :  { %v741_v34 = vpop.f32.mrf.mxu3 }
 0x145   :  { %v790_v38 = vmax.f32 %v786_v31, 0.0  ;;  %v742_v39 = vadd.f32 %v741_v34, %v713_v33 }
 0x146   :  { %v657_v44 = vpop.f32.mrf.mxu0 }
 0x147   :  { %794 = vst [vmem:[%s1795_s3] sm:$0xff] %v790_v38  ;;  %v755_v43 = vmax.f32 %v626_v36, %v742_v39  ;;  %v686_v47 = vpop.f32.mrf.mxu1 }
 0x148   :  { %v687_v48 = vadd.f32 %v686_v47, %v657_v44 }
 0x149   :  { %v759_v32 = vmax.f32 %v751_v42, %v755_v43 }
 0x14a   :  { %v715_v53 = vpop.f32.mrf.mxu2 }
 0x14b   :  { %v787_v54 = vadd.f32 %v774_v49, %v759_v32  ;;  %v716_v56 = vadd.f32 %v715_v53, %v687_v48 }
 0x14c   :  { %v744_v57 = vpop.f32.mrf.mxu3 }
 0x14d   :  { %v791_v1 = vmax.f32 %v787_v54, 0.0  ;;  %v745_v2 = vadd.f32 %v744_v57, %v716_v56 }
 0x14e   :  { %v660_v63 = vpop.f32.mrf.mxu0 }
 0x14f   :  { %795 = vst [vmem:[%s1795_s3 + $0x8] sm:$0xff] %v791_v1  ;;  %v756_v62 = vmax.f32 %v629_v58, %v745_v2  ;;  %v689_v7 = vpop.f32.mrf.mxu1 }
 0x150   :  { %v690_v6 = vadd.f32 %v689_v7, %v660_v63 }
 0x151   :  { %v760_v14 = vmax.f32 %v752_v52, %v756_v62 }
 0x152   :  { %v718_v41 = vpop.f32.mrf.mxu2 }
 0x153   :  { %v788_v42 = vadd.f32 %v779_v5, %v760_v14  ;;  %v719_v9 = vadd.f32 %v718_v41, %v690_v6 }
 0x154   :  { %v747_v15 = vpop.f32.mrf.mxu3 }
 0x155   :  { %v792_v10 = vmax.f32 %v788_v42, 0.0  ;;  %v748_v25 = vadd.f32 %v747_v15, %v719_v9 }
 0x157   :  { %796 = vst [vmem:[%s1795_s3 + $0x10] sm:$0xff] %v792_v10  ;;  %v757_v11 = vmax.f32 %v632_v20, %v748_v25 }
 0x159   :  { %v761_v26 = vmax.f32 %v753_v0, %v757_v11 }
 0x15b   :  { %v789_v35 = vadd.f32 %v784_v13, %v761_v26 }
 0x15d   :  { %v793_v18 = vmax.f32 %v789_v35, 0.0 }
 0x15f   :  { %797 = vst [vmem:[%s1795_s3 + $0x18] sm:$0xff] %v793_v18 }

// kernel: forward.6
= control target key start
LH: loop header
LB: loop body
LE: loop exit
PB: predicated region body
PF: predicated region fallthrough
CT: control target
= control target key end

     0   :  { %s7953_s12 = smov 0   ;;  %s7955_s13 = smov 0   ;;  %s10245_s0 = inlined_call_operand.vmem [shape: bf16[2,1024], index: 0, kind: input, shape index: {}]   ;;  %s10246_s1 = inlined_call_operand.vmem [shape: bf16[1024,2048], index: 1, kind: input, shape index: {}]   ;;  %s10247_s2 = inlined_call_operand.vmem [shape: f32[1,2048], index: 2, kind: input, shape index: {}]   ;;  %s10248_s3 = inlined_call_operand.vmem [shape: bf16[2,2048], index: 3, kind: output, shape index: {}]  }
   0x1   :  { %s7957_s14 = smov 0  }
   0x2 LB: > { %s5285_s15 = sadd.s32 4294967295, %s7931_s14   ;;  %s7970_s16 = sadd.s32 1, %s7931_s14   ;;  %s7931_s14 = sphi %s7957_s14, %s10251_s14   ;;  %s7927_s13 = sphi %s7955_s13, %s10250_s13   ;;  %s7923_s12 = sphi %s7953_s12, %s10249_s12  }
   0x3   : > { %s38_s17 = ssub.s32 %s7931_s14, %s7970_s16  ;;  %s41_s18 = sadd.s32 1, %s7927_s13 }
   0x4   : > { %p39_p0 = scmp.eq.s32.totalorder %s38_s17, 0  ;;  %p48_p1 = scmp.ne.s32.totalorder %s7927_s13, %s7923_s12 }
   0x5   : > { %p49_p2 = scmp.eq.s32.totalorder %s7931_s14, 0  ;;  %p5288_p4 = scmp.ge.s32.totalorder %s7931_s14, 2 }
   0x6   : > { %s7979_s19 = scalar_select %p39_p0, %s7927_s13, %s41_s18  }
   0x7   : > { %p50_p3 = por %p49_p2, %p48_p1  ;;  %129 = sbr.rel (%p5288_p4) target bundleno = 528 (0x210), region = 20 }
   0xc   : > { %132 = sbr.rel (!%p50_p3) target bundleno = 528 (0x210), region = 24  ;;  %s134_s20 = sand.u32 (%p50_p3), 1, %s7927_s13  }
   0xd   : > { %s7346_s21 = sshll.u32 (%p50_p3), %s7931_s14, 5  ;;  %s5289_s22 = sshll.u32 (%p50_p3), %s134_s20, 12 }
   0xe   : > { %s7987_s25 = scalar_lea.vmem (%p50_p3), %s10246_s1, %s7346_s21  ;;  %s7992_s26 = scalar_lea.vmem (%p50_p3), [#allocation2], %s5289_s22 }
   0xf   : > { %v152_v0 = vld [vmem:[%s7987_s25] sm:$0xff] (%p50_p3)  ;;  %v154_v1 = vld [vmem:[%s7987_s25 + $0x8] sm:$0xff] (%p50_p3)  ;;  %v156_v2 = vld [vmem:[%s7987_s25 + $0x10] sm:$0xff] (%p50_p3) }
  0x10   : > { %153 = vst [vmem:[%s7992_s26] sm:$0xff] (%p50_p3), %v152_v0  ;;  %v158_v3 = vld [vmem:[%s7987_s25 + $0x18] sm:$0xff] (%p50_p3)  ;;  %v160_v4 = vld [vmem:[%s7987_s25 + $0x40] sm:$0xff] (%p50_p3)  ;;  %v162_v5 = vld [vmem:[%s7987_s25 + $0x48] sm:$0xff] (%p50_p3) }
  0x11   : > { %155 = vst [vmem:[%s7992_s26 + $0x8] sm:$0xff] %v154_v1  ;;  %v164_v6 = vld [vmem:[%s7987_s25 + $0x50] sm:$0xff]  ;;  %v166_v7 = vld [vmem:[%s7987_s25 + $0x58] sm:$0xff]  ;;  %v168_v8 = vld [vmem:[%s7987_s25 + $0x80] sm:$0xff] }
  0x12   : > { %157 = vst [vmem:[%s7992_s26 + $0x10] sm:$0xff] %v156_v2  ;;  %v170_v9 = vld [vmem:[%s7987_s25 + $0x88] sm:$0xff]  ;;  %v172_v10 = vld [vmem:[%s7987_s25 + $0x90] sm:$0xff]  ;;  %v174_v11 = vld [vmem:[%s7987_s25 + $0x98] sm:$0xff] }
  0x13   : > { %159 = vst [vmem:[%s7992_s26 + $0x18] sm:$0xff] %v158_v3  ;;  %v176_v12 = vld [vmem:[%s7987_s25 + $0xc0] sm:$0xff]  ;;  %v178_v13 = vld [vmem:[%s7987_s25 + $0xc8] sm:$0xff]  ;;  %v180_v14 = vld [vmem:[%s7987_s25 + $0xd0] sm:$0xff] }
  0x14   : > { %161 = vst [vmem:[%s7992_s26 + $0x20] sm:$0xff] %v160_v4  ;;  %v182_v15 = vld [vmem:[%s7987_s25 + $0xd8] sm:$0xff]  ;;  %v184_v16 = vld [vmem:[%s7987_s25 + $0x100] sm:$0xff]  ;;  %v186_v17 = vld [vmem:[%s7987_s25 + $0x108] sm:$0xff] }
  0x15   : > { %163 = vst [vmem:[%s7992_s26 + $0x28] sm:$0xff] %v162_v5  ;;  %v188_v18 = vld [vmem:[%s7987_s25 + $0x110] sm:$0xff]  ;;  %v190_v19 = vld [vmem:[%s7987_s25 + $0x118] sm:$0xff]  ;;  %v192_v20 = vld [vmem:[%s7987_s25 + $0x140] sm:$0xff] }
  0x16   : > { %165 = vst [vmem:[%s7992_s26 + $0x30] sm:$0xff] %v164_v6  ;;  %v194_v21 = vld [vmem:[%s7987_s25 + $0x148] sm:$0xff]  ;;  %v196_v22 = vld [vmem:[%s7987_s25 + $0x150] sm:$0xff]  ;;  %v198_v23 = vld [vmem:[%s7987_s25 + $0x158] sm:$0xff] }
  0x17   : > { %167 = vst [vmem:[%s7992_s26 + $0x38] sm:$0xff] %v166_v7  ;;  %v200_v24 = vld [vmem:[%s7987_s25 + $0x180] sm:$0xff]  ;;  %v202_v25 = vld [vmem:[%s7987_s25 + $0x188] sm:$0xff]  ;;  %v204_v26 = vld [vmem:[%s7987_s25 + $0x190] sm:$0xff] }
  0x18   : > { %169 = vst [vmem:[%s7992_s26 + $0x40] sm:$0xff] %v168_v8  ;;  %v206_v27 = vld [vmem:[%s7987_s25 + $0x198] sm:$0xff]  ;;  %v208_v28 = vld [vmem:[%s7987_s25 + $0x1c0] sm:$0xff]  ;;  %v210_v29 = vld [vmem:[%s7987_s25 + $0x1c8] sm:$0xff] }
  0x19   : > { %171 = vst [vmem:[%s7992_s26 + $0x48] sm:$0xff] %v170_v9  ;;  %v212_v30 = vld [vmem:[%s7987_s25 + $0x1d0] sm:$0xff]  ;;  %v214_v31 = vld [vmem:[%s7987_s25 + $0x1d8] sm:$0xff]  ;;  %v216_v32 = vld [vmem:[%s7987_s25 + $0x200] sm:$0xff] }
  0x1a   : > { %173 = vst [vmem:[%s7992_s26 + $0x50] sm:$0xff] %v172_v10  ;;  %v218_v33 = vld [vmem:[%s7987_s25 + $0x208] sm:$0xff]  ;;  %v220_v34 = vld [vmem:[%s7987_s25 + $0x210] sm:$0xff]  ;;  %v222_v35 = vld [vmem:[%s7987_s25 + $0x218] sm:$0xff] }
  0x1b   : > { %175 = vst [vmem:[%s7992_s26 + $0x58] sm:$0xff] %v174_v11  ;;  %v224_v36 = vld [vmem:[%s7987_s25 + $0x240] sm:$0xff]  ;;  %v226_v37 = vld [vmem:[%s7987_s25 + $0x248] sm:$0xff]  ;;  %v228_v38 = vld [vmem:[%s7987_s25 + $0x250] sm:$0xff] }
  0x1c   : > { %177 = vst [vmem:[%s7992_s26 + $0x60] sm:$0xff] %v176_v12  ;;  %v230_v39 = vld [vmem:[%s7987_s25 + $0x258] sm:$0xff]  ;;  %v232_v40 = vld [vmem:[%s7987_s25 + $0x280] sm:$0xff]  ;;  %v234_v41 = vld [vmem:[%s7987_s25 + $0x288] sm:$0xff] }
  0x1d   : > { %179 = vst [vmem:[%s7992_s26 + $0x68] sm:$0xff] %v178_v13  ;;  %v236_v42 = vld [vmem:[%s7987_s25 + $0x290] sm:$0xff]  ;;  %v238_v43 = vld [vmem:[%s7987_s25 + $0x298] sm:$0xff]  ;;  %v240_v44 = vld [vmem:[%s7987_s25 + $0x2c0] sm:$0xff] }
  0x1e   : > { %181 = vst [vmem:[%s7992_s26 + $0x70] sm:$0xff] %v180_v14  ;;  %v242_v45 = vld [vmem:[%s7987_s25 + $0x2c8] sm:$0xff]  ;;  %v244_v46 = vld [vmem:[%s7987_s25 + $0x2d0] sm:$0xff]  ;;  %v246_v47 = vld [vmem:[%s7987_s25 + $0x2d8] sm:$0xff] }
  0x1f   : > { %183 = vst [vmem:[%s7992_s26 + $0x78] sm:$0xff] %v182_v15  ;;  %v248_v48 = vld [vmem:[%s7987_s25 + $0x300] sm:$0xff]  ;;  %v250_v49 = vld [vmem:[%s7987_s25 + $0x308] sm:$0xff]  ;;  %v252_v50 = vld [vmem:[%s7987_s25 + $0x310] sm:$0xff] }
  0x20   : > { %185 = vst [vmem:[%s7992_s26 + $0x80] sm:$0xff] %v184_v16  ;;  %v254_v51 = vld [vmem:[%s7987_s25 + $0x318] sm:$0xff]  ;;  %v256_v52 = vld [vmem:[%s7987_s25 + $0x340] sm:$0xff]  ;;  %v258_v53 = vld [vmem:[%s7987_s25 + $0x348] sm:$0xff] }
  0x21   : > { %187 = vst [vmem:[%s7992_s26 + $0x88] sm:$0xff] %v186_v17  ;;  %v260_v54 = vld [vmem:[%s7987_s25 + $0x350] sm:$0xff]  ;;  %v262_v55 = vld [vmem:[%s7987_s25 + $0x358] sm:$0xff]  ;;  %v264_v56 = vld [vmem:[%s7987_s25 + $0x380] sm:$0xff] }
  0x22   : > { %189 = vst [vmem:[%s7992_s26 + $0x90] sm:$0xff] %v188_v18  ;;  %v266_v57 = vld [vmem:[%s7987_s25 + $0x388] sm:$0xff]  ;;  %v268_v58 = vld [vmem:[%s7987_s25 + $0x390] sm:$0xff]  ;;  %v270_v59 = vld [vmem:[%s7987_s25 + $0x398] sm:$0xff] }
  0x23   : > { %191 = vst [vmem:[%s7992_s26 + $0x98] sm:$0xff] %v190_v19  ;;  %v272_v60 = vld [vmem:[%s7987_s25 + $0x3c0] sm:$0xff]  ;;  %v274_v61 = vld [vmem:[%s7987_s25 + $0x3c8] sm:$0xff]  ;;  %v276_v62 = vld [vmem:[%s7987_s25 + $0x3d0] sm:$0xff] }
  0x24   : > { %193 = vst [vmem:[%s7992_s26 + $0xa0] sm:$0xff] %v192_v20  ;;  %v278_v63 = vld [vmem:[%s7987_s25 + $0x3d8] sm:$0xff]  ;;  %v280_v0 = vld [vmem:[%s7987_s25 + $0x400] sm:$0xff]  ;;  %v282_v1 = vld [vmem:[%s7987_s25 + $0x408] sm:$0xff] }
  0x25   : > { %195 = vst [vmem:[%s7992_s26 + $0xa8] sm:$0xff] %v194_v21  ;;  %v284_v2 = vld [vmem:[%s7987_s25 + $0x410] sm:$0xff]  ;;  %v286_v3 = vld [vmem:[%s7987_s25 + $0x418] sm:$0xff]  ;;  %v288_v4 = vld [vmem:[%s7987_s25 + $0x440] sm:$0xff] }
  0x26   : > { %197 = vst [vmem:[%s7992_s26 + $0xb0] sm:$0xff] %v196_v22  ;;  %v290_v5 = vld [vmem:[%s7987_s25 + $0x448] sm:$0xff]  ;;  %v292_v6 = vld [vmem:[%s7987_s25 + $0x450] sm:$0xff]  ;;  %v294_v7 = vld [vmem:[%s7987_s25 + $0x458] sm:$0xff] }
  0x27   : > { %199 = vst [vmem:[%s7992_s26 + $0xb8] sm:$0xff] %v198_v23  ;;  %v296_v8 = vld [vmem:[%s7987_s25 + $0x480] sm:$0xff]  ;;  %v298_v9 = vld [vmem:[%s7987_s25 + $0x488] sm:$0xff]  ;;  %v300_v10 = vld [vmem:[%s7987_s25 + $0x490] sm:$0xff] }
  0x28   : > { %201 = vst [vmem:[%s7992_s26 + $0xc0] sm:$0xff] %v200_v24  ;;  %v302_v11 = vld [vmem:[%s7987_s25 + $0x498] sm:$0xff]  ;;  %v304_v12 = vld [vmem:[%s7987_s25 + $0x4c0] sm:$0xff]  ;;  %v306_v13 = vld [vmem:[%s7987_s25 + $0x4c8] sm:$0xff] }
  0x29   : > { %203 = vst [vmem:[%s7992_s26 + $0xc8] sm:$0xff] %v202_v25  ;;  %v308_v14 = vld [vmem:[%s7987_s25 + $0x4d0] sm:$0xff]  ;;  %v310_v15 = vld [vmem:[%s7987_s25 + $0x4d8] sm:$0xff]  ;;  %v312_v16 = vld [vmem:[%s7987_s25 + $0x500] sm:$0xff] }
  0x2a   : > { %205 = vst [vmem:[%s7992_s26 + $0xd0] sm:$0xff] %v204_v26  ;;  %v314_v17 = vld [vmem:[%s7987_s25 + $0x508] sm:$0xff]  ;;  %v316_v18 = vld [vmem:[%s7987_s25 + $0x510] sm:$0xff]  ;;  %v318_v19 = vld [vmem:[%s7987_s25 + $0x518] sm:$0xff] }
  0x2b   : > { %207 = vst [vmem:[%s7992_s26 + $0xd8] sm:$0xff] %v206_v27  ;;  %v320_v20 = vld [vmem:[%s7987_s25 + $0x540] sm:$0xff]  ;;  %v322_v21 = vld [vmem:[%s7987_s25 + $0x548] sm:$0xff]  ;;  %v324_v22 = vld [vmem:[%s7987_s25 + $0x550] sm:$0xff] }
  0x2c   : > { %209 = vst [vmem:[%s7992_s26 + $0xe0] sm:$0xff] %v208_v28  ;;  %v326_v23 = vld [vmem:[%s7987_s25 + $0x558] sm:$0xff]  ;;  %v328_v24 = vld [vmem:[%s7987_s25 + $0x580] sm:$0xff]  ;;  %v330_v25 = vld [vmem:[%s7987_s25 + $0x588] sm:$0xff] }
  0x2d   : > { %211 = vst [vmem:[%s7992_s26 + $0xe8] sm:$0xff] %v210_v29  ;;  %v332_v26 = vld [vmem:[%s7987_s25 + $0x590] sm:$0xff]  ;;  %v334_v27 = vld [vmem:[%s7987_s25 + $0x598] sm:$0xff]  ;;  %v336_v28 = vld [vmem:[%s7987_s25 + $0x5c0] sm:$0xff] }
  0x2e   : > { %213 = vst [vmem:[%s7992_s26 + $0xf0] sm:$0xff] %v212_v30  ;;  %v338_v29 = vld [vmem:[%s7987_s25 + $0x5c8] sm:$0xff]  ;;  %v340_v30 = vld [vmem:[%s7987_s25 + $0x5d0] sm:$0xff] }
  0x2f   : > { %215 = vst [vmem:[%s7992_s26 + $0xf8] sm:$0xff] %v214_v31  ;;  %v342_v31 = vld [vmem:[%s7987_s25 + $0x5d8] sm:$0xff] }
  0x30   : > { %217 = vst [vmem:[%s7992_s26 + $0x100] sm:$0xff] %v216_v32  ;;  %v344_v32 = vld [vmem:[%s7987_s25 + $0x600] sm:$0xff] }
  0x31   : > { %219 = vst [vmem:[%s7992_s26 + $0x108] sm:$0xff] %v218_v33  ;;  %v346_v33 = vld [vmem:[%s7987_s25 + $0x608] sm:$0xff] }
  0x32   : > { %221 = vst [vmem:[%s7992_s26 + $0x110] sm:$0xff] %v220_v34  ;;  %v348_v34 = vld [vmem:[%s7987_s25 + $0x610] sm:$0xff] }
  0x33   : > { %223 = vst [vmem:[%s7992_s26 + $0x118] sm:$0xff] %v222_v35  ;;  %v350_v35 = vld [vmem:[%s7987_s25 + $0x618] sm:$0xff] }
  0x34   : > { %225 = vst [vmem:[%s7992_s26 + $0x120] sm:$0xff] %v224_v36  ;;  %v352_v36 = vld [vmem:[%s7987_s25 + $0x640] sm:$0xff] }
  0x35   : > { %227 = vst [vmem:[%s7992_s26 + $0x128] sm:$0xff] %v226_v37  ;;  %v354_v37 = vld [vmem:[%s7987_s25 + $0x648] sm:$0xff] }
  0x36   : > { %229 = vst [vmem:[%s7992_s26 + $0x130] sm:$0xff] %v228_v38  ;;  %v356_v38 = vld [vmem:[%s7987_s25 + $0x650] sm:$0xff] }
  0x37   : > { %231 = vst [vmem:[%s7992_s26 + $0x138] sm:$0xff] %v230_v39  ;;  %v358_v39 = vld [vmem:[%s7987_s25 + $0x658] sm:$0xff] }
  0x38   : > { %233 = vst [vmem:[%s7992_s26 + $0x140] sm:$0xff] %v232_v40  ;;  %v360_v40 = vld [vmem:[%s7987_s25 + $0x680] sm:$0xff] }
  0x39   : > { %235 = vst [vmem:[%s7992_s26 + $0x148] sm:$0xff] %v234_v41  ;;  %v362_v41 = vld [vmem:[%s7987_s25 + $0x688] sm:$0xff] }
  0x3a   : > { %237 = vst [vmem:[%s7992_s26 + $0x150] sm:$0xff] %v236_v42  ;;  %v364_v42 = vld [vmem:[%s7987_s25 + $0x690] sm:$0xff] }
  0x3b   : > { %239 = vst [vmem:[%s7992_s26 + $0x158] sm:$0xff] %v238_v43  ;;  %v366_v43 = vld [vmem:[%s7987_s25 + $0x698] sm:$0xff] }
  0x3c   : > { %241 = vst [vmem:[%s7992_s26 + $0x160] sm:$0xff] %v240_v44  ;;  %v368_v44 = vld [vmem:[%s7987_s25 + $0x6c0] sm:$0xff] }
  0x3d   : > { %243 = vst [vmem:[%s7992_s26 + $0x168] sm:$0xff] %v242_v45  ;;  %v370_v45 = vld [vmem:[%s7987_s25 + $0x6c8] sm:$0xff] }
  0x3e   : > { %245 = vst [vmem:[%s7992_s26 + $0x170] sm:$0xff] %v244_v46  ;;  %v372_v46 = vld [vmem:[%s7987_s25 + $0x6d0] sm:$0xff] }
  0x3f   : > { %247 = vst [vmem:[%s7992_s26 + $0x178] sm:$0xff] %v246_v47  ;;  %v374_v47 = vld [vmem:[%s7987_s25 + $0x6d8] sm:$0xff] }
  0x40   : > { %249 = vst [vmem:[%s7992_s26 + $0x180] sm:$0xff] %v248_v48  ;;  %v376_v48 = vld [vmem:[%s7987_s25 + $0x700] sm:$0xff] }
  0x41   : > { %251 = vst [vmem:[%s7992_s26 + $0x188] sm:$0xff] %v250_v49  ;;  %v378_v49 = vld [vmem:[%s7987_s25 + $0x708] sm:$0xff] }
  0x42   : > { %253 = vst [vmem:[%s7992_s26 + $0x190] sm:$0xff] %v252_v50  ;;  %v380_v50 = vld [vmem:[%s7987_s25 + $0x710] sm:$0xff] }
  0x43   : > { %255 = vst [vmem:[%s7992_s26 + $0x198] sm:$0xff] %v254_v51  ;;  %v382_v51 = vld [vmem:[%s7987_s25 + $0x718] sm:$0xff] }
  0x44   : > { %257 = vst [vmem:[%s7992_s26 + $0x1a0] sm:$0xff] %v256_v52  ;;  %v384_v52 = vld [vmem:[%s7987_s25 + $0x740] sm:$0xff] }
  0x45   : > { %259 = vst [vmem:[%s7992_s26 + $0x1a8] sm:$0xff] %v258_v53  ;;  %v386_v53 = vld [vmem:[%s7987_s25 + $0x748] sm:$0xff] }
  0x46   : > { %261 = vst [vmem:[%s7992_s26 + $0x1b0] sm:$0xff] %v260_v54  ;;  %v388_v54 = vld [vmem:[%s7987_s25 + $0x750] sm:$0xff] }
  0x47   : > { %263 = vst [vmem:[%s7992_s26 + $0x1b8] sm:$0xff] %v262_v55  ;;  %v390_v55 = vld [vmem:[%s7987_s25 + $0x758] sm:$0xff] }
  0x48   : > { %265 = vst [vmem:[%s7992_s26 + $0x1c0] sm:$0xff] %v264_v56  ;;  %v392_v56 = vld [vmem:[%s7987_s25 + $0x780] sm:$0xff] }
  0x49   : > { %267 = vst [vmem:[%s7992_s26 + $0x1c8] sm:$0xff] %v266_v57  ;;  %v394_v57 = vld [vmem:[%s7987_s25 + $0x788] sm:$0xff] }
  0x4a   : > { %269 = vst [vmem:[%s7992_s26 + $0x1d0] sm:$0xff] %v268_v58  ;;  %v396_v58 = vld [vmem:[%s7987_s25 + $0x790] sm:$0xff] }
  0x4b   : > { %271 = vst [vmem:[%s7992_s26 + $0x1d8] sm:$0xff] %v270_v59  ;;  %v398_v59 = vld [vmem:[%s7987_s25 + $0x798] sm:$0xff] }
  0x4c   : > { %273 = vst [vmem:[%s7992_s26 + $0x1e0] sm:$0xff] %v272_v60  ;;  %v400_v60 = vld [vmem:[%s7987_s25 + $0x7c0] sm:$0xff] }
  0x4d   : > { %275 = vst [vmem:[%s7992_s26 + $0x1e8] sm:$0xff] %v274_v61  ;;  %v402_v61 = vld [vmem:[%s7987_s25 + $0x7c8] sm:$0xff] }
  0x4e   : > { %277 = vst [vmem:[%s7992_s26 + $0x1f0] sm:$0xff] %v276_v62  ;;  %v404_v62 = vld [vmem:[%s7987_s25 + $0x7d0] sm:$0xff] }
  0x4f   : > { %279 = vst [vmem:[%s7992_s26 + $0x1f8] sm:$0xff] %v278_v63  ;;  %v406_v63 = vld [vmem:[%s7987_s25 + $0x7d8] sm:$0xff] }
  0x50   : > { %281 = vst [vmem:[%s7992_s26 + $0x200] sm:$0xff] %v280_v0  ;;  %v408_v0 = vld [vmem:[%s7987_s25 + $0x800] sm:$0xff] }
  0x51   : > { %283 = vst [vmem:[%s7992_s26 + $0x208] sm:$0xff] %v282_v1  ;;  %v410_v1 = vld [vmem:[%s7987_s25 + $0x808] sm:$0xff] }
  0x52   : > { %285 = vst [vmem:[%s7992_s26 + $0x210] sm:$0xff] %v284_v2  ;;  %v412_v2 = vld [vmem:[%s7987_s25 + $0x810] sm:$0xff] }
  0x53   : > { %287 = vst [vmem:[%s7992_s26 + $0x218] sm:$0xff] %v286_v3  ;;  %v414_v3 = vld [vmem:[%s7987_s25 + $0x818] sm:$0xff] }
  0x54   : > { %289 = vst [vmem:[%s7992_s26 + $0x220] sm:$0xff] %v288_v4  ;;  %v416_v4 = vld [vmem:[%s7987_s25 + $0x840] sm:$0xff] }
  0x55   : > { %291 = vst [vmem:[%s7992_s26 + $0x228] sm:$0xff] %v290_v5  ;;  %v418_v5 = vld [vmem:[%s7987_s25 + $0x848] sm:$0xff] }
  0x56   : > { %293 = vst [vmem:[%s7992_s26 + $0x230] sm:$0xff] %v292_v6  ;;  %v420_v6 = vld [vmem:[%s7987_s25 + $0x850] sm:$0xff] }
  0x57   : > { %295 = vst [vmem:[%s7992_s26 + $0x238] sm:$0xff] %v294_v7  ;;  %v422_v7 = vld [vmem:[%s7987_s25 + $0x858] sm:$0xff] }
  0x58   : > { %297 = vst [vmem:[%s7992_s26 + $0x240] sm:$0xff] %v296_v8  ;;  %v424_v8 = vld [vmem:[%s7987_s25 + $0x880] sm:$0xff] }
  0x59   : > { %299 = vst [vmem:[%s7992_s26 + $0x248] sm:$0xff] %v298_v9  ;;  %v426_v9 = vld [vmem:[%s7987_s25 + $0x888] sm:$0xff] }
  0x5a   : > { %301 = vst [vmem:[%s7992_s26 + $0x250] sm:$0xff] %v300_v10  ;;  %v428_v10 = vld [vmem:[%s7987_s25 + $0x890] sm:$0xff] }
  0x5b   : > { %303 = vst [vmem:[%s7992_s26 + $0x258] sm:$0xff] %v302_v11  ;;  %v430_v11 = vld [vmem:[%s7987_s25 + $0x898] sm:$0xff] }
  0x5c   : > { %305 = vst [vmem:[%s7992_s26 + $0x260] sm:$0xff] %v304_v12  ;;  %v432_v12 = vld [vmem:[%s7987_s25 + $0x8c0] sm:$0xff] }
  0x5d   : > { %307 = vst [vmem:[%s7992_s26 + $0x268] sm:$0xff] %v306_v13  ;;  %v434_v13 = vld [vmem:[%s7987_s25 + $0x8c8] sm:$0xff] }
  0x5e   : > { %309 = vst [vmem:[%s7992_s26 + $0x270] sm:$0xff] %v308_v14  ;;  %v436_v14 = vld [vmem:[%s7987_s25 + $0x8d0] sm:$0xff] }
  0x5f   : > { %311 = vst [vmem:[%s7992_s26 + $0x278] sm:$0xff] %v310_v15  ;;  %v438_v15 = vld [vmem:[%s7987_s25 + $0x8d8] sm:$0xff] }
  0x60   : > { %313 = vst [vmem:[%s7992_s26 + $0x280] sm:$0xff] %v312_v16  ;;  %v440_v16 = vld [vmem:[%s7987_s25 + $0x900] sm:$0xff] }
  0x61   : > { %315 = vst [vmem:[%s7992_s26 + $0x288] sm:$0xff] %v314_v17  ;;  %v442_v17 = vld [vmem:[%s7987_s25 + $0x908] sm:$0xff] }
  0x62   : > { %317 = vst [vmem:[%s7992_s26 + $0x290] sm:$0xff] %v316_v18  ;;  %v444_v18 = vld [vmem:[%s7987_s25 + $0x910] sm:$0xff] }
  0x63   : > { %319 = vst [vmem:[%s7992_s26 + $0x298] sm:$0xff] %v318_v19  ;;  %v446_v19 = vld [vmem:[%s7987_s25 + $0x918] sm:$0xff] }
  0x64   : > { %321 = vst [vmem:[%s7992_s26 + $0x2a0] sm:$0xff] %v320_v20  ;;  %v448_v20 = vld [vmem:[%s7987_s25 + $0x940] sm:$0xff] }
  0x65   : > { %323 = vst [vmem:[%s7992_s26 + $0x2a8] sm:$0xff] %v322_v21  ;;  %v450_v21 = vld [vmem:[%s7987_s25 + $0x948] sm:$0xff] }
  0x66   : > { %325 = vst [vmem:[%s7992_s26 + $0x2b0] sm:$0xff] %v324_v22  ;;  %v452_v22 = vld [vmem:[%s7987_s25 + $0x950] sm:$0xff] }
  0x67   : > { %327 = vst [vmem:[%s7992_s26 + $0x2b8] sm:$0xff] %v326_v23  ;;  %v454_v23 = vld [vmem:[%s7987_s25 + $0x958] sm:$0xff] }
  0x68   : > { %329 = vst [vmem:[%s7992_s26 + $0x2c0] sm:$0xff] %v328_v24  ;;  %v456_v24 = vld [vmem:[%s7987_s25 + $0x980] sm:$0xff] }
  0x69   : > { %331 = vst [vmem:[%s7992_s26 + $0x2c8] sm:$0xff] %v330_v25  ;;  %v458_v25 = vld [vmem:[%s7987_s25 + $0x988] sm:$0xff] }
  0x6a   : > { %333 = vst [vmem:[%s7992_s26 + $0x2d0] sm:$0xff] %v332_v26  ;;  %v460_v26 = vld [vmem:[%s7987_s25 + $0x990] sm:$0xff] }
  0x6b   : > { %335 = vst [vmem:[%s7992_s26 + $0x2d8] sm:$0xff] %v334_v27  ;;  %v462_v27 = vld [vmem:[%s7987_s25 + $0x998] sm:$0xff] }
  0x6c   : > { %337 = vst [vmem:[%s7992_s26 + $0x2e0] sm:$0xff] %v336_v28  ;;  %v464_v28 = vld [vmem:[%s7987_s25 + $0x9c0] sm:$0xff] }
  0x6d   : > { %339 = vst [vmem:[%s7992_s26 + $0x2e8] sm:$0xff] %v338_v29  ;;  %v466_v29 = vld [vmem:[%s7987_s25 + $0x9c8] sm:$0xff] }
  0x6e   : > { %341 = vst [vmem:[%s7992_s26 + $0x2f0] sm:$0xff] %v340_v30  ;;  %v468_v30 = vld [vmem:[%s7987_s25 + $0x9d0] sm:$0xff] }
  0x6f   : > { %343 = vst [vmem:[%s7992_s26 + $0x2f8] sm:$0xff] %v342_v31  ;;  %v470_v31 = vld [vmem:[%s7987_s25 + $0x9d8] sm:$0xff] }
  0x70   : > { %345 = vst [vmem:[%s7992_s26 + $0x300] sm:$0xff] %v344_v32  ;;  %v472_v32 = vld [vmem:[%s7987_s25 + $0xa00] sm:$0xff] }
  0x71   : > { %347 = vst [vmem:[%s7992_s26 + $0x308] sm:$0xff] %v346_v33  ;;  %v474_v33 = vld [vmem:[%s7987_s25 + $0xa08] sm:$0xff] }
  0x72   : > { %349 = vst [vmem:[%s7992_s26 + $0x310] sm:$0xff] %v348_v34  ;;  %v476_v34 = vld [vmem:[%s7987_s25 + $0xa10] sm:$0xff] }
  0x73   : > { %351 = vst [vmem:[%s7992_s26 + $0x318] sm:$0xff] %v350_v35  ;;  %v478_v35 = vld [vmem:[%s7987_s25 + $0xa18] sm:$0xff] }
  0x74   : > { %353 = vst [vmem:[%s7992_s26 + $0x320] sm:$0xff] %v352_v36  ;;  %v480_v36 = vld [vmem:[%s7987_s25 + $0xa40] sm:$0xff] }
  0x75   : > { %355 = vst [vmem:[%s7992_s26 + $0x328] sm:$0xff] %v354_v37  ;;  %v482_v37 = vld [vmem:[%s7987_s25 + $0xa48] sm:$0xff] }
  0x76   : > { %357 = vst [vmem:[%s7992_s26 + $0x330] sm:$0xff] %v356_v38  ;;  %v484_v38 = vld [vmem:[%s7987_s25 + $0xa50] sm:$0xff] }
  0x77   : > { %359 = vst [vmem:[%s7992_s26 + $0x338] sm:$0xff] %v358_v39  ;;  %v486_v39 = vld [vmem:[%s7987_s25 + $0xa58] sm:$0xff] }
  0x78   : > { %361 = vst [vmem:[%s7992_s26 + $0x340] sm:$0xff] %v360_v40  ;;  %v488_v40 = vld [vmem:[%s7987_s25 + $0xa80] sm:$0xff] }
  0x79   : > { %363 = vst [vmem:[%s7992_s26 + $0x348] sm:$0xff] %v362_v41  ;;  %v490_v41 = vld [vmem:[%s7987_s25 + $0xa88] sm:$0xff] }
  0x7a   : > { %365 = vst [vmem:[%s7992_s26 + $0x350] sm:$0xff] %v364_v42  ;;  %v492_v42 = vld [vmem:[%s7987_s25 + $0xa90] sm:$0xff] }
  0x7b   : > { %367 = vst [vmem:[%s7992_s26 + $0x358] sm:$0xff] %v366_v43  ;;  %v494_v43 = vld [vmem:[%s7987_s25 + $0xa98] sm:$0xff] }
  0x7c   : > { %369 = vst [vmem:[%s7992_s26 + $0x360] sm:$0xff] %v368_v44  ;;  %v496_v44 = vld [vmem:[%s7987_s25 + $0xac0] sm:$0xff] }
  0x7d   : > { %371 = vst [vmem:[%s7992_s26 + $0x368] sm:$0xff] %v370_v45  ;;  %v498_v45 = vld [vmem:[%s7987_s25 + $0xac8] sm:$0xff] }
  0x7e   : > { %373 = vst [vmem:[%s7992_s26 + $0x370] sm:$0xff] %v372_v46  ;;  %v500_v46 = vld [vmem:[%s7987_s25 + $0xad0] sm:$0xff] }
  0x7f   : > { %375 = vst [vmem:[%s7992_s26 + $0x378] sm:$0xff] %v374_v47  ;;  %v502_v47 = vld [vmem:[%s7987_s25 + $0xad8] sm:$0xff] }
  0x80   : > { %377 = vst [vmem:[%s7992_s26 + $0x380] sm:$0xff] %v376_v48  ;;  %v504_v48 = vld [vmem:[%s7987_s25 + $0xb00] sm:$0xff] }
  0x81   : > { %379 = vst [vmem:[%s7992_s26 + $0x388] sm:$0xff] %v378_v49  ;;  %v506_v49 = vld [vmem:[%s7987_s25 + $0xb08] sm:$0xff] }
  0x82   : > { %381 = vst [vmem:[%s7992_s26 + $0x390] sm:$0xff] %v380_v50  ;;  %v508_v50 = vld [vmem:[%s7987_s25 + $0xb10] sm:$0xff] }
  0x83   : > { %383 = vst [vmem:[%s7992_s26 + $0x398] sm:$0xff] %v382_v51  ;;  %v510_v51 = vld [vmem:[%s7987_s25 + $0xb18] sm:$0xff] }
  0x84   : > { %385 = vst [vmem:[%s7992_s26 + $0x3a0] sm:$0xff] %v384_v52  ;;  %v512_v52 = vld [vmem:[%s7987_s25 + $0xb40] sm:$0xff] }
  0x85   : > { %387 = vst [vmem:[%s7992_s26 + $0x3a8] sm:$0xff] %v386_v53  ;;  %v514_v53 = vld [vmem:[%s7987_s25 + $0xb48] sm:$0xff] }
  0x86   : > { %389 = vst [vmem:[%s7992_s26 + $0x3b0] sm:$0xff] %v388_v54  ;;  %v516_v54 = vld [vmem:[%s7987_s25 + $0xb50] sm:$0xff] }
  0x87   : > { %391 = vst [vmem:[%s7992_s26 + $0x3b8] sm:$0xff] %v390_v55  ;;  %v518_v55 = vld [vmem:[%s7987_s25 + $0xb58] sm:$0xff] }
  0x88   : > { %393 = vst [vmem:[%s7992_s26 + $0x3c0] sm:$0xff] %v392_v56  ;;  %v520_v56 = vld [vmem:[%s7987_s25 + $0xb80] sm:$0xff] }
  0x89   : > { %395 = vst [vmem:[%s7992_s26 + $0x3c8] sm:$0xff] %v394_v57  ;;  %v522_v57 = vld [vmem:[%s7987_s25 + $0xb88] sm:$0xff] }
  0x8a   : > { %397 = vst [vmem:[%s7992_s26 + $0x3d0] sm:$0xff] %v396_v58  ;;  %v524_v58 = vld [vmem:[%s7987_s25 + $0xb90] sm:$0xff] }
  0x8b   : > { %399 = vst [vmem:[%s7992_s26 + $0x3d8] sm:$0xff] %v398_v59  ;;  %v526_v59 = vld [vmem:[%s7987_s25 + $0xb98] sm:$0xff] }
  0x8c   : > { %401 = vst [vmem:[%s7992_s26 + $0x3e0] sm:$0xff] %v400_v60  ;;  %v528_v60 = vld [vmem:[%s7987_s25 + $0xbc0] sm:$0xff] }
  0x8d   : > { %403 = vst [vmem:[%s7992_s26 + $0x3e8] sm:$0xff] %v402_v61  ;;  %v530_v61 = vld [vmem:[%s7987_s25 + $0xbc8] sm:$0xff] }
  0x8e   : > { %405 = vst [vmem:[%s7992_s26 + $0x3f0] sm:$0xff] %v404_v62  ;;  %v532_v62 = vld [vmem:[%s7987_s25 + $0xbd0] sm:$0xff] }
  0x8f   : > { %407 = vst [vmem:[%s7992_s26 + $0x3f8] sm:$0xff] %v406_v63  ;;  %v534_v63 = vld [vmem:[%s7987_s25 + $0xbd8] sm:$0xff] }
  0x90   : > { %409 = vst [vmem:[%s7992_s26 + $0x400] sm:$0xff] %v408_v0  ;;  %v536_v0 = vld [vmem:[%s7987_s25 + $0xc00] sm:$0xff] }
  0x91   : > { %411 = vst [vmem:[%s7992_s26 + $0x408] sm:$0xff] %v410_v1  ;;  %v538_v1 = vld [vmem:[%s7987_s25 + $0xc08] sm:$0xff] }
  0x92   : > { %413 = vst [vmem:[%s7992_s26 + $0x410] sm:$0xff] %v412_v2  ;;  %v540_v2 = vld [vmem:[%s7987_s25 + $0xc10] sm:$0xff] }
  0x93   : > { %415 = vst [vmem:[%s7992_s26 + $0x418] sm:$0xff] %v414_v3  ;;  %v542_v3 = vld [vmem:[%s7987_s25 + $0xc18] sm:$0xff] }
  0x94   : > { %417 = vst [vmem:[%s7992_s26 + $0x420] sm:$0xff] %v416_v4  ;;  %v544_v4 = vld [vmem:[%s7987_s25 + $0xc40] sm:$0xff] }
  0x95   : > { %419 = vst [vmem:[%s7992_s26 + $0x428] sm:$0xff] %v418_v5  ;;  %v546_v5 = vld [vmem:[%s7987_s25 + $0xc48] sm:$0xff] }
  0x96   : > { %421 = vst [vmem:[%s7992_s26 + $0x430] sm:$0xff] %v420_v6  ;;  %v548_v6 = vld [vmem:[%s7987_s25 + $0xc50] sm:$0xff] }
  0x97   : > { %423 = vst [vmem:[%s7992_s26 + $0x438] sm:$0xff] %v422_v7  ;;  %v550_v7 = vld [vmem:[%s7987_s25 + $0xc58] sm:$0xff] }
  0x98   : > { %425 = vst [vmem:[%s7992_s26 + $0x440] sm:$0xff] %v424_v8  ;;  %v552_v8 = vld [vmem:[%s7987_s25 + $0xc80] sm:$0xff] }
  0x99   : > { %427 = vst [vmem:[%s7992_s26 + $0x448] sm:$0xff] %v426_v9  ;;  %v554_v9 = vld [vmem:[%s7987_s25 + $0xc88] sm:$0xff] }
  0x9a   : > { %429 = vst [vmem:[%s7992_s26 + $0x450] sm:$0xff] %v428_v10  ;;  %v556_v10 = vld [vmem:[%s7987_s25 + $0xc90] sm:$0xff] }
  0x9b   : > { %431 = vst [vmem:[%s7992_s26 + $0x458] sm:$0xff] %v430_v11  ;;  %v558_v11 = vld [vmem:[%s7987_s25 + $0xc98] sm:$0xff] }
  0x9c   : > { %433 = vst [vmem:[%s7992_s26 + $0x460] sm:$0xff] %v432_v12  ;;  %v560_v12 = vld [vmem:[%s7987_s25 + $0xcc0] sm:$0xff] }
  0x9d   : > { %435 = vst [vmem:[%s7992_s26 + $0x468] sm:$0xff] %v434_v13  ;;  %v562_v13 = vld [vmem:[%s7987_s25 + $0xcc8] sm:$0xff] }
  0x9e   : > { %437 = vst [vmem:[%s7992_s26 + $0x470] sm:$0xff] %v436_v14  ;;  %v564_v14 = vld [vmem:[%s7987_s25 + $0xcd0] sm:$0xff] }
  0x9f   : > { %439 = vst [vmem:[%s7992_s26 + $0x478] sm:$0xff] %v438_v15  ;;  %v566_v15 = vld [vmem:[%s7987_s25 + $0xcd8] sm:$0xff] }
  0xa0   : > { %441 = vst [vmem:[%s7992_s26 + $0x480] sm:$0xff] %v440_v16  ;;  %v568_v16 = vld [vmem:[%s7987_s25 + $0xd00] sm:$0xff] }
  0xa1   : > { %443 = vst [vmem:[%s7992_s26 + $0x488] sm:$0xff] %v442_v17  ;;  %v570_v17 = vld [vmem:[%s7987_s25 + $0xd08] sm:$0xff] }
  0xa2   : > { %445 = vst [vmem:[%s7992_s26 + $0x490] sm:$0xff] %v444_v18  ;;  %v572_v18 = vld [vmem:[%s7987_s25 + $0xd10] sm:$0xff] }
  0xa3   : > { %447 = vst [vmem:[%s7992_s26 + $0x498] sm:$0xff] %v446_v19  ;;  %v574_v19 = vld [vmem:[%s7987_s25 + $0xd18] sm:$0xff] }
  0xa4   : > { %449 = vst [vmem:[%s7992_s26 + $0x4a0] sm:$0xff] %v448_v20  ;;  %v576_v20 = vld [vmem:[%s7987_s25 + $0xd40] sm:$0xff] }
  0xa5   : > { %451 = vst [vmem:[%s7992_s26 + $0x4a8] sm:$0xff] %v450_v21  ;;  %v578_v21 = vld [vmem:[%s7987_s25 + $0xd48] sm:$0xff] }
  0xa6   : > { %453 = vst [vmem:[%s7992_s26 + $0x4b0] sm:$0xff] %v452_v22  ;;  %v580_v22 = vld [vmem:[%s7987_s25 + $0xd50] sm:$0xff] }
  0xa7   : > { %455 = vst [vmem:[%s7992_s26 + $0x4b8] sm:$0xff] %v454_v23  ;;  %v582_v23 = vld [vmem:[%s7987_s25 + $0xd58] sm:$0xff] }
  0xa8   : > { %457 = vst [vmem:[%s7992_s26 + $0x4c0] sm:$0xff] %v456_v24  ;;  %v584_v24 = vld [vmem:[%s7987_s25 + $0xd80] sm:$0xff] }
  0xa9   : > { %459 = vst [vmem:[%s7992_s26 + $0x4c8] sm:$0xff] %v458_v25  ;;  %v586_v25 = vld [vmem:[%s7987_s25 + $0xd88] sm:$0xff] }
  0xaa   : > { %461 = vst [vmem:[%s7992_s26 + $0x4d0] sm:$0xff] %v460_v26  ;;  %v588_v26 = vld [vmem:[%s7987_s25 + $0xd90] sm:$0xff] }
  0xab   : > { %463 = vst [vmem:[%s7992_s26 + $0x4d8] sm:$0xff] %v462_v27  ;;  %v590_v27 = vld [vmem:[%s7987_s25 + $0xd98] sm:$0xff] }
  0xac   : > { %465 = vst [vmem:[%s7992_s26 + $0x4e0] sm:$0xff] %v464_v28  ;;  %v592_v28 = vld [vmem:[%s7987_s25 + $0xdc0] sm:$0xff] }
  0xad   : > { %467 = vst [vmem:[%s7992_s26 + $0x4e8] sm:$0xff] %v466_v29  ;;  %v594_v29 = vld [vmem:[%s7987_s25 + $0xdc8] sm:$0xff] }
  0xae   : > { %469 = vst [vmem:[%s7992_s26 + $0x4f0] sm:$0xff] %v468_v30  ;;  %v596_v30 = vld [vmem:[%s7987_s25 + $0xdd0] sm:$0xff] }
  0xaf   : > { %471 = vst [vmem:[%s7992_s26 + $0x4f8] sm:$0xff] %v470_v31  ;;  %v598_v31 = vld [vmem:[%s7987_s25 + $0xdd8] sm:$0xff] }
  0xb0   : > { %473 = vst [vmem:[%s7992_s26 + $0x500] sm:$0xff] %v472_v32  ;;  %v600_v32 = vld [vmem:[%s7987_s25 + $0xe00] sm:$0xff] }
  0xb1   : > { %475 = vst [vmem:[%s7992_s26 + $0x508] sm:$0xff] %v474_v33  ;;  %v602_v33 = vld [vmem:[%s7987_s25 + $0xe08] sm:$0xff] }
  0xb2   : > { %477 = vst [vmem:[%s7992_s26 + $0x510] sm:$0xff] %v476_v34  ;;  %v604_v34 = vld [vmem:[%s7987_s25 + $0xe10] sm:$0xff] }
  0xb3   : > { %479 = vst [vmem:[%s7992_s26 + $0x518] sm:$0xff] %v478_v35  ;;  %v606_v35 = vld [vmem:[%s7987_s25 + $0xe18] sm:$0xff] }
  0xb4   : > { %481 = vst [vmem:[%s7992_s26 + $0x520] sm:$0xff] %v480_v36  ;;  %v608_v36 = vld [vmem:[%s7987_s25 + $0xe40] sm:$0xff] }
  0xb5   : > { %483 = vst [vmem:[%s7992_s26 + $0x528] sm:$0xff] %v482_v37  ;;  %v610_v37 = vld [vmem:[%s7987_s25 + $0xe48] sm:$0xff] }
  0xb6   : > { %485 = vst [vmem:[%s7992_s26 + $0x530] sm:$0xff] %v484_v38  ;;  %v612_v38 = vld [vmem:[%s7987_s25 + $0xe50] sm:$0xff] }
  0xb7   : > { %487 = vst [vmem:[%s7992_s26 + $0x538] sm:$0xff] %v486_v39  ;;  %v614_v39 = vld [vmem:[%s7987_s25 + $0xe58] sm:$0xff] }
  0xb8   : > { %489 = vst [vmem:[%s7992_s26 + $0x540] sm:$0xff] %v488_v40  ;;  %v616_v40 = vld [vmem:[%s7987_s25 + $0xe80] sm:$0xff] }
  0xb9   : > { %491 = vst [vmem:[%s7992_s26 + $0x548] sm:$0xff] %v490_v41  ;;  %v618_v41 = vld [vmem:[%s7987_s25 + $0xe88] sm:$0xff] }
  0xba   : > { %493 = vst [vmem:[%s7992_s26 + $0x550] sm:$0xff] %v492_v42  ;;  %v620_v42 = vld [vmem:[%s7987_s25 + $0xe90] sm:$0xff] }
  0xbb   : > { %495 = vst [vmem:[%s7992_s26 + $0x558] sm:$0xff] %v494_v43  ;;  %v622_v43 = vld [vmem:[%s7987_s25 + $0xe98] sm:$0xff] }
  0xbc   : > { %497 = vst [vmem:[%s7992_s26 + $0x560] sm:$0xff] %v496_v44  ;;  %v624_v44 = vld [vmem:[%s7987_s25 + $0xec0] sm:$0xff] }
  0xbd   : > { %499 = vst [vmem:[%s7992_s26 + $0x568] sm:$0xff] %v498_v45  ;;  %v626_v45 = vld [vmem:[%s7987_s25 + $0xec8] sm:$0xff] }
  0xbe   : > { %501 = vst [vmem:[%s7992_s26 + $0x570] sm:$0xff] %v500_v46  ;;  %v628_v46 = vld [vmem:[%s7987_s25 + $0xed0] sm:$0xff] }
  0xbf   : > { %503 = vst [vmem:[%s7992_s26 + $0x578] sm:$0xff] %v502_v47  ;;  %v630_v47 = vld [vmem:[%s7987_s25 + $0xed8] sm:$0xff] }
  0xc0   : > { %505 = vst [vmem:[%s7992_s26 + $0x580] sm:$0xff] %v504_v48  ;;  %v632_v48 = vld [vmem:[%s7987_s25 + $0xf00] sm:$0xff] }
  0xc1   : > { %507 = vst [vmem:[%s7992_s26 + $0x588] sm:$0xff] %v506_v49  ;;  %v634_v49 = vld [vmem:[%s7987_s25 + $0xf08] sm:$0xff] }
  0xc2   : > { %509 = vst [vmem:[%s7992_s26 + $0x590] sm:$0xff] %v508_v50  ;;  %v636_v50 = vld [vmem:[%s7987_s25 + $0xf10] sm:$0xff] }
  0xc3   : > { %511 = vst [vmem:[%s7992_s26 + $0x598] sm:$0xff] %v510_v51  ;;  %v638_v51 = vld [vmem:[%s7987_s25 + $0xf18] sm:$0xff] }
  0xc4   : > { %513 = vst [vmem:[%s7992_s26 + $0x5a0] sm:$0xff] %v512_v52  ;;  %v640_v52 = vld [vmem:[%s7987_s25 + $0xf40] sm:$0xff] }
  0xc5   : > { %515 = vst [vmem:[%s7992_s26 + $0x5a8] sm:$0xff] %v514_v53  ;;  %v642_v53 = vld [vmem:[%s7987_s25 + $0xf48] sm:$0xff] }
  0xc6   : > { %517 = vst [vmem:[%s7992_s26 + $0x5b0] sm:$0xff] %v516_v54  ;;  %v644_v54 = vld [vmem:[%s7987_s25 + $0xf50] sm:$0xff] }
  0xc7   : > { %519 = vst [vmem:[%s7992_s26 + $0x5b8] sm:$0xff] %v518_v55  ;;  %v646_v55 = vld [vmem:[%s7987_s25 + $0xf58] sm:$0xff] }
  0xc8   : > { %521 = vst [vmem:[%s7992_s26 + $0x5c0] sm:$0xff] %v520_v56  ;;  %v648_v56 = vld [vmem:[%s7987_s25 + $0xf80] sm:$0xff] }
  0xc9   : > { %523 = vst [vmem:[%s7992_s26 + $0x5c8] sm:$0xff] %v522_v57  ;;  %v650_v57 = vld [vmem:[%s7987_s25 + $0xf88] sm:$0xff] }
  0xca   : > { %525 = vst [vmem:[%s7992_s26 + $0x5d0] sm:$0xff] %v524_v58  ;;  %v652_v58 = vld [vmem:[%s7987_s25 + $0xf90] sm:$0xff] }
  0xcb   : > { %527 = vst [vmem:[%s7992_s26 + $0x5d8] sm:$0xff] %v526_v59  ;;  %v654_v59 = vld [vmem:[%s7987_s25 + $0xf98] sm:$0xff] }
  0xcc   : > { %529 = vst [vmem:[%s7992_s26 + $0x5e0] sm:$0xff] %v528_v60  ;;  %v656_v60 = vld [vmem:[%s7987_s25 + $0xfc0] sm:$0xff] }
  0xcd   : > { %531 = vst [vmem:[%s7992_s26 + $0x5e8] sm:$0xff] %v530_v61  ;;  %v658_v61 = vld [vmem:[%s7987_s25 + $0xfc8] sm:$0xff] }
  0xce   : > { %533 = vst [vmem:[%s7992_s26 + $0x5f0] sm:$0xff] %v532_v62  ;;  %v660_v62 = vld [vmem:[%s7987_s25 + $0xfd0] sm:$0xff] }
  0xcf   : > { %535 = vst [vmem:[%s7992_s26 + $0x5f8] sm:$0xff] %v534_v63  ;;  %v662_v63 = vld [vmem:[%s7987_s25 + $0xfd8] sm:$0xff] }
  0xd0   : > { %537 = vst [vmem:[%s7992_s26 + $0x600] sm:$0xff] %v536_v0  ;;  %v664_v0 = vld [vmem:[%s7987_s25 + $0x1000] sm:$0xff] }
  0xd1   : > { %539 = vst [vmem:[%s7992_s26 + $0x608] sm:$0xff] %v538_v1  ;;  %v666_v1 = vld [vmem:[%s7987_s25 + $0x1008] sm:$0xff] }
  0xd2   : > { %541 = vst [vmem:[%s7992_s26 + $0x610] sm:$0xff] %v540_v2  ;;  %v668_v2 = vld [vmem:[%s7987_s25 + $0x1010] sm:$0xff] }
  0xd3   : > { %543 = vst [vmem:[%s7992_s26 + $0x618] sm:$0xff] %v542_v3  ;;  %v670_v3 = vld [vmem:[%s7987_s25 + $0x1018] sm:$0xff] }
  0xd4   : > { %545 = vst [vmem:[%s7992_s26 + $0x620] sm:$0xff] %v544_v4  ;;  %v672_v4 = vld [vmem:[%s7987_s25 + $0x1040] sm:$0xff] }
  0xd5   : > { %547 = vst [vmem:[%s7992_s26 + $0x628] sm:$0xff] %v546_v5  ;;  %v674_v5 = vld [vmem:[%s7987_s25 + $0x1048] sm:$0xff] }
  0xd6   : > { %549 = vst [vmem:[%s7992_s26 + $0x630] sm:$0xff] %v548_v6  ;;  %v676_v6 = vld [vmem:[%s7987_s25 + $0x1050] sm:$0xff] }
  0xd7   : > { %551 = vst [vmem:[%s7992_s26 + $0x638] sm:$0xff] %v550_v7  ;;  %v678_v7 = vld [vmem:[%s7987_s25 + $0x1058] sm:$0xff] }
  0xd8   : > { %553 = vst [vmem:[%s7992_s26 + $0x640] sm:$0xff] %v552_v8  ;;  %v680_v8 = vld [vmem:[%s7987_s25 + $0x1080] sm:$0xff] }
  0xd9   : > { %555 = vst [vmem:[%s7992_s26 + $0x648] sm:$0xff] %v554_v9  ;;  %v682_v9 = vld [vmem:[%s7987_s25 + $0x1088] sm:$0xff] }
  0xda   : > { %557 = vst [vmem:[%s7992_s26 + $0x650] sm:$0xff] %v556_v10  ;;  %v684_v10 = vld [vmem:[%s7987_s25 + $0x1090] sm:$0xff] }
  0xdb   : > { %559 = vst [vmem:[%s7992_s26 + $0x658] sm:$0xff] %v558_v11  ;;  %v686_v11 = vld [vmem:[%s7987_s25 + $0x1098] sm:$0xff] }
  0xdc   : > { %561 = vst [vmem:[%s7992_s26 + $0x660] sm:$0xff] %v560_v12  ;;  %v688_v12 = vld [vmem:[%s7987_s25 + $0x10c0] sm:$0xff] }
  0xdd   : > { %563 = vst [vmem:[%s7992_s26 + $0x668] sm:$0xff] %v562_v13  ;;  %v690_v13 = vld [vmem:[%s7987_s25 + $0x10c8] sm:$0xff] }
  0xde   : > { %565 = vst [vmem:[%s7992_s26 + $0x670] sm:$0xff] %v564_v14  ;;  %v692_v14 = vld [vmem:[%s7987_s25 + $0x10d0] sm:$0xff] }
  0xdf   : > { %567 = vst [vmem:[%s7992_s26 + $0x678] sm:$0xff] %v566_v15  ;;  %v694_v15 = vld [vmem:[%s7987_s25 + $0x10d8] sm:$0xff] }
  0xe0   : > { %569 = vst [vmem:[%s7992_s26 + $0x680] sm:$0xff] %v568_v16  ;;  %v696_v16 = vld [vmem:[%s7987_s25 + $0x1100] sm:$0xff] }
  0xe1   : > { %571 = vst [vmem:[%s7992_s26 + $0x688] sm:$0xff] %v570_v17  ;;  %v698_v17 = vld [vmem:[%s7987_s25 + $0x1108] sm:$0xff] }
  0xe2   : > { %573 = vst [vmem:[%s7992_s26 + $0x690] sm:$0xff] %v572_v18  ;;  %v700_v18 = vld [vmem:[%s7987_s25 + $0x1110] sm:$0xff] }
  0xe3   : > { %575 = vst [vmem:[%s7992_s26 + $0x698] sm:$0xff] %v574_v19  ;;  %v702_v19 = vld [vmem:[%s7987_s25 + $0x1118] sm:$0xff] }
  0xe4   : > { %577 = vst [vmem:[%s7992_s26 + $0x6a0] sm:$0xff] %v576_v20  ;;  %v704_v20 = vld [vmem:[%s7987_s25 + $0x1140] sm:$0xff] }
  0xe5   : > { %579 = vst [vmem:[%s7992_s26 + $0x6a8] sm:$0xff] %v578_v21  ;;  %v706_v21 = vld [vmem:[%s7987_s25 + $0x1148] sm:$0xff] }
  0xe6   : > { %581 = vst [vmem:[%s7992_s26 + $0x6b0] sm:$0xff] %v580_v22  ;;  %v708_v22 = vld [vmem:[%s7987_s25 + $0x1150] sm:$0xff] }
  0xe7   : > { %583 = vst [vmem:[%s7992_s26 + $0x6b8] sm:$0xff] %v582_v23  ;;  %v710_v23 = vld [vmem:[%s7987_s25 + $0x1158] sm:$0xff] }
  0xe8   : > { %585 = vst [vmem:[%s7992_s26 + $0x6c0] sm:$0xff] %v584_v24  ;;  %v712_v24 = vld [vmem:[%s7987_s25 + $0x1180] sm:$0xff] }
  0xe9   : > { %587 = vst [vmem:[%s7992_s26 + $0x6c8] sm:$0xff] %v586_v25  ;;  %v714_v25 = vld [vmem:[%s7987_s25 + $0x1188] sm:$0xff] }
  0xea   : > { %589 = vst [vmem:[%s7992_s26 + $0x6d0] sm:$0xff] %v588_v26  ;;  %v716_v26 = vld [vmem:[%s7987_s25 + $0x1190] sm:$0xff] }
  0xeb   : > { %591 = vst [vmem:[%s7992_s26 + $0x6d8] sm:$0xff] %v590_v27  ;;  %v718_v27 = vld [vmem:[%s7987_s25 + $0x1198] sm:$0xff] }
  0xec   : > { %593 = vst [vmem:[%s7992_s26 + $0x6e0] sm:$0xff] %v592_v28  ;;  %v720_v28 = vld [vmem:[%s7987_s25 + $0x11c0] sm:$0xff] }
  0xed   : > { %595 = vst [vmem:[%s7992_s26 + $0x6e8] sm:$0xff] %v594_v29  ;;  %v722_v29 = vld [vmem:[%s7987_s25 + $0x11c8] sm:$0xff] }
  0xee   : > { %597 = vst [vmem:[%s7992_s26 + $0x6f0] sm:$0xff] %v596_v30  ;;  %v724_v30 = vld [vmem:[%s7987_s25 + $0x11d0] sm:$0xff] }
  0xef   : > { %599 = vst [vmem:[%s7992_s26 + $0x6f8] sm:$0xff] %v598_v31  ;;  %v726_v31 = vld [vmem:[%s7987_s25 + $0x11d8] sm:$0xff] }
  0xf0   : > { %601 = vst [vmem:[%s7992_s26 + $0x700] sm:$0xff] %v600_v32  ;;  %v728_v32 = vld [vmem:[%s7987_s25 + $0x1200] sm:$0xff] }
  0xf1   : > { %603 = vst [vmem:[%s7992_s26 + $0x708] sm:$0xff] %v602_v33  ;;  %v730_v33 = vld [vmem:[%s7987_s25 + $0x1208] sm:$0xff] }
  0xf2   : > { %605 = vst [vmem:[%s7992_s26 + $0x710] sm:$0xff] %v604_v34  ;;  %v732_v34 = vld [vmem:[%s7987_s25 + $0x1210] sm:$0xff] }
  0xf3   : > { %607 = vst [vmem:[%s7992_s26 + $0x718] sm:$0xff] %v606_v35  ;;  %v734_v35 = vld [vmem:[%s7987_s25 + $0x1218] sm:$0xff] }
  0xf4   : > { %609 = vst [vmem:[%s7992_s26 + $0x720] sm:$0xff] %v608_v36  ;;  %v736_v36 = vld [vmem:[%s7987_s25 + $0x1240] sm:$0xff] }
  0xf5   : > { %611 = vst [vmem:[%s7992_s26 + $0x728] sm:$0xff] %v610_v37  ;;  %v738_v37 = vld [vmem:[%s7987_s25 + $0x1248] sm:$0xff] }
  0xf6   : > { %613 = vst [vmem:[%s7992_s26 + $0x730] sm:$0xff] %v612_v38  ;;  %v740_v38 = vld [vmem:[%s7987_s25 + $0x1250] sm:$0xff] }
  0xf7   : > { %615 = vst [vmem:[%s7992_s26 + $0x738] sm:$0xff] %v614_v39  ;;  %v742_v39 = vld [vmem:[%s7987_s25 + $0x1258] sm:$0xff] }
  0xf8   : > { %617 = vst [vmem:[%s7992_s26 + $0x740] sm:$0xff] %v616_v40  ;;  %v744_v40 = vld [vmem:[%s7987_s25 + $0x1280] sm:$0xff] }
  0xf9   : > { %619 = vst [vmem:[%s7992_s26 + $0x748] sm:$0xff] %v618_v41  ;;  %v746_v41 = vld [vmem:[%s7987_s25 + $0x1288] sm:$0xff] }
  0xfa   : > { %621 = vst [vmem:[%s7992_s26 + $0x750] sm:$0xff] %v620_v42  ;;  %v748_v42 = vld [vmem:[%s7987_s25 + $0x1290] sm:$0xff] }
  0xfb   : > { %623 = vst [vmem:[%s7992_s26 + $0x758] sm:$0xff] %v622_v43  ;;  %v750_v43 = vld [vmem:[%s7987_s25 + $0x1298] sm:$0xff] }
  0xfc   : > { %625 = vst [vmem:[%s7992_s26 + $0x760] sm:$0xff] %v624_v44  ;;  %v752_v44 = vld [vmem:[%s7987_s25 + $0x12c0] sm:$0xff] }
  0xfd   : > { %627 = vst [vmem:[%s7992_s26 + $0x768] sm:$0xff] %v626_v45  ;;  %v754_v45 = vld [vmem:[%s7987_s25 + $0x12c8] sm:$0xff] }
  0xfe   : > { %629 = vst [vmem:[%s7992_s26 + $0x770] sm:$0xff] %v628_v46  ;;  %v756_v46 = vld [vmem:[%s7987_s25 + $0x12d0] sm:$0xff] }
  0xff   : > { %631 = vst [vmem:[%s7992_s26 + $0x778] sm:$0xff] %v630_v47  ;;  %v758_v47 = vld [vmem:[%s7987_s25 + $0x12d8] sm:$0xff] }
 0x100   : > { %633 = vst [vmem:[%s7992_s26 + $0x780] sm:$0xff] %v632_v48  ;;  %v760_v48 = vld [vmem:[%s7987_s25 + $0x1300] sm:$0xff] }
 0x101   : > { %635 = vst [vmem:[%s7992_s26 + $0x788] sm:$0xff] %v634_v49  ;;  %v762_v49 = vld [vmem:[%s7987_s25 + $0x1308] sm:$0xff] }
 0x102   : > { %637 = vst [vmem:[%s7992_s26 + $0x790] sm:$0xff] %v636_v50  ;;  %v764_v50 = vld [vmem:[%s7987_s25 + $0x1310] sm:$0xff] }
 0x103   : > { %639 = vst [vmem:[%s7992_s26 + $0x798] sm:$0xff] %v638_v51  ;;  %v766_v51 = vld [vmem:[%s7987_s25 + $0x1318] sm:$0xff] }
 0x104   : > { %641 = vst [vmem:[%s7992_s26 + $0x7a0] sm:$0xff] %v640_v52  ;;  %v768_v52 = vld [vmem:[%s7987_s25 + $0x1340] sm:$0xff] }
 0x105   : > { %643 = vst [vmem:[%s7992_s26 + $0x7a8] sm:$0xff] %v642_v53  ;;  %v770_v53 = vld [vmem:[%s7987_s25 + $0x1348] sm:$0xff] }
 0x106   : > { %645 = vst [vmem:[%s7992_s26 + $0x7b0] sm:$0xff] %v644_v54  ;;  %v772_v54 = vld [vmem:[%s7987_s25 + $0x1350] sm:$0xff] }
 0x107   : > { %647 = vst [vmem:[%s7992_s26 + $0x7b8] sm:$0xff] %v646_v55  ;;  %v774_v55 = vld [vmem:[%s7987_s25 + $0x1358] sm:$0xff] }
 0x108   : > { %649 = vst [vmem:[%s7992_s26 + $0x7c0] sm:$0xff] %v648_v56  ;;  %v776_v56 = vld [vmem:[%s7987_s25 + $0x1380] sm:$0xff] }
 0x109   : > { %651 = vst [vmem:[%s7992_s26 + $0x7c8] sm:$0xff] %v650_v57  ;;  %v778_v57 = vld [vmem:[%s7987_s25 + $0x1388] sm:$0xff] }
 0x10a   : > { %653 = vst [vmem:[%s7992_s26 + $0x7d0] sm:$0xff] %v652_v58  ;;  %v780_v58 = vld [vmem:[%s7987_s25 + $0x1390] sm:$0xff] }
 0x10b   : > { %655 = vst [vmem:[%s7992_s26 + $0x7d8] sm:$0xff] %v654_v59  ;;  %v782_v59 = vld [vmem:[%s7987_s25 + $0x1398] sm:$0xff] }
 0x10c   : > { %657 = vst [vmem:[%s7992_s26 + $0x7e0] sm:$0xff] %v656_v60  ;;  %v784_v60 = vld [vmem:[%s7987_s25 + $0x13c0] sm:$0xff] }
 0x10d   : > { %659 = vst [vmem:[%s7992_s26 + $0x7e8] sm:$0xff] %v658_v61  ;;  %v786_v61 = vld [vmem:[%s7987_s25 + $0x13c8] sm:$0xff] }
 0x10e   : > { %661 = vst [vmem:[%s7992_s26 + $0x7f0] sm:$0xff] %v660_v62  ;;  %v788_v62 = vld [vmem:[%s7987_s25 + $0x13d0] sm:$0xff] }
 0x10f   : > { %663 = vst [vmem:[%s7992_s26 + $0x7f8] sm:$0xff] %v662_v63  ;;  %v790_v63 = vld [vmem:[%s7987_s25 + $0x13d8] sm:$0xff] }
 0x110   : > { %665 = vst [vmem:[%s7992_s26 + $0x800] sm:$0xff] %v664_v0  ;;  %v792_v0 = vld [vmem:[%s7987_s25 + $0x1400] sm:$0xff] }
 0x111   : > { %667 = vst [vmem:[%s7992_s26 + $0x808] sm:$0xff] %v666_v1  ;;  %v794_v1 = vld [vmem:[%s7987_s25 + $0x1408] sm:$0xff] }
 0x112   : > { %669 = vst [vmem:[%s7992_s26 + $0x810] sm:$0xff] %v668_v2  ;;  %v796_v2 = vld [vmem:[%s7987_s25 + $0x1410] sm:$0xff] }
 0x113   : > { %671 = vst [vmem:[%s7992_s26 + $0x818] sm:$0xff] %v670_v3  ;;  %v798_v3 = vld [vmem:[%s7987_s25 + $0x1418] sm:$0xff] }
 0x114   : > { %673 = vst [vmem:[%s7992_s26 + $0x820] sm:$0xff] %v672_v4  ;;  %v800_v4 = vld [vmem:[%s7987_s25 + $0x1440] sm:$0xff] }
 0x115   : > { %675 = vst [vmem:[%s7992_s26 + $0x828] sm:$0xff] %v674_v5  ;;  %v802_v5 = vld [vmem:[%s7987_s25 + $0x1448] sm:$0xff] }
 0x116   : > { %677 = vst [vmem:[%s7992_s26 + $0x830] sm:$0xff] %v676_v6  ;;  %v804_v6 = vld [vmem:[%s7987_s25 + $0x1450] sm:$0xff] }
 0x117   : > { %679 = vst [vmem:[%s7992_s26 + $0x838] sm:$0xff] %v678_v7  ;;  %v806_v7 = vld [vmem:[%s7987_s25 + $0x1458] sm:$0xff] }
 0x118   : > { %681 = vst [vmem:[%s7992_s26 + $0x840] sm:$0xff] %v680_v8  ;;  %v808_v8 = vld [vmem:[%s7987_s25 + $0x1480] sm:$0xff] }
 0x119   : > { %683 = vst [vmem:[%s7992_s26 + $0x848] sm:$0xff] %v682_v9  ;;  %v810_v9 = vld [vmem:[%s7987_s25 + $0x1488] sm:$0xff] }
 0x11a   : > { %685 = vst [vmem:[%s7992_s26 + $0x850] sm:$0xff] %v684_v10  ;;  %v812_v10 = vld [vmem:[%s7987_s25 + $0x1490] sm:$0xff] }
 0x11b   : > { %687 = vst [vmem:[%s7992_s26 + $0x858] sm:$0xff] %v686_v11  ;;  %v814_v11 = vld [vmem:[%s7987_s25 + $0x1498] sm:$0xff] }
 0x11c   : > { %689 = vst [vmem:[%s7992_s26 + $0x860] sm:$0xff] %v688_v12  ;;  %v816_v12 = vld [vmem:[%s7987_s25 + $0x14c0] sm:$0xff] }
 0x11d   : > { %691 = vst [vmem:[%s7992_s26 + $0x868] sm:$0xff] %v690_v13  ;;  %v818_v13 = vld [vmem:[%s7987_s25 + $0x14c8] sm:$0xff] }
 0x11e   : > { %693 = vst [vmem:[%s7992_s26 + $0x870] sm:$0xff] %v692_v14  ;;  %v820_v14 = vld [vmem:[%s7987_s25 + $0x14d0] sm:$0xff] }
 0x11f   : > { %695 = vst [vmem:[%s7992_s26 + $0x878] sm:$0xff] %v694_v15  ;;  %v822_v15 = vld [vmem:[%s7987_s25 + $0x14d8] sm:$0xff] }
 0x120   : > { %697 = vst [vmem:[%s7992_s26 + $0x880] sm:$0xff] %v696_v16  ;;  %v824_v16 = vld [vmem:[%s7987_s25 + $0x1500] sm:$0xff] }
 0x121   : > { %699 = vst [vmem:[%s7992_s26 + $0x888] sm:$0xff] %v698_v17  ;;  %v826_v17 = vld [vmem:[%s7987_s25 + $0x1508] sm:$0xff] }
 0x122   : > { %701 = vst [vmem:[%s7992_s26 + $0x890] sm:$0xff] %v700_v18  ;;  %v828_v18 = vld [vmem:[%s7987_s25 + $0x1510] sm:$0xff] }
 0x123   : > { %703 = vst [vmem:[%s7992_s26 + $0x898] sm:$0xff] %v702_v19  ;;  %v830_v19 = vld [vmem:[%s7987_s25 + $0x1518] sm:$0xff] }
 0x124   : > { %705 = vst [vmem:[%s7992_s26 + $0x8a0] sm:$0xff] %v704_v20  ;;  %v832_v20 = vld [vmem:[%s7987_s25 + $0x1540] sm:$0xff] }
 0x125   : > { %707 = vst [vmem:[%s7992_s26 + $0x8a8] sm:$0xff] %v706_v21  ;;  %v834_v21 = vld [vmem:[%s7987_s25 + $0x1548] sm:$0xff] }
 0x126   : > { %709 = vst [vmem:[%s7992_s26 + $0x8b0] sm:$0xff] %v708_v22  ;;  %v836_v22 = vld [vmem:[%s7987_s25 + $0x1550] sm:$0xff] }
 0x127   : > { %711 = vst [vmem:[%s7992_s26 + $0x8b8] sm:$0xff] %v710_v23  ;;  %v838_v23 = vld [vmem:[%s7987_s25 + $0x1558] sm:$0xff] }
 0x128   : > { %713 = vst [vmem:[%s7992_s26 + $0x8c0] sm:$0xff] %v712_v24  ;;  %v840_v24 = vld [vmem:[%s7987_s25 + $0x1580] sm:$0xff] }
 0x129   : > { %715 = vst [vmem:[%s7992_s26 + $0x8c8] sm:$0xff] %v714_v25  ;;  %v842_v25 = vld [vmem:[%s7987_s25 + $0x1588] sm:$0xff] }
 0x12a   : > { %717 = vst [vmem:[%s7992_s26 + $0x8d0] sm:$0xff] %v716_v26  ;;  %v844_v26 = vld [vmem:[%s7987_s25 + $0x1590] sm:$0xff] }
 0x12b   : > { %719 = vst [vmem:[%s7992_s26 + $0x8d8] sm:$0xff] %v718_v27  ;;  %v846_v27 = vld [vmem:[%s7987_s25 + $0x1598] sm:$0xff] }
 0x12c   : > { %721 = vst [vmem:[%s7992_s26 + $0x8e0] sm:$0xff] %v720_v28  ;;  %v848_v28 = vld [vmem:[%s7987_s25 + $0x15c0] sm:$0xff] }
 0x12d   : > { %723 = vst [vmem:[%s7992_s26 + $0x8e8] sm:$0xff] %v722_v29  ;;  %v850_v29 = vld [vmem:[%s7987_s25 + $0x15c8] sm:$0xff] }
 0x12e   : > { %725 = vst [vmem:[%s7992_s26 + $0x8f0] sm:$0xff] %v724_v30  ;;  %v852_v30 = vld [vmem:[%s7987_s25 + $0x15d0] sm:$0xff] }
 0x12f   : > { %727 = vst [vmem:[%s7992_s26 + $0x8f8] sm:$0xff] %v726_v31  ;;  %v854_v31 = vld [vmem:[%s7987_s25 + $0x15d8] sm:$0xff] }
 0x130   : > { %729 = vst [vmem:[%s7992_s26 + $0x900] sm:$0xff] %v728_v32  ;;  %v856_v32 = vld [vmem:[%s7987_s25 + $0x1600] sm:$0xff] }
 0x131   : > { %731 = vst [vmem:[%s7992_s26 + $0x908] sm:$0xff] %v730_v33  ;;  %v858_v33 = vld [vmem:[%s7987_s25 + $0x1608] sm:$0xff] }
 0x132   : > { %733 = vst [vmem:[%s7992_s26 + $0x910] sm:$0xff] %v732_v34  ;;  %v860_v34 = vld [vmem:[%s7987_s25 + $0x1610] sm:$0xff] }
 0x133   : > { %735 = vst [vmem:[%s7992_s26 + $0x918] sm:$0xff] %v734_v35  ;;  %v862_v35 = vld [vmem:[%s7987_s25 + $0x1618] sm:$0xff] }
 0x134   : > { %737 = vst [vmem:[%s7992_s26 + $0x920] sm:$0xff] %v736_v36  ;;  %v864_v36 = vld [vmem:[%s7987_s25 + $0x1640] sm:$0xff] }
 0x135   : > { %739 = vst [vmem:[%s7992_s26 + $0x928] sm:$0xff] %v738_v37  ;;  %v866_v37 = vld [vmem:[%s7987_s25 + $0x1648] sm:$0xff] }
 0x136   : > { %741 = vst [vmem:[%s7992_s26 + $0x930] sm:$0xff] %v740_v38  ;;  %v868_v38 = vld [vmem:[%s7987_s25 + $0x1650] sm:$0xff] }
 0x137   : > { %743 = vst [vmem:[%s7992_s26 + $0x938] sm:$0xff] %v742_v39  ;;  %v870_v39 = vld [vmem:[%s7987_s25 + $0x1658] sm:$0xff] }
 0x138   : > { %745 = vst [vmem:[%s7992_s26 + $0x940] sm:$0xff] %v744_v40  ;;  %v872_v40 = vld [vmem:[%s7987_s25 + $0x1680] sm:$0xff] }
 0x139   : > { %747 = vst [vmem:[%s7992_s26 + $0x948] sm:$0xff] %v746_v41  ;;  %v874_v41 = vld [vmem:[%s7987_s25 + $0x1688] sm:$0xff] }
 0x13a   : > { %749 = vst [vmem:[%s7992_s26 + $0x950] sm:$0xff] %v748_v42  ;;  %v876_v42 = vld [vmem:[%s7987_s25 + $0x1690] sm:$0xff] }
 0x13b   : > { %751 = vst [vmem:[%s7992_s26 + $0x958] sm:$0xff] %v750_v43  ;;  %v878_v43 = vld [vmem:[%s7987_s25 + $0x1698] sm:$0xff] }
 0x13c   : > { %753 = vst [vmem:[%s7992_s26 + $0x960] sm:$0xff] %v752_v44  ;;  %v880_v44 = vld [vmem:[%s7987_s25 + $0x16c0] sm:$0xff] }
 0x13d   : > { %755 = vst [vmem:[%s7992_s26 + $0x968] sm:$0xff] %v754_v45  ;;  %v882_v45 = vld [vmem:[%s7987_s25 + $0x16c8] sm:$0xff] }
 0x13e   : > { %757 = vst [vmem:[%s7992_s26 + $0x970] sm:$0xff] %v756_v46  ;;  %v884_v46 = vld [vmem:[%s7987_s25 + $0x16d0] sm:$0xff] }
 0x13f   : > { %759 = vst [vmem:[%s7992_s26 + $0x978] sm:$0xff] %v758_v47  ;;  %v886_v47 = vld [vmem:[%s7987_s25 + $0x16d8] sm:$0xff] }
 0x140   : > { %761 = vst [vmem:[%s7992_s26 + $0x980] sm:$0xff] %v760_v48  ;;  %v888_v48 = vld [vmem:[%s7987_s25 + $0x1700] sm:$0xff] }
 0x141   : > { %763 = vst [vmem:[%s7992_s26 + $0x988] sm:$0xff] %v762_v49  ;;  %v890_v49 = vld [vmem:[%s7987_s25 + $0x1708] sm:$0xff] }
 0x142   : > { %765 = vst [vmem:[%s7992_s26 + $0x990] sm:$0xff] %v764_v50  ;;  %v892_v50 = vld [vmem:[%s7987_s25 + $0x1710] sm:$0xff] }
 0x143   : > { %767 = vst [vmem:[%s7992_s26 + $0x998] sm:$0xff] %v766_v51  ;;  %v894_v51 = vld [vmem:[%s7987_s25 + $0x1718] sm:$0xff] }
 0x144   : > { %769 = vst [vmem:[%s7992_s26 + $0x9a0] sm:$0xff] %v768_v52  ;;  %v896_v52 = vld [vmem:[%s7987_s25 + $0x1740] sm:$0xff] }
 0x145   : > { %771 = vst [vmem:[%s7992_s26 + $0x9a8] sm:$0xff] %v770_v53  ;;  %v898_v53 = vld [vmem:[%s7987_s25 + $0x1748] sm:$0xff] }
 0x146   : > { %773 = vst [vmem:[%s7992_s26 + $0x9b0] sm:$0xff] %v772_v54  ;;  %v900_v54 = vld [vmem:[%s7987_s25 + $0x1750] sm:$0xff] }
 0x147   : > { %775 = vst [vmem:[%s7992_s26 + $0x9b8] sm:$0xff] %v774_v55  ;;  %v902_v55 = vld [vmem:[%s7987_s25 + $0x1758] sm:$0xff] }
 0x148   : > { %777 = vst [vmem:[%s7992_s26 + $0x9c0] sm:$0xff] %v776_v56  ;;  %v904_v56 = vld [vmem:[%s7987_s25 + $0x1780] sm:$0xff] }
 0x149   : > { %779 = vst [vmem:[%s7992_s26 + $0x9c8] sm:$0xff] %v778_v57  ;;  %v906_v57 = vld [vmem:[%s7987_s25 + $0x1788] sm:$0xff] }
 0x14a   : > { %781 = vst [vmem:[%s7992_s26 + $0x9d0] sm:$0xff] %v780_v58  ;;  %v908_v58 = vld [vmem:[%s7987_s25 + $0x1790] sm:$0xff] }
 0x14b   : > { %783 = vst [vmem:[%s7992_s26 + $0x9d8] sm:$0xff] %v782_v59  ;;  %v910_v59 = vld [vmem:[%s7987_s25 + $0x1798] sm:$0xff] }
 0x14c   : > { %785 = vst [vmem:[%s7992_s26 + $0x9e0] sm:$0xff] %v784_v60  ;;  %v912_v60 = vld [vmem:[%s7987_s25 + $0x17c0] sm:$0xff] }
 0x14d   : > { %787 = vst [vmem:[%s7992_s26 + $0x9e8] sm:$0xff] %v786_v61  ;;  %v914_v61 = vld [vmem:[%s7987_s25 + $0x17c8] sm:$0xff] }
 0x14e   : > { %789 = vst [vmem:[%s7992_s26 + $0x9f0] sm:$0xff] %v788_v62  ;;  %v916_v62 = vld [vmem:[%s7987_s25 + $0x17d0] sm:$0xff] }
 0x14f   : > { %791 = vst [vmem:[%s7992_s26 + $0x9f8] sm:$0xff] %v790_v63  ;;  %v918_v63 = vld [vmem:[%s7987_s25 + $0x17d8] sm:$0xff] }
 0x150   : > { %793 = vst [vmem:[%s7992_s26 + $0xa00] sm:$0xff] %v792_v0  ;;  %v920_v0 = vld [vmem:[%s7987_s25 + $0x1800] sm:$0xff] }
 0x151   : > { %795 = vst [vmem:[%s7992_s26 + $0xa08] sm:$0xff] %v794_v1  ;;  %v922_v1 = vld [vmem:[%s7987_s25 + $0x1808] sm:$0xff] }
 0x152   : > { %797 = vst [vmem:[%s7992_s26 + $0xa10] sm:$0xff] %v796_v2  ;;  %v924_v2 = vld [vmem:[%s7987_s25 + $0x1810] sm:$0xff] }
 0x153   : > { %799 = vst [vmem:[%s7992_s26 + $0xa18] sm:$0xff] %v798_v3  ;;  %v926_v3 = vld [vmem:[%s7987_s25 + $0x1818] sm:$0xff] }
 0x154   : > { %801 = vst [vmem:[%s7992_s26 + $0xa20] sm:$0xff] %v800_v4  ;;  %v928_v4 = vld [vmem:[%s7987_s25 + $0x1840] sm:$0xff] }
 0x155   : > { %803 = vst [vmem:[%s7992_s26 + $0xa28] sm:$0xff] %v802_v5  ;;  %v930_v5 = vld [vmem:[%s7987_s25 + $0x1848] sm:$0xff] }
 0x156   : > { %805 = vst [vmem:[%s7992_s26 + $0xa30] sm:$0xff] %v804_v6  ;;  %v932_v6 = vld [vmem:[%s7987_s25 + $0x1850] sm:$0xff] }
 0x157   : > { %807 = vst [vmem:[%s7992_s26 + $0xa38] sm:$0xff] %v806_v7  ;;  %v934_v7 = vld [vmem:[%s7987_s25 + $0x1858] sm:$0xff] }
 0x158   : > { %809 = vst [vmem:[%s7992_s26 + $0xa40] sm:$0xff] %v808_v8  ;;  %v936_v8 = vld [vmem:[%s7987_s25 + $0x1880] sm:$0xff] }
 0x159   : > { %811 = vst [vmem:[%s7992_s26 + $0xa48] sm:$0xff] %v810_v9  ;;  %v938_v9 = vld [vmem:[%s7987_s25 + $0x1888] sm:$0xff] }
 0x15a   : > { %813 = vst [vmem:[%s7992_s26 + $0xa50] sm:$0xff] %v812_v10  ;;  %v940_v10 = vld [vmem:[%s7987_s25 + $0x1890] sm:$0xff] }
 0x15b   : > { %815 = vst [vmem:[%s7992_s26 + $0xa58] sm:$0xff] %v814_v11  ;;  %v942_v11 = vld [vmem:[%s7987_s25 + $0x1898] sm:$0xff] }
 0x15c   : > { %817 = vst [vmem:[%s7992_s26 + $0xa60] sm:$0xff] %v816_v12  ;;  %v944_v12 = vld [vmem:[%s7987_s25 + $0x18c0] sm:$0xff] }
 0x15d   : > { %819 = vst [vmem:[%s7992_s26 + $0xa68] sm:$0xff] %v818_v13  ;;  %v946_v13 = vld [vmem:[%s7987_s25 + $0x18c8] sm:$0xff] }
 0x15e   : > { %821 = vst [vmem:[%s7992_s26 + $0xa70] sm:$0xff] %v820_v14  ;;  %v948_v14 = vld [vmem:[%s7987_s25 + $0x18d0] sm:$0xff] }
 0x15f   : > { %823 = vst [vmem:[%s7992_s26 + $0xa78] sm:$0xff] %v822_v15  ;;  %v950_v15 = vld [vmem:[%s7987_s25 + $0x18d8] sm:$0xff] }
 0x160   : > { %825 = vst [vmem:[%s7992_s26 + $0xa80] sm:$0xff] %v824_v16  ;;  %v952_v16 = vld [vmem:[%s7987_s25 + $0x1900] sm:$0xff] }
 0x161   : > { %827 = vst [vmem:[%s7992_s26 + $0xa88] sm:$0xff] %v826_v17  ;;  %v954_v17 = vld [vmem:[%s7987_s25 + $0x1908] sm:$0xff] }
 0x162   : > { %829 = vst [vmem:[%s7992_s26 + $0xa90] sm:$0xff] %v828_v18  ;;  %v956_v18 = vld [vmem:[%s7987_s25 + $0x1910] sm:$0xff] }
 0x163   : > { %831 = vst [vmem:[%s7992_s26 + $0xa98] sm:$0xff] %v830_v19  ;;  %v958_v19 = vld [vmem:[%s7987_s25 + $0x1918] sm:$0xff] }
 0x164   : > { %833 = vst [vmem:[%s7992_s26 + $0xaa0] sm:$0xff] %v832_v20  ;;  %v960_v20 = vld [vmem:[%s7987_s25 + $0x1940] sm:$0xff] }
 0x165   : > { %835 = vst [vmem:[%s7992_s26 + $0xaa8] sm:$0xff] %v834_v21  ;;  %v962_v21 = vld [vmem:[%s7987_s25 + $0x1948] sm:$0xff] }
 0x166   : > { %837 = vst [vmem:[%s7992_s26 + $0xab0] sm:$0xff] %v836_v22  ;;  %v964_v22 = vld [vmem:[%s7987_s25 + $0x1950] sm:$0xff] }
 0x167   : > { %839 = vst [vmem:[%s7992_s26 + $0xab8] sm:$0xff] %v838_v23  ;;  %v966_v23 = vld [vmem:[%s7987_s25 + $0x1958] sm:$0xff] }
 0x168   : > { %841 = vst [vmem:[%s7992_s26 + $0xac0] sm:$0xff] %v840_v24  ;;  %v968_v24 = vld [vmem:[%s7987_s25 + $0x1980] sm:$0xff] }
 0x169   : > { %843 = vst [vmem:[%s7992_s26 + $0xac8] sm:$0xff] %v842_v25  ;;  %v970_v25 = vld [vmem:[%s7987_s25 + $0x1988] sm:$0xff] }
 0x16a   : > { %845 = vst [vmem:[%s7992_s26 + $0xad0] sm:$0xff] %v844_v26  ;;  %v972_v26 = vld [vmem:[%s7987_s25 + $0x1990] sm:$0xff] }
 0x16b   : > { %847 = vst [vmem:[%s7992_s26 + $0xad8] sm:$0xff] %v846_v27  ;;  %v974_v27 = vld [vmem:[%s7987_s25 + $0x1998] sm:$0xff] }
 0x16c   : > { %849 = vst [vmem:[%s7992_s26 + $0xae0] sm:$0xff] %v848_v28  ;;  %v976_v28 = vld [vmem:[%s7987_s25 + $0x19c0] sm:$0xff] }
 0x16d   : > { %851 = vst [vmem:[%s7992_s26 + $0xae8] sm:$0xff] %v850_v29  ;;  %v978_v29 = vld [vmem:[%s7987_s25 + $0x19c8] sm:$0xff] }
 0x16e   : > { %853 = vst [vmem:[%s7992_s26 + $0xaf0] sm:$0xff] %v852_v30  ;;  %v980_v30 = vld [vmem:[%s7987_s25 + $0x19d0] sm:$0xff] }
 0x16f   : > { %855 = vst [vmem:[%s7992_s26 + $0xaf8] sm:$0xff] %v854_v31  ;;  %v982_v31 = vld [vmem:[%s7987_s25 + $0x19d8] sm:$0xff] }
 0x170   : > { %857 = vst [vmem:[%s7992_s26 + $0xb00] sm:$0xff] %v856_v32  ;;  %v984_v32 = vld [vmem:[%s7987_s25 + $0x1a00] sm:$0xff] }
 0x171   : > { %859 = vst [vmem:[%s7992_s26 + $0xb08] sm:$0xff] %v858_v33  ;;  %v986_v33 = vld [vmem:[%s7987_s25 + $0x1a08] sm:$0xff] }
 0x172   : > { %861 = vst [vmem:[%s7992_s26 + $0xb10] sm:$0xff] %v860_v34  ;;  %v988_v34 = vld [vmem:[%s7987_s25 + $0x1a10] sm:$0xff] }
 0x173   : > { %863 = vst [vmem:[%s7992_s26 + $0xb18] sm:$0xff] %v862_v35  ;;  %v990_v35 = vld [vmem:[%s7987_s25 + $0x1a18] sm:$0xff] }
 0x174   : > { %865 = vst [vmem:[%s7992_s26 + $0xb20] sm:$0xff] %v864_v36  ;;  %v992_v36 = vld [vmem:[%s7987_s25 + $0x1a40] sm:$0xff] }
 0x175   : > { %867 = vst [vmem:[%s7992_s26 + $0xb28] sm:$0xff] %v866_v37  ;;  %v994_v37 = vld [vmem:[%s7987_s25 + $0x1a48] sm:$0xff] }
 0x176   : > { %869 = vst [vmem:[%s7992_s26 + $0xb30] sm:$0xff] %v868_v38  ;;  %v996_v38 = vld [vmem:[%s7987_s25 + $0x1a50] sm:$0xff] }
 0x177   : > { %871 = vst [vmem:[%s7992_s26 + $0xb38] sm:$0xff] %v870_v39  ;;  %v998_v39 = vld [vmem:[%s7987_s25 + $0x1a58] sm:$0xff] }
 0x178   : > { %873 = vst [vmem:[%s7992_s26 + $0xb40] sm:$0xff] %v872_v40  ;;  %v1000_v40 = vld [vmem:[%s7987_s25 + $0x1a80] sm:$0xff] }
 0x179   : > { %875 = vst [vmem:[%s7992_s26 + $0xb48] sm:$0xff] %v874_v41  ;;  %v1002_v41 = vld [vmem:[%s7987_s25 + $0x1a88] sm:$0xff] }
 0x17a   : > { %877 = vst [vmem:[%s7992_s26 + $0xb50] sm:$0xff] %v876_v42  ;;  %v1004_v42 = vld [vmem:[%s7987_s25 + $0x1a90] sm:$0xff] }
 0x17b   : > { %879 = vst [vmem:[%s7992_s26 + $0xb58] sm:$0xff] %v878_v43  ;;  %v1006_v43 = vld [vmem:[%s7987_s25 + $0x1a98] sm:$0xff] }
 0x17c   : > { %881 = vst [vmem:[%s7992_s26 + $0xb60] sm:$0xff] %v880_v44  ;;  %v1008_v44 = vld [vmem:[%s7987_s25 + $0x1ac0] sm:$0xff] }
 0x17d   : > { %883 = vst [vmem:[%s7992_s26 + $0xb68] sm:$0xff] %v882_v45  ;;  %v1010_v45 = vld [vmem:[%s7987_s25 + $0x1ac8] sm:$0xff] }
 0x17e   : > { %885 = vst [vmem:[%s7992_s26 + $0xb70] sm:$0xff] %v884_v46  ;;  %v1012_v46 = vld [vmem:[%s7987_s25 + $0x1ad0] sm:$0xff] }
 0x17f   : > { %887 = vst [vmem:[%s7992_s26 + $0xb78] sm:$0xff] %v886_v47  ;;  %v1014_v47 = vld [vmem:[%s7987_s25 + $0x1ad8] sm:$0xff] }
 0x180   : > { %889 = vst [vmem:[%s7992_s26 + $0xb80] sm:$0xff] %v888_v48  ;;  %v1016_v48 = vld [vmem:[%s7987_s25 + $0x1b00] sm:$0xff] }
 0x181   : > { %891 = vst [vmem:[%s7992_s26 + $0xb88] sm:$0xff] %v890_v49  ;;  %v1018_v49 = vld [vmem:[%s7987_s25 + $0x1b08] sm:$0xff] }
 0x182   : > { %893 = vst [vmem:[%s7992_s26 + $0xb90] sm:$0xff] %v892_v50  ;;  %v1020_v50 = vld [vmem:[%s7987_s25 + $0x1b10] sm:$0xff] }
 0x183   : > { %895 = vst [vmem:[%s7992_s26 + $0xb98] sm:$0xff] %v894_v51  ;;  %v1022_v51 = vld [vmem:[%s7987_s25 + $0x1b18] sm:$0xff] }
 0x184   : > { %897 = vst [vmem:[%s7992_s26 + $0xba0] sm:$0xff] %v896_v52  ;;  %v1024_v52 = vld [vmem:[%s7987_s25 + $0x1b40] sm:$0xff] }
 0x185   : > { %899 = vst [vmem:[%s7992_s26 + $0xba8] sm:$0xff] %v898_v53  ;;  %v1026_v53 = vld [vmem:[%s7987_s25 + $0x1b48] sm:$0xff] }
 0x186   : > { %901 = vst [vmem:[%s7992_s26 + $0xbb0] sm:$0xff] %v900_v54  ;;  %v1028_v54 = vld [vmem:[%s7987_s25 + $0x1b50] sm:$0xff] }
 0x187   : > { %903 = vst [vmem:[%s7992_s26 + $0xbb8] sm:$0xff] %v902_v55  ;;  %v1030_v55 = vld [vmem:[%s7987_s25 + $0x1b58] sm:$0xff] }
 0x188   : > { %905 = vst [vmem:[%s7992_s26 + $0xbc0] sm:$0xff] %v904_v56  ;;  %v1032_v56 = vld [vmem:[%s7987_s25 + $0x1b80] sm:$0xff] }
 0x189   : > { %907 = vst [vmem:[%s7992_s26 + $0xbc8] sm:$0xff] %v906_v57  ;;  %v1034_v57 = vld [vmem:[%s7987_s25 + $0x1b88] sm:$0xff] }
 0x18a   : > { %909 = vst [vmem:[%s7992_s26 + $0xbd0] sm:$0xff] %v908_v58  ;;  %v1036_v58 = vld [vmem:[%s7987_s25 + $0x1b90] sm:$0xff] }
 0x18b   : > { %911 = vst [vmem:[%s7992_s26 + $0xbd8] sm:$0xff] %v910_v59  ;;  %v1038_v59 = vld [vmem:[%s7987_s25 + $0x1b98] sm:$0xff] }
 0x18c   : > { %913 = vst [vmem:[%s7992_s26 + $0xbe0] sm:$0xff] %v912_v60  ;;  %v1040_v60 = vld [vmem:[%s7987_s25 + $0x1bc0] sm:$0xff] }
 0x18d   : > { %915 = vst [vmem:[%s7992_s26 + $0xbe8] sm:$0xff] %v914_v61  ;;  %v1042_v61 = vld [vmem:[%s7987_s25 + $0x1bc8] sm:$0xff] }
 0x18e   : > { %917 = vst [vmem:[%s7992_s26 + $0xbf0] sm:$0xff] %v916_v62  ;;  %v1044_v62 = vld [vmem:[%s7987_s25 + $0x1bd0] sm:$0xff] }
 0x18f   : > { %919 = vst [vmem:[%s7992_s26 + $0xbf8] sm:$0xff] %v918_v63  ;;  %v1046_v63 = vld [vmem:[%s7987_s25 + $0x1bd8] sm:$0xff] }
 0x190   : > { %921 = vst [vmem:[%s7992_s26 + $0xc00] sm:$0xff] %v920_v0  ;;  %v1048_v0 = vld [vmem:[%s7987_s25 + $0x1c00] sm:$0xff] }
 0x191   : > { %923 = vst [vmem:[%s7992_s26 + $0xc08] sm:$0xff] %v922_v1  ;;  %v1050_v1 = vld [vmem:[%s7987_s25 + $0x1c08] sm:$0xff] }
 0x192   : > { %925 = vst [vmem:[%s7992_s26 + $0xc10] sm:$0xff] %v924_v2  ;;  %v1052_v2 = vld [vmem:[%s7987_s25 + $0x1c10] sm:$0xff] }
 0x193   : > { %927 = vst [vmem:[%s7992_s26 + $0xc18] sm:$0xff] %v926_v3  ;;  %v1054_v3 = vld [vmem:[%s7987_s25 + $0x1c18] sm:$0xff] }
 0x194   : > { %929 = vst [vmem:[%s7992_s26 + $0xc20] sm:$0xff] %v928_v4  ;;  %v1056_v4 = vld [vmem:[%s7987_s25 + $0x1c40] sm:$0xff] }
 0x195   : > { %931 = vst [vmem:[%s7992_s26 + $0xc28] sm:$0xff] %v930_v5  ;;  %v1058_v5 = vld [vmem:[%s7987_s25 + $0x1c48] sm:$0xff] }
 0x196   : > { %933 = vst [vmem:[%s7992_s26 + $0xc30] sm:$0xff] %v932_v6  ;;  %v1060_v6 = vld [vmem:[%s7987_s25 + $0x1c50] sm:$0xff] }
 0x197   : > { %935 = vst [vmem:[%s7992_s26 + $0xc38] sm:$0xff] %v934_v7  ;;  %v1062_v7 = vld [vmem:[%s7987_s25 + $0x1c58] sm:$0xff] }
 0x198   : > { %937 = vst [vmem:[%s7992_s26 + $0xc40] sm:$0xff] %v936_v8  ;;  %v1064_v8 = vld [vmem:[%s7987_s25 + $0x1c80] sm:$0xff] }
 0x199   : > { %939 = vst [vmem:[%s7992_s26 + $0xc48] sm:$0xff] %v938_v9  ;;  %v1066_v9 = vld [vmem:[%s7987_s25 + $0x1c88] sm:$0xff] }
 0x19a   : > { %941 = vst [vmem:[%s7992_s26 + $0xc50] sm:$0xff] %v940_v10  ;;  %v1068_v10 = vld [vmem:[%s7987_s25 + $0x1c90] sm:$0xff] }
 0x19b   : > { %943 = vst [vmem:[%s7992_s26 + $0xc58] sm:$0xff] %v942_v11  ;;  %v1070_v11 = vld [vmem:[%s7987_s25 + $0x1c98] sm:$0xff] }
 0x19c   : > { %945 = vst [vmem:[%s7992_s26 + $0xc60] sm:$0xff] %v944_v12  ;;  %v1072_v12 = vld [vmem:[%s7987_s25 + $0x1cc0] sm:$0xff] }
 0x19d   : > { %947 = vst [vmem:[%s7992_s26 + $0xc68] sm:$0xff] %v946_v13  ;;  %v1074_v13 = vld [vmem:[%s7987_s25 + $0x1cc8] sm:$0xff] }
 0x19e   : > { %949 = vst [vmem:[%s7992_s26 + $0xc70] sm:$0xff] %v948_v14  ;;  %v1076_v14 = vld [vmem:[%s7987_s25 + $0x1cd0] sm:$0xff] }
 0x19f   : > { %951 = vst [vmem:[%s7992_s26 + $0xc78] sm:$0xff] %v950_v15  ;;  %v1078_v15 = vld [vmem:[%s7987_s25 + $0x1cd8] sm:$0xff] }
 0x1a0   : > { %953 = vst [vmem:[%s7992_s26 + $0xc80] sm:$0xff] %v952_v16  ;;  %v1080_v16 = vld [vmem:[%s7987_s25 + $0x1d00] sm:$0xff] }
 0x1a1   : > { %955 = vst [vmem:[%s7992_s26 + $0xc88] sm:$0xff] %v954_v17  ;;  %v1082_v17 = vld [vmem:[%s7987_s25 + $0x1d08] sm:$0xff] }
 0x1a2   : > { %957 = vst [vmem:[%s7992_s26 + $0xc90] sm:$0xff] %v956_v18  ;;  %v1084_v18 = vld [vmem:[%s7987_s25 + $0x1d10] sm:$0xff] }
 0x1a3   : > { %959 = vst [vmem:[%s7992_s26 + $0xc98] sm:$0xff] %v958_v19  ;;  %v1086_v19 = vld [vmem:[%s7987_s25 + $0x1d18] sm:$0xff] }
 0x1a4   : > { %961 = vst [vmem:[%s7992_s26 + $0xca0] sm:$0xff] %v960_v20  ;;  %v1088_v20 = vld [vmem:[%s7987_s25 + $0x1d40] sm:$0xff] }
 0x1a5   : > { %963 = vst [vmem:[%s7992_s26 + $0xca8] sm:$0xff] %v962_v21  ;;  %v1090_v21 = vld [vmem:[%s7987_s25 + $0x1d48] sm:$0xff] }
 0x1a6   : > { %965 = vst [vmem:[%s7992_s26 + $0xcb0] sm:$0xff] %v964_v22  ;;  %v1092_v22 = vld [vmem:[%s7987_s25 + $0x1d50] sm:$0xff] }
 0x1a7   : > { %967 = vst [vmem:[%s7992_s26 + $0xcb8] sm:$0xff] %v966_v23  ;;  %v1094_v23 = vld [vmem:[%s7987_s25 + $0x1d58] sm:$0xff] }
 0x1a8   : > { %969 = vst [vmem:[%s7992_s26 + $0xcc0] sm:$0xff] %v968_v24  ;;  %v1096_v24 = vld [vmem:[%s7987_s25 + $0x1d80] sm:$0xff] }
 0x1a9   : > { %971 = vst [vmem:[%s7992_s26 + $0xcc8] sm:$0xff] %v970_v25  ;;  %v1098_v25 = vld [vmem:[%s7987_s25 + $0x1d88] sm:$0xff] }
 0x1aa   : > { %973 = vst [vmem:[%s7992_s26 + $0xcd0] sm:$0xff] %v972_v26  ;;  %v1100_v26 = vld [vmem:[%s7987_s25 + $0x1d90] sm:$0xff] }
 0x1ab   : > { %975 = vst [vmem:[%s7992_s26 + $0xcd8] sm:$0xff] %v974_v27  ;;  %v1102_v27 = vld [vmem:[%s7987_s25 + $0x1d98] sm:$0xff] }
 0x1ac   : > { %977 = vst [vmem:[%s7992_s26 + $0xce0] sm:$0xff] %v976_v28  ;;  %v1104_v28 = vld [vmem:[%s7987_s25 + $0x1dc0] sm:$0xff] }
 0x1ad   : > { %979 = vst [vmem:[%s7992_s26 + $0xce8] sm:$0xff] %v978_v29  ;;  %v1106_v29 = vld [vmem:[%s7987_s25 + $0x1dc8] sm:$0xff] }
 0x1ae   : > { %981 = vst [vmem:[%s7992_s26 + $0xcf0] sm:$0xff] %v980_v30  ;;  %v1108_v30 = vld [vmem:[%s7987_s25 + $0x1dd0] sm:$0xff] }
 0x1af   : > { %983 = vst [vmem:[%s7992_s26 + $0xcf8] sm:$0xff] %v982_v31  ;;  %v1110_v31 = vld [vmem:[%s7987_s25 + $0x1dd8] sm:$0xff] }
 0x1b0   : > { %985 = vst [vmem:[%s7992_s26 + $0xd00] sm:$0xff] %v984_v32  ;;  %v1112_v32 = vld [vmem:[%s7987_s25 + $0x1e00] sm:$0xff] }
 0x1b1   : > { %987 = vst [vmem:[%s7992_s26 + $0xd08] sm:$0xff] %v986_v33  ;;  %v1114_v33 = vld [vmem:[%s7987_s25 + $0x1e08] sm:$0xff] }
 0x1b2   : > { %989 = vst [vmem:[%s7992_s26 + $0xd10] sm:$0xff] %v988_v34  ;;  %v1116_v34 = vld [vmem:[%s7987_s25 + $0x1e10] sm:$0xff] }
 0x1b3   : > { %991 = vst [vmem:[%s7992_s26 + $0xd18] sm:$0xff] %v990_v35  ;;  %v1118_v35 = vld [vmem:[%s7987_s25 + $0x1e18] sm:$0xff] }
 0x1b4   : > { %993 = vst [vmem:[%s7992_s26 + $0xd20] sm:$0xff] %v992_v36  ;;  %v1120_v36 = vld [vmem:[%s7987_s25 + $0x1e40] sm:$0xff] }
 0x1b5   : > { %995 = vst [vmem:[%s7992_s26 + $0xd28] sm:$0xff] %v994_v37  ;;  %v1122_v37 = vld [vmem:[%s7987_s25 + $0x1e48] sm:$0xff] }
 0x1b6   : > { %997 = vst [vmem:[%s7992_s26 + $0xd30] sm:$0xff] %v996_v38  ;;  %v1124_v38 = vld [vmem:[%s7987_s25 + $0x1e50] sm:$0xff] }
 0x1b7   : > { %999 = vst [vmem:[%s7992_s26 + $0xd38] sm:$0xff] %v998_v39  ;;  %v1126_v39 = vld [vmem:[%s7987_s25 + $0x1e58] sm:$0xff] }
 0x1b8   : > { %1001 = vst [vmem:[%s7992_s26 + $0xd40] sm:$0xff] %v1000_v40  ;;  %v1128_v40 = vld [vmem:[%s7987_s25 + $0x1e80] sm:$0xff] }
 0x1b9   : > { %1003 = vst [vmem:[%s7992_s26 + $0xd48] sm:$0xff] %v1002_v41  ;;  %v1130_v41 = vld [vmem:[%s7987_s25 + $0x1e88] sm:$0xff] }
 0x1ba   : > { %1005 = vst [vmem:[%s7992_s26 + $0xd50] sm:$0xff] %v1004_v42  ;;  %v1132_v42 = vld [vmem:[%s7987_s25 + $0x1e90] sm:$0xff] }
 0x1bb   : > { %1007 = vst [vmem:[%s7992_s26 + $0xd58] sm:$0xff] %v1006_v43  ;;  %v1134_v43 = vld [vmem:[%s7987_s25 + $0x1e98] sm:$0xff] }
 0x1bc   : > { %1009 = vst [vmem:[%s7992_s26 + $0xd60] sm:$0xff] %v1008_v44  ;;  %v1136_v44 = vld [vmem:[%s7987_s25 + $0x1ec0] sm:$0xff] }
 0x1bd   : > { %1011 = vst [vmem:[%s7992_s26 + $0xd68] sm:$0xff] %v1010_v45  ;;  %v1138_v45 = vld [vmem:[%s7987_s25 + $0x1ec8] sm:$0xff] }
 0x1be   : > { %1013 = vst [vmem:[%s7992_s26 + $0xd70] sm:$0xff] %v1012_v46  ;;  %v1140_v46 = vld [vmem:[%s7987_s25 + $0x1ed0] sm:$0xff] }
 0x1bf   : > { %1015 = vst [vmem:[%s7992_s26 + $0xd78] sm:$0xff] %v1014_v47  ;;  %v1142_v47 = vld [vmem:[%s7987_s25 + $0x1ed8] sm:$0xff] }
 0x1c0   : > { %1017 = vst [vmem:[%s7992_s26 + $0xd80] sm:$0xff] %v1016_v48  ;;  %v1144_v48 = vld [vmem:[%s7987_s25 + $0x1f00] sm:$0xff] }
 0x1c1   : > { %1019 = vst [vmem:[%s7992_s26 + $0xd88] sm:$0xff] %v1018_v49  ;;  %v1146_v49 = vld [vmem:[%s7987_s25 + $0x1f08] sm:$0xff] }
 0x1c2   : > { %1021 = vst [vmem:[%s7992_s26 + $0xd90] sm:$0xff] %v1020_v50  ;;  %v1148_v50 = vld [vmem:[%s7987_s25 + $0x1f10] sm:$0xff] }
 0x1c3   : > { %1023 = vst [vmem:[%s7992_s26 + $0xd98] sm:$0xff] %v1022_v51  ;;  %v1150_v51 = vld [vmem:[%s7987_s25 + $0x1f18] sm:$0xff] }
 0x1c4   : > { %1025 = vst [vmem:[%s7992_s26 + $0xda0] sm:$0xff] %v1024_v52  ;;  %v1152_v52 = vld [vmem:[%s7987_s25 + $0x1f40] sm:$0xff] }
 0x1c5   : > { %1027 = vst [vmem:[%s7992_s26 + $0xda8] sm:$0xff] %v1026_v53  ;;  %v1154_v53 = vld [vmem:[%s7987_s25 + $0x1f48] sm:$0xff] }
 0x1c6   : > { %1029 = vst [vmem:[%s7992_s26 + $0xdb0] sm:$0xff] %v1028_v54  ;;  %v1156_v54 = vld [vmem:[%s7987_s25 + $0x1f50] sm:$0xff] }
 0x1c7   : > { %1031 = vst [vmem:[%s7992_s26 + $0xdb8] sm:$0xff] %v1030_v55  ;;  %v1158_v55 = vld [vmem:[%s7987_s25 + $0x1f58] sm:$0xff] }
 0x1c8   : > { %1033 = vst [vmem:[%s7992_s26 + $0xdc0] sm:$0xff] %v1032_v56  ;;  %v1160_v56 = vld [vmem:[%s7987_s25 + $0x1f80] sm:$0xff] }
 0x1c9   : > { %1035 = vst [vmem:[%s7992_s26 + $0xdc8] sm:$0xff] %v1034_v57  ;;  %v1162_v57 = vld [vmem:[%s7987_s25 + $0x1f88] sm:$0xff] }
 0x1ca   : > { %1037 = vst [vmem:[%s7992_s26 + $0xdd0] sm:$0xff] %v1036_v58  ;;  %v1164_v58 = vld [vmem:[%s7987_s25 + $0x1f90] sm:$0xff] }
 0x1cb   : > { %1039 = vst [vmem:[%s7992_s26 + $0xdd8] sm:$0xff] %v1038_v59  ;;  %v1166_v59 = vld [vmem:[%s7987_s25 + $0x1f98] sm:$0xff] }
 0x1cc   : > { %1041 = vst [vmem:[%s7992_s26 + $0xde0] sm:$0xff] %v1040_v60  ;;  %v1168_v60 = vld [vmem:[%s7987_s25 + $0x1fc0] sm:$0xff] }
 0x1cd   : > { %1043 = vst [vmem:[%s7992_s26 + $0xde8] sm:$0xff] %v1042_v61  ;;  %v1170_v61 = vld [vmem:[%s7987_s25 + $0x1fc8] sm:$0xff] }
 0x1ce   : > { %1045 = vst [vmem:[%s7992_s26 + $0xdf0] sm:$0xff] %v1044_v62  ;;  %v1172_v62 = vld [vmem:[%s7987_s25 + $0x1fd0] sm:$0xff] }
 0x1cf   : > { %1047 = vst [vmem:[%s7992_s26 + $0xdf8] sm:$0xff] %v1046_v63  ;;  %v1174_v63 = vld [vmem:[%s7987_s25 + $0x1fd8] sm:$0xff] }
 0x1d0   : > { %1049 = vst [vmem:[%s7992_s26 + $0xe00] sm:$0xff] %v1048_v0 }
 0x1d1   : > { %1051 = vst [vmem:[%s7992_s26 + $0xe08] sm:$0xff] %v1050_v1 }
 0x1d2   : > { %1053 = vst [vmem:[%s7992_s26 + $0xe10] sm:$0xff] %v1052_v2 }
 0x1d3   : > { %1055 = vst [vmem:[%s7992_s26 + $0xe18] sm:$0xff] %v1054_v3 }
 0x1d4   : > { %1057 = vst [vmem:[%s7992_s26 + $0xe20] sm:$0xff] %v1056_v4 }
 0x1d5   : > { %1059 = vst [vmem:[%s7992_s26 + $0xe28] sm:$0xff] %v1058_v5 }
 0x1d6   : > { %1061 = vst [vmem:[%s7992_s26 + $0xe30] sm:$0xff] %v1060_v6 }
 0x1d7   : > { %1063 = vst [vmem:[%s7992_s26 + $0xe38] sm:$0xff] %v1062_v7 }
 0x1d8   : > { %1065 = vst [vmem:[%s7992_s26 + $0xe40] sm:$0xff] %v1064_v8 }
 0x1d9   : > { %1067 = vst [vmem:[%s7992_s26 + $0xe48] sm:$0xff] %v1066_v9 }
 0x1da   : > { %1069 = vst [vmem:[%s7992_s26 + $0xe50] sm:$0xff] %v1068_v10 }
 0x1db   : > { %1071 = vst [vmem:[%s7992_s26 + $0xe58] sm:$0xff] %v1070_v11 }
 0x1dc   : > { %1073 = vst [vmem:[%s7992_s26 + $0xe60] sm:$0xff] %v1072_v12 }
 0x1dd   : > { %1075 = vst [vmem:[%s7992_s26 + $0xe68] sm:$0xff] %v1074_v13 }
 0x1de   : > { %1077 = vst [vmem:[%s7992_s26 + $0xe70] sm:$0xff] %v1076_v14 }
 0x1df   : > { %1079 = vst [vmem:[%s7992_s26 + $0xe78] sm:$0xff] %v1078_v15 }
 0x1e0   : > { %1081 = vst [vmem:[%s7992_s26 + $0xe80] sm:$0xff] %v1080_v16 }
 0x1e1   : > { %1083 = vst [vmem:[%s7992_s26 + $0xe88] sm:$0xff] %v1082_v17 }
 0x1e2   : > { %1085 = vst [vmem:[%s7992_s26 + $0xe90] sm:$0xff] %v1084_v18 }
 0x1e3   : > { %1087 = vst [vmem:[%s7992_s26 + $0xe98] sm:$0xff] %v1086_v19 }
 0x1e4   : > { %1089 = vst [vmem:[%s7992_s26 + $0xea0] sm:$0xff] %v1088_v20 }
 0x1e5   : > { %1091 = vst [vmem:[%s7992_s26 + $0xea8] sm:$0xff] %v1090_v21 }
 0x1e6   : > { %1093 = vst [vmem:[%s7992_s26 + $0xeb0] sm:$0xff] %v1092_v22 }
 0x1e7   : > { %1095 = vst [vmem:[%s7992_s26 + $0xeb8] sm:$0xff] %v1094_v23 }
 0x1e8   : > { %1097 = vst [vmem:[%s7992_s26 + $0xec0] sm:$0xff] %v1096_v24 }
 0x1e9   : > { %1099 = vst [vmem:[%s7992_s26 + $0xec8] sm:$0xff] %v1098_v25 }
 0x1ea   : > { %1101 = vst [vmem:[%s7992_s26 + $0xed0] sm:$0xff] %v1100_v26 }
 0x1eb   : > { %1103 = vst [vmem:[%s7992_s26 + $0xed8] sm:$0xff] %v1102_v27 }
 0x1ec   : > { %1105 = vst [vmem:[%s7992_s26 + $0xee0] sm:$0xff] %v1104_v28 }
 0x1ed   : > { %1107 = vst [vmem:[%s7992_s26 + $0xee8] sm:$0xff] %v1106_v29 }
 0x1ee   : > { %1109 = vst [vmem:[%s7992_s26 + $0xef0] sm:$0xff] %v1108_v30 }
 0x1ef   : > { %1111 = vst [vmem:[%s7992_s26 + $0xef8] sm:$0xff] %v1110_v31 }
 0x1f0   : > { %1113 = vst [vmem:[%s7992_s26 + $0xf00] sm:$0xff] %v1112_v32 }
 0x1f1   : > { %1115 = vst [vmem:[%s7992_s26 + $0xf08] sm:$0xff] %v1114_v33 }
 0x1f2   : > { %1117 = vst [vmem:[%s7992_s26 + $0xf10] sm:$0xff] %v1116_v34 }
 0x1f3   : > { %1119 = vst [vmem:[%s7992_s26 + $0xf18] sm:$0xff] %v1118_v35 }
 0x1f4   : > { %1121 = vst [vmem:[%s7992_s26 + $0xf20] sm:$0xff] %v1120_v36 }
 0x1f5   : > { %1123 = vst [vmem:[%s7992_s26 + $0xf28] sm:$0xff] %v1122_v37 }
 0x1f6   : > { %1125 = vst [vmem:[%s7992_s26 + $0xf30] sm:$0xff] %v1124_v38 }
 0x1f7   : > { %1127 = vst [vmem:[%s7992_s26 + $0xf38] sm:$0xff] %v1126_v39 }
 0x1f8   : > { %1129 = vst [vmem:[%s7992_s26 + $0xf40] sm:$0xff] %v1128_v40 }
 0x1f9   : > { %1131 = vst [vmem:[%s7992_s26 + $0xf48] sm:$0xff] %v1130_v41 }
 0x1fa   : > { %1133 = vst [vmem:[%s7992_s26 + $0xf50] sm:$0xff] %v1132_v42 }
 0x1fb   : > { %1135 = vst [vmem:[%s7992_s26 + $0xf58] sm:$0xff] %v1134_v43 }
 0x1fc   : > { %1137 = vst [vmem:[%s7992_s26 + $0xf60] sm:$0xff] %v1136_v44 }
 0x1fd   : > { %1139 = vst [vmem:[%s7992_s26 + $0xf68] sm:$0xff] %v1138_v45 }
 0x1fe   : > { %1141 = vst [vmem:[%s7992_s26 + $0xf70] sm:$0xff] %v1140_v46 }
 0x1ff   : > { %1143 = vst [vmem:[%s7992_s26 + $0xf78] sm:$0xff] %v1142_v47 }
 0x200   : > { %1145 = vst [vmem:[%s7992_s26 + $0xf80] sm:$0xff] %v1144_v48 }
 0x201   : > { %1147 = vst [vmem:[%s7992_s26 + $0xf88] sm:$0xff] %v1146_v49 }
 0x202   : > { %1149 = vst [vmem:[%s7992_s26 + $0xf90] sm:$0xff] %v1148_v50 }
 0x203   : > { %1151 = vst [vmem:[%s7992_s26 + $0xf98] sm:$0xff] %v1150_v51 }
 0x204   : > { %1153 = vst [vmem:[%s7992_s26 + $0xfa0] sm:$0xff] %v1152_v52 }
 0x205   : > { %1155 = vst [vmem:[%s7992_s26 + $0xfa8] sm:$0xff] %v1154_v53 }
 0x206   : > { %1157 = vst [vmem:[%s7992_s26 + $0xfb0] sm:$0xff] %v1156_v54 }
 0x207   : > { %1159 = vst [vmem:[%s7992_s26 + $0xfb8] sm:$0xff] %v1158_v55 }
 0x208   : > { %1161 = vst [vmem:[%s7992_s26 + $0xfc0] sm:$0xff] %v1160_v56 }
 0x209   : > { %1163 = vst [vmem:[%s7992_s26 + $0xfc8] sm:$0xff] %v1162_v57 }
 0x20a   : > { %1165 = vst [vmem:[%s7992_s26 + $0xfd0] sm:$0xff] %v1164_v58 }
 0x20b   : > { %1167 = vst [vmem:[%s7992_s26 + $0xfd8] sm:$0xff] %v1166_v59 }
 0x20c   : > { %1169 = vst [vmem:[%s7992_s26 + $0xfe0] sm:$0xff] %v1168_v60 }
 0x20d   : > { %1171 = vst [vmem:[%s7992_s26 + $0xfe8] sm:$0xff] %v1170_v61 }
 0x20e   : > { %1173 = vst [vmem:[%s7992_s26 + $0xff0] sm:$0xff] %v1172_v62 }
 0x20f   : > { %1175 = vst [vmem:[%s7992_s26 + $0xff8] sm:$0xff] %v1174_v63 }
 0x210 PF: > { %p5292_p5 = scmp.ge.s32.totalorder %s7931_s14, 1  ;;  %p1188_p6 = scmp.lt.s32.totalorder %s7931_s14, 3 }
 0x212   : > { %p1189_p7 = pnand %p5292_p5, %p1188_p6 }
 0x213   : > { %s1195_s27 = sand.u32 (!%p1189_p7), 1, %s7923_s12   ;;  %s9393_s5 = sshll.u32 (!%p1189_p7), %s5285_s15, 3 }
 0x214   : > { %1192 = sbr.rel (%p1189_p7) target bundleno = 1456 (0x5b0), region = 51  ;;  %s5293_s28 = sshll.u32 (!%p1189_p7), %s1195_s27, 12 }
 0x215   : > { %s9018_s29 = scalar_lea.vmem (!%p1189_p7), [#allocation2], %s5293_s28  ;;  %p1223_p8 = scmp.lt.s32.totalorder (!%p1189_p7), %s9393_s5, 15 }
 0x219   : > { %v5522_v0 = vld [vmem:[%s9018_s29 + $0x1c0] sm:$0xf]  ;;  %s10253_s5 = smov (!%p1223_p8, %s9393_s5), 15  ;;  %vm5196_vm0 = vcmask 1040384   ;;  %vm5200_vm1 = vcmask 1042434   ;;  %vm5204_vm2 = vcmask 1041408  }
 0x21a   : > { %v7407_v1 = vld [vmem:[%s9018_s29 + $0x1dc] sm:$0xf0]  ;;  %s9433_s8 = scalar_lea.vmem %s10247_s2, %s10253_s5  ;;  %vm5206_vm3 = vcmask 1044484   ;;  %vm5210_vm4 = vcmask 1046534   ;;  %vm5214_vm5 = vcmask 1045508   ;;  %vm5216_vm6 = vcmask 1043456   ;;  %s1230_s11 = scalar_lea.vmem %s10248_s3, %s10253_s5 }
 0x21b   : > { %v5778_v2 = vld [vmem:[%s9018_s29 + $0x3c0] sm:$0xf]  ;;  %v5523_v3 = vor.u32 %v7407_v1, %v5522_v0 }
 0x21c   : > { %v7471_v4 = vld [vmem:[%s9018_s29 + $0x3dc] sm:$0xf0] }
 0x21d   : > { %v6034_v5 = vld [vmem:[%s9018_s29 + $0x5c0] sm:$0xf]  ;;  %v5779_v7 = vor.u32 %v7471_v4, %v5778_v2  ;;  %4341 = vmatpush.bf16.msra.mxu0 %v5523_v3 }
 0x21e   : > { %v7535_v6 = vld [vmem:[%s9018_s29 + $0x5dc] sm:$0xf0] }
 0x21f   : > { %v6035_v8 = vor.u32 %v7535_v6, %v6034_v5  ;;  %v6290_v9 = vld [vmem:[%s9018_s29 + $0x7c0] sm:$0xf]  ;;  %4354 = vmatpush.bf16.msra.mxu1 %v5779_v7 }
 0x220   : > { %v7599_v10 = vld [vmem:[%s9018_s29 + $0x7dc] sm:$0xf0] }
 0x221   : > { %v5490_v11 = vld [vmem:[%s9018_s29 + $0x180] sm:$0xf]  ;;  %v6291_v12 = vor.u32 %v7599_v10, %v6290_v9  ;;  %4367 = vmatpush.bf16.msra.mxu2 %v6035_v8 }
 0x222   : > { %v7399_v13 = vld [vmem:[%s9018_s29 + $0x19c] sm:$0xf0] }
 0x223   : > { %v5746_v14 = vld [vmem:[%s9018_s29 + $0x380] sm:$0xf]  ;;  %v5491_v16 = vor.u32 %v7399_v13, %v5490_v11  ;;  %4380 = vmatpush.bf16.msra.mxu3 %v6291_v12 }
 0x224   : > { %v7463_v15 = vld [vmem:[%s9018_s29 + $0x39c] sm:$0xf0] }
 0x225   : > { %v5747_v17 = vor.u32 %v7463_v15, %v5746_v14  ;;  %v6002_v18 = vld [vmem:[%s9018_s29 + $0x580] sm:$0xf]  ;;  %4342 = vmatpush.bf16.msra.mxu0 %v5491_v16 }
 0x226   : > { %v7527_v19 = vld [vmem:[%s9018_s29 + $0x59c] sm:$0xf0] }
 0x227   : > { %v6258_v20 = vld [vmem:[%s9018_s29 + $0x780] sm:$0xf]  ;;  %v6003_v21 = vor.u32 %v7527_v19, %v6002_v18  ;;  %4355 = vmatpush.bf16.msra.mxu1 %v5747_v17 }
 0x228   : > { %v7591_v22 = vld [vmem:[%s9018_s29 + $0x79c] sm:$0xf0] }
 0x229   : > { %v5458_v23 = vld [vmem:[%s9018_s29 + $0x140] sm:$0xf]  ;;  %v6259_v25 = vor.u32 %v7591_v22, %v6258_v20  ;;  %4368 = vmatpush.bf16.msra.mxu2 %v6003_v21 }
 0x22a   : > { %v7391_v24 = vld [vmem:[%s9018_s29 + $0x15c] sm:$0xf0] }
 0x22b   : > { %v5714_v26 = vld [vmem:[%s9018_s29 + $0x340] sm:$0xf]  ;;  %v5459_v29 = vor.u32 %v7391_v24, %v5458_v23  ;;  %4381 = vmatpush.bf16.msra.mxu3 %v6259_v25 }
 0x22c   : > { %v7455_v27 = vld [vmem:[%s9018_s29 + $0x35c] sm:$0xf0] }
 0x22d   : > { %v5970_v28 = vld [vmem:[%s9018_s29 + $0x540] sm:$0xf]  ;;  %v5715_v33 = vor.u32 %v7455_v27, %v5714_v26  ;;  %4343 = vmatpush.bf16.msra.mxu0 %v5459_v29 }
 0x22e   : > { %v7519_v30 = vld [vmem:[%s9018_s29 + $0x55c] sm:$0xf0] }
 0x22f   : > { %v6226_v31 = vld [vmem:[%s9018_s29 + $0x740] sm:$0xf]  ;;  %v5971_v34 = vor.u32 %v7519_v30, %v5970_v28  ;;  %4356 = vmatpush.bf16.msra.mxu1 %v5715_v33 }
 0x230   : > { %v7583_v32 = vld [vmem:[%s9018_s29 + $0x75c] sm:$0xf0] }
 0x231   : > { %v5426_v35 = vld [vmem:[%s9018_s29 + $0x100] sm:$0xf]  ;;  %v6227_v38 = vor.u32 %v7583_v32, %v6226_v31  ;;  %4369 = vmatpush.bf16.msra.mxu2 %v5971_v34 }
 0x232   : > { %v7383_v36 = vld [vmem:[%s9018_s29 + $0x11c] sm:$0xf0] }
 0x233   : > { %v5682_v37 = vld [vmem:[%s9018_s29 + $0x300] sm:$0xf]  ;;  %v5427_v44 = vor.u32 %v7383_v36, %v5426_v35  ;;  %4382 = vmatpush.bf16.msra.mxu3 %v6227_v38 }
 0x234   : > { %v7447_v39 = vld [vmem:[%s9018_s29 + $0x31c] sm:$0xf0] }
 0x235   : > { %v5938_v40 = vld [vmem:[%s9018_s29 + $0x500] sm:$0xf]  ;;  %v5683_v45 = vor.u32 %v7447_v39, %v5682_v37  ;;  %4344 = vmatpush.bf16.msra.mxu0 %v5427_v44 }
 0x236   : > { %v7511_v41 = vld [vmem:[%s9018_s29 + $0x51c] sm:$0xf0] }
 0x237   : > { %v6194_v42 = vld [vmem:[%s9018_s29 + $0x700] sm:$0xf]  ;;  %v5939_v46 = vor.u32 %v7511_v41, %v5938_v40  ;;  %4357 = vmatpush.bf16.msra.mxu1 %v5683_v45 }
 0x238   : > { %v7575_v43 = vld [vmem:[%s9018_s29 + $0x71c] sm:$0xf0] }
 0x239   : > { %v5394_v47 = vld [vmem:[%s9018_s29 + $0xc0] sm:$0xf]  ;;  %v6195_v50 = vor.u32 %v7575_v43, %v6194_v42  ;;  %4370 = vmatpush.bf16.msra.mxu2 %v5939_v46 }
 0x23a   : > { %v7375_v48 = vld [vmem:[%s9018_s29 + $0xdc] sm:$0xf0] }
 0x23b   : > { %v5650_v49 = vld [vmem:[%s9018_s29 + $0x2c0] sm:$0xf]  ;;  %v5395_v56 = vor.u32 %v7375_v48, %v5394_v47  ;;  %4383 = vmatpush.bf16.msra.mxu3 %v6195_v50 }
 0x23c   : > { %v7439_v51 = vld [vmem:[%s9018_s29 + $0x2dc] sm:$0xf0] }
 0x23d   : > { %v5906_v52 = vld [vmem:[%s9018_s29 + $0x4c0] sm:$0xf]  ;;  %v5651_v57 = vor.u32 %v7439_v51, %v5650_v49  ;;  %4345 = vmatpush.bf16.msra.mxu0 %v5395_v56 }
 0x23e   : > { %v7503_v53 = vld [vmem:[%s9018_s29 + $0x4dc] sm:$0xf0] }
 0x23f   : > { %v6162_v54 = vld [vmem:[%s9018_s29 + $0x6c0] sm:$0xf]  ;;  %v5907_v58 = vor.u32 %v7503_v53, %v5906_v52  ;;  %4358 = vmatpush.bf16.msra.mxu1 %v5651_v57 }
 0x240   : > { %v7567_v55 = vld [vmem:[%s9018_s29 + $0x6dc] sm:$0xf0] }
 0x241   : > { %v5362_v59 = vld [vmem:[%s9018_s29 + $0x80] sm:$0xf]  ;;  %v6163_v62 = vor.u32 %v7567_v55, %v6162_v54  ;;  %4371 = vmatpush.bf16.msra.mxu2 %v5907_v58 }
 0x242   : > { %v7367_v60 = vld [vmem:[%s9018_s29 + $0x9c] sm:$0xf0] }
 0x243   : > { %v5618_v61 = vld [vmem:[%s9018_s29 + $0x280] sm:$0xf]  ;;  %v5363_v4 = vor.u32 %v7367_v60, %v5362_v59  ;;  %4384 = vmatpush.bf16.msra.mxu3 %v6163_v62 }
 0x244   : > { %v7431_v63 = vld [vmem:[%s9018_s29 + $0x29c] sm:$0xf0] }
 0x245   : > { %v5874_v0 = vld [vmem:[%s9018_s29 + $0x480] sm:$0xf]  ;;  %v5619_v5 = vor.u32 %v7431_v63, %v5618_v61  ;;  %4346 = vmatpush.bf16.msra.mxu0 %v5363_v4 }
 0x246   : > { %v7495_v1 = vld [vmem:[%s9018_s29 + $0x49c] sm:$0xf0] }
 0x247   : > { %v6130_v2 = vld [vmem:[%s9018_s29 + $0x680] sm:$0xf]  ;;  %v5875_v6 = vor.u32 %v7495_v1, %v5874_v0  ;;  %4359 = vmatpush.bf16.msra.mxu1 %v5619_v5 }
 0x248   : > { %v7559_v3 = vld [vmem:[%s9018_s29 + $0x69c] sm:$0xf0] }
 0x249   : > { %v5330_v7 = vld [vmem:[%s9018_s29 + $0x40] sm:$0xf]  ;;  %v6131_v10 = vor.u32 %v7559_v3, %v6130_v2  ;;  %4372 = vmatpush.bf16.msra.mxu2 %v5875_v6  ;;  %v1232_v2 = vld [vmem:[%s10245_s0] sm:$0xff] }
 0x24a   : > { %v7359_v8 = vld [vmem:[%s9018_s29 + $0x5c] sm:$0xf0]  ;;  %1764 = vst [vmem:[#allocation1] ss:$9 sm:$0xff] %v1232_v2  ;;  %v5524_v2 = vld [vmem:[%s9018_s29 + $0x1e0] sm:$0xf0] }
 0x24b   : > { %v5586_v9 = vld [vmem:[%s9018_s29 + $0x240] sm:$0xf]  ;;  %v5331_v16 = vor.u32 %v7359_v8, %v5330_v7  ;;  %4385 = vmatpush.bf16.msra.mxu3 %v6131_v10 }
 0x24c   : > { %v7423_v11 = vld [vmem:[%s9018_s29 + $0x25c] sm:$0xf0] }
 0x24d   : > { %v5842_v12 = vld [vmem:[%s9018_s29 + $0x440] sm:$0xf]  ;;  %v5587_v19 = vor.u32 %v7423_v11, %v5586_v9  ;;  %4347 = vmatpush.bf16.msra.mxu0 %v5331_v16 }
 0x24e   : > { %v7487_v13 = vld [vmem:[%s9018_s29 + $0x45c] sm:$0xf0] }
 0x24f   : > { %v6098_v14 = vld [vmem:[%s9018_s29 + $0x640] sm:$0xf]  ;;  %v5843_v20 = vor.u32 %v7487_v13, %v5842_v12  ;;  %4360 = vmatpush.bf16.msra.mxu1 %v5587_v19 }
 0x250   : > { %v7551_v15 = vld [vmem:[%s9018_s29 + $0x65c] sm:$0xf0] }
 0x251   : > { %v5298_v17 = vld [vmem:[%s9018_s29] sm:$0xf]  ;;  %v6099_v24 = vor.u32 %v7551_v15, %v6098_v14  ;;  %4373 = vmatpush.bf16.msra.mxu2 %v5843_v20 }
 0x252   : > { %v7351_v18 = vld [vmem:[%s9018_s29 + $0x1c] sm:$0xf0] }
 0x253   : > { %v5554_v21 = vld [vmem:[%s9018_s29 + $0x200] sm:$0xf]  ;;  %v5299_v31 = vor.u32 %v7351_v18, %v5298_v17  ;;  %4386 = vmatpush.bf16.msra.mxu3 %v6099_v24 }
 0x254   : > { %v7415_v22 = vld [vmem:[%s9018_s29 + $0x21c] sm:$0xf0] }
 0x255   : > { %v5810_v23 = vld [vmem:[%s9018_s29 + $0x400] sm:$0xf]  ;;  %v5555_v35 = vor.u32 %v7415_v22, %v5554_v21  ;;  %4348 = vmatpush.bf16.msra.mxu0 %v5299_v31 }
 0x256   : > { %v7479_v25 = vld [vmem:[%s9018_s29 + $0x41c] sm:$0xf0] }
 0x257   : > { %v6066_v26 = vld [vmem:[%s9018_s29 + $0x600] sm:$0xf]  ;;  %v5811_v36 = vor.u32 %v7479_v25, %v5810_v23  ;;  %4361 = vmatpush.bf16.msra.mxu1 %v5555_v35 }
 0x258   : > { %v7543_v27 = vld [vmem:[%s9018_s29 + $0x61c] sm:$0xf0] }
 0x259   : > { %v6546_v28 = vld [vmem:[%s9018_s29 + $0x9c0] sm:$0xf]  ;;  %v6067_v39 = vor.u32 %v7543_v27, %v6066_v26  ;;  %4374 = vmatpush.bf16.msra.mxu2 %v5811_v36  ;;  %v9128_v27 = vld [vmem:[#allocation1 + $0x12] sm:$0xff] }
 0x25a   : > { %v7663_v29 = vld [vmem:[%s9018_s29 + $0x9dc] sm:$0xf0] }
 0x25b   : > { %v6802_v30 = vld [vmem:[%s9018_s29 + $0xbc0] sm:$0xf]  ;;  %v6547_v40 = vor.u32 %v7663_v29, %v6546_v28  ;;  %4387 = vmatpush.bf16.msra.mxu3 %v6067_v39  ;;  %v9130_v28 = vld [vmem:[#allocation1] sm:$0xff] }
 0x25c   : > { %v7727_v32 = vld [vmem:[%s9018_s29 + $0xbdc] sm:$0xf0]  ;;  %v9132_v29 = vld [vmem:[#allocation1 + $0x1b] sm:$0xff]  ;;  %4375 = vmatmul.bf16.vlgmr.msra.gmra.mxu2 %v9128_v27  ;;  %4349 = vmatmul.bf16.vlgmr.msra.gmra.mxu0 %v9130_v28 }
 0x25d   : > { %v7058_v33 = vld [vmem:[%s9018_s29 + $0xdc0] sm:$0xf]  ;;  %v6803_v41 = vor.u32 %v7727_v32, %v6802_v30  ;;  %4393 = vmatpush.bf16.msrb.mxu0 %v6547_v40 }
 0x25e   : > { %v7791_v34 = vld [vmem:[%s9018_s29 + $0xddc] sm:$0xf0]  ;;  %4388 = vmatmul.bf16.vlgmr.msra.gmra.mxu3 %v9132_v29 }
 0x25f   : > { %v7314_v37 = vld [vmem:[%s9018_s29 + $0xfc0] sm:$0xf]  ;;  %v7059_v42 = vor.u32 %v7791_v34, %v7058_v33  ;;  %4406 = vmatpush.bf16.msrb.mxu1 %v6803_v41 }
 0x260   : > { %v7855_v38 = vld [vmem:[%s9018_s29 + $0xfdc] sm:$0xf0] }
 0x261   : > { %v6514_v43 = vld [vmem:[%s9018_s29 + $0x980] sm:$0xf]  ;;  %v7315_v46 = vor.u32 %v7855_v38, %v7314_v37  ;;  %4419 = vmatpush.bf16.msrb.mxu2 %v7059_v42 }
 0x262   : > { %v7655_v44 = vld [vmem:[%s9018_s29 + $0x99c] sm:$0xf0] }
 0x263   : > { %v6770_v45 = vld [vmem:[%s9018_s29 + $0xb80] sm:$0xf]  ;;  %v6515_v52 = vor.u32 %v7655_v44, %v6514_v43  ;;  %4432 = vmatpush.bf16.msrb.mxu3 %v7315_v46 }
 0x264   : > { %v7719_v47 = vld [vmem:[%s9018_s29 + $0xb9c] sm:$0xf0] }
 0x265   : > { %v7026_v48 = vld [vmem:[%s9018_s29 + $0xd80] sm:$0xf]  ;;  %v6771_v53 = vor.u32 %v7719_v47, %v6770_v45  ;;  %4394 = vmatpush.bf16.msrb.mxu0 %v6515_v52 }
 0x266   : > { %v7783_v49 = vld [vmem:[%s9018_s29 + $0xd9c] sm:$0xf0] }
 0x267   : > { %v7282_v50 = vld [vmem:[%s9018_s29 + $0xf80] sm:$0xf]  ;;  %v7027_v54 = vor.u32 %v7783_v49, %v7026_v48  ;;  %4407 = vmatpush.bf16.msrb.mxu1 %v6771_v53 }
 0x268   : > { %v7847_v51 = vld [vmem:[%s9018_s29 + $0xf9c] sm:$0xf0] }
 0x269   : > { %v6482_v55 = vld [vmem:[%s9018_s29 + $0x940] sm:$0xf]  ;;  %v7283_v58 = vor.u32 %v7847_v51, %v7282_v50  ;;  %4420 = vmatpush.bf16.msrb.mxu2 %v7027_v54 }
 0x26a   : > { %v7647_v56 = vld [vmem:[%s9018_s29 + $0x95c] sm:$0xf0] }
 0x26b   : > { %v6738_v57 = vld [vmem:[%s9018_s29 + $0xb40] sm:$0xf]  ;;  %v6483_v0 = vor.u32 %v7647_v56, %v6482_v55  ;;  %4433 = vmatpush.bf16.msrb.mxu3 %v7283_v58 }
 0x26c   : > { %v7711_v59 = vld [vmem:[%s9018_s29 + $0xb5c] sm:$0xf0] }
 0x26d   : > { %v6994_v60 = vld [vmem:[%s9018_s29 + $0xd40] sm:$0xf]  ;;  %v6739_v3 = vor.u32 %v7711_v59, %v6738_v57  ;;  %4395 = vmatpush.bf16.msrb.mxu0 %v6483_v0 }
 0x26e   : > { %v7775_v61 = vld [vmem:[%s9018_s29 + $0xd5c] sm:$0xf0] }
 0x26f   : > { %v7250_v62 = vld [vmem:[%s9018_s29 + $0xf40] sm:$0xf]  ;;  %v6995_v4 = vor.u32 %v7775_v61, %v6994_v60  ;;  %4408 = vmatpush.bf16.msrb.mxu1 %v6739_v3  ;;  %v7467_v3 = vld [vmem:[%s9018_s29 + $0x3c4] sm:$0xf] }
 0x270   : > { %v7839_v63 = vld [vmem:[%s9018_s29 + $0xf5c] sm:$0xf0] }
 0x271   : > { %v6450_v1 = vld [vmem:[%s9018_s29 + $0x900] sm:$0xf]  ;;  %v7251_v7 = vor.u32 %v7839_v63, %v7250_v62  ;;  %4421 = vmatpush.bf16.msrb.mxu2 %v6995_v4 }
 0x272   : > { %v7639_v5 = vld [vmem:[%s9018_s29 + $0x91c] sm:$0xf0] }
 0x273   : > { %v6706_v6 = vld [vmem:[%s9018_s29 + $0xb00] sm:$0xf]  ;;  %v6451_v13 = vor.u32 %v7639_v5, %v6450_v1  ;;  %4434 = vmatpush.bf16.msrb.mxu3 %v7251_v7  ;;  %v7403_v1 = vld [vmem:[%s9018_s29 + $0x1c4] sm:$0xf] }
 0x274   : > { %v7703_v8 = vld [vmem:[%s9018_s29 + $0xb1c] sm:$0xf0]  ;;  %v5780_v5 = vld [vmem:[%s9018_s29 + $0x3e0] sm:$0xf0] }
 0x275   : > { %v6962_v9 = vld [vmem:[%s9018_s29 + $0xd00] sm:$0xf]  ;;  %v6707_v14 = vor.u32 %v7703_v8, %v6706_v6  ;;  %4396 = vmatpush.bf16.msrb.mxu0 %v6451_v13  ;;  %v7531_v6 = vld [vmem:[%s9018_s29 + $0x5c4] sm:$0xf]  ;;  %v5527_v13 = vor.u32 %v7403_v1, %v5524_v2 }
 0x276   : > { %v7767_v10 = vld [vmem:[%s9018_s29 + $0xd1c] sm:$0xf0]  ;;  %v6036_v7 = vld [vmem:[%s9018_s29 + $0x5e0] sm:$0xf0] }
 0x277   : > { %v7218_v11 = vld [vmem:[%s9018_s29 + $0xf00] sm:$0xf]  ;;  %v6963_v15 = vor.u32 %v7767_v10, %v6962_v9  ;;  %4409 = vmatpush.bf16.msrb.mxu1 %v6707_v14  ;;  %v7595_v10 = vld [vmem:[%s9018_s29 + $0x7c4] sm:$0xf]  ;;  %v5783_v14 = vor.u32 %v7467_v3, %v5780_v5 }
 0x278   : > { %v7831_v12 = vld [vmem:[%s9018_s29 + $0xf1c] sm:$0xf0]  ;;  %v7499_v1 = vld [vmem:[%s9018_s29 + $0x4c4] sm:$0xf] }
 0x279   : > { %v6418_v16 = vld [vmem:[%s9018_s29 + $0x8c0] sm:$0xf]  ;;  %v7219_v19 = vor.u32 %v7831_v12, %v7218_v11  ;;  %4422 = vmatpush.bf16.msrb.mxu2 %v6963_v15  ;;  %v6292_v11 = vld [vmem:[%s9018_s29 + $0x7e0] sm:$0xf0]  ;;  %v6039_v15 = vor.u32 %v7531_v6, %v6036_v7 }
 0x27a   : > { %v7631_v17 = vld [vmem:[%s9018_s29 + $0x8dc] sm:$0xf0]  ;;  %v5908_v2 = vld [vmem:[%s9018_s29 + $0x4e0] sm:$0xf0] }
 0x27b   : > { %v6674_v18 = vld [vmem:[%s9018_s29 + $0xac0] sm:$0xf]  ;;  %v6419_v26 = vor.u32 %v7631_v17, %v6418_v16  ;;  %4435 = vmatpush.bf16.msrb.mxu3 %v7219_v19  ;;  %v7395_v16 = vld [vmem:[%s9018_s29 + $0x184] sm:$0xf]  ;;  %v6295_v19 = vor.u32 %v7595_v10, %v6292_v11  ;;  %v5911_v7 = vor.u32 %v7499_v1, %v5908_v2 }
 0x27c   : > { %v7695_v20 = vld [vmem:[%s9018_s29 + $0xadc] sm:$0xf0]  ;;  %v5492_v17 = vld [vmem:[%s9018_s29 + $0x1a0] sm:$0xf0] }
 0x27d   : > { %v6930_v21 = vld [vmem:[%s9018_s29 + $0xcc0] sm:$0xf]  ;;  %v6675_v30 = vor.u32 %v7695_v20, %v6674_v18  ;;  %4397 = vmatpush.bf16.msrb.mxu0 %v6419_v26  ;;  %v7459_v18 = vld [vmem:[%s9018_s29 + $0x384] sm:$0xf]  ;;  %v5495_v26 = vor.u32 %v7395_v16, %v5492_v17 }
 0x27e   : > { %v7759_v22 = vld [vmem:[%s9018_s29 + $0xcdc] sm:$0xf0]  ;;  %v5748_v20 = vld [vmem:[%s9018_s29 + $0x3a0] sm:$0xf0] }
 0x27f   : > { %v7186_v23 = vld [vmem:[%s9018_s29 + $0xec0] sm:$0xf]  ;;  %v6931_v31 = vor.u32 %v7759_v22, %v6930_v21  ;;  %4410 = vmatpush.bf16.msrb.mxu1 %v6675_v30  ;;  %v7523_v21 = vld [vmem:[%s9018_s29 + $0x584] sm:$0xf] }
 0x280   : > { %v7823_v24 = vld [vmem:[%s9018_s29 + $0xedc] sm:$0xf0]  ;;  %v6004_v22 = vld [vmem:[%s9018_s29 + $0x5a0] sm:$0xf0] }
 0x281   : > { %v6386_v25 = vld [vmem:[%s9018_s29 + $0x880] sm:$0xf]  ;;  %v7187_v35 = vor.u32 %v7823_v24, %v7186_v23  ;;  %4423 = vmatpush.bf16.msrb.mxu2 %v6931_v31  ;;  %v7587_v23 = vld [vmem:[%s9018_s29 + $0x784] sm:$0xf] }
 0x282   : > { %v7623_v32 = vld [vmem:[%s9018_s29 + $0x89c] sm:$0xf0]  ;;  %v6260_v24 = vld [vmem:[%s9018_s29 + $0x7a0] sm:$0xf0] }
 0x283   : > { %v6642_v33 = vld [vmem:[%s9018_s29 + $0xa80] sm:$0xf]  ;;  %v6387_v41 = vor.u32 %v7623_v32, %v6386_v25  ;;  %4436 = vmatpush.bf16.msrb.mxu3 %v7187_v35  ;;  %v9179_v25 = vld [vmem:[#allocation1 + $0x36] sm:$0xff]  ;;  %v7387_v30 = vld [vmem:[%s9018_s29 + $0x144] sm:$0xf]  ;;  %v6007_v35 = vor.u32 %v7523_v21, %v6004_v22 }
 0x284   : > { %v9136_v34 = vld [vmem:[#allocation1 + $0x9] sm:$0xff]  ;;  %v9184_v32 = vld [vmem:[#allocation1 + $0x3f] sm:$0xff] }
 0x285   : > { %v7687_v36 = vld [vmem:[%s9018_s29 + $0xa9c] sm:$0xf0]  ;;  %4362 = vmatmul.bf16.vlgmr.msra.gmra.mxu1 %v9136_v34  ;;  %4398 = vmatpush.bf16.msrb.mxu0 %v6387_v41  ;;  %v7515_v41 = vld [vmem:[%s9018_s29 + $0x544] sm:$0xf] }
 0x286   : > { %v6898_v37 = vld [vmem:[%s9018_s29 + $0xc80] sm:$0xf]  ;;  %v6643_v42 = vor.u32 %v7687_v36, %v6642_v33  ;;  %v5751_v33 = vor.u32 %v7459_v18, %v5748_v20  ;;  %v5460_v36 = vld [vmem:[%s9018_s29 + $0x160] sm:$0xf0] }
 0x287   : > { %v7751_v38 = vld [vmem:[%s9018_s29 + $0xc9c] sm:$0xf0]  ;;  %v7563_v3 = vld [vmem:[%s9018_s29 + $0x6c4] sm:$0xf] }
 0x288   : > { %v7154_v39 = vld [vmem:[%s9018_s29 + $0xe80] sm:$0xf]  ;;  %v6899_v43 = vor.u32 %v7751_v38, %v6898_v37  ;;  %4411 = vmatpush.bf16.msrb.mxu1 %v6643_v42  ;;  %v7451_v37 = vld [vmem:[%s9018_s29 + $0x344] sm:$0xf] }
 0x289   : > { %v7815_v40 = vld [vmem:[%s9018_s29 + $0xe9c] sm:$0xf0]  ;;  %v9188_v38 = vld [vmem:[#allocation1 + $0x2d] sm:$0xff] }
 0x28a   : > { %v6354_v44 = vld [vmem:[%s9018_s29 + $0x840] sm:$0xf]  ;;  %v7155_v47 = vor.u32 %v7815_v40, %v7154_v39  ;;  %4424 = vmatpush.bf16.msrb.mxu2 %v6899_v43  ;;  %v6263_v39 = vor.u32 %v7587_v23, %v6260_v24  ;;  %v5716_v40 = vld [vmem:[%s9018_s29 + $0x360] sm:$0xf0] }
 0x28b   : > { %v7615_v45 = vld [vmem:[%s9018_s29 + $0x85c] sm:$0xf0]  ;;  %v5972_v42 = vld [vmem:[%s9018_s29 + $0x560] sm:$0xf0] }
 0x28c   : > { %v6610_v46 = vld [vmem:[%s9018_s29 + $0xa40] sm:$0xf]  ;;  %v6355_v53 = vor.u32 %v7615_v45, %v6354_v44  ;;  %4437 = vmatpush.bf16.msrb.mxu3 %v7155_v47  ;;  %v7579_v43 = vld [vmem:[%s9018_s29 + $0x744] sm:$0xf]  ;;  %v5463_v45 = vor.u32 %v7387_v30, %v5460_v36  ;;  %v5975_v47 = vor.u32 %v7515_v41, %v5972_v42 }
 0x28d   : > { %v7679_v48 = vld [vmem:[%s9018_s29 + $0xa5c] sm:$0xf0]  ;;  %v6228_v44 = vld [vmem:[%s9018_s29 + $0x760] sm:$0xf0] }
 0x28e   : > { %v6866_v49 = vld [vmem:[%s9018_s29 + $0xc40] sm:$0xf]  ;;  %v6611_v56 = vor.u32 %v7679_v48, %v6610_v46  ;;  %4399 = vmatpush.bf16.msrb.mxu0 %v6355_v53  ;;  %v5719_v46 = vor.u32 %v7451_v37, %v5716_v40  ;;  %v7379_v48 = vld [vmem:[%s9018_s29 + $0x104] sm:$0xf] }
 0x28f   : > { %v7743_v50 = vld [vmem:[%s9018_s29 + $0xc5c] sm:$0xf0]  ;;  %v7507_v53 = vld [vmem:[%s9018_s29 + $0x504] sm:$0xf] }
 0x290   : > { %v7122_v51 = vld [vmem:[%s9018_s29 + $0xe40] sm:$0xf]  ;;  %v6867_v57 = vor.u32 %v7743_v50, %v6866_v49  ;;  %4412 = vmatpush.bf16.msrb.mxu1 %v6611_v56  ;;  %v5428_v49 = vld [vmem:[%s9018_s29 + $0x120] sm:$0xf0] }
 0x291   : > { %v7807_v52 = vld [vmem:[%s9018_s29 + $0xe5c] sm:$0xf0]  ;;  %v7443_v50 = vld [vmem:[%s9018_s29 + $0x304] sm:$0xf] }
 0x292   : > { %v6322_v54 = vld [vmem:[%s9018_s29 + $0x800] sm:$0xf]  ;;  %v7123_v61 = vor.u32 %v7807_v52, %v7122_v51  ;;  %4425 = vmatpush.bf16.msrb.mxu2 %v6867_v57  ;;  %v6231_v51 = vor.u32 %v7579_v43, %v6228_v44  ;;  %v5684_v52 = vld [vmem:[%s9018_s29 + $0x320] sm:$0xf0]  ;;  %v5431_v57 = vor.u32 %v7379_v48, %v5428_v49 }
 0x293   : > { %v7607_v55 = vld [vmem:[%s9018_s29 + $0x81c] sm:$0xf0]  ;;  %v6196_v56 = vld [vmem:[%s9018_s29 + $0x720] sm:$0xf0] }
 0x294   : > { %v6578_v58 = vld [vmem:[%s9018_s29 + $0xa00] sm:$0xf]  ;;  %v6323_v4 = vor.u32 %v7607_v55, %v6322_v54  ;;  %4438 = vmatpush.bf16.msrb.mxu3 %v7123_v61  ;;  %v5940_v54 = vld [vmem:[%s9018_s29 + $0x520] sm:$0xf0] }
 0x295   : > { %v7671_v59 = vld [vmem:[%s9018_s29 + $0xa1c] sm:$0xf0]  ;;  %v7571_v55 = vld [vmem:[%s9018_s29 + $0x704] sm:$0xf] }
 0x296   : > { %v6834_v60 = vld [vmem:[%s9018_s29 + $0xc00] sm:$0xf]  ;;  %v6579_v8 = vor.u32 %v7671_v59, %v6578_v58  ;;  %4400 = vmatpush.bf16.msrb.mxu0 %v6323_v4  ;;  %v5687_v58 = vor.u32 %v7443_v50, %v5684_v52  ;;  %v5943_v59 = vor.u32 %v7507_v53, %v5940_v54  ;;  %v5396_v61 = vld [vmem:[%s9018_s29 + $0xe0] sm:$0xf0] }
 0x297   : > { %v7735_v62 = vld [vmem:[%s9018_s29 + $0xc1c] sm:$0xf0]  ;;  %v6164_v4 = vld [vmem:[%s9018_s29 + $0x6e0] sm:$0xf0] }
 0x298   : > { %v7090_v63 = vld [vmem:[%s9018_s29 + $0xe00] sm:$0xf]  ;;  %v6835_v9 = vor.u32 %v7735_v62, %v6834_v60  ;;  %4413 = vmatpush.bf16.msrb.mxu1 %v6579_v8  ;;  %v7371_v60 = vld [vmem:[%s9018_s29 + $0xc4] sm:$0xf]  ;;  %v6167_v11 = vor.u32 %v7563_v3, %v6164_v4 }
 0x299   : > { %v7799_v0 = vld [vmem:[%s9018_s29 + $0xe1c] sm:$0xf0]  ;;  %v7435_v62 = vld [vmem:[%s9018_s29 + $0x2c4] sm:$0xf]  ;;  %v5399_v5 = vor.u32 %v7371_v60, %v5396_v61 }
 0x29a   : > { %v7091_v12 = vor.u32 %v7799_v0, %v7090_v63  ;;  %4426 = vmatpush.bf16.msrb.mxu2 %v6835_v9  ;;  %4445 = vmatpush.bf16.msra.mxu0 %v5527_v13  ;;  %v9182_v31 = vld [vmem:[#allocation1 + $0x24] sm:$0xff]  ;;  %v6199_v63 = vor.u32 %v7571_v55, %v6196_v56  ;;  %v5652_v0 = vld [vmem:[%s9018_s29 + $0x2e0] sm:$0xf0] }
 0x29b   : > { %4401 = vmatmul.bf16.vlgmr.msrb.gmra.mxu0 %v9182_v31  ;;  %4414 = vmatmul.bf16.vlgmr.msrb.gmra.mxu1 %v9188_v38  ;;  %v5655_v6 = vor.u32 %v7435_v62, %v5652_v0  ;;  %v7363_v8 = vld [vmem:[%s9018_s29 + $0x84] sm:$0xf] }
 0x29c   : > { %4439 = vmatpush.bf16.msrb.mxu3 %v7091_v12  ;;  %4458 = vmatpush.bf16.msra.mxu1 %v5783_v14  ;;  %v5364_v9 = vld [vmem:[%s9018_s29 + $0xa0] sm:$0xf0] }
 0x29d   : > { %4427 = vmatmul.bf16.vlgmr.msrb.gmra.mxu2 %v9179_v25  ;;  %v7427_v10 = vld [vmem:[%s9018_s29 + $0x284] sm:$0xf]  ;;  %v5367_v17 = vor.u32 %v7363_v8, %v5364_v9 }
 0x29e   : > { %4471 = vmatpush.bf16.msra.mxu2 %v6039_v15  ;;  %4446 = vmatpush.bf16.msra.mxu0 %v5495_v26  ;;  %v5620_v12 = vld [vmem:[%s9018_s29 + $0x2a0] sm:$0xf0] }
 0x29f   : > { %4440 = vmatmul.bf16.vlgmr.msrb.gmra.mxu3 %v9184_v32  ;;  %v7491_v13 = vld [vmem:[%s9018_s29 + $0x484] sm:$0xf]  ;;  %v5623_v18 = vor.u32 %v7427_v10, %v5620_v12 }
 0x2a0   : > { %4484 = vmatpush.bf16.msra.mxu3 %v6295_v19  ;;  %4459 = vmatpush.bf16.msra.mxu1 %v5751_v33  ;;  %v5876_v14 = vld [vmem:[%s9018_s29 + $0x4a0] sm:$0xf0] }
 0x2a1   : > { %v7555_v15 = vld [vmem:[%s9018_s29 + $0x684] sm:$0xf]  ;;  %v5879_v19 = vor.u32 %v7491_v13, %v5876_v14 }
 0x2a2   : > { %4472 = vmatpush.bf16.msra.mxu2 %v6007_v35  ;;  %4447 = vmatpush.bf16.msra.mxu0 %v5463_v45  ;;  %v6132_v16 = vld [vmem:[%s9018_s29 + $0x6a0] sm:$0xf0] }
 0x2a3   : > { %v7355_v20 = vld [vmem:[%s9018_s29 + $0x44] sm:$0xf]  ;;  %v6135_v23 = vor.u32 %v7555_v15, %v6132_v16 }
 0x2a4   : > { %4485 = vmatpush.bf16.msra.mxu3 %v6263_v39  ;;  %4460 = vmatpush.bf16.msra.mxu1 %v5719_v46  ;;  %v5332_v21 = vld [vmem:[%s9018_s29 + $0x60] sm:$0xf0] }
 0x2a5   : > { %v7419_v22 = vld [vmem:[%s9018_s29 + $0x244] sm:$0xf]  ;;  %v5335_v36 = vor.u32 %v7355_v20, %v5332_v21 }
 0x2a6   : > { %4473 = vmatpush.bf16.msra.mxu2 %v5975_v47  ;;  %4448 = vmatpush.bf16.msra.mxu0 %v5431_v57  ;;  %v5588_v24 = vld [vmem:[%s9018_s29 + $0x260] sm:$0xf0] }
 0x2a7   : > { %v7483_v26 = vld [vmem:[%s9018_s29 + $0x444] sm:$0xf]  ;;  %v5591_v40 = vor.u32 %v7419_v22, %v5588_v24 }
 0x2a8   : > { %4486 = vmatpush.bf16.msra.mxu3 %v6231_v51  ;;  %4461 = vmatpush.bf16.msra.mxu1 %v5687_v58  ;;  %v5844_v30 = vld [vmem:[%s9018_s29 + $0x460] sm:$0xf0] }
 0x2a9   : > { %v7547_v33 = vld [vmem:[%s9018_s29 + $0x644] sm:$0xf]  ;;  %v5847_v41 = vor.u32 %v7483_v26, %v5844_v30 }
 0x2aa   : > { %4474 = vmatpush.bf16.msra.mxu2 %v5943_v59  ;;  %4449 = vmatpush.bf16.msra.mxu0 %v5399_v5  ;;  %v6100_v35 = vld [vmem:[%s9018_s29 + $0x660] sm:$0xf0] }
 0x2ab   : > { %v7347_v37 = vld [vmem:[%s9018_s29 + $0x4] sm:$0xf]  ;;  %v6103_v45 = vor.u32 %v7547_v33, %v6100_v35 }
 0x2ac   : > { %4487 = vmatpush.bf16.msra.mxu3 %v6199_v63  ;;  %4462 = vmatpush.bf16.msra.mxu1 %v5655_v6  ;;  %v5300_v39 = vld [vmem:[%s9018_s29 + $0x20] sm:$0xf0] }
 0x2ad   : > { %v7411_v42 = vld [vmem:[%s9018_s29 + $0x204] sm:$0xf]  ;;  %v5303_v52 = vor.u32 %v7347_v37, %v5300_v39 }
 0x2ae   : > { %4475 = vmatpush.bf16.msra.mxu2 %v5911_v7  ;;  %4450 = vmatpush.bf16.msra.mxu0 %v5367_v17  ;;  %v5556_v43 = vld [vmem:[%s9018_s29 + $0x220] sm:$0xf0] }
 0x2af   : > { %v7475_v44 = vld [vmem:[%s9018_s29 + $0x404] sm:$0xf]  ;;  %v5559_v56 = vor.u32 %v7411_v42, %v5556_v43 }
 0x2b0   : > { %4488 = vmatpush.bf16.msra.mxu3 %v6167_v11  ;;  %4463 = vmatpush.bf16.msra.mxu1 %v5623_v18  ;;  %v5812_v46 = vld [vmem:[%s9018_s29 + $0x420] sm:$0xf0] }
 0x2b1   : > { %v7539_v47 = vld [vmem:[%s9018_s29 + $0x604] sm:$0xf]  ;;  %v5815_v57 = vor.u32 %v7475_v44, %v5812_v46 }
 0x2b2   : > { %4476 = vmatpush.bf16.msra.mxu2 %v5879_v19  ;;  %v6068_v48 = vld [vmem:[%s9018_s29 + $0x620] sm:$0xf0]  ;;  %4451 = vmatpush.bf16.msra.mxu0 %v5335_v36 }
 0x2b3   : > { %v7659_v49 = vld [vmem:[%s9018_s29 + $0x9c4] sm:$0xf]  ;;  %v6071_v60 = vor.u32 %v7539_v47, %v6068_v48 }
 0x2b4   : > { %4489 = vmatpush.bf16.msra.mxu3 %v6135_v23  ;;  %v6548_v50 = vld [vmem:[%s9018_s29 + $0x9e0] sm:$0xf0]  ;;  %4464 = vmatpush.bf16.msra.mxu1 %v5591_v40 }
 0x2b5   : > { %v7723_v51 = vld [vmem:[%s9018_s29 + $0xbc4] sm:$0xf]  ;;  %v6551_v61 = vor.u32 %v7659_v49, %v6548_v50 }
 0x2b6   : > { %v6804_v53 = vld [vmem:[%s9018_s29 + $0xbe0] sm:$0xf0]  ;;  %4477 = vmatpush.bf16.msra.mxu2 %v5847_v41  ;;  %4452 = vmatpush.bf16.msra.mxu0 %v5303_v52 }
 0x2b7   : > { %v7787_v54 = vld [vmem:[%s9018_s29 + $0xdc4] sm:$0xf]  ;;  %v6807_v62 = vor.u32 %v7723_v51, %v6804_v53 }
 0x2b8   : > { %v7060_v55 = vld [vmem:[%s9018_s29 + $0xde0] sm:$0xf0]  ;;  %4490 = vmatpush.bf16.msra.mxu3 %v6103_v45  ;;  %4465 = vmatpush.bf16.msra.mxu1 %v5559_v56 }
 0x2b9   : > { %v7851_v58 = vld [vmem:[%s9018_s29 + $0xfc4] sm:$0xf]  ;;  %v7063_v63 = vor.u32 %v7787_v54, %v7060_v55  ;;  %4453 = vmatmul.bf16.vlgmr.msra.gmra.mxu0 %v9130_v28 }
 0x2ba   : > { %v7316_v59 = vld [vmem:[%s9018_s29 + $0xfe0] sm:$0xf0]  ;;  %4478 = vmatpush.bf16.msra.mxu2 %v5815_v57  ;;  %4497 = vmatpush.bf16.msrb.mxu0 %v6551_v61 }
 0x2bb   : > { %v7651_v0 = vld [vmem:[%s9018_s29 + $0x984] sm:$0xf]  ;;  %v7319_v3 = vor.u32 %v7851_v58, %v7316_v59  ;;  %4466 = vmatmul.bf16.vlgmr.msra.gmra.mxu1 %v9136_v34 }
 0x2bc   : > { %v6516_v1 = vld [vmem:[%s9018_s29 + $0x9a0] sm:$0xf0]  ;;  %4491 = vmatpush.bf16.msra.mxu3 %v6071_v60  ;;  %4510 = vmatpush.bf16.msrb.mxu1 %v6807_v62 }
 0x2bd   : > { %v7715_v2 = vld [vmem:[%s9018_s29 + $0xb84] sm:$0xf]  ;;  %v6519_v9 = vor.u32 %v7651_v0, %v6516_v1  ;;  %4479 = vmatmul.bf16.vlgmr.msra.gmra.mxu2 %v9128_v27 }
 0x2be   : > { %v6772_v4 = vld [vmem:[%s9018_s29 + $0xba0] sm:$0xf0]  ;;  %4523 = vmatpush.bf16.msrb.mxu2 %v7063_v63 }
 0x2bf   : > { %v7779_v5 = vld [vmem:[%s9018_s29 + $0xd84] sm:$0xf]  ;;  %v6775_v10 = vor.u32 %v7715_v2, %v6772_v4  ;;  %4492 = vmatmul.bf16.vlgmr.msra.gmra.mxu3 %v9132_v29  ;;  %4498 = vmatpush.bf16.msrb.mxu0 %v6519_v9 }
 0x2c0   : > { %v7028_v6 = vld [vmem:[%s9018_s29 + $0xda0] sm:$0xf0]  ;;  %4536 = vmatpush.bf16.msrb.mxu3 %v7319_v3 }
 0x2c1   : > { %v7843_v7 = vld [vmem:[%s9018_s29 + $0xf84] sm:$0xf]  ;;  %v7031_v11 = vor.u32 %v7779_v5, %v7028_v6  ;;  %4511 = vmatpush.bf16.msrb.mxu1 %v6775_v10 }
 0x2c2   : > { %v7284_v8 = vld [vmem:[%s9018_s29 + $0xfa0] sm:$0xf0] }
 0x2c3   : > { %v7643_v12 = vld [vmem:[%s9018_s29 + $0x944] sm:$0xf]  ;;  %v7287_v15 = vor.u32 %v7843_v7, %v7284_v8  ;;  %4524 = vmatpush.bf16.msrb.mxu2 %v7031_v11 }
 0x2c4   : > { %v6484_v13 = vld [vmem:[%s9018_s29 + $0x960] sm:$0xf0] }
 0x2c5   : > { %v7707_v14 = vld [vmem:[%s9018_s29 + $0xb44] sm:$0xf]  ;;  %v6487_v21 = vor.u32 %v7643_v12, %v6484_v13  ;;  %4537 = vmatpush.bf16.msrb.mxu3 %v7287_v15 }
 0x2c6   : > { %v6740_v16 = vld [vmem:[%s9018_s29 + $0xb60] sm:$0xf0] }
 0x2c7   : > { %v7771_v17 = vld [vmem:[%s9018_s29 + $0xd44] sm:$0xf]  ;;  %v6743_v22 = vor.u32 %v7707_v14, %v6740_v16  ;;  %4499 = vmatpush.bf16.msrb.mxu0 %v6487_v21 }
 0x2c8   : > { %v6996_v18 = vld [vmem:[%s9018_s29 + $0xd60] sm:$0xf0] }
 0x2c9   : > { %v7835_v19 = vld [vmem:[%s9018_s29 + $0xf44] sm:$0xf]  ;;  %v6999_v23 = vor.u32 %v7771_v17, %v6996_v18  ;;  %4512 = vmatpush.bf16.msrb.mxu1 %v6743_v22 }
 0x2ca   : > { %v7252_v20 = vld [vmem:[%s9018_s29 + $0xf60] sm:$0xf0] }
 0x2cb   : > { %v7635_v24 = vld [vmem:[%s9018_s29 + $0x904] sm:$0xf]  ;;  %v7255_v33 = vor.u32 %v7835_v19, %v7252_v20  ;;  %4525 = vmatpush.bf16.msrb.mxu2 %v6999_v23 }
 0x2cc   : > { %v6452_v26 = vld [vmem:[%s9018_s29 + $0x920] sm:$0xf0] }
 0x2cd   : > { %v7699_v30 = vld [vmem:[%s9018_s29 + $0xb04] sm:$0xf]  ;;  %v6455_v41 = vor.u32 %v7635_v24, %v6452_v26  ;;  %4538 = vmatpush.bf16.msrb.mxu3 %v7255_v33  ;;  %v5530_v26 = vld [vmem:[%s9018_s29 + $0x1c8] sm:$0xf] }
 0x2ce   : > { %v6708_v35 = vld [vmem:[%s9018_s29 + $0xb20] sm:$0xf0]  ;;  %v5786_v33 = vld [vmem:[%s9018_s29 + $0x3c8] sm:$0xf] }
 0x2cf   : > { %v7763_v36 = vld [vmem:[%s9018_s29 + $0xd04] sm:$0xf]  ;;  %v6711_v42 = vor.u32 %v7699_v30, %v6708_v35  ;;  %4500 = vmatpush.bf16.msrb.mxu0 %v6455_v41  ;;  %v7408_v30 = vld [vmem:[%s9018_s29 + $0x1e4] sm:$0xf0] }
 0x2d0   : > { %v6964_v37 = vld [vmem:[%s9018_s29 + $0xd20] sm:$0xf0] }
 0x2d1   : > { %v7827_v39 = vld [vmem:[%s9018_s29 + $0xf04] sm:$0xf]  ;;  %v6967_v43 = vor.u32 %v7763_v36, %v6964_v37  ;;  %4513 = vmatpush.bf16.msrb.mxu1 %v6711_v42  ;;  %v7472_v36 = vld [vmem:[%s9018_s29 + $0x3e4] sm:$0xf0] }
 0x2d2   : > { %v7220_v40 = vld [vmem:[%s9018_s29 + $0xf20] sm:$0xf0]  ;;  %v6042_v37 = vld [vmem:[%s9018_s29 + $0x5c8] sm:$0xf] }
 0x2d3   : > { %v7627_v44 = vld [vmem:[%s9018_s29 + $0x8c4] sm:$0xf]  ;;  %v7223_v47 = vor.u32 %v7827_v39, %v7220_v40  ;;  %4526 = vmatpush.bf16.msrb.mxu2 %v6967_v43  ;;  %v7536_v39 = vld [vmem:[%s9018_s29 + $0x5e4] sm:$0xf0] }
 0x2d4   : > { %v6420_v45 = vld [vmem:[%s9018_s29 + $0x8e0] sm:$0xf0]  ;;  %v6298_v42 = vld [vmem:[%s9018_s29 + $0x7c8] sm:$0xf] }
 0x2d5   : > { %v7691_v46 = vld [vmem:[%s9018_s29 + $0xac4] sm:$0xf]  ;;  %v6423_v53 = vor.u32 %v7627_v44, %v6420_v45  ;;  %4539 = vmatpush.bf16.msrb.mxu3 %v7223_v47  ;;  %v7600_v43 = vld [vmem:[%s9018_s29 + $0x7e4] sm:$0xf0]  ;;  %v5531_v45 = vor.u32 %v7408_v30, %v5530_v26  ;;  %v6043_v47 = vor.u32 %v7536_v39, %v6042_v37 }
 0x2d6   : > { %v6676_v48 = vld [vmem:[%s9018_s29 + $0xae0] sm:$0xf0]  ;;  %v5626_v37 = vld [vmem:[%s9018_s29 + $0x288] sm:$0xf] }
 0x2d7   : > { %v7755_v49 = vld [vmem:[%s9018_s29 + $0xcc4] sm:$0xf]  ;;  %v6679_v54 = vor.u32 %v7691_v46, %v6676_v48  ;;  %4501 = vmatpush.bf16.msrb.mxu0 %v6423_v53  ;;  %v5787_v46 = vor.u32 %v7472_v36, %v5786_v33  ;;  %v5498_v48 = vld [vmem:[%s9018_s29 + $0x188] sm:$0xf] }
 0x2d8   : > { %v6932_v50 = vld [vmem:[%s9018_s29 + $0xce0] sm:$0xf0]  ;;  %v6010_v53 = vld [vmem:[%s9018_s29 + $0x588] sm:$0xf] }
 0x2d9   : > { %v7819_v51 = vld [vmem:[%s9018_s29 + $0xec4] sm:$0xf]  ;;  %v6935_v55 = vor.u32 %v7755_v49, %v6932_v50  ;;  %4514 = vmatpush.bf16.msrb.mxu1 %v6679_v54  ;;  %v7400_v49 = vld [vmem:[%s9018_s29 + $0x1a4] sm:$0xf0] }
 0x2da   : > { %v7188_v52 = vld [vmem:[%s9018_s29 + $0xee0] sm:$0xf0]  ;;  %v5754_v50 = vld [vmem:[%s9018_s29 + $0x388] sm:$0xf] }
 0x2db   : > { %v7619_v56 = vld [vmem:[%s9018_s29 + $0x884] sm:$0xf]  ;;  %v7191_v59 = vor.u32 %v7819_v51, %v7188_v52  ;;  %4527 = vmatpush.bf16.msrb.mxu2 %v6935_v55  ;;  %v6299_v51 = vor.u32 %v7600_v43, %v6298_v42  ;;  %v7464_v52 = vld [vmem:[%s9018_s29 + $0x3a4] sm:$0xf0] }
 0x2dc   : > { %v6388_v57 = vld [vmem:[%s9018_s29 + $0x8a0] sm:$0xf0]  ;;  %v7528_v54 = vld [vmem:[%s9018_s29 + $0x5a4] sm:$0xf0] }
 0x2dd   : > { %v7683_v58 = vld [vmem:[%s9018_s29 + $0xa84] sm:$0xf]  ;;  %v6391_v1 = vor.u32 %v7619_v56, %v6388_v57  ;;  %4540 = vmatpush.bf16.msrb.mxu3 %v7191_v59  ;;  %v6266_v55 = vld [vmem:[%s9018_s29 + $0x788] sm:$0xf]  ;;  %v5499_v57 = vor.u32 %v7400_v49, %v5498_v48  ;;  %v6011_v59 = vor.u32 %v7528_v54, %v6010_v53 }
 0x2de   : > { %v6644_v60 = vld [vmem:[%s9018_s29 + $0xaa0] sm:$0xf0]  ;;  %v7592_v56 = vld [vmem:[%s9018_s29 + $0x7a4] sm:$0xf0] }
 0x2df   : > { %v7747_v61 = vld [vmem:[%s9018_s29 + $0xc84] sm:$0xf]  ;;  %v6647_v2 = vor.u32 %v7683_v58, %v6644_v60  ;;  %4502 = vmatpush.bf16.msrb.mxu0 %v6391_v1  ;;  %v5755_v58 = vor.u32 %v7464_v52, %v5754_v50  ;;  %v5466_v60 = vld [vmem:[%s9018_s29 + $0x148] sm:$0xf] }
 0x2e0   : > { %v6900_v62 = vld [vmem:[%s9018_s29 + $0xca0] sm:$0xf0]  ;;  %v5978_v1 = vld [vmem:[%s9018_s29 + $0x548] sm:$0xf] }
 0x2e1   : > { %v7811_v63 = vld [vmem:[%s9018_s29 + $0xe84] sm:$0xf]  ;;  %v6903_v3 = vor.u32 %v7747_v61, %v6900_v62  ;;  %4515 = vmatpush.bf16.msrb.mxu1 %v6647_v2  ;;  %v7392_v61 = vld [vmem:[%s9018_s29 + $0x164] sm:$0xf0] }
 0x2e2   : > { %v7156_v0 = vld [vmem:[%s9018_s29 + $0xea0] sm:$0xf0]  ;;  %v5722_v62 = vld [vmem:[%s9018_s29 + $0x348] sm:$0xf] }
 0x2e3   : > { %v7611_v4 = vld [vmem:[%s9018_s29 + $0x844] sm:$0xf]  ;;  %v7159_v7 = vor.u32 %v7811_v63, %v7156_v0  ;;  %4528 = vmatpush.bf16.msrb.mxu2 %v6903_v3  ;;  %v6267_v63 = vor.u32 %v7592_v56, %v6266_v55  ;;  %v7456_v0 = vld [vmem:[%s9018_s29 + $0x364] sm:$0xf0] }
 0x2e4   : > { %v6356_v5 = vld [vmem:[%s9018_s29 + $0x860] sm:$0xf0]  ;;  %v7520_v2 = vld [vmem:[%s9018_s29 + $0x564] sm:$0xf0] }
 0x2e5   : > { %v7675_v6 = vld [vmem:[%s9018_s29 + $0xa44] sm:$0xf]  ;;  %v6359_v13 = vor.u32 %v7611_v4, %v6356_v5  ;;  %4541 = vmatpush.bf16.msrb.mxu3 %v7159_v7  ;;  %v6234_v3 = vld [vmem:[%s9018_s29 + $0x748] sm:$0xf]  ;;  %v5723_v5 = vor.u32 %v7456_v0, %v5722_v62 }
 0x2e6   : > { %v6612_v8 = vld [vmem:[%s9018_s29 + $0xa60] sm:$0xf0]  ;;  %v7584_v4 = vld [vmem:[%s9018_s29 + $0x764] sm:$0xf0] }
 0x2e7   : > { %v7739_v9 = vld [vmem:[%s9018_s29 + $0xc44] sm:$0xf]  ;;  %v6615_v16 = vor.u32 %v7675_v6, %v6612_v8  ;;  %4503 = vmatpush.bf16.msrb.mxu0 %v6359_v13  ;;  %v5979_v6 = vor.u32 %v7520_v2, %v5978_v1  ;;  %v5434_v7 = vld [vmem:[%s9018_s29 + $0x108] sm:$0xf] }
 0x2e8   : > { %v6868_v10 = vld [vmem:[%s9018_s29 + $0xc60] sm:$0xf0]  ;;  %v5690_v8 = vld [vmem:[%s9018_s29 + $0x308] sm:$0xf] }
 0x2e9   : > { %v7803_v11 = vld [vmem:[%s9018_s29 + $0xe44] sm:$0xf]  ;;  %v6871_v17 = vor.u32 %v7739_v9, %v6868_v10  ;;  %4516 = vmatpush.bf16.msrb.mxu1 %v6615_v16  ;;  %v7448_v9 = vld [vmem:[%s9018_s29 + $0x324] sm:$0xf0] }
 0x2ea   : > { %v7124_v12 = vld [vmem:[%s9018_s29 + $0xe60] sm:$0xf0]  ;;  %v5946_v10 = vld [vmem:[%s9018_s29 + $0x508] sm:$0xf] }
 0x2eb   : > { %v7603_v14 = vld [vmem:[%s9018_s29 + $0x804] sm:$0xf]  ;;  %v7127_v21 = vor.u32 %v7803_v11, %v7124_v12  ;;  %4529 = vmatpush.bf16.msrb.mxu2 %v6871_v17  ;;  %v7512_v11 = vld [vmem:[%s9018_s29 + $0x524] sm:$0xf0] }
 0x2ec   : > { %v6324_v15 = vld [vmem:[%s9018_s29 + $0x820] sm:$0xf0]  ;;  %v7576_v12 = vld [vmem:[%s9018_s29 + $0x724] sm:$0xf0] }
 0x2ed   : > { %v7667_v18 = vld [vmem:[%s9018_s29 + $0xa04] sm:$0xf]  ;;  %v6327_v35 = vor.u32 %v7603_v14, %v6324_v15  ;;  %4542 = vmatpush.bf16.msrb.mxu3 %v7127_v21  ;;  %v5691_v14 = vor.u32 %v7448_v9, %v5690_v8  ;;  %v5947_v15 = vor.u32 %v7512_v11, %v5946_v10  ;;  %v5402_v16 = vld [vmem:[%s9018_s29 + $0xc8] sm:$0xf] }
 0x2ee   : > { %v6580_v19 = vld [vmem:[%s9018_s29 + $0xa20] sm:$0xf0]  ;;  %v7376_v17 = vld [vmem:[%s9018_s29 + $0xe4] sm:$0xf0] }
 0x2ef   : > { %v7731_v20 = vld [vmem:[%s9018_s29 + $0xc04] sm:$0xf]  ;;  %v6583_v40 = vor.u32 %v7667_v18, %v6580_v19  ;;  %4504 = vmatpush.bf16.msrb.mxu0 %v6327_v35  ;;  %v5658_v18 = vld [vmem:[%s9018_s29 + $0x2c8] sm:$0xf]  ;;  %v5403_v26 = vor.u32 %v7376_v17, %v5402_v16 }
 0x2f0   : > { %v6836_v22 = vld [vmem:[%s9018_s29 + $0xc20] sm:$0xf0]  ;;  %v5914_v21 = vld [vmem:[%s9018_s29 + $0x4c8] sm:$0xf] }
 0x2f1   : > { %v7795_v23 = vld [vmem:[%s9018_s29 + $0xe04] sm:$0xf]  ;;  %v6839_v41 = vor.u32 %v7731_v20, %v6836_v22  ;;  %4517 = vmatpush.bf16.msrb.mxu1 %v6583_v40  ;;  %v7440_v20 = vld [vmem:[%s9018_s29 + $0x2e4] sm:$0xf0] }
 0x2f2   : > { %v7092_v24 = vld [vmem:[%s9018_s29 + $0xe20] sm:$0xf0]  ;;  %4505 = vmatmul.bf16.vlgmr.msrb.gmra.mxu0 %v9182_v31  ;;  %v7384_v31 = vld [vmem:[%s9018_s29 + $0x124] sm:$0xf0]  ;;  %v5659_v30 = vor.u32 %v7440_v20, %v5658_v18 }
 0x2f3   : > { %v7095_v44 = vor.u32 %v7795_v23, %v7092_v24  ;;  %4530 = vmatpush.bf16.msrb.mxu2 %v6839_v41  ;;  %4549 = vmatpush.bf16.msra.mxu0 %v5531_v45  ;;  %v5435_v13 = vor.u32 %v7384_v31, %v5434_v7  ;;  %v7504_v22 = vld [vmem:[%s9018_s29 + $0x4e4] sm:$0xf0] }
 0x2f4   : > { %4518 = vmatmul.bf16.vlgmr.msrb.gmra.mxu1 %v9188_v38  ;;  %v6202_v38 = vld [vmem:[%s9018_s29 + $0x708] sm:$0xf]  ;;  %v5915_v33 = vor.u32 %v7504_v22, %v5914_v21 }
 0x2f5   : > { %4543 = vmatpush.bf16.msrb.mxu3 %v7095_v44  ;;  %4562 = vmatpush.bf16.msra.mxu1 %v5787_v46  ;;  %v6203_v19 = vor.u32 %v7576_v12, %v6202_v38  ;;  %v6170_v23 = vld [vmem:[%s9018_s29 + $0x6c8] sm:$0xf] }
 0x2f6   : > { %4531 = vmatmul.bf16.vlgmr.msrb.gmra.mxu2 %v9179_v25  ;;  %v5467_v25 = vor.u32 %v7392_v61, %v5466_v60  ;;  %v7568_v24 = vld [vmem:[%s9018_s29 + $0x6e4] sm:$0xf0] }
 0x2f7   : > { %4575 = vmatpush.bf16.msra.mxu2 %v6043_v47  ;;  %4550 = vmatpush.bf16.msra.mxu0 %v5499_v57  ;;  %v5370_v35 = vld [vmem:[%s9018_s29 + $0x88] sm:$0xf]  ;;  %v6171_v39 = vor.u32 %v7568_v24, %v6170_v23 }
 0x2f8   : > { %4544 = vmatmul.bf16.vlgmr.msrb.gmra.mxu3 %v9184_v32  ;;  %v6235_v32 = vor.u32 %v7584_v4, %v6234_v3  ;;  %v7368_v36 = vld [vmem:[%s9018_s29 + $0xa4] sm:$0xf0] }
 0x2f9   : > { %4588 = vmatpush.bf16.msra.mxu3 %v6299_v51  ;;  %4563 = vmatpush.bf16.msra.mxu1 %v5755_v58  ;;  %v7432_v40 = vld [vmem:[%s9018_s29 + $0x2a4] sm:$0xf0]  ;;  %v5371_v45 = vor.u32 %v7368_v36, %v5370_v35 }
 0x2fa   : > { %v5882_v41 = vld [vmem:[%s9018_s29 + $0x488] sm:$0xf]  ;;  %v5627_v46 = vor.u32 %v7432_v40, %v5626_v37 }
 0x2fb   : > { %4576 = vmatpush.bf16.msra.mxu2 %v6011_v59  ;;  %4551 = vmatpush.bf16.msra.mxu0 %v5467_v25  ;;  %v7496_v42 = vld [vmem:[%s9018_s29 + $0x4a4] sm:$0xf0] }
 0x2fc   : > { %v6138_v43 = vld [vmem:[%s9018_s29 + $0x688] sm:$0xf]  ;;  %v5883_v47 = vor.u32 %v7496_v42, %v5882_v41 }
 0x2fd   : > { %4589 = vmatpush.bf16.msra.mxu3 %v6267_v63  ;;  %4564 = vmatpush.bf16.msra.mxu1 %v5723_v5  ;;  %v7560_v44 = vld [vmem:[%s9018_s29 + $0x6a4] sm:$0xf0] }
 0x2fe   : > { %v5338_v48 = vld [vmem:[%s9018_s29 + $0x48] sm:$0xf]  ;;  %v6139_v51 = vor.u32 %v7560_v44, %v6138_v43 }
 0x2ff   : > { %4577 = vmatpush.bf16.msra.mxu2 %v5979_v6  ;;  %4552 = vmatpush.bf16.msra.mxu0 %v5435_v13  ;;  %v7360_v49 = vld [vmem:[%s9018_s29 + $0x64] sm:$0xf0] }
 0x300   : > { %v5594_v50 = vld [vmem:[%s9018_s29 + $0x248] sm:$0xf]  ;;  %v5339_v57 = vor.u32 %v7360_v49, %v5338_v48 }
 0x301   : > { %4590 = vmatpush.bf16.msra.mxu3 %v6235_v32  ;;  %4565 = vmatpush.bf16.msra.mxu1 %v5691_v14  ;;  %v7424_v52 = vld [vmem:[%s9018_s29 + $0x264] sm:$0xf0] }
 0x302   : > { %v5850_v53 = vld [vmem:[%s9018_s29 + $0x448] sm:$0xf]  ;;  %v5595_v60 = vor.u32 %v7424_v52, %v5594_v50 }
 0x303   : > { %4578 = vmatpush.bf16.msra.mxu2 %v5947_v15  ;;  %4553 = vmatpush.bf16.msra.mxu0 %v5403_v26  ;;  %v7488_v54 = vld [vmem:[%s9018_s29 + $0x464] sm:$0xf0] }
 0x304   : > { %v6106_v55 = vld [vmem:[%s9018_s29 + $0x648] sm:$0xf]  ;;  %v5851_v61 = vor.u32 %v7488_v54, %v5850_v53 }
 0x305   : > { %4591 = vmatpush.bf16.msra.mxu3 %v6203_v19  ;;  %4566 = vmatpush.bf16.msra.mxu1 %v5659_v30  ;;  %v7552_v56 = vld [vmem:[%s9018_s29 + $0x664] sm:$0xf0] }
 0x306   : > { %v5306_v58 = vld [vmem:[%s9018_s29 + $0x8] sm:$0xf]  ;;  %v6107_v1 = vor.u32 %v7552_v56, %v6106_v55 }
 0x307   : > { %4579 = vmatpush.bf16.msra.mxu2 %v5915_v33  ;;  %4554 = vmatpush.bf16.msra.mxu0 %v5371_v45  ;;  %v7352_v59 = vld [vmem:[%s9018_s29 + $0x24] sm:$0xf0] }
 0x308   : > { %v5562_v62 = vld [vmem:[%s9018_s29 + $0x208] sm:$0xf]  ;;  %v5307_v7 = vor.u32 %v7352_v59, %v5306_v58 }
 0x309   : > { %4592 = vmatpush.bf16.msra.mxu3 %v6171_v39  ;;  %4567 = vmatpush.bf16.msra.mxu1 %v5627_v46  ;;  %v7416_v63 = vld [vmem:[%s9018_s29 + $0x224] sm:$0xf0] }
 0x30a   : > { %v5818_v0 = vld [vmem:[%s9018_s29 + $0x408] sm:$0xf]  ;;  %v5563_v9 = vor.u32 %v7416_v63, %v5562_v62 }
 0x30b   : > { %4580 = vmatpush.bf16.msra.mxu2 %v5883_v47  ;;  %v7480_v2 = vld [vmem:[%s9018_s29 + $0x424] sm:$0xf0]  ;;  %4555 = vmatpush.bf16.msra.mxu0 %v5339_v57 }
 0x30c   : > { %v6074_v3 = vld [vmem:[%s9018_s29 + $0x608] sm:$0xf]  ;;  %v5819_v10 = vor.u32 %v7480_v2, %v5818_v0 }
 0x30d   : > { %4593 = vmatpush.bf16.msra.mxu3 %v6139_v51  ;;  %v7544_v4 = vld [vmem:[%s9018_s29 + $0x624] sm:$0xf0]  ;;  %4568 = vmatpush.bf16.msra.mxu1 %v5595_v60 }
 0x30e   : > { %v6554_v25 = vld [vmem:[%s9018_s29 + $0x9c8] sm:$0xf]  ;;  %v6075_v12 = vor.u32 %v7544_v4, %v6074_v3 }
 0x30f   : > { %v7664_v5 = vld [vmem:[%s9018_s29 + $0x9e4] sm:$0xf0]  ;;  %4581 = vmatpush.bf16.msra.mxu2 %v5851_v61  ;;  %4556 = vmatpush.bf16.msra.mxu0 %v5307_v7 }
 0x310   : > { %v6810_v6 = vld [vmem:[%s9018_s29 + $0xbc8] sm:$0xf]  ;;  %v6555_v13 = vor.u32 %v7664_v5, %v6554_v25 }
 0x311   : > { %v7728_v31 = vld [vmem:[%s9018_s29 + $0xbe4] sm:$0xf0]  ;;  %4594 = vmatpush.bf16.msra.mxu3 %v6107_v1  ;;  %4569 = vmatpush.bf16.msra.mxu1 %v5563_v9 }
 0x312   : > { %v7066_v8 = vld [vmem:[%s9018_s29 + $0xdc8] sm:$0xf]  ;;  %v6811_v14 = vor.u32 %v7728_v31, %v6810_v6  ;;  %4557 = vmatmul.bf16.vlgmr.msra.gmra.mxu0 %v9130_v28 }
 0x313   : > { %v7792_v32 = vld [vmem:[%s9018_s29 + $0xde4] sm:$0xf0]  ;;  %4582 = vmatpush.bf16.msra.mxu2 %v5819_v10  ;;  %4601 = vmatpush.bf16.msrb.mxu0 %v6555_v13 }
 0x314   : > { %v7322_v11 = vld [vmem:[%s9018_s29 + $0xfc8] sm:$0xf]  ;;  %v7067_v15 = vor.u32 %v7792_v32, %v7066_v8  ;;  %4570 = vmatmul.bf16.vlgmr.msra.gmra.mxu1 %v9136_v34  ;;  %v9442_v32 = vld [vmem:[%s9433_s8] sm:$0xff] }
 0x315   : > { %v7856_v38 = vld [vmem:[%s9018_s29 + $0xfe4] sm:$0xf0]  ;;  %4595 = vmatpush.bf16.msra.mxu3 %v6075_v12  ;;  %4614 = vmatpush.bf16.msrb.mxu1 %v6811_v14 }
 0x316   : > { %v6522_v16 = vld [vmem:[%s9018_s29 + $0x988] sm:$0xf]  ;;  %v7323_v19 = vor.u32 %v7856_v38, %v7322_v11  ;;  %4583 = vmatmul.bf16.vlgmr.msra.gmra.mxu2 %v9128_v27 }
 0x317   : > { %v7656_v17 = vld [vmem:[%s9018_s29 + $0x9a4] sm:$0xf0]  ;;  %4627 = vmatpush.bf16.msrb.mxu2 %v7067_v15 }
 0x318   : > { %v6778_v18 = vld [vmem:[%s9018_s29 + $0xb88] sm:$0xf]  ;;  %v6523_v26 = vor.u32 %v7656_v17, %v6522_v16  ;;  %4596 = vmatmul.bf16.vlgmr.msra.gmra.mxu3 %v9132_v29  ;;  %v1747_v16 = vperm.slane %v9442_v32, 0 }
 0x319   : > { %v7720_v20 = vld [vmem:[%s9018_s29 + $0xba4] sm:$0xf0]  ;;  %4640 = vmatpush.bf16.msrb.mxu3 %v7323_v19 }
 0x31a   : > { %v7034_v21 = vld [vmem:[%s9018_s29 + $0xd88] sm:$0xf]  ;;  %v6779_v30 = vor.u32 %v7720_v20, %v6778_v18  ;;  %4602 = vmatpush.bf16.msrb.mxu0 %v6523_v26 }
 0x31b   : > { %v7784_v22 = vld [vmem:[%s9018_s29 + $0xda4] sm:$0xf0] }
 0x31c   : > { %v7290_v23 = vld [vmem:[%s9018_s29 + $0xf88] sm:$0xf]  ;;  %v7035_v33 = vor.u32 %v7784_v22, %v7034_v21  ;;  %4615 = vmatpush.bf16.msrb.mxu1 %v6779_v30  ;;  %v4350_v30 = vpop.f32.mrf.mxu0 }
 0x31d   : > { %v7848_v24 = vld [vmem:[%s9018_s29 + $0xfa4] sm:$0xf0] }
 0x31e   : > { %v6490_v35 = vld [vmem:[%s9018_s29 + $0x948] sm:$0xf]  ;;  %v7291_v39 = vor.u32 %v7848_v24, %v7290_v23  ;;  %4628 = vmatpush.bf16.msrb.mxu2 %v7035_v33 }
 0x31f   : > { %v7648_v36 = vld [vmem:[%s9018_s29 + $0x964] sm:$0xf0] }
 0x320   : > { %v6746_v37 = vld [vmem:[%s9018_s29 + $0xb48] sm:$0xf]  ;;  %v6491_v45 = vor.u32 %v7648_v36, %v6490_v35  ;;  %4641 = vmatpush.bf16.msrb.mxu3 %v7291_v39 }
 0x321   : > { %v7712_v40 = vld [vmem:[%s9018_s29 + $0xb64] sm:$0xf0] }
 0x322   : > { %v7002_v41 = vld [vmem:[%s9018_s29 + $0xd48] sm:$0xf]  ;;  %v6747_v27 = vor.u32 %v7712_v40, %v6746_v37  ;;  %4603 = vmatpush.bf16.msrb.mxu0 %v6491_v45  ;;  %v4351_v40 = vadd.f32 %v4350_v30, %v1747_v16  ;;  %v5980_v16 = vld [vmem:[%s9018_s29 + $0x568] sm:$0xf0] }
 0x323   : > { %v7776_v42 = vld [vmem:[%s9018_s29 + $0xd64] sm:$0xf0] }
 0x324   : > { %v7258_v43 = vld [vmem:[%s9018_s29 + $0xf48] sm:$0xf]  ;;  %v7003_v46 = vor.u32 %v7776_v42, %v7002_v41  ;;  %4616 = vmatpush.bf16.msrb.mxu1 %v6747_v27  ;;  %v4363_v41 = vpop.f32.mrf.mxu1  ;;  %v7404_v27 = vld [vmem:[%s9018_s29 + $0x1cc] sm:$0xf] }
 0x325   : > { %v7840_v44 = vld [vmem:[%s9018_s29 + $0xf64] sm:$0xf0] }
 0x326   : > { %v6458_v47 = vld [vmem:[%s9018_s29 + $0x908] sm:$0xf]  ;;  %v7259_v29 = vor.u32 %v7840_v44, %v7258_v43  ;;  %4629 = vmatpush.bf16.msrb.mxu2 %v7003_v46  ;;  %v5532_v46 = vld [vmem:[%s9018_s29 + $0x1e8] sm:$0xf0] }
 0x327   : > { %v7640_v48 = vld [vmem:[%s9018_s29 + $0x924] sm:$0xf0] }
 0x328   : > { %v6714_v28 = vld [vmem:[%s9018_s29 + $0xb08] sm:$0xf]  ;;  %v6459_v53 = vor.u32 %v7640_v48, %v6458_v47  ;;  %4642 = vmatpush.bf16.msrb.mxu3 %v7259_v29  ;;  %v7468_v47 = vld [vmem:[%s9018_s29 + $0x3cc] sm:$0xf]  ;;  %v4364_v48 = vadd.f32 %v4363_v41, %v4351_v40 }
 0x329   : > { %v7704_v49 = vld [vmem:[%s9018_s29 + $0xb24] sm:$0xf0]  ;;  %v5788_v29 = vld [vmem:[%s9018_s29 + $0x3e8] sm:$0xf0] }
 0x32a   : > { %v6970_v50 = vld [vmem:[%s9018_s29 + $0xd08] sm:$0xf]  ;;  %v6715_v54 = vor.u32 %v7704_v49, %v6714_v28  ;;  %4604 = vmatpush.bf16.msrb.mxu0 %v6459_v53  ;;  %v7532_v49 = vld [vmem:[%s9018_s29 + $0x5cc] sm:$0xf] }
 0x32b   : > { %v7768_v51 = vld [vmem:[%s9018_s29 + $0xd24] sm:$0xf0]  ;;  %v6300_v53 = vld [vmem:[%s9018_s29 + $0x7e8] sm:$0xf0] }
 0x32c   : > { %v7226_v52 = vld [vmem:[%s9018_s29 + $0xf08] sm:$0xf]  ;;  %v6971_v55 = vor.u32 %v7768_v51, %v6970_v50  ;;  %4617 = vmatpush.bf16.msrb.mxu1 %v6715_v54  ;;  %v6044_v50 = vld [vmem:[%s9018_s29 + $0x5e8] sm:$0xf0]  ;;  %v4376_v54 = vpop.f32.mrf.mxu2 }
 0x32d   : > { %v7832_v34 = vld [vmem:[%s9018_s29 + $0xf24] sm:$0xf0]  ;;  %v7508_v40 = vld [vmem:[%s9018_s29 + $0x50c] sm:$0xf] }
 0x32e   : > { %v6426_v56 = vld [vmem:[%s9018_s29 + $0x8c8] sm:$0xf]  ;;  %v7227_v59 = vor.u32 %v7832_v34, %v7226_v52  ;;  %4630 = vmatpush.bf16.msrb.mxu2 %v6971_v55  ;;  %v7596_v34 = vld [vmem:[%s9018_s29 + $0x7cc] sm:$0xf] }
 0x32f   : > { %v7632_v57 = vld [vmem:[%s9018_s29 + $0x8e4] sm:$0xf0]  ;;  %v5948_v41 = vld [vmem:[%s9018_s29 + $0x528] sm:$0xf0] }
 0x330   : > { %v6682_v58 = vld [vmem:[%s9018_s29 + $0xac8] sm:$0xf]  ;;  %v6427_v1 = vor.u32 %v7632_v57, %v6426_v56  ;;  %4643 = vmatpush.bf16.msrb.mxu3 %v7227_v59  ;;  %v5535_v56 = vor.u32 %v7404_v27, %v5532_v46  ;;  %v4377_v57 = vadd.f32 %v4376_v54, %v4364_v48  ;;  %v5791_v59 = vor.u32 %v7468_v47, %v5788_v29  ;;  %v7372_v47 = vld [vmem:[%s9018_s29 + $0xcc] sm:$0xf] }
 0x331   : > { %v7696_v60 = vld [vmem:[%s9018_s29 + $0xae4] sm:$0xf0]  ;;  %v5951_v46 = vor.u32 %v7508_v40, %v5948_v41  ;;  %v5404_v48 = vld [vmem:[%s9018_s29 + $0xe8] sm:$0xf0] }
 0x332   : > { %v6938_v61 = vld [vmem:[%s9018_s29 + $0xcc8] sm:$0xf]  ;;  %v6683_v3 = vor.u32 %v7696_v60, %v6682_v58  ;;  %4605 = vmatpush.bf16.msrb.mxu0 %v6427_v1  ;;  %v4389_v58 = vpop.f32.mrf.mxu3  ;;  %v6047_v60 = vor.u32 %v7532_v49, %v6044_v50  ;;  %v5756_v1 = vld [vmem:[%s9018_s29 + $0x3a8] sm:$0xf0] }
 0x333   : > { %v7760_v62 = vld [vmem:[%s9018_s29 + $0xce4] sm:$0xf0]  ;;  %v6172_v54 = vld [vmem:[%s9018_s29 + $0x6e8] sm:$0xf0] }
 0x334   : > { %v7194_v63 = vld [vmem:[%s9018_s29 + $0xec8] sm:$0xf]  ;;  %v6939_v4 = vor.u32 %v7760_v62, %v6938_v61  ;;  %4618 = vmatpush.bf16.msrb.mxu1 %v6683_v3  ;;  %v7396_v61 = vld [vmem:[%s9018_s29 + $0x18c] sm:$0xf] }
 0x335   : > { %v7824_v0 = vld [vmem:[%s9018_s29 + $0xee4] sm:$0xf0]  ;;  %v5500_v62 = vld [vmem:[%s9018_s29 + $0x1a8] sm:$0xf0] }
 0x336   : > { %v6394_v2 = vld [vmem:[%s9018_s29 + $0x888] sm:$0xf]  ;;  %v7195_v7 = vor.u32 %v7824_v0, %v7194_v63  ;;  %4631 = vmatpush.bf16.msrb.mxu2 %v6939_v4  ;;  %v7460_v63 = vld [vmem:[%s9018_s29 + $0x38c] sm:$0xf]  ;;  %v6303_v0 = vor.u32 %v7596_v34, %v6300_v53  ;;  %v4390_v4 = vadd.f32 %v4389_v58, %v4377_v57 }
 0x337   : > { %v7624_v25 = vld [vmem:[%s9018_s29 + $0x8a4] sm:$0xf0]  ;;  %v6012_v3 = vld [vmem:[%s9018_s29 + $0x5a8] sm:$0xf0] }
 0x338   : > { %v6650_v5 = vld [vmem:[%s9018_s29 + $0xa88] sm:$0xf]  ;;  %v6395_v11 = vor.u32 %v7624_v25, %v6394_v2  ;;  %4644 = vmatpush.bf16.msrb.mxu3 %v7195_v7  ;;  %v7524_v2 = vld [vmem:[%s9018_s29 + $0x58c] sm:$0xf]  ;;  %v4352_v25 = vpop.f32.mrf.mxu0  ;;  %v4365_v7 = vpop.f32.mrf.mxu1 }
 0x339   : > { %v7688_v6 = vld [vmem:[%s9018_s29 + $0xaa4] sm:$0xf0]  ;;  %v5916_v34 = vld [vmem:[%s9018_s29 + $0x4e8] sm:$0xf0] }
 0x33a   : > { %v6906_v31 = vld [vmem:[%s9018_s29 + $0xc88] sm:$0xf]  ;;  %v6651_v12 = vor.u32 %v7688_v6, %v6650_v5  ;;  %4606 = vmatpush.bf16.msrb.mxu0 %v6395_v11  ;;  %v7588_v5 = vld [vmem:[%s9018_s29 + $0x78c] sm:$0xf] }
 0x33b   : > { %v7752_v8 = vld [vmem:[%s9018_s29 + $0xca4] sm:$0xf0]  ;;  %v6268_v6 = vld [vmem:[%s9018_s29 + $0x7a8] sm:$0xf0] }
 0x33c   : > { %v7162_v9 = vld [vmem:[%s9018_s29 + $0xe88] sm:$0xf]  ;;  %v6907_v13 = vor.u32 %v7752_v8, %v6906_v31  ;;  %4619 = vmatpush.bf16.msrb.mxu1 %v6651_v12  ;;  %v5503_v31 = vor.u32 %v7396_v61, %v5500_v62  ;;  %v5759_v8 = vor.u32 %v7460_v63, %v5756_v1  ;;  %v5468_v11 = vld [vmem:[%s9018_s29 + $0x168] sm:$0xf0]  ;;  %v6271_v12 = vor.u32 %v7588_v5, %v6268_v6 }
 0x33d   : > { %v7816_v10 = vld [vmem:[%s9018_s29 + $0xea4] sm:$0xf0]  ;;  %v7564_v53 = vld [vmem:[%s9018_s29 + $0x6cc] sm:$0xf] }
 0x33e   : > { %v6362_v38 = vld [vmem:[%s9018_s29 + $0x848] sm:$0xf]  ;;  %v7163_v17 = vor.u32 %v7816_v10, %v7162_v9  ;;  %4632 = vmatpush.bf16.msrb.mxu2 %v6907_v13  ;;  %v6015_v9 = vor.u32 %v7524_v2, %v6012_v3  ;;  %v7388_v10 = vld [vmem:[%s9018_s29 + $0x14c] sm:$0xf]  ;;  %v6175_v63 = vor.u32 %v7564_v53, %v6172_v54 }
 0x33f   : > { %v7616_v14 = vld [vmem:[%s9018_s29 + $0x864] sm:$0xf0]  ;;  %v9482_v13 = vld [vmem:[#allocation1 + $0x36] sm:$0xff] }
 0x340   : > { %v6618_v15 = vld [vmem:[%s9018_s29 + $0xa48] sm:$0xf]  ;;  %v6363_v23 = vor.u32 %v7616_v14, %v6362_v38  ;;  %4645 = vmatpush.bf16.msrb.mxu3 %v7163_v17  ;;  %v7452_v38 = vld [vmem:[%s9018_s29 + $0x34c] sm:$0xf]  ;;  %v4415_v49 = vpop.f32.mrf.mxu1 }
 0x341   : > { %v7680_v18 = vld [vmem:[%s9018_s29 + $0xa64] sm:$0xf0]  ;;  %v5724_v14 = vld [vmem:[%s9018_s29 + $0x368] sm:$0xf0] }
 0x342   : > { %v6874_v19 = vld [vmem:[%s9018_s29 + $0xc48] sm:$0xf]  ;;  %v6619_v33 = vor.u32 %v7680_v18, %v6618_v15  ;;  %4607 = vmatpush.bf16.msrb.mxu0 %v6363_v23  ;;  %v7516_v15 = vld [vmem:[%s9018_s29 + $0x54c] sm:$0xf] }
 0x343   : > { %v7744_v20 = vld [vmem:[%s9018_s29 + $0xc64] sm:$0xf0]  ;;  %v7580_v17 = vld [vmem:[%s9018_s29 + $0x74c] sm:$0xf]  ;;  %v5983_v30 = vor.u32 %v7516_v15, %v5980_v16 }
 0x344   : > { %v7130_v21 = vld [vmem:[%s9018_s29 + $0xe48] sm:$0xf]  ;;  %v6875_v35 = vor.u32 %v7744_v20, %v6874_v19  ;;  %4620 = vmatpush.bf16.msrb.mxu1 %v6619_v33  ;;  %v6236_v18 = vld [vmem:[%s9018_s29 + $0x768] sm:$0xf0]  ;;  %v9490_v19 = vld [vmem:[#allocation1 + $0x24] sm:$0xff] }
 0x345   : > { %v7808_v22 = vld [vmem:[%s9018_s29 + $0xe64] sm:$0xf0]  ;;  %v9493_v20 = vld [vmem:[#allocation1 + $0x3f] sm:$0xff]  ;;  %v7380_v33 = vld [vmem:[%s9018_s29 + $0x10c] sm:$0xf] }
 0x346   : > { %v6330_v24 = vld [vmem:[%s9018_s29 + $0x808] sm:$0xf]  ;;  %v7131_v42 = vor.u32 %v7808_v22, %v7130_v21  ;;  %4633 = vmatpush.bf16.msrb.mxu2 %v6875_v35  ;;  %v4378_v21 = vpop.f32.mrf.mxu2  ;;  %v5471_v22 = vor.u32 %v7388_v10, %v5468_v11  ;;  %v5436_v35 = vld [vmem:[%s9018_s29 + $0x128] sm:$0xf0] }
 0x347   : > { %v7608_v26 = vld [vmem:[%s9018_s29 + $0x824] sm:$0xf0]  ;;  %v7428_v61 = vld [vmem:[%s9018_s29 + $0x28c] sm:$0xf] }
 0x348   : > { %v6586_v36 = vld [vmem:[%s9018_s29 + $0xa08] sm:$0xf]  ;;  %v6331_v28 = vor.u32 %v7608_v26, %v6330_v24  ;;  %4646 = vmatpush.bf16.msrb.mxu3 %v7131_v42  ;;  %v4391_v24 = vpop.f32.mrf.mxu3  ;;  %v5727_v26 = vor.u32 %v7452_v38, %v5724_v14  ;;  %v7572_v42 = vld [vmem:[%s9018_s29 + $0x70c] sm:$0xf] }
 0x349   : > { %v7672_v37 = vld [vmem:[%s9018_s29 + $0xa24] sm:$0xf0]  ;;  %v7492_v1 = vld [vmem:[%s9018_s29 + $0x48c] sm:$0xf] }
 0x34a   : > { %v6842_v39 = vld [vmem:[%s9018_s29 + $0xc08] sm:$0xf]  ;;  %v6587_v51 = vor.u32 %v7672_v37, %v6586_v36  ;;  %4608 = vmatpush.bf16.msrb.mxu0 %v6331_v28  ;;  %v7444_v36 = vld [vmem:[%s9018_s29 + $0x30c] sm:$0xf]  ;;  %v6239_v37 = vor.u32 %v7580_v17, %v6236_v18 }
 0x34b   : > { %v7736_v43 = vld [vmem:[%s9018_s29 + $0xc24] sm:$0xf0]  ;;  %v7436_v28 = vld [vmem:[%s9018_s29 + $0x2cc] sm:$0xf] }
 0x34c   : > { %v7098_v44 = vld [vmem:[%s9018_s29 + $0xe08] sm:$0xf]  ;;  %v6843_v52 = vor.u32 %v7736_v43, %v6842_v39  ;;  %4621 = vmatpush.bf16.msrb.mxu1 %v6587_v51  ;;  %v5692_v39 = vld [vmem:[%s9018_s29 + $0x328] sm:$0xf0] }
 0x34d   : > { %v7800_v45 = vld [vmem:[%s9018_s29 + $0xe24] sm:$0xf0]  ;;  %4609 = vmatmul.bf16.vlgmr.msrb.gmra.mxu0 %v9490_v19  ;;  %v6204_v43 = vld [vmem:[%s9018_s29 + $0x728] sm:$0xf0]  ;;  %v5695_v27 = vor.u32 %v7444_v36, %v5692_v39 }
 0x34e   : > { %v7099_v55 = vor.u32 %v7800_v45, %v7098_v44  ;;  %4634 = vmatpush.bf16.msrb.mxu2 %v6843_v52  ;;  %4653 = vmatpush.bf16.msra.mxu0 %v5535_v56  ;;  %v9496_v23 = vld [vmem:[#allocation1 + $0x2d] sm:$0xff]  ;;  %v5439_v44 = vor.u32 %v7380_v33, %v5436_v35  ;;  %v4402_v45 = vpop.f32.mrf.mxu0  ;;  %v6207_v50 = vor.u32 %v7572_v42, %v6204_v43  ;;  %v4428_v62 = vpop.f32.mrf.mxu2 }
 0x34f   : > { %4622 = vmatmul.bf16.vlgmr.msrb.gmra.mxu1 %v9496_v23  ;;  %v4403_v29 = vadd.f32 %v4402_v45, %v4390_v4  ;;  %v5660_v51 = vld [vmem:[%s9018_s29 + $0x2e8] sm:$0xf0]  ;;  %v5407_v56 = vor.u32 %v7372_v47, %v5404_v48 }
 0x350   : > { %4647 = vmatpush.bf16.msrb.mxu3 %v7099_v55  ;;  %4666 = vmatpush.bf16.msra.mxu1 %v5791_v59  ;;  %v7500_v52 = vld [vmem:[%s9018_s29 + $0x4cc] sm:$0xf]  ;;  %v5663_v57 = vor.u32 %v7436_v28, %v5660_v51  ;;  %v4441_v4 = vpop.f32.mrf.mxu3 }
 0x351   : > { %4635 = vmatmul.bf16.vlgmr.msrb.gmra.mxu2 %v9482_v13  ;;  %v4416_v55 = vadd.f32 %v4415_v49, %v4403_v29  ;;  %v5919_v58 = vor.u32 %v7500_v52, %v5916_v34  ;;  %v7364_v59 = vld [vmem:[%s9018_s29 + $0x8c] sm:$0xf] }
 0x352   : > { %4679 = vmatpush.bf16.msra.mxu2 %v6047_v60  ;;  %4654 = vmatpush.bf16.msra.mxu0 %v5503_v31  ;;  %v5372_v60 = vld [vmem:[%s9018_s29 + $0xa8] sm:$0xf0] }
 0x353   : > { %4648 = vmatmul.bf16.vlgmr.msrb.gmra.mxu3 %v9493_v20  ;;  %v5884_v2 = vld [vmem:[%s9018_s29 + $0x4a8] sm:$0xf0]  ;;  %v4429_v3 = vadd.f32 %v4428_v62, %v4416_v55  ;;  %v5375_v6 = vor.u32 %v7364_v59, %v5372_v60 }
 0x354   : > { %4692 = vmatpush.bf16.msra.mxu3 %v6303_v0  ;;  %4667 = vmatpush.bf16.msra.mxu1 %v5759_v8  ;;  %v5628_v0 = vld [vmem:[%s9018_s29 + $0x2a8] sm:$0xf0] }
 0x355   : > { %v7556_v25 = vld [vmem:[%s9018_s29 + $0x68c] sm:$0xf]  ;;  %v9523_v7 = vadd.f32 %v4441_v4, %v4429_v3  ;;  %v5631_v8 = vor.u32 %v7428_v61, %v5628_v0 }
 0x356   : > { %4680 = vmatpush.bf16.msra.mxu2 %v6015_v9  ;;  %4655 = vmatpush.bf16.msra.mxu0 %v5471_v22  ;;  %v6140_v5 = vld [vmem:[%s9018_s29 + $0x6a8] sm:$0xf0]  ;;  %v4404_v31 = vpop.f32.mrf.mxu0  ;;  %v5887_v9 = vor.u32 %v7492_v1, %v5884_v2  ;;  %v4430_v39 = vpop.f32.mrf.mxu2 }
 0x357   : > { %v7356_v10 = vld [vmem:[%s9018_s29 + $0x4c] sm:$0xf]  ;;  %v6143_v14 = vor.u32 %v7556_v25, %v6140_v5 }
 0x358   : > { %4693 = vmatpush.bf16.msra.mxu3 %v6271_v12  ;;  %4668 = vmatpush.bf16.msra.mxu1 %v5727_v26  ;;  %v5340_v11 = vld [vmem:[%s9018_s29 + $0x68] sm:$0xf0]  ;;  %v4417_v12 = vpop.f32.mrf.mxu1 }
 0x359   : > { %v7420_v38 = vld [vmem:[%s9018_s29 + $0x24c] sm:$0xf]  ;;  %v5343_v22 = vor.u32 %v7356_v10, %v5340_v11  ;;  %v9568_v12 = vld [vmem:[#allocation1] sm:$0xff] }
 0x35a   : > { %4681 = vmatpush.bf16.msra.mxu2 %v5983_v30  ;;  %4656 = vmatpush.bf16.msra.mxu0 %v5439_v44  ;;  %v5596_v15 = vld [vmem:[%s9018_s29 + $0x268] sm:$0xf0]  ;;  %v4443_v44 = vpop.f32.mrf.mxu3 }
 0x35b   : > { %v7484_v16 = vld [vmem:[%s9018_s29 + $0x44c] sm:$0xf]  ;;  %v5599_v30 = vor.u32 %v7420_v38, %v5596_v15 }
 0x35c   : > { %4694 = vmatpush.bf16.msra.mxu3 %v6239_v37  ;;  %4669 = vmatpush.bf16.msra.mxu1 %v5695_v27  ;;  %v5852_v17 = vld [vmem:[%s9018_s29 + $0x468] sm:$0xf0] }
 0x35d   : > { %v7548_v18 = vld [vmem:[%s9018_s29 + $0x64c] sm:$0xf]  ;;  %v5855_v33 = vor.u32 %v7484_v16, %v5852_v17  ;;  %v9575_v17 = vld [vmem:[#allocation1 + $0x9] sm:$0xff] }
 0x35e   : > { %4682 = vmatpush.bf16.msra.mxu2 %v5951_v46  ;;  %4657 = vmatpush.bf16.msra.mxu0 %v5407_v56  ;;  %v6108_v21 = vld [vmem:[%s9018_s29 + $0x668] sm:$0xf0] }
 0x35f   : > { %v7348_v24 = vld [vmem:[%s9018_s29 + $0xc] sm:$0xf]  ;;  %v6111_v40 = vor.u32 %v7548_v18, %v6108_v21 }
 0x360   : > { %4695 = vmatpush.bf16.msra.mxu3 %v6207_v50  ;;  %4670 = vmatpush.bf16.msra.mxu1 %v5663_v57  ;;  %v5308_v26 = vld [vmem:[%s9018_s29 + $0x28] sm:$0xf0] }
 0x361   : > { %v7412_v35 = vld [vmem:[%s9018_s29 + $0x20c] sm:$0xf]  ;;  %v5311_v47 = vor.u32 %v7348_v24, %v5308_v26  ;;  %v1748_v26 = vperm.slane %v9442_v32, 1 }
 0x362   : > { %4683 = vmatpush.bf16.msra.mxu2 %v5919_v58  ;;  %4658 = vmatpush.bf16.msra.mxu0 %v5375_v6  ;;  %v5564_v36 = vld [vmem:[%s9018_s29 + $0x228] sm:$0xf0] }
 0x363   : > { %v7476_v37 = vld [vmem:[%s9018_s29 + $0x40c] sm:$0xf]  ;;  %v5567_v49 = vor.u32 %v7412_v35, %v5564_v36 }
 0x364   : > { %4696 = vmatpush.bf16.msra.mxu3 %v6175_v63  ;;  %4671 = vmatpush.bf16.msra.mxu1 %v5631_v8  ;;  %v5820_v41 = vld [vmem:[%s9018_s29 + $0x428] sm:$0xf0] }
 0x365   : > { %v7540_v42 = vld [vmem:[%s9018_s29 + $0x60c] sm:$0xf]  ;;  %v5823_v50 = vor.u32 %v7476_v37, %v5820_v41  ;;  %v4454_v41 = vpop.f32.mrf.mxu0 }
 0x366   : > { %4684 = vmatpush.bf16.msra.mxu2 %v5887_v9  ;;  %v6076_v43 = vld [vmem:[%s9018_s29 + $0x628] sm:$0xf0]  ;;  %4659 = vmatpush.bf16.msra.mxu0 %v5343_v22 }
 0x367   : > { %v7660_v45 = vld [vmem:[%s9018_s29 + $0x9cc] sm:$0xf]  ;;  %v6079_v34 = vor.u32 %v7540_v42, %v6076_v43 }
 0x368   : > { %4697 = vmatpush.bf16.msra.mxu3 %v6143_v14  ;;  %v6556_v27 = vld [vmem:[%s9018_s29 + $0x9e8] sm:$0xf0]  ;;  %4672 = vmatpush.bf16.msra.mxu1 %v5599_v30  ;;  %v9571_v14 = vld [vmem:[#allocation1 + $0x1b] sm:$0xff] }
 0x369   : > { %v7724_v46 = vld [vmem:[%s9018_s29 + $0xbcc] sm:$0xf]  ;;  %v6559_v53 = vor.u32 %v7660_v45, %v6556_v27  ;;  %v4455_v27 = vadd.f32 %v4454_v41, %v1748_v26 }
 0x36a   : > { %v6812_v48 = vld [vmem:[%s9018_s29 + $0xbe8] sm:$0xf0]  ;;  %4685 = vmatpush.bf16.msra.mxu2 %v5855_v33  ;;  %4660 = vmatpush.bf16.msra.mxu0 %v5311_v47 }
 0x36b   : > { %v7788_v28 = vld [vmem:[%s9018_s29 + $0xdcc] sm:$0xf]  ;;  %v6815_v54 = vor.u32 %v7724_v46, %v6812_v48  ;;  %v4467_v46 = vpop.f32.mrf.mxu1 }
 0x36c   : > { %v7068_v29 = vld [vmem:[%s9018_s29 + $0xde8] sm:$0xf0]  ;;  %4698 = vmatpush.bf16.msra.mxu3 %v6111_v40  ;;  %4673 = vmatpush.bf16.msra.mxu1 %v5567_v49 }
 0x36d   : > { %v7852_v51 = vld [vmem:[%s9018_s29 + $0xfcc] sm:$0xf]  ;;  %v7071_v55 = vor.u32 %v7788_v28, %v7068_v29  ;;  %4661 = vmatmul.bf16.vlgmr.msra.gmra.mxu0 %v9568_v12 }
 0x36e   : > { %v7324_v52 = vld [vmem:[%s9018_s29 + $0xfe8] sm:$0xf0]  ;;  %4686 = vmatpush.bf16.msra.mxu2 %v5823_v50  ;;  %4705 = vmatpush.bf16.msrb.mxu0 %v6559_v53 }
 0x36f   : > { %v7652_v56 = vld [vmem:[%s9018_s29 + $0x98c] sm:$0xf]  ;;  %v7327_v59 = vor.u32 %v7852_v51, %v7324_v52  ;;  %4674 = vmatmul.bf16.vlgmr.msra.gmra.mxu1 %v9575_v17  ;;  %v4468_v51 = vadd.f32 %v4467_v46, %v4455_v27  ;;  %v5794_v27 = vld [vmem:[%s9018_s29 + $0x3d0] sm:$0xf] }
 0x370   : > { %v6524_v57 = vld [vmem:[%s9018_s29 + $0x9a8] sm:$0xf0]  ;;  %4699 = vmatpush.bf16.msra.mxu3 %v6079_v34  ;;  %4718 = vmatpush.bf16.msrb.mxu1 %v6815_v54 }
 0x371   : > { %v7716_v58 = vld [vmem:[%s9018_s29 + $0xb8c] sm:$0xf]  ;;  %v6527_v1 = vor.u32 %v7652_v56, %v6524_v57  ;;  %v4480_v57 = vpop.f32.mrf.mxu2 }
 0x372   : > { %v6780_v60 = vld [vmem:[%s9018_s29 + $0xba8] sm:$0xf0]  ;;  %4731 = vmatpush.bf16.msrb.mxu2 %v7071_v55 }
 0x373   : > { %v7780_v61 = vld [vmem:[%s9018_s29 + $0xd8c] sm:$0xf]  ;;  %v6783_v2 = vor.u32 %v7716_v58, %v6780_v60  ;;  %4700 = vmatmul.bf16.vlgmr.msra.gmra.mxu3 %v9571_v14  ;;  %4706 = vmatpush.bf16.msrb.mxu0 %v6527_v1 }
 0x374   : > { %v7036_v62 = vld [vmem:[%s9018_s29 + $0xda8] sm:$0xf0]  ;;  %4744 = vmatpush.bf16.msrb.mxu3 %v7327_v59 }
 0x375   : > { %v7844_v63 = vld [vmem:[%s9018_s29 + $0xf8c] sm:$0xf]  ;;  %v7039_v3 = vor.u32 %v7780_v61, %v7036_v62  ;;  %4719 = vmatpush.bf16.msrb.mxu1 %v6783_v2  ;;  %v4481_v62 = vadd.f32 %v4480_v57, %v4468_v51  ;;  %v7601_v51 = vld [vmem:[%s9018_s29 + $0x7ec] sm:$0xf0] }
 0x376   : > { %v7292_v0 = vld [vmem:[%s9018_s29 + $0xfa8] sm:$0xf0]  ;;  %v5762_v57 = vld [vmem:[%s9018_s29 + $0x390] sm:$0xf] }
 0x377   : > { %v7644_v4 = vld [vmem:[%s9018_s29 + $0x94c] sm:$0xf]  ;;  %v7295_v6 = vor.u32 %v7844_v63, %v7292_v0  ;;  %4732 = vmatpush.bf16.msrb.mxu2 %v7039_v3  ;;  %v4493_v63 = vpop.f32.mrf.mxu3 }
 0x378   : > { %v6492_v25 = vld [vmem:[%s9018_s29 + $0x968] sm:$0xf0]  ;;  %v9602_v3 = vadd.f32 %v4493_v63, %v4481_v62  ;;  %v6274_v62 = vld [vmem:[%s9018_s29 + $0x790] sm:$0xf] }
 0x379   : > { %v7708_v5 = vld [vmem:[%s9018_s29 + $0xb4c] sm:$0xf]  ;;  %v6495_v15 = vor.u32 %v7644_v4, %v6492_v25  ;;  %4745 = vmatpush.bf16.msrb.mxu3 %v7295_v6  ;;  %v4456_v4 = vpop.f32.mrf.mxu0  ;;  %v7593_v63 = vld [vmem:[%s9018_s29 + $0x7ac] sm:$0xf0] }
 0x37a   : > { %v6748_v31 = vld [vmem:[%s9018_s29 + $0xb68] sm:$0xf0]  ;;  %v5474_v4 = vld [vmem:[%s9018_s29 + $0x150] sm:$0xf] }
 0x37b   : > { %v7772_v8 = vld [vmem:[%s9018_s29 + $0xd4c] sm:$0xf]  ;;  %v6751_v18 = vor.u32 %v7708_v5, %v6748_v31  ;;  %4707 = vmatpush.bf16.msrb.mxu0 %v6495_v15 }
 0x37c   : > { %v7004_v9 = vld [vmem:[%s9018_s29 + $0xd68] sm:$0xf0] }
 0x37d   : > { %v9563_v10 = vld [vmem:[#allocation1 + $0x12] sm:$0xff]  ;;  %v7007_v21 = vor.u32 %v7772_v8, %v7004_v9  ;;  %4720 = vmatpush.bf16.msrb.mxu1 %v6751_v18  ;;  %v4469_v9 = vpop.f32.mrf.mxu1 }
 0x37e   : > { %4687 = vmatmul.bf16.vlgmr.msra.gmra.mxu2 %v9563_v10  ;;  %v7836_v11 = vld [vmem:[%s9018_s29 + $0xf4c] sm:$0xf]  ;;  %v7521_v9 = vld [vmem:[%s9018_s29 + $0x56c] sm:$0xf0] }
 0x37f   : > { %v7260_v38 = vld [vmem:[%s9018_s29 + $0xf68] sm:$0xf0]  ;;  %4733 = vmatpush.bf16.msrb.mxu2 %v7007_v21 }
 0x380   : > { %v7636_v16 = vld [vmem:[%s9018_s29 + $0x90c] sm:$0xf]  ;;  %v7263_v30 = vor.u32 %v7836_v11, %v7260_v38 }
 0x381   : > { %v6460_v22 = vld [vmem:[%s9018_s29 + $0x928] sm:$0xf0] }
 0x382   : > { %v7700_v24 = vld [vmem:[%s9018_s29 + $0xb0c] sm:$0xf]  ;;  %v6463_v40 = vor.u32 %v7636_v16, %v6460_v22  ;;  %4746 = vmatpush.bf16.msrb.mxu3 %v7263_v30 }
 0x383   : > { %v6716_v33 = vld [vmem:[%s9018_s29 + $0xb28] sm:$0xf0] }
 0x384   : > { %v7764_v35 = vld [vmem:[%s9018_s29 + $0xd0c] sm:$0xf]  ;;  %v6719_v32 = vor.u32 %v7700_v24, %v6716_v33  ;;  %4708 = vmatpush.bf16.msrb.mxu0 %v6463_v40 }
 0x385   : > { %v6972_v36 = vld [vmem:[%s9018_s29 + $0xd28] sm:$0xf0] }
 0x386   : > { %v7828_v37 = vld [vmem:[%s9018_s29 + $0xf0c] sm:$0xf]  ;;  %v6975_v42 = vor.u32 %v7764_v35, %v6972_v36  ;;  %4721 = vmatpush.bf16.msrb.mxu1 %v6719_v32 }
 0x387   : > { %v7228_v39 = vld [vmem:[%s9018_s29 + $0xf28] sm:$0xf0] }
 0x388   : > { %v7628_v43 = vld [vmem:[%s9018_s29 + $0x8cc] sm:$0xf]  ;;  %v7231_v47 = vor.u32 %v7828_v37, %v7228_v39  ;;  %4734 = vmatpush.bf16.msrb.mxu2 %v6975_v42  ;;  %v4482_v39 = vpop.f32.mrf.mxu2 }
 0x389   : > { %v6428_v44 = vld [vmem:[%s9018_s29 + $0x8e8] sm:$0xf0] }
 0x38a   : > { %v7692_v45 = vld [vmem:[%s9018_s29 + $0xacc] sm:$0xf]  ;;  %v6431_v52 = vor.u32 %v7628_v43, %v6428_v44  ;;  %4747 = vmatpush.bf16.msrb.mxu3 %v7231_v47  ;;  %v4495_v43 = vpop.f32.mrf.mxu3  ;;  %v5538_v44 = vld [vmem:[%s9018_s29 + $0x1d0] sm:$0xf] }
 0x38b   : > { %v6684_v48 = vld [vmem:[%s9018_s29 + $0xae8] sm:$0xf0]  ;;  %v7473_v47 = vld [vmem:[%s9018_s29 + $0x3ec] sm:$0xf0] }
 0x38c   : > { %v7756_v28 = vld [vmem:[%s9018_s29 + $0xccc] sm:$0xf]  ;;  %v6687_v34 = vor.u32 %v7692_v45, %v6684_v48  ;;  %4709 = vmatpush.bf16.msrb.mxu0 %v6431_v52  ;;  %v7409_v45 = vld [vmem:[%s9018_s29 + $0x1ec] sm:$0xf0] }
 0x38d   : > { %v6940_v29 = vld [vmem:[%s9018_s29 + $0xce8] sm:$0xf0]  ;;  %v6050_v48 = vld [vmem:[%s9018_s29 + $0x5d0] sm:$0xf] }
 0x38e   : > { %v7820_v49 = vld [vmem:[%s9018_s29 + $0xecc] sm:$0xf]  ;;  %v6943_v53 = vor.u32 %v7756_v28, %v6940_v29  ;;  %4722 = vmatpush.bf16.msrb.mxu1 %v6687_v34  ;;  %v7537_v28 = vld [vmem:[%s9018_s29 + $0x5ec] sm:$0xf0]  ;;  %v5539_v34 = vor.u32 %v7409_v45, %v5538_v44 }
 0x38f   : > { %v7196_v50 = vld [vmem:[%s9018_s29 + $0xee8] sm:$0xf0]  ;;  %v7441_v44 = vld [vmem:[%s9018_s29 + $0x2ec] sm:$0xf0] }
 0x390   : > { %v7620_v54 = vld [vmem:[%s9018_s29 + $0x88c] sm:$0xf]  ;;  %v7199_v58 = vor.u32 %v7820_v49, %v7196_v50  ;;  %4735 = vmatpush.bf16.msrb.mxu2 %v6943_v53  ;;  %v6306_v50 = vld [vmem:[%s9018_s29 + $0x7d0] sm:$0xf]  ;;  %v5795_v53 = vor.u32 %v7473_v47, %v5794_v27 }
 0x391   : > { %v6396_v55 = vld [vmem:[%s9018_s29 + $0x8a8] sm:$0xf0]  ;;  %v5922_v45 = vld [vmem:[%s9018_s29 + $0x4d0] sm:$0xf] }
 0x392   : > { %v7684_v56 = vld [vmem:[%s9018_s29 + $0xa8c] sm:$0xf]  ;;  %v6399_v2 = vor.u32 %v7620_v54, %v6396_v55  ;;  %4748 = vmatpush.bf16.msrb.mxu3 %v7199_v58  ;;  %v6051_v54 = vor.u32 %v7537_v28, %v6050_v48  ;;  %v5506_v55 = vld [vmem:[%s9018_s29 + $0x190] sm:$0xf]  ;;  %v6307_v58 = vor.u32 %v7601_v51, %v6306_v50 }
 0x393   : > { %v6652_v59 = vld [vmem:[%s9018_s29 + $0xaa8] sm:$0xf0]  ;;  %v7505_v27 = vld [vmem:[%s9018_s29 + $0x4ec] sm:$0xf0] }
 0x394   : > { %v7748_v60 = vld [vmem:[%s9018_s29 + $0xc8c] sm:$0xf]  ;;  %v6655_v25 = vor.u32 %v7684_v56, %v6652_v59  ;;  %4710 = vmatpush.bf16.msrb.mxu0 %v6399_v2  ;;  %v7401_v56 = vld [vmem:[%s9018_s29 + $0x1ac] sm:$0xf0] }
 0x395   : > { %v6908_v61 = vld [vmem:[%s9018_s29 + $0xca8] sm:$0xf0]  ;;  %v7465_v59 = vld [vmem:[%s9018_s29 + $0x3ac] sm:$0xf0] }
 0x396   : > { %v7812_v0 = vld [vmem:[%s9018_s29 + $0xe8c] sm:$0xf]  ;;  %v6911_v5 = vor.u32 %v7748_v60, %v6908_v61  ;;  %4723 = vmatpush.bf16.msrb.mxu1 %v6655_v25  ;;  %v6018_v60 = vld [vmem:[%s9018_s29 + $0x590] sm:$0xf] }
 0x397   : > { %v7164_v1 = vld [vmem:[%s9018_s29 + $0xea8] sm:$0xf0]  ;;  %v7529_v61 = vld [vmem:[%s9018_s29 + $0x5ac] sm:$0xf0] }
 0x398   : > { %v7612_v6 = vld [vmem:[%s9018_s29 + $0x84c] sm:$0xf]  ;;  %v7167_v11 = vor.u32 %v7812_v0, %v7164_v1  ;;  %4736 = vmatpush.bf16.msrb.mxu2 %v6911_v5  ;;  %v5507_v0 = vor.u32 %v7401_v56, %v5506_v55  ;;  %v5763_v1 = vor.u32 %v7465_v59, %v5762_v57  ;;  %v6019_v2 = vor.u32 %v7529_v61, %v6018_v60  ;;  %v7393_v25 = vld [vmem:[%s9018_s29 + $0x16c] sm:$0xf0] }
 0x399   : > { %v6364_v31 = vld [vmem:[%s9018_s29 + $0x868] sm:$0xf0]  ;;  %v5730_v5 = vld [vmem:[%s9018_s29 + $0x350] sm:$0xf] }
 0x39a   : > { %v7676_v8 = vld [vmem:[%s9018_s29 + $0xa4c] sm:$0xf]  ;;  %v6367_v22 = vor.u32 %v7612_v6, %v6364_v31  ;;  %4749 = vmatpush.bf16.msrb.mxu3 %v7167_v11  ;;  %v6275_v6 = vor.u32 %v7593_v63, %v6274_v62  ;;  %v7457_v31 = vld [vmem:[%s9018_s29 + $0x36c] sm:$0xf0] }
 0x39b   : > { %v6620_v38 = vld [vmem:[%s9018_s29 + $0xa68] sm:$0xf0]  ;;  %v6242_v11 = vld [vmem:[%s9018_s29 + $0x750] sm:$0xf] }
 0x39c   : > { %v7740_v15 = vld [vmem:[%s9018_s29 + $0xc4c] sm:$0xf]  ;;  %v6623_v30 = vor.u32 %v7676_v8, %v6620_v38  ;;  %4711 = vmatpush.bf16.msrb.mxu0 %v6367_v22  ;;  %v5986_v8 = vld [vmem:[%s9018_s29 + $0x550] sm:$0xf] }
 0x39d   : > { %v6876_v16 = vld [vmem:[%s9018_s29 + $0xc68] sm:$0xf0]  ;;  %v7585_v38 = vld [vmem:[%s9018_s29 + $0x76c] sm:$0xf0] }
 0x39e   : > { %v7804_v18 = vld [vmem:[%s9018_s29 + $0xe4c] sm:$0xf]  ;;  %v6879_v33 = vor.u32 %v7740_v15, %v6876_v16  ;;  %4724 = vmatpush.bf16.msrb.mxu1 %v6623_v30  ;;  %v5731_v15 = vor.u32 %v7457_v31, %v5730_v5  ;;  %v5987_v16 = vor.u32 %v7521_v9, %v5986_v8  ;;  %v7449_v22 = vld [vmem:[%s9018_s29 + $0x32c] sm:$0xf0] }
 0x39f   : > { %v7132_v21 = vld [vmem:[%s9018_s29 + $0xe68] sm:$0xf0]  ;;  %v6210_v30 = vld [vmem:[%s9018_s29 + $0x710] sm:$0xf] }
 0x3a0   : > { %v7604_v24 = vld [vmem:[%s9018_s29 + $0x80c] sm:$0xf]  ;;  %v7135_v40 = vor.u32 %v7804_v18, %v7132_v21  ;;  %4737 = vmatpush.bf16.msrb.mxu2 %v6879_v33  ;;  %v5442_v18 = vld [vmem:[%s9018_s29 + $0x110] sm:$0xf] }
 0x3a1   : > { %v6332_v26 = vld [vmem:[%s9018_s29 + $0x828] sm:$0xf0]  ;;  %v7385_v21 = vld [vmem:[%s9018_s29 + $0x12c] sm:$0xf0] }
 0x3a2   : > { %v7668_v35 = vld [vmem:[%s9018_s29 + $0xa0c] sm:$0xf]  ;;  %v6335_v46 = vor.u32 %v7604_v24, %v6332_v26  ;;  %4750 = vmatpush.bf16.msrb.mxu3 %v7135_v40  ;;  %v5954_v24 = vld [vmem:[%s9018_s29 + $0x510] sm:$0xf]  ;;  %v4519_v40 = vpop.f32.mrf.mxu1 }
 0x3a3   : > { %v6588_v36 = vld [vmem:[%s9018_s29 + $0xa28] sm:$0xf0]  ;;  %v7513_v26 = vld [vmem:[%s9018_s29 + $0x52c] sm:$0xf0] }
 0x3a4   : > { %v7732_v37 = vld [vmem:[%s9018_s29 + $0xc0c] sm:$0xf]  ;;  %v6591_v29 = vor.u32 %v7668_v35, %v6588_v36  ;;  %4712 = vmatpush.bf16.msrb.mxu0 %v6335_v46  ;;  %v7577_v33 = vld [vmem:[%s9018_s29 + $0x72c] sm:$0xf0]  ;;  %v4506_v35 = vpop.f32.mrf.mxu0 }
 0x3a5   : > { %v6844_v41 = vld [vmem:[%s9018_s29 + $0xc28] sm:$0xf0]  ;;  %v4507_v39 = vadd.f32 %v4506_v35, %v9602_v3  ;;  %v6211_v43 = vor.u32 %v7577_v33, %v6210_v30  ;;  %v6178_v47 = vld [vmem:[%s9018_s29 + $0x6d0] sm:$0xf] }
 0x3a6   : > { %v7796_v32 = vld [vmem:[%s9018_s29 + $0xe0c] sm:$0xf]  ;;  %v6847_v49 = vor.u32 %v7732_v37, %v6844_v41  ;;  %4725 = vmatpush.bf16.msrb.mxu1 %v6591_v29  ;;  %v5955_v37 = vor.u32 %v7513_v26, %v5954_v24  ;;  %v5410_v41 = vld [vmem:[%s9018_s29 + $0xd0] sm:$0xf]  ;;  %v5923_v29 = vor.u32 %v7505_v27, %v5922_v45 }
 0x3a7   : > { %v7100_v42 = vld [vmem:[%s9018_s29 + $0xe28] sm:$0xf0]  ;;  %4713 = vmatmul.bf16.vlgmr.msrb.gmra.mxu0 %v9490_v19  ;;  %v5698_v19 = vld [vmem:[%s9018_s29 + $0x310] sm:$0xf]  ;;  %v4520_v46 = vadd.f32 %v4519_v40, %v4507_v39 }
 0x3a8   : > { %v7103_v52 = vor.u32 %v7796_v32, %v7100_v42  ;;  %4738 = vmatpush.bf16.msrb.mxu2 %v6847_v49  ;;  %4757 = vmatpush.bf16.msra.mxu0 %v5539_v34  ;;  %v5699_v36 = vor.u32 %v7449_v22, %v5698_v19  ;;  %v7377_v32 = vld [vmem:[%s9018_s29 + $0xec] sm:$0xf0]  ;;  %v4532_v49 = vpop.f32.mrf.mxu2 }
 0x3a9   : > { %4726 = vmatmul.bf16.vlgmr.msrb.gmra.mxu1 %v9496_v23  ;;  %v5443_v23 = vor.u32 %v7385_v21, %v5442_v18  ;;  %v5666_v42 = vld [vmem:[%s9018_s29 + $0x2d0] sm:$0xf]  ;;  %v5411_v3 = vor.u32 %v7377_v32, %v5410_v41 }
 0x3aa   : > { %4751 = vmatpush.bf16.msrb.mxu3 %v7103_v52  ;;  %4770 = vmatpush.bf16.msra.mxu1 %v5795_v53  ;;  %v7569_v48 = vld [vmem:[%s9018_s29 + $0x6ec] sm:$0xf0]  ;;  %v5667_v28 = vor.u32 %v7441_v44, %v5666_v42  ;;  %v4533_v53 = vadd.f32 %v4532_v49, %v4520_v46  ;;  %v4521_v5 = vpop.f32.mrf.mxu1 }
 0x3ab   : > { %4739 = vmatmul.bf16.vlgmr.msrb.gmra.mxu2 %v9482_v13  ;;  %v5475_v13 = vor.u32 %v7393_v25, %v5474_v4  ;;  %v5378_v50 = vld [vmem:[%s9018_s29 + $0x90] sm:$0xf]  ;;  %v6179_v34 = vor.u32 %v7569_v48, %v6178_v47 }
 0x3ac   : > { %4783 = vmatpush.bf16.msra.mxu2 %v6051_v54  ;;  %4758 = vmatpush.bf16.msra.mxu0 %v5507_v0  ;;  %v7369_v51 = vld [vmem:[%s9018_s29 + $0xac] sm:$0xf0]  ;;  %v4545_v54 = vpop.f32.mrf.mxu3  ;;  %v4508_v63 = vpop.f32.mrf.mxu0 }
 0x3ad   : > { %4752 = vmatmul.bf16.vlgmr.msrb.gmra.mxu3 %v9493_v20  ;;  %v6243_v20 = vor.u32 %v7585_v38, %v6242_v11  ;;  %v5634_v52 = vld [vmem:[%s9018_s29 + $0x290] sm:$0xf]  ;;  %v4546_v60 = vadd.f32 %v4545_v54, %v4533_v53  ;;  %v5379_v61 = vor.u32 %v7369_v51, %v5378_v50 }
 0x3ae   : > { %4796 = vmatpush.bf16.msra.mxu3 %v6307_v58  ;;  %4771 = vmatpush.bf16.msra.mxu1 %v5763_v1  ;;  %v7433_v55 = vld [vmem:[%s9018_s29 + $0x2ac] sm:$0xf0] }
 0x3af   : > { %v5890_v56 = vld [vmem:[%s9018_s29 + $0x490] sm:$0xf]  ;;  %v5635_v0 = vor.u32 %v7433_v55, %v5634_v52  ;;  %v5174_v31 = vmax.f32 %v4546_v60, 0.0 }
 0x3b0   : > { %4784 = vmatpush.bf16.msra.mxu2 %v6019_v2  ;;  %4759 = vmatpush.bf16.msra.mxu0 %v5475_v13  ;;  %v7497_v57 = vld [vmem:[%s9018_s29 + $0x4ac] sm:$0xf0]  ;;  %v4534_v26 = vpop.f32.mrf.mxu2 }
 0x3b1   : > { %v6146_v58 = vld [vmem:[%s9018_s29 + $0x690] sm:$0xf]  ;;  %v5891_v1 = vor.u32 %v7497_v57, %v5890_v56 }
 0x3b2   : > { %4797 = vmatpush.bf16.msra.mxu3 %v6275_v6  ;;  %4772 = vmatpush.bf16.msra.mxu1 %v5731_v15  ;;  %v7561_v59 = vld [vmem:[%s9018_s29 + $0x6ac] sm:$0xf0]  ;;  %v5173_v6 = vmax.f32 %v9523_v7, 0.0 }
 0x3b3   : > { %v5346_v62 = vld [vmem:[%s9018_s29 + $0x50] sm:$0xf]  ;;  %v6147_v8 = vor.u32 %v7561_v59, %v6146_v58 }
 0x3b4   : > { %4785 = vmatpush.bf16.msra.mxu2 %v5987_v16  ;;  %4760 = vmatpush.bf16.msra.mxu0 %v5443_v23  ;;  %v7361_v2 = vld [vmem:[%s9018_s29 + $0x6c] sm:$0xf0]  ;;  %v9682_v15 = vpack.c.bf16 %v5174_v31, %v5173_v6 }
 0x3b5   : > { %v5602_v4 = vld [vmem:[%s9018_s29 + $0x250] sm:$0xf]  ;;  %v5347_v16 = vor.u32 %v7361_v2, %v5346_v62 }
 0x3b6   : > { %4798 = vmatpush.bf16.msra.mxu3 %v6243_v20  ;;  %4773 = vmatpush.bf16.msra.mxu1 %v5699_v36  ;;  %v7425_v25 = vld [vmem:[%s9018_s29 + $0x26c] sm:$0xf0]  ;;  %v4547_v36 = vpop.f32.mrf.mxu3 }
 0x3b7   : > { %v5858_v9 = vld [vmem:[%s9018_s29 + $0x450] sm:$0xf]  ;;  %v5603_v21 = vor.u32 %v7425_v25, %v5602_v4 }
 0x3b8   : > { %4786 = vmatpush.bf16.msra.mxu2 %v5955_v37  ;;  %4761 = vmatpush.bf16.msra.mxu0 %v5411_v3  ;;  %v7489_v11 = vld [vmem:[%s9018_s29 + $0x46c] sm:$0xf0] }
 0x3b9   : > { %v6114_v38 = vld [vmem:[%s9018_s29 + $0x650] sm:$0xf]  ;;  %v5859_v19 = vor.u32 %v7489_v11, %v5858_v9  ;;  %v9724_v9 = vld [vmem:[%s9433_s8] sm:$0xff] }
 0x3ba   : > { %4799 = vmatpush.bf16.msra.mxu3 %v6211_v43  ;;  %4774 = vmatpush.bf16.msra.mxu1 %v5667_v28  ;;  %v7553_v13 = vld [vmem:[%s9018_s29 + $0x66c] sm:$0xf0] }
 0x3bb   : > { %v5314_v18 = vld [vmem:[%s9018_s29 + $0x10] sm:$0xf]  ;;  %v6115_v30 = vor.u32 %v7553_v13, %v6114_v38 }
 0x3bc   : > { %4787 = vmatpush.bf16.msra.mxu2 %v5923_v29  ;;  %4762 = vmatpush.bf16.msra.mxu0 %v5379_v61  ;;  %v7353_v7 = vld [vmem:[%s9018_s29 + $0x2c] sm:$0xf0] }
 0x3bd   : > { %v5570_v20 = vld [vmem:[%s9018_s29 + $0x210] sm:$0xf]  ;;  %v5315_v41 = vor.u32 %v7353_v7, %v5314_v18  ;;  %v4558_v7 = vpop.f32.mrf.mxu0 }
 0x3be   : > { %4800 = vmatpush.bf16.msra.mxu3 %v6179_v34  ;;  %4775 = vmatpush.bf16.msra.mxu1 %v5635_v0  ;;  %v7417_v22 = vld [vmem:[%s9018_s29 + $0x22c] sm:$0xf0] }
 0x3bf   : > { %v5826_v24 = vld [vmem:[%s9018_s29 + $0x410] sm:$0xf]  ;;  %v5571_v44 = vor.u32 %v7417_v22, %v5570_v20 }
 0x3c0   : > { %4788 = vmatpush.bf16.msra.mxu2 %v5891_v1  ;;  %v7481_v33 = vld [vmem:[%s9018_s29 + $0x42c] sm:$0xf0]  ;;  %4763 = vmatpush.bf16.msra.mxu0 %v5347_v16 }
 0x3c1   : > { %v6082_v23 = vld [vmem:[%s9018_s29 + $0x610] sm:$0xf]  ;;  %v5827_v45 = vor.u32 %v7481_v33, %v5826_v24 }
 0x3c2   : > { %4801 = vmatpush.bf16.msra.mxu3 %v6147_v8  ;;  %v7545_v35 = vld [vmem:[%s9018_s29 + $0x62c] sm:$0xf0]  ;;  %4776 = vmatpush.bf16.msra.mxu1 %v5603_v21 }
 0x3c3   : > { %v6562_v37 = vld [vmem:[%s9018_s29 + $0x9d0] sm:$0xf]  ;;  %v6083_v47 = vor.u32 %v7545_v35, %v6082_v23 }
 0x3c4   : > { %v7665_v39 = vld [vmem:[%s9018_s29 + $0x9ec] sm:$0xf0]  ;;  %4789 = vmatpush.bf16.msra.mxu2 %v5859_v19  ;;  %4764 = vmatpush.bf16.msra.mxu0 %v5315_v41 }
 0x3c5   : > { %v6818_v40 = vld [vmem:[%s9018_s29 + $0xbd0] sm:$0xf]  ;;  %v6563_v48 = vor.u32 %v7665_v39, %v6562_v37 }
 0x3c6   : > { %v7729_v32 = vld [vmem:[%s9018_s29 + $0xbec] sm:$0xf0]  ;;  %4802 = vmatpush.bf16.msra.mxu3 %v6115_v30  ;;  %4777 = vmatpush.bf16.msra.mxu1 %v5571_v44  ;;  %v4571_v30 = vpop.f32.mrf.mxu1 }
 0x3c7   : > { %v7074_v42 = vld [vmem:[%s9018_s29 + $0xdd0] sm:$0xf]  ;;  %v6819_v3 = vor.u32 %v7729_v32, %v6818_v40  ;;  %4765 = vmatmul.bf16.vlgmr.msra.gmra.mxu0 %v9568_v12  ;;  %v1749_v12 = vperm.slane %v9724_v9, 2 }
 0x3c8   : > { %v7793_v43 = vld [vmem:[%s9018_s29 + $0xdec] sm:$0xf0]  ;;  %4790 = vmatpush.bf16.msra.mxu2 %v5827_v45  ;;  %4809 = vmatpush.bf16.msrb.mxu0 %v6563_v48 }
 0x3c9   : > { %v7330_v27 = vld [vmem:[%s9018_s29 + $0xfd0] sm:$0xf]  ;;  %v7075_v28 = vor.u32 %v7793_v43, %v7074_v42  ;;  %4778 = vmatmul.bf16.vlgmr.msra.gmra.mxu1 %v9575_v17  ;;  %v4559_v26 = vadd.f32 %v4558_v7, %v1749_v12 }
 0x3ca   : > { %v7857_v46 = vld [vmem:[%s9018_s29 + $0xfec] sm:$0xf0]  ;;  %4803 = vmatpush.bf16.msra.mxu3 %v6083_v47  ;;  %4822 = vmatpush.bf16.msrb.mxu1 %v6819_v3 }
 0x3cb   : > { %v6530_v29 = vld [vmem:[%s9018_s29 + $0x990] sm:$0xf]  ;;  %v7331_v51 = vor.u32 %v7857_v46, %v7330_v27  ;;  %4791 = vmatmul.bf16.vlgmr.msra.gmra.mxu2 %v9563_v10  ;;  %v4572_v40 = vadd.f32 %v4571_v30, %v4559_v26  ;;  %v4584_v27 = vpop.f32.mrf.mxu2  ;;  %v7597_v26 = vld [vmem:[%s9018_s29 + $0x7d4] sm:$0xf] }
 0x3cc   : > { %v7657_v49 = vld [vmem:[%s9018_s29 + $0x9ac] sm:$0xf0]  ;;  %4835 = vmatpush.bf16.msrb.mxu2 %v7075_v28  ;;  %v6308_v30 = vld [vmem:[%s9018_s29 + $0x7f0] sm:$0xf0] }
 0x3cd   : > { %v6786_v50 = vld [vmem:[%s9018_s29 + $0xb90] sm:$0xf]  ;;  %v6531_v56 = vor.u32 %v7657_v49, %v6530_v29  ;;  %4804 = vmatmul.bf16.vlgmr.msra.gmra.mxu3 %v9571_v14  ;;  %v4585_v28 = vadd.f32 %v4584_v27, %v4572_v40  ;;  %v4597_v29 = vpop.f32.mrf.mxu3  ;;  %v7461_v40 = vld [vmem:[%s9018_s29 + $0x394] sm:$0xf] }
 0x3ce   : > { %v7721_v52 = vld [vmem:[%s9018_s29 + $0xbac] sm:$0xf0]  ;;  %4848 = vmatpush.bf16.msrb.mxu3 %v7331_v51 }
 0x3cf   : > { %v7042_v34 = vld [vmem:[%s9018_s29 + $0xd90] sm:$0xf]  ;;  %v6787_v57 = vor.u32 %v7721_v52, %v6786_v50  ;;  %4810 = vmatpush.bf16.msrb.mxu0 %v6531_v56  ;;  %v9748_v52 = vadd.f32 %v4597_v29, %v4585_v28  ;;  %v7453_v28 = vld [vmem:[%s9018_s29 + $0x354] sm:$0xf] }
 0x3d0   : > { %v7785_v53 = vld [vmem:[%s9018_s29 + $0xdac] sm:$0xf0] }
 0x3d1   : > { %v7298_v54 = vld [vmem:[%s9018_s29 + $0xf90] sm:$0xf]  ;;  %v7043_v58 = vor.u32 %v7785_v53, %v7042_v34  ;;  %4823 = vmatpush.bf16.msrb.mxu1 %v6787_v57  ;;  %v4560_v34 = vpop.f32.mrf.mxu0 }
 0x3d2   : > { %v7849_v55 = vld [vmem:[%s9018_s29 + $0xfac] sm:$0xf0]  ;;  %v5988_v34 = vld [vmem:[%s9018_s29 + $0x570] sm:$0xf0] }
 0x3d3   : > { %v6498_v59 = vld [vmem:[%s9018_s29 + $0x950] sm:$0xf]  ;;  %v7299_v62 = vor.u32 %v7849_v55, %v7298_v54  ;;  %4836 = vmatpush.bf16.msrb.mxu2 %v7043_v58  ;;  %v4573_v58 = vpop.f32.mrf.mxu1 }
 0x3d4   : > { %v7649_v60 = vld [vmem:[%s9018_s29 + $0x96c] sm:$0xf0]  ;;  %v9799_v58 = vld [vmem:[#allocation1 + $0x2d] sm:$0xff] }
 0x3d5   : > { %v6754_v61 = vld [vmem:[%s9018_s29 + $0xb50] sm:$0xf]  ;;  %v6499_v25 = vor.u32 %v7649_v60, %v6498_v59  ;;  %4849 = vmatpush.bf16.msrb.mxu3 %v7299_v62 }
 0x3d6   : > { %v7713_v63 = vld [vmem:[%s9018_s29 + $0xb6c] sm:$0xf0] }
 0x3d7   : > { %v7010_v0 = vld [vmem:[%s9018_s29 + $0xd50] sm:$0xf]  ;;  %v6755_v6 = vor.u32 %v7713_v63, %v6754_v61  ;;  %4811 = vmatpush.bf16.msrb.mxu0 %v6499_v25 }
 0x3d8   : > { %v7777_v1 = vld [vmem:[%s9018_s29 + $0xd6c] sm:$0xf0] }
 0x3d9   : > { %v7266_v2 = vld [vmem:[%s9018_s29 + $0xf50] sm:$0xf]  ;;  %v7011_v10 = vor.u32 %v7777_v1, %v7010_v0  ;;  %4824 = vmatpush.bf16.msrb.mxu1 %v6755_v6 }
 0x3da   : > { %v7841_v4 = vld [vmem:[%s9018_s29 + $0xf6c] sm:$0xf0] }
 0x3db   : > { %v6466_v5 = vld [vmem:[%s9018_s29 + $0x910] sm:$0xf]  ;;  %v7267_v14 = vor.u32 %v7841_v4, %v7266_v2  ;;  %4837 = vmatpush.bf16.msrb.mxu2 %v7011_v10 }
 0x3dc   : > { %v7641_v31 = vld [vmem:[%s9018_s29 + $0x92c] sm:$0xf0] }
 0x3dd   : > { %v6722_v8 = vld [vmem:[%s9018_s29 + $0xb10] sm:$0xf]  ;;  %v6467_v18 = vor.u32 %v7641_v31, %v6466_v5  ;;  %4850 = vmatpush.bf16.msrb.mxu3 %v7267_v14 }
 0x3de   : > { %v7705_v11 = vld [vmem:[%s9018_s29 + $0xb2c] sm:$0xf0] }
 0x3df   : > { %v6978_v38 = vld [vmem:[%s9018_s29 + $0xd10] sm:$0xf]  ;;  %v6723_v21 = vor.u32 %v7705_v11, %v6722_v8  ;;  %4812 = vmatpush.bf16.msrb.mxu0 %v6467_v18  ;;  %v4586_v8 = vpop.f32.mrf.mxu2  ;;  %v7469_v18 = vld [vmem:[%s9018_s29 + $0x3d4] sm:$0xf] }
 0x3e0   : > { %v7769_v13 = vld [vmem:[%s9018_s29 + $0xd2c] sm:$0xf0] }
 0x3e1   : > { %v7234_v16 = vld [vmem:[%s9018_s29 + $0xf10] sm:$0xf]  ;;  %v6979_v19 = vor.u32 %v7769_v13, %v6978_v38  ;;  %4825 = vmatpush.bf16.msrb.mxu1 %v6723_v21  ;;  %v4599_v13 = vpop.f32.mrf.mxu3  ;;  %v5796_v21 = vld [vmem:[%s9018_s29 + $0x3f0] sm:$0xf0] }
 0x3e2   : > { %v7833_v17 = vld [vmem:[%s9018_s29 + $0xf2c] sm:$0xf0]  ;;  %v4623_v13 = vpop.f32.mrf.mxu1 }
 0x3e3   : > { %v6434_v20 = vld [vmem:[%s9018_s29 + $0x8d0] sm:$0xf]  ;;  %v7235_v33 = vor.u32 %v7833_v17, %v7234_v16  ;;  %4838 = vmatpush.bf16.msrb.mxu2 %v6979_v19  ;;  %v7405_v16 = vld [vmem:[%s9018_s29 + $0x1d4] sm:$0xf] }
 0x3e4   : > { %v7633_v22 = vld [vmem:[%s9018_s29 + $0x8ec] sm:$0xf0]  ;;  %v5540_v17 = vld [vmem:[%s9018_s29 + $0x1f0] sm:$0xf0] }
 0x3e5   : > { %v6690_v24 = vld [vmem:[%s9018_s29 + $0xad0] sm:$0xf]  ;;  %v6435_v41 = vor.u32 %v7633_v22, %v6434_v20  ;;  %4851 = vmatpush.bf16.msrb.mxu3 %v7235_v33  ;;  %v7533_v19 = vld [vmem:[%s9018_s29 + $0x5d4] sm:$0xf] }
 0x3e6   : > { %v7697_v23 = vld [vmem:[%s9018_s29 + $0xaec] sm:$0xf0]  ;;  %v6052_v20 = vld [vmem:[%s9018_s29 + $0x5f0] sm:$0xf0] }
 0x3e7   : > { %v6946_v35 = vld [vmem:[%s9018_s29 + $0xcd0] sm:$0xf]  ;;  %v6691_v32 = vor.u32 %v7697_v23, %v6690_v24  ;;  %4813 = vmatpush.bf16.msrb.mxu0 %v6435_v41  ;;  %v5543_v23 = vor.u32 %v7405_v16, %v5540_v17  ;;  %v6311_v41 = vor.u32 %v7597_v26, %v6308_v30  ;;  %v5668_v17 = vld [vmem:[%s9018_s29 + $0x2f0] sm:$0xf0] }
 0x3e8   : > { %v7761_v36 = vld [vmem:[%s9018_s29 + $0xcec] sm:$0xf0]  ;;  %v7365_v26 = vld [vmem:[%s9018_s29 + $0x94] sm:$0xf] }
 0x3e9   : > { %v7202_v37 = vld [vmem:[%s9018_s29 + $0xed0] sm:$0xf]  ;;  %v6947_v42 = vor.u32 %v7761_v36, %v6946_v35  ;;  %4826 = vmatpush.bf16.msrb.mxu1 %v6691_v32  ;;  %v5799_v35 = vor.u32 %v7469_v18, %v5796_v21  ;;  %v6055_v36 = vor.u32 %v7533_v19, %v6052_v20  ;;  %v5764_v32 = vld [vmem:[%s9018_s29 + $0x3b0] sm:$0xf0] }
 0x3ea   : > { %v7825_v39 = vld [vmem:[%s9018_s29 + $0xeec] sm:$0xf0]  ;;  %v7501_v18 = vld [vmem:[%s9018_s29 + $0x4d4] sm:$0xf] }
 0x3eb   : > { %v6402_v43 = vld [vmem:[%s9018_s29 + $0x890] sm:$0xf]  ;;  %v7203_v46 = vor.u32 %v7825_v39, %v7202_v37  ;;  %4839 = vmatpush.bf16.msrb.mxu2 %v6947_v42  ;;  %v7397_v37 = vld [vmem:[%s9018_s29 + $0x194] sm:$0xf] }
 0x3ec   : > { %v7625_v44 = vld [vmem:[%s9018_s29 + $0x8ac] sm:$0xf0]  ;;  %v5508_v39 = vld [vmem:[%s9018_s29 + $0x1b0] sm:$0xf0] }
 0x3ed   : > { %v6658_v45 = vld [vmem:[%s9018_s29 + $0xa90] sm:$0xf]  ;;  %v6403_v51 = vor.u32 %v7625_v44, %v6402_v43  ;;  %4852 = vmatpush.bf16.msrb.mxu3 %v7203_v46  ;;  %v7525_v42 = vld [vmem:[%s9018_s29 + $0x594] sm:$0xf]  ;;  %v5511_v27 = vor.u32 %v7397_v37, %v5508_v39  ;;  %v5767_v46 = vor.u32 %v7461_v40, %v5764_v32 }
 0x3ee   : > { %v7689_v47 = vld [vmem:[%s9018_s29 + $0xaac] sm:$0xf0]  ;;  %v6020_v43 = vld [vmem:[%s9018_s29 + $0x5b0] sm:$0xf0] }
 0x3ef   : > { %v6914_v48 = vld [vmem:[%s9018_s29 + $0xc90] sm:$0xf]  ;;  %v6659_v53 = vor.u32 %v7689_v47, %v6658_v45  ;;  %4814 = vmatpush.bf16.msrb.mxu0 %v6403_v51  ;;  %v7589_v44 = vld [vmem:[%s9018_s29 + $0x794] sm:$0xf]  ;;  %v6023_v47 = vor.u32 %v7525_v42, %v6020_v43 }
 0x3f0   : > { %v7753_v3 = vld [vmem:[%s9018_s29 + $0xcac] sm:$0xf0]  ;;  %v6276_v45 = vld [vmem:[%s9018_s29 + $0x7b0] sm:$0xf0] }
 0x3f1   : > { %v7170_v49 = vld [vmem:[%s9018_s29 + $0xe90] sm:$0xf]  ;;  %v6915_v54 = vor.u32 %v7753_v3, %v6914_v48  ;;  %4827 = vmatpush.bf16.msrb.mxu1 %v6659_v53  ;;  %v7389_v48 = vld [vmem:[%s9018_s29 + $0x154] sm:$0xf]  ;;  %v6279_v29 = vor.u32 %v7589_v44, %v6276_v45 }
 0x3f2   : > { %v7817_v50 = vld [vmem:[%s9018_s29 + $0xeac] sm:$0xf0]  ;;  %v5476_v3 = vld [vmem:[%s9018_s29 + $0x170] sm:$0xf0] }
 0x3f3   : > { %v6370_v55 = vld [vmem:[%s9018_s29 + $0x850] sm:$0xf]  ;;  %v7171_v59 = vor.u32 %v7817_v50, %v7170_v49  ;;  %4840 = vmatpush.bf16.msrb.mxu2 %v6915_v54  ;;  %v5732_v50 = vld [vmem:[%s9018_s29 + $0x370] sm:$0xf0] }
 0x3f4   : > { %v7617_v56 = vld [vmem:[%s9018_s29 + $0x86c] sm:$0xf0]  ;;  %v7517_v51 = vld [vmem:[%s9018_s29 + $0x554] sm:$0xf] }
 0x3f5   : > { %v6626_v57 = vld [vmem:[%s9018_s29 + $0xa50] sm:$0xf]  ;;  %v6371_v1 = vor.u32 %v7617_v56, %v6370_v55  ;;  %4853 = vmatpush.bf16.msrb.mxu3 %v7171_v59  ;;  %v7581_v53 = vld [vmem:[%s9018_s29 + $0x754] sm:$0xf]  ;;  %v9793_v55 = vld [vmem:[#allocation1 + $0x24] sm:$0xff]  ;;  %v5735_v59 = vor.u32 %v7453_v28, %v5732_v50  ;;  %v4625_v28 = vpop.f32.mrf.mxu1 }
 0x3f6   : > { %v7681_v60 = vld [vmem:[%s9018_s29 + $0xa6c] sm:$0xf0]  ;;  %v6244_v54 = vld [vmem:[%s9018_s29 + $0x770] sm:$0xf0] }
 0x3f7   : > { %v6882_v61 = vld [vmem:[%s9018_s29 + $0xc50] sm:$0xf]  ;;  %v6627_v25 = vor.u32 %v7681_v60, %v6626_v57  ;;  %4815 = vmatpush.bf16.msrb.mxu0 %v6371_v1  ;;  %v9796_v56 = vld [vmem:[#allocation1 + $0x3f] sm:$0xff]  ;;  %v5479_v57 = vor.u32 %v7389_v48, %v5476_v3  ;;  %v5991_v60 = vor.u32 %v7517_v51, %v5988_v34 }
 0x3f8   : > { %v7745_v62 = vld [vmem:[%s9018_s29 + $0xc6c] sm:$0xf0]  ;;  %v5700_v1 = vld [vmem:[%s9018_s29 + $0x330] sm:$0xf0] }
 0x3f9   : > { %v7138_v63 = vld [vmem:[%s9018_s29 + $0xe50] sm:$0xf]  ;;  %v6883_v5 = vor.u32 %v7745_v62, %v6882_v61  ;;  %4828 = vmatpush.bf16.msrb.mxu1 %v6627_v25  ;;  %v7381_v61 = vld [vmem:[%s9018_s29 + $0x114] sm:$0xf] }
 0x3fa   : > { %v7809_v0 = vld [vmem:[%s9018_s29 + $0xe6c] sm:$0xf0]  ;;  %v5444_v62 = vld [vmem:[%s9018_s29 + $0x130] sm:$0xf0] }
 0x3fb   : > { %v6338_v2 = vld [vmem:[%s9018_s29 + $0x810] sm:$0xf]  ;;  %v7139_v12 = vor.u32 %v7809_v0, %v7138_v63  ;;  %4841 = vmatpush.bf16.msrb.mxu2 %v6883_v5  ;;  %v7445_v63 = vld [vmem:[%s9018_s29 + $0x314] sm:$0xf]  ;;  %v6247_v0 = vor.u32 %v7581_v53, %v6244_v54 }
 0x3fc   : > { %v7609_v4 = vld [vmem:[%s9018_s29 + $0x82c] sm:$0xf0]  ;;  %v7573_v25 = vld [vmem:[%s9018_s29 + $0x714] sm:$0xf] }
 0x3fd   : > { %v6594_v6 = vld [vmem:[%s9018_s29 + $0xa10] sm:$0xf]  ;;  %v6339_v7 = vor.u32 %v7609_v4, %v6338_v2  ;;  %4854 = vmatpush.bf16.msrb.mxu3 %v7139_v12  ;;  %v7509_v2 = vld [vmem:[%s9018_s29 + $0x514] sm:$0xf] }
 0x3fe   : > { %v7673_v10 = vld [vmem:[%s9018_s29 + $0xa2c] sm:$0xf0]  ;;  %v5956_v4 = vld [vmem:[%s9018_s29 + $0x530] sm:$0xf0] }
 0x3ff   : > { %v6850_v31 = vld [vmem:[%s9018_s29 + $0xc10] sm:$0xf]  ;;  %v6595_v22 = vor.u32 %v7673_v10, %v6594_v6  ;;  %4816 = vmatpush.bf16.msrb.mxu0 %v6339_v7  ;;  %v6212_v5 = vld [vmem:[%s9018_s29 + $0x730] sm:$0xf0]  ;;  %v5447_v6 = vor.u32 %v7381_v61, %v5444_v62  ;;  %v4610_v10 = vpop.f32.mrf.mxu0  ;;  %v5959_v8 = vor.u32 %v7509_v2, %v5956_v4 }
 0x400   : > { %v7737_v14 = vld [vmem:[%s9018_s29 + $0xc2c] sm:$0xf0]  ;;  %v7373_v12 = vld [vmem:[%s9018_s29 + $0xd4] sm:$0xf]  ;;  %v6215_v16 = vor.u32 %v7573_v25, %v6212_v5 }
 0x401   : > { %v7106_v11 = vld [vmem:[%s9018_s29 + $0xe10] sm:$0xf]  ;;  %v6851_v24 = vor.u32 %v7737_v14, %v6850_v31  ;;  %4829 = vmatpush.bf16.msrb.mxu1 %v6595_v22  ;;  %v5703_v31 = vor.u32 %v7445_v63, %v5700_v1  ;;  %v5412_v14 = vld [vmem:[%s9018_s29 + $0xf0] sm:$0xf0] }
 0x402   : > { %v7801_v38 = vld [vmem:[%s9018_s29 + $0xe2c] sm:$0xf0]  ;;  %4817 = vmatmul.bf16.vlgmr.msrb.gmra.mxu0 %v9793_v55  ;;  %v5924_v7 = vld [vmem:[%s9018_s29 + $0x4f0] sm:$0xf0]  ;;  %v5415_v22 = vor.u32 %v7373_v12, %v5412_v14 }
 0x403   : > { %v7107_v33 = vor.u32 %v7801_v38, %v7106_v11  ;;  %4842 = vmatpush.bf16.msrb.mxu2 %v6851_v24  ;;  %4861 = vmatpush.bf16.msra.mxu0 %v5543_v23  ;;  %v9785_v49 = vld [vmem:[#allocation1 + $0x36] sm:$0xff]  ;;  %v4611_v38 = vadd.f32 %v4610_v10, %v9748_v52  ;;  %v5927_v24 = vor.u32 %v7501_v18, %v5924_v7  ;;  %v4636_v23 = vpop.f32.mrf.mxu2 }
 0x404   : > { %4830 = vmatmul.bf16.vlgmr.msrb.gmra.mxu1 %v9799_v58  ;;  %v7437_v11 = vld [vmem:[%s9018_s29 + $0x2d4] sm:$0xf] }
 0x405   : > { %4855 = vmatpush.bf16.msrb.mxu3 %v7107_v33  ;;  %4874 = vmatpush.bf16.msra.mxu1 %v5799_v35  ;;  %v7565_v21 = vld [vmem:[%s9018_s29 + $0x6d4] sm:$0xf]  ;;  %v4624_v20 = vadd.f32 %v4623_v13, %v4611_v38  ;;  %v5671_v52 = vor.u32 %v7437_v11, %v5668_v17 }
 0x406   : > { %4843 = vmatmul.bf16.vlgmr.msrb.gmra.mxu2 %v9785_v49  ;;  %v6180_v19 = vld [vmem:[%s9018_s29 + $0x6f0] sm:$0xf0] }
 0x407   : > { %4887 = vmatpush.bf16.msra.mxu2 %v6055_v36  ;;  %4862 = vmatpush.bf16.msra.mxu0 %v5511_v27  ;;  %v5380_v30 = vld [vmem:[%s9018_s29 + $0xb0] sm:$0xf0]  ;;  %v6183_v35 = vor.u32 %v7565_v21, %v6180_v19  ;;  %v4637_v40 = vadd.f32 %v4636_v23, %v4624_v20  ;;  %v4612_v45 = vpop.f32.mrf.mxu0 }
 0x408   : > { %4856 = vmatmul.bf16.vlgmr.msrb.gmra.mxu3 %v9796_v56  ;;  %v7429_v33 = vld [vmem:[%s9018_s29 + $0x294] sm:$0xf]  ;;  %v5383_v43 = vor.u32 %v7365_v26, %v5380_v30 }
 0x409   : > { %4900 = vmatpush.bf16.msra.mxu3 %v6311_v41  ;;  %4875 = vmatpush.bf16.msra.mxu1 %v5767_v46  ;;  %v5636_v36 = vld [vmem:[%s9018_s29 + $0x2b0] sm:$0xf0]  ;;  %v4649_v41 = vpop.f32.mrf.mxu3 }
 0x40a   : > { %v7493_v37 = vld [vmem:[%s9018_s29 + $0x494] sm:$0xf]  ;;  %v9827_v44 = vadd.f32 %v4649_v41, %v4637_v40  ;;  %v5639_v27 = vor.u32 %v7429_v33, %v5636_v36 }
 0x40b   : > { %4888 = vmatpush.bf16.msra.mxu2 %v6023_v47  ;;  %4863 = vmatpush.bf16.msra.mxu0 %v5479_v57  ;;  %v5892_v39 = vld [vmem:[%s9018_s29 + $0x4b0] sm:$0xf0]  ;;  %v4638_v2 = vpop.f32.mrf.mxu2 }
 0x40c   : > { %v7557_v32 = vld [vmem:[%s9018_s29 + $0x694] sm:$0xf]  ;;  %v5895_v46 = vor.u32 %v7493_v37, %v5892_v39 }
 0x40d   : > { %4901 = vmatpush.bf16.msra.mxu3 %v6279_v29  ;;  %4876 = vmatpush.bf16.msra.mxu1 %v5735_v59  ;;  %v6148_v42 = vld [vmem:[%s9018_s29 + $0x6b0] sm:$0xf0] }
 0x40e   : > { %v7357_v47 = vld [vmem:[%s9018_s29 + $0x54] sm:$0xf]  ;;  %v6151_v29 = vor.u32 %v7557_v32, %v6148_v42 }
 0x40f   : > { %4889 = vmatpush.bf16.msra.mxu2 %v5991_v60  ;;  %4864 = vmatpush.bf16.msra.mxu0 %v5447_v6  ;;  %v5348_v48 = vld [vmem:[%s9018_s29 + $0x70] sm:$0xf0] }
 0x410   : > { %v7421_v3 = vld [vmem:[%s9018_s29 + $0x254] sm:$0xf]  ;;  %v5351_v57 = vor.u32 %v7357_v47, %v5348_v48  ;;  %v9867_v48 = vld [vmem:[#allocation1 + $0x12] sm:$0xff] }
 0x411   : > { %4902 = vmatpush.bf16.msra.mxu3 %v6247_v0  ;;  %4877 = vmatpush.bf16.msra.mxu1 %v5703_v31  ;;  %v5604_v50 = vld [vmem:[%s9018_s29 + $0x270] sm:$0xf0]  ;;  %v4651_v10 = vpop.f32.mrf.mxu3 }
 0x412   : > { %v7485_v51 = vld [vmem:[%s9018_s29 + $0x454] sm:$0xf]  ;;  %v5607_v61 = vor.u32 %v7421_v3, %v5604_v50 }
 0x413   : > { %4890 = vmatpush.bf16.msra.mxu2 %v5959_v8  ;;  %4865 = vmatpush.bf16.msra.mxu0 %v5415_v22  ;;  %v5860_v34 = vld [vmem:[%s9018_s29 + $0x470] sm:$0xf0] }
 0x414   : > { %v7549_v53 = vld [vmem:[%s9018_s29 + $0x654] sm:$0xf]  ;;  %v5863_v62 = vor.u32 %v7485_v51, %v5860_v34 }
 0x415   : > { %4903 = vmatpush.bf16.msra.mxu3 %v6215_v16  ;;  %4878 = vmatpush.bf16.msra.mxu1 %v5671_v52  ;;  %v6116_v54 = vld [vmem:[%s9018_s29 + $0x670] sm:$0xf0] }
 0x416   : > { %v7349_v59 = vld [vmem:[%s9018_s29 + $0x14] sm:$0xf]  ;;  %v6119_v4 = vor.u32 %v7549_v53, %v6116_v54  ;;  %v9879_v53 = vld [vmem:[#allocation1 + $0x9] sm:$0xff] }
 0x417   : > { %4891 = vmatpush.bf16.msra.mxu2 %v5927_v24  ;;  %4866 = vmatpush.bf16.msra.mxu0 %v5383_v43  ;;  %v5316_v60 = vld [vmem:[%s9018_s29 + $0x30] sm:$0xf0] }
 0x418   : > { %v7413_v63 = vld [vmem:[%s9018_s29 + $0x214] sm:$0xf]  ;;  %v5319_v14 = vor.u32 %v7349_v59, %v5316_v60 }
 0x419   : > { %4904 = vmatpush.bf16.msra.mxu3 %v6183_v35  ;;  %4879 = vmatpush.bf16.msra.mxu1 %v5639_v27  ;;  %v5572_v0 = vld [vmem:[%s9018_s29 + $0x230] sm:$0xf0] }
 0x41a   : > { %v7477_v1 = vld [vmem:[%s9018_s29 + $0x414] sm:$0xf]  ;;  %v5575_v16 = vor.u32 %v7413_v63, %v5572_v0 }
 0x41b   : > { %4892 = vmatpush.bf16.msra.mxu2 %v5895_v46  ;;  %v5828_v25 = vld [vmem:[%s9018_s29 + $0x430] sm:$0xf0]  ;;  %4867 = vmatpush.bf16.msra.mxu0 %v5351_v57 }
 0x41c   : > { %v7541_v5 = vld [vmem:[%s9018_s29 + $0x614] sm:$0xf]  ;;  %v5831_v17 = vor.u32 %v7477_v1, %v5828_v25 }
 0x41d   : > { %4905 = vmatpush.bf16.msra.mxu3 %v6151_v29  ;;  %v6084_v6 = vld [vmem:[%s9018_s29 + $0x630] sm:$0xf0]  ;;  %4880 = vmatpush.bf16.msra.mxu1 %v5607_v61  ;;  %v9872_v29 = vld [vmem:[#allocation1] sm:$0xff]  ;;  %v1750_v61 = vperm.slane %v9724_v9, 3 }
 0x41e   : > { %v7661_v31 = vld [vmem:[%s9018_s29 + $0x9d4] sm:$0xf]  ;;  %v6087_v21 = vor.u32 %v7541_v5, %v6084_v6  ;;  %v4662_v5 = vpop.f32.mrf.mxu0 }
 0x41f   : > { %v6564_v8 = vld [vmem:[%s9018_s29 + $0x9f0] sm:$0xf0]  ;;  %4893 = vmatpush.bf16.msra.mxu2 %v5863_v62  ;;  %4868 = vmatpush.bf16.msra.mxu0 %v5319_v14  ;;  %v4675_v14 = vpop.f32.mrf.mxu1 }
 0x420   : > { %v7725_v12 = vld [vmem:[%s9018_s29 + $0xbd4] sm:$0xf]  ;;  %v6567_v19 = vor.u32 %v7661_v31, %v6564_v8 }
 0x421   : > { %v6820_v11 = vld [vmem:[%s9018_s29 + $0xbf0] sm:$0xf0]  ;;  %4906 = vmatpush.bf16.msra.mxu3 %v6119_v4  ;;  %4881 = vmatpush.bf16.msra.mxu1 %v5575_v16 }
 0x422   : > { %v7789_v38 = vld [vmem:[%s9018_s29 + $0xdd4] sm:$0xf]  ;;  %v6823_v20 = vor.u32 %v7725_v12, %v6820_v11  ;;  %4869 = vmatmul.bf16.vlgmr.msra.gmra.mxu0 %v9872_v29  ;;  %v4663_v12 = vadd.f32 %v4662_v5, %v1750_v61 }
 0x423   : > { %v7076_v13 = vld [vmem:[%s9018_s29 + $0xdf0] sm:$0xf0]  ;;  %4894 = vmatpush.bf16.msra.mxu2 %v5831_v17  ;;  %4913 = vmatpush.bf16.msrb.mxu0 %v6567_v19 }
 0x424   : > { %v7853_v18 = vld [vmem:[%s9018_s29 + $0xfd4] sm:$0xf]  ;;  %v7079_v22 = vor.u32 %v7789_v38, %v7076_v13  ;;  %4882 = vmatmul.bf16.vlgmr.msra.gmra.mxu1 %v9879_v53 }
 0x425   : > { %v7332_v7 = vld [vmem:[%s9018_s29 + $0xff0] sm:$0xf0]  ;;  %4907 = vmatpush.bf16.msra.mxu3 %v6087_v21  ;;  %4926 = vmatpush.bf16.msrb.mxu1 %v6823_v20 }
 0x426   : > { %v7653_v52 = vld [vmem:[%s9018_s29 + $0x994] sm:$0xf]  ;;  %v7335_v30 = vor.u32 %v7853_v18, %v7332_v7  ;;  %4895 = vmatmul.bf16.vlgmr.msra.gmra.mxu2 %v9867_v48  ;;  %v4676_v7 = vadd.f32 %v4675_v14, %v4663_v12  ;;  %v7410_v12 = vld [vmem:[%s9018_s29 + $0x1f4] sm:$0xf0] }
 0x427   : > { %v6532_v24 = vld [vmem:[%s9018_s29 + $0x9b0] sm:$0xf0]  ;;  %4939 = vmatpush.bf16.msrb.mxu2 %v7079_v22  ;;  %v5802_v14 = vld [vmem:[%s9018_s29 + $0x3d8] sm:$0xf] }
 0x428   : > { %v7717_v26 = vld [vmem:[%s9018_s29 + $0xb94] sm:$0xf]  ;;  %v6535_v39 = vor.u32 %v7653_v52, %v6532_v24 }
 0x429   : > { %v6788_v33 = vld [vmem:[%s9018_s29 + $0xbb0] sm:$0xf0]  ;;  %4952 = vmatpush.bf16.msrb.mxu3 %v7335_v30 }
 0x42a   : > { %v7781_v23 = vld [vmem:[%s9018_s29 + $0xd94] sm:$0xf]  ;;  %v6791_v40 = vor.u32 %v7717_v26, %v6788_v33  ;;  %4914 = vmatpush.bf16.msrb.mxu0 %v6535_v39  ;;  %v4688_v26 = vpop.f32.mrf.mxu2 }
 0x42b   : > { %v7044_v35 = vld [vmem:[%s9018_s29 + $0xdb0] sm:$0xf0] }
 0x42c   : > { %v7845_v36 = vld [vmem:[%s9018_s29 + $0xf94] sm:$0xf]  ;;  %v7047_v41 = vor.u32 %v7781_v23, %v7044_v35  ;;  %4927 = vmatpush.bf16.msrb.mxu1 %v6791_v40 }
 0x42d   : > { %v7300_v37 = vld [vmem:[%s9018_s29 + $0xfb0] sm:$0xf0] }
 0x42e   : > { %v7645_v32 = vld [vmem:[%s9018_s29 + $0x954] sm:$0xf]  ;;  %v7303_v45 = vor.u32 %v7845_v36, %v7300_v37  ;;  %4940 = vmatpush.bf16.msrb.mxu2 %v7047_v41  ;;  %v4689_v36 = vadd.f32 %v4688_v26, %v4676_v7  ;;  %v4701_v37 = vpop.f32.mrf.mxu3  ;;  %v6314_v7 = vld [vmem:[%s9018_s29 + $0x7d8] sm:$0xf] }
 0x42f   : > { %v6500_v42 = vld [vmem:[%s9018_s29 + $0x970] sm:$0xf0]  ;;  %v7402_v26 = vld [vmem:[%s9018_s29 + $0x1b4] sm:$0xf0] }
 0x430   : > { %v7709_v43 = vld [vmem:[%s9018_s29 + $0xb54] sm:$0xf]  ;;  %v6503_v51 = vor.u32 %v7645_v32, %v6500_v42  ;;  %4953 = vmatpush.bf16.msrb.mxu3 %v7303_v45  ;;  %v9906_v32 = vadd.f32 %v4701_v37, %v4689_v36  ;;  %v4664_v42 = vpop.f32.mrf.mxu0  ;;  %v7530_v36 = vld [vmem:[%s9018_s29 + $0x5b4] sm:$0xf0] }
 0x431   : > { %v6756_v27 = vld [vmem:[%s9018_s29 + $0xb70] sm:$0xf0]  ;;  %v6282_v37 = vld [vmem:[%s9018_s29 + $0x798] sm:$0xf] }
 0x432   : > { %v7773_v46 = vld [vmem:[%s9018_s29 + $0xd54] sm:$0xf]  ;;  %v6759_v54 = vor.u32 %v7709_v43, %v6756_v27  ;;  %4915 = vmatpush.bf16.msrb.mxu0 %v6503_v51 }
 0x433   : > { %v7012_v47 = vld [vmem:[%s9018_s29 + $0xd70] sm:$0xf0] }
 0x434   : > { %v7837_v3 = vld [vmem:[%s9018_s29 + $0xf54] sm:$0xf]  ;;  %v7015_v57 = vor.u32 %v7773_v46, %v7012_v47  ;;  %4928 = vmatpush.bf16.msrb.mxu1 %v6759_v54 }
 0x435   : > { %v7268_v28 = vld [vmem:[%s9018_s29 + $0xf70] sm:$0xf0] }
 0x436   : > { %v9875_v50 = vld [vmem:[#allocation1 + $0x1b] sm:$0xff]  ;;  %v7271_v62 = vor.u32 %v7837_v3, %v7268_v28  ;;  %4941 = vmatpush.bf16.msrb.mxu2 %v7015_v57  ;;  %v4677_v3 = vpop.f32.mrf.mxu1 }
 0x437   : > { %4908 = vmatmul.bf16.vlgmr.msra.gmra.mxu3 %v9875_v50  ;;  %v7637_v34 = vld [vmem:[%s9018_s29 + $0x914] sm:$0xf]  ;;  %v5994_v3 = vld [vmem:[%s9018_s29 + $0x558] sm:$0xf] }
 0x438   : > { %v6468_v59 = vld [vmem:[%s9018_s29 + $0x930] sm:$0xf0]  ;;  %4954 = vmatpush.bf16.msrb.mxu3 %v7271_v62 }
 0x439   : > { %v7701_v60 = vld [vmem:[%s9018_s29 + $0xb14] sm:$0xf]  ;;  %v6471_v25 = vor.u32 %v7637_v34, %v6468_v59 }
 0x43a   : > { %v6724_v63 = vld [vmem:[%s9018_s29 + $0xb30] sm:$0xf0] }
 0x43b   : > { %v7765_v0 = vld [vmem:[%s9018_s29 + $0xd14] sm:$0xf]  ;;  %v6727_v9 = vor.u32 %v7701_v60, %v6724_v63  ;;  %4916 = vmatpush.bf16.msrb.mxu0 %v6471_v25  ;;  %v4690_v25 = vpop.f32.mrf.mxu2 }
 0x43c   : > { %v6980_v1 = vld [vmem:[%s9018_s29 + $0xd30] sm:$0xf0] }
 0x43d   : > { %v7829_v2 = vld [vmem:[%s9018_s29 + $0xf14] sm:$0xf]  ;;  %v6983_v6 = vor.u32 %v7765_v0, %v6980_v1  ;;  %4929 = vmatpush.bf16.msrb.mxu1 %v6727_v9 }
 0x43e   : > { %v7236_v4 = vld [vmem:[%s9018_s29 + $0xf30] sm:$0xf0] }
 0x43f   : > { %v7629_v10 = vld [vmem:[%s9018_s29 + $0x8d4] sm:$0xf]  ;;  %v7239_v11 = vor.u32 %v7829_v2, %v7236_v4  ;;  %4942 = vmatpush.bf16.msrb.mxu2 %v6983_v6 }
 0x440   : > { %v6436_v31 = vld [vmem:[%s9018_s29 + $0x8f0] sm:$0xf0] }
 0x441   : > { %v7693_v8 = vld [vmem:[%s9018_s29 + $0xad4] sm:$0xf]  ;;  %v6439_v21 = vor.u32 %v7629_v10, %v6436_v31  ;;  %4955 = vmatpush.bf16.msrb.mxu3 %v7239_v11  ;;  %v4703_v31 = vpop.f32.mrf.mxu3 }
 0x442   : > { %v6692_v38 = vld [vmem:[%s9018_s29 + $0xaf0] sm:$0xf0]  ;;  %v5674_v31 = vld [vmem:[%s9018_s29 + $0x2d8] sm:$0xf] }
 0x443   : > { %v7757_v13 = vld [vmem:[%s9018_s29 + $0xcd4] sm:$0xf]  ;;  %v6695_v19 = vor.u32 %v7693_v8, %v6692_v38  ;;  %4917 = vmatpush.bf16.msrb.mxu0 %v6439_v21  ;;  %v5546_v8 = vld [vmem:[%s9018_s29 + $0x1d8] sm:$0xf] }
 0x444   : > { %v6948_v16 = vld [vmem:[%s9018_s29 + $0xcf0] sm:$0xf0]  ;;  %v7474_v38 = vld [vmem:[%s9018_s29 + $0x3f4] sm:$0xf0] }
 0x445   : > { %v7821_v17 = vld [vmem:[%s9018_s29 + $0xed4] sm:$0xf]  ;;  %v6951_v20 = vor.u32 %v7757_v13, %v6948_v16  ;;  %4930 = vmatpush.bf16.msrb.mxu1 %v6695_v19  ;;  %v6058_v13 = vld [vmem:[%s9018_s29 + $0x5d8] sm:$0xf] }
 0x446   : > { %v7204_v18 = vld [vmem:[%s9018_s29 + $0xef0] sm:$0xf0]  ;;  %v7538_v16 = vld [vmem:[%s9018_s29 + $0x5f4] sm:$0xf0] }
 0x447   : > { %v7621_v22 = vld [vmem:[%s9018_s29 + $0x894] sm:$0xf]  ;;  %v7207_v30 = vor.u32 %v7821_v17, %v7204_v18  ;;  %4943 = vmatpush.bf16.msrb.mxu2 %v6951_v20  ;;  %v7602_v21 = vld [vmem:[%s9018_s29 + $0x7f4] sm:$0xf0]  ;;  %v5547_v20 = vor.u32 %v7410_v12, %v5546_v8 }
 0x448   : > { %v6404_v52 = vld [vmem:[%s9018_s29 + $0x8b0] sm:$0xf0]  ;;  %v7442_v12 = vld [vmem:[%s9018_s29 + $0x2f4] sm:$0xf0] }
 0x449   : > { %v7685_v24 = vld [vmem:[%s9018_s29 + $0xa94] sm:$0xf]  ;;  %v6407_v41 = vor.u32 %v7621_v22, %v6404_v52  ;;  %4956 = vmatpush.bf16.msrb.mxu3 %v7207_v30  ;;  %v5803_v22 = vor.u32 %v7474_v38, %v5802_v14  ;;  %v6059_v52 = vor.u32 %v7538_v16, %v6058_v13  ;;  %v5770_v30 = vld [vmem:[%s9018_s29 + $0x398] sm:$0xf] }
 0x44a   : > { %v6660_v33 = vld [vmem:[%s9018_s29 + $0xab0] sm:$0xf0]  ;;  %v5930_v14 = vld [vmem:[%s9018_s29 + $0x4d8] sm:$0xf] }
 0x44b   : > { %v7749_v23 = vld [vmem:[%s9018_s29 + $0xc94] sm:$0xf]  ;;  %v6663_v43 = vor.u32 %v7685_v24, %v6660_v33  ;;  %4918 = vmatpush.bf16.msrb.mxu0 %v6407_v41  ;;  %v5514_v24 = vld [vmem:[%s9018_s29 + $0x198] sm:$0xf]  ;;  %v6315_v33 = vor.u32 %v7602_v21, %v6314_v7  ;;  %v4740_v7 = vpop.f32.mrf.mxu2 }
 0x44c   : > { %v6916_v35 = vld [vmem:[%s9018_s29 + $0xcb0] sm:$0xf0]  ;;  %v6186_v13 = vld [vmem:[%s9018_s29 + $0x6d8] sm:$0xf] }
 0x44d   : > { %v7813_v39 = vld [vmem:[%s9018_s29 + $0xe94] sm:$0xf]  ;;  %v6919_v45 = vor.u32 %v7749_v23, %v6916_v35  ;;  %4931 = vmatpush.bf16.msrb.mxu1 %v6663_v43  ;;  %v7466_v23 = vld [vmem:[%s9018_s29 + $0x3b4] sm:$0xf0] }
 0x44e   : > { %v7172_v40 = vld [vmem:[%s9018_s29 + $0xeb0] sm:$0xf0]  ;;  %v6026_v35 = vld [vmem:[%s9018_s29 + $0x598] sm:$0xf]  ;;  %v5771_v41 = vor.u32 %v7466_v23, %v5770_v30 }
 0x44f   : > { %v7613_v27 = vld [vmem:[%s9018_s29 + $0x854] sm:$0xf]  ;;  %v7175_v28 = vor.u32 %v7813_v39, %v7172_v40  ;;  %4944 = vmatpush.bf16.msrb.mxu2 %v6919_v45  ;;  %v7594_v39 = vld [vmem:[%s9018_s29 + $0x7b4] sm:$0xf0]  ;;  %v5515_v40 = vor.u32 %v7402_v26, %v5514_v24  ;;  %v6027_v42 = vor.u32 %v7530_v36, %v6026_v35  ;;  %v4753_v24 = vpop.f32.mrf.mxu3  ;;  %v5189_v36 = vrot.slane %v9682_v15, 3 }
 0x450   : > { %v6372_v46 = vld [vmem:[%s9018_s29 + $0x870] sm:$0xf0]  ;;  %v5482_v43 = vld [vmem:[%s9018_s29 + $0x158] sm:$0xf] }
 0x451   : > { %v7677_v47 = vld [vmem:[%s9018_s29 + $0xa54] sm:$0xf]  ;;  %v6375_v60 = vor.u32 %v7613_v27, %v6372_v46  ;;  %4957 = vmatpush.bf16.msrb.mxu3 %v7175_v28  ;;  %v7394_v45 = vld [vmem:[%s9018_s29 + $0x174] sm:$0xf0]  ;;  %v6283_v46 = vor.u32 %v7594_v39, %v6282_v37 }
 0x452   : > { %v6628_v51 = vld [vmem:[%s9018_s29 + $0xa70] sm:$0xf0]  ;;  %v5738_v27 = vld [vmem:[%s9018_s29 + $0x358] sm:$0xf] }
 0x453   : > { %v7741_v34 = vld [vmem:[%s9018_s29 + $0xc54] sm:$0xf]  ;;  %v6631_v63 = vor.u32 %v7677_v47, %v6628_v51  ;;  %4919 = vmatpush.bf16.msrb.mxu0 %v6375_v60  ;;  %v7458_v47 = vld [vmem:[%s9018_s29 + $0x374] sm:$0xf0] }
 0x454   : > { %v6884_v54 = vld [vmem:[%s9018_s29 + $0xc70] sm:$0xf0]  ;;  %v7522_v28 = vld [vmem:[%s9018_s29 + $0x574] sm:$0xf0] }
 0x455   : > { %v7805_v57 = vld [vmem:[%s9018_s29 + $0xe54] sm:$0xf]  ;;  %v6887_v0 = vor.u32 %v7741_v34, %v6884_v54  ;;  %4932 = vmatpush.bf16.msrb.mxu1 %v6631_v63  ;;  %v6250_v51 = vld [vmem:[%s9018_s29 + $0x758] sm:$0xf]  ;;  %v5739_v54 = vor.u32 %v7458_v47, %v5738_v27 }
 0x456   : > { %v7140_v59 = vld [vmem:[%s9018_s29 + $0xe70] sm:$0xf0]  ;;  %v7586_v34 = vld [vmem:[%s9018_s29 + $0x774] sm:$0xf0] }
 0x457   : > { %v7605_v61 = vld [vmem:[%s9018_s29 + $0x814] sm:$0xf]  ;;  %v7143_v5 = vor.u32 %v7805_v57, %v7140_v59  ;;  %4945 = vmatpush.bf16.msrb.mxu2 %v6887_v0  ;;  %v5995_v57 = vor.u32 %v7522_v28, %v5994_v3  ;;  %v5450_v59 = vld [vmem:[%s9018_s29 + $0x118] sm:$0xf]  ;;  %v5175_v3 = vmax.f32 %v9827_v44, 0.0 }
 0x458   : > { %v6340_v62 = vld [vmem:[%s9018_s29 + $0x830] sm:$0xf0]  ;;  %v7386_v60 = vld [vmem:[%s9018_s29 + $0x134] sm:$0xf0] }
 0x459   : > { %v7669_v1 = vld [vmem:[%s9018_s29 + $0xa14] sm:$0xf]  ;;  %v6343_v11 = vor.u32 %v7605_v61, %v6340_v62  ;;  %4958 = vmatpush.bf16.msrb.mxu3 %v7143_v5  ;;  %v7450_v61 = vld [vmem:[%s9018_s29 + $0x334] sm:$0xf0] }
 0x45a   : > { %v6596_v2 = vld [vmem:[%s9018_s29 + $0xa30] sm:$0xf0]  ;;  %v5962_v62 = vld [vmem:[%s9018_s29 + $0x518] sm:$0xf] }
 0x45b   : > { %v7733_v4 = vld [vmem:[%s9018_s29 + $0xc14] sm:$0xf]  ;;  %v6599_v17 = vor.u32 %v7669_v1, %v6596_v2  ;;  %4920 = vmatpush.bf16.msrb.mxu0 %v6343_v11  ;;  %v7514_v63 = vld [vmem:[%s9018_s29 + $0x534] sm:$0xf0]  ;;  %v4714_v2 = vpop.f32.mrf.mxu0 }
 0x45c   : > { %v6852_v9 = vld [vmem:[%s9018_s29 + $0xc30] sm:$0xf0]  ;;  %v6218_v0 = vld [vmem:[%s9018_s29 + $0x718] sm:$0xf]  ;;  %v5963_v25 = vor.u32 %v7514_v63, %v5962_v62  ;;  %v4715_v5 = vadd.f32 %v4714_v2, %v9906_v32 }
 0x45d   : > { %v7797_v6 = vld [vmem:[%s9018_s29 + $0xe14] sm:$0xf]  ;;  %v6855_v18 = vor.u32 %v7733_v4, %v6852_v9  ;;  %4933 = vmatpush.bf16.msrb.mxu1 %v6599_v17  ;;  %v7578_v1 = vld [vmem:[%s9018_s29 + $0x734] sm:$0xf0]  ;;  %v4727_v9 = vpop.f32.mrf.mxu1  ;;  %v5675_v17 = vor.u32 %v7442_v12, %v5674_v31  ;;  %v5199_v12 = vsel %vm5196_vm0, %v9682_v15, %v5189_v36 }
 0x45e   : > { %v7108_v10 = vld [vmem:[%s9018_s29 + $0xe30] sm:$0xf0]  ;;  %4921 = vmatmul.bf16.vlgmr.msrb.gmra.mxu0 %v9793_v55  ;;  %v5706_v55 = vld [vmem:[%s9018_s29 + $0x318] sm:$0xf]  ;;  %v6219_v8 = vor.u32 %v7578_v1, %v6218_v0  ;;  %v4728_v38 = vadd.f32 %v4727_v9, %v4715_v5 }
 0x45f   : > { %v7111_v19 = vor.u32 %v7797_v6, %v7108_v10  ;;  %4946 = vmatpush.bf16.msrb.mxu2 %v6855_v18  ;;  %4965 = vmatpush.bf16.msra.mxu0 %v5547_v20  ;;  %v5707_v4 = vor.u32 %v7450_v61, %v5706_v55  ;;  %v5418_v6 = vld [vmem:[%s9018_s29 + $0xd8] sm:$0xf] }
 0x460   : > { %4934 = vmatmul.bf16.vlgmr.msrb.gmra.mxu1 %v9799_v58  ;;  %v5451_v58 = vor.u32 %v7386_v60, %v5450_v59  ;;  %v7378_v10 = vld [vmem:[%s9018_s29 + $0xf4] sm:$0xf0] }
 0x461   : > { %4959 = vmatpush.bf16.msrb.mxu3 %v7111_v19  ;;  %4978 = vmatpush.bf16.msra.mxu1 %v5803_v22  ;;  %v7506_v11 = vld [vmem:[%s9018_s29 + $0x4f4] sm:$0xf0]  ;;  %v5419_v32 = vor.u32 %v7378_v10, %v5418_v6  ;;  %v4755_v6 = vpop.f32.mrf.mxu3 }
 0x462   : > { %4947 = vmatmul.bf16.vlgmr.msrb.gmra.mxu2 %v9785_v49  ;;  %v5483_v49 = vor.u32 %v7394_v45, %v5482_v43  ;;  %v7570_v16 = vld [vmem:[%s9018_s29 + $0x6f4] sm:$0xf0]  ;;  %v5931_v18 = vor.u32 %v7506_v11, %v5930_v14 }
 0x463   : > { %4991 = vmatpush.bf16.msra.mxu2 %v6059_v52  ;;  %4966 = vmatpush.bf16.msra.mxu0 %v5515_v40  ;;  %v5386_v21 = vld [vmem:[%s9018_s29 + $0x98] sm:$0xf]  ;;  %v6187_v22 = vor.u32 %v7570_v16, %v6186_v13  ;;  %v4741_v52 = vadd.f32 %v4740_v7, %v4728_v38 }
 0x464   : > { %4960 = vmatmul.bf16.vlgmr.msrb.gmra.mxu3 %v9796_v56  ;;  %v6251_v56 = vor.u32 %v7586_v34, %v6250_v51  ;;  %v7370_v19 = vld [vmem:[%s9018_s29 + $0xb4] sm:$0xf0] }
 0x465   : > { %5004 = vmatpush.bf16.msra.mxu3 %v6315_v33  ;;  %4979 = vmatpush.bf16.msra.mxu1 %v5771_v41  ;;  %v5642_v20 = vld [vmem:[%s9018_s29 + $0x298] sm:$0xf]  ;;  %v4754_v37 = vadd.f32 %v4753_v24, %v4741_v52  ;;  %v5387_v39 = vor.u32 %v7370_v19, %v5386_v21  ;;  %v4716_v41 = vpop.f32.mrf.mxu0  ;;  %v4729_v47 = vpop.f32.mrf.mxu1 }
 0x466   : > { %v7434_v26 = vld [vmem:[%s9018_s29 + $0x2b4] sm:$0xf0] }
 0x467   : > { %4992 = vmatpush.bf16.msra.mxu2 %v6027_v42  ;;  %4967 = vmatpush.bf16.msra.mxu0 %v5483_v49  ;;  %v5898_v30 = vld [vmem:[%s9018_s29 + $0x498] sm:$0xf]  ;;  %v5643_v42 = vor.u32 %v7434_v26, %v5642_v20  ;;  %v5176_v28 = vmax.f32 %v4754_v37, 0.0 }
 0x468   : > { %v7498_v33 = vld [vmem:[%s9018_s29 + $0x4b4] sm:$0xf0] }
 0x469   : > { %5005 = vmatpush.bf16.msra.mxu3 %v6283_v46  ;;  %4980 = vmatpush.bf16.msra.mxu1 %v5739_v54  ;;  %v6154_v23 = vld [vmem:[%s9018_s29 + $0x698] sm:$0xf]  ;;  %v5899_v43 = vor.u32 %v7498_v33, %v5898_v30  ;;  %v5182_v59 = vpack.c.bf16 %v5176_v28, %v5175_v3 }
 0x46a   : > { %v7562_v35 = vld [vmem:[%s9018_s29 + $0x6b4] sm:$0xf0] }
 0x46b   : > { %4993 = vmatpush.bf16.msra.mxu2 %v5995_v57  ;;  %4968 = vmatpush.bf16.msra.mxu0 %v5451_v58  ;;  %v5354_v40 = vld [vmem:[%s9018_s29 + $0x58] sm:$0xf]  ;;  %v6155_v51 = vor.u32 %v7562_v35, %v6154_v23  ;;  %v4742_v58 = vpop.f32.mrf.mxu2  ;;  %v5190_v2 = vrot.slane %v5182_v59, 6 }
 0x46c   : > { %v7362_v45 = vld [vmem:[%s9018_s29 + $0x74] sm:$0xf0] }
 0x46d   : > { %5006 = vmatpush.bf16.msra.mxu3 %v6251_v56  ;;  %4981 = vmatpush.bf16.msra.mxu1 %v5707_v4  ;;  %v5610_v27 = vld [vmem:[%s9018_s29 + $0x258] sm:$0xf]  ;;  %v5355_v60 = vor.u32 %v7362_v45, %v5354_v40  ;;  %v5191_v4 = vrot.slane %v5182_v59, 1 }
 0x46e   : > { %v7426_v46 = vld [vmem:[%s9018_s29 + $0x274] sm:$0xf0] }
 0x46f   : > { %4994 = vmatpush.bf16.msra.mxu2 %v5963_v25  ;;  %4969 = vmatpush.bf16.msra.mxu0 %v5419_v32  ;;  %v5866_v34 = vld [vmem:[%s9018_s29 + $0x458] sm:$0xf]  ;;  %v5611_v61 = vor.u32 %v7426_v46, %v5610_v27  ;;  %v5203_v14 = vsel %vm5200_vm1, %v5190_v2, %v5191_v4 }
 0x470   : > { %v7490_v49 = vld [vmem:[%s9018_s29 + $0x474] sm:$0xf0]  ;;  %v10005_v32 = vsel %vm5204_vm2, %v5199_v12, %v5203_v14 }
 0x471   : > { %5007 = vmatpush.bf16.msra.mxu3 %v6219_v8  ;;  %4982 = vmatpush.bf16.msra.mxu1 %v5675_v17  ;;  %v6122_v54 = vld [vmem:[%s9018_s29 + $0x658] sm:$0xf]  ;;  %v5867_v62 = vor.u32 %v7490_v49, %v5866_v34 }
 0x472   : > { %v7554_v57 = vld [vmem:[%s9018_s29 + $0x674] sm:$0xf0] }
 0x473   : > { %4995 = vmatpush.bf16.msra.mxu2 %v5931_v18  ;;  %4970 = vmatpush.bf16.msra.mxu0 %v5387_v39  ;;  %v5322_v55 = vld [vmem:[%s9018_s29 + $0x18] sm:$0xf]  ;;  %v6123_v25 = vor.u32 %v7554_v57, %v6122_v54 }
 0x474   : > { %v7354_v56 = vld [vmem:[%s9018_s29 + $0x34] sm:$0xf0] }
 0x475   : > { %5008 = vmatpush.bf16.msra.mxu3 %v6187_v22  ;;  %v5578_v44 = vld [vmem:[%s9018_s29 + $0x218] sm:$0xf]  ;;  %4983 = vmatpush.bf16.msra.mxu1 %v5643_v42  ;;  %v5323_v11 = vor.u32 %v7354_v56, %v5322_v55 }
 0x476   : > { %v7418_v63 = vld [vmem:[%s9018_s29 + $0x234] sm:$0xf0] }
 0x477   : > { %4996 = vmatpush.bf16.msra.mxu2 %v5899_v43  ;;  %v5834_v0 = vld [vmem:[%s9018_s29 + $0x418] sm:$0xf]  ;;  %4971 = vmatpush.bf16.msra.mxu0 %v5355_v60  ;;  %v5579_v17 = vor.u32 %v7418_v63, %v5578_v44  ;;  %v4766_v63 = vpop.f32.mrf.mxu0 }
 0x478   : > { %v7482_v1 = vld [vmem:[%s9018_s29 + $0x434] sm:$0xf0] }
 0x479   : > { %5009 = vmatpush.bf16.msra.mxu3 %v6155_v51  ;;  %v6090_v5 = vld [vmem:[%s9018_s29 + $0x618] sm:$0xf]  ;;  %4984 = vmatpush.bf16.msra.mxu1 %v5611_v61  ;;  %v5835_v15 = vor.u32 %v7482_v1, %v5834_v0 }
 0x47a   : > { %v7546_v9 = vld [vmem:[%s9018_s29 + $0x634] sm:$0xf0] }
 0x47b   : > { %v6570_v10 = vld [vmem:[%s9018_s29 + $0x9d8] sm:$0xf]  ;;  %4997 = vmatpush.bf16.msra.mxu2 %v5867_v62  ;;  %v6091_v21 = vor.u32 %v7546_v9, %v6090_v5  ;;  %4972 = vmatpush.bf16.msra.mxu0 %v5323_v11  ;;  %v4779_v5 = vpop.f32.mrf.mxu1 }
 0x47c   : > { %v7666_v31 = vld [vmem:[%s9018_s29 + $0x9f4] sm:$0xf0] }
 0x47d   : > { %v6826_v8 = vld [vmem:[%s9018_s29 + $0xbd8] sm:$0xf]  ;;  %5010 = vmatpush.bf16.msra.mxu3 %v6123_v25  ;;  %v6571_v19 = vor.u32 %v7666_v31, %v6570_v10  ;;  %4985 = vmatpush.bf16.msra.mxu1 %v5579_v17 }
 0x47e   : > { %v7730_v38 = vld [vmem:[%s9018_s29 + $0xbf4] sm:$0xf0]  ;;  %4973 = vmatmul.bf16.vlgmr.msra.gmra.mxu0 %v9872_v29 }
 0x47f   : > { %v7082_v13 = vld [vmem:[%s9018_s29 + $0xdd8] sm:$0xf]  ;;  %v6827_v20 = vor.u32 %v7730_v38, %v6826_v8  ;;  %4998 = vmatpush.bf16.msra.mxu2 %v5835_v15  ;;  %5017 = vmatpush.bf16.msrb.mxu0 %v6571_v19 }
 0x480   : > { %v7794_v16 = vld [vmem:[%s9018_s29 + $0xdf4] sm:$0xf0]  ;;  %4986 = vmatmul.bf16.vlgmr.msra.gmra.mxu1 %v9879_v53 }
 0x481   : > { %v7338_v18 = vld [vmem:[%s9018_s29 + $0xfd8] sm:$0xf]  ;;  %v7083_v22 = vor.u32 %v7794_v16, %v7082_v13  ;;  %5011 = vmatpush.bf16.msra.mxu3 %v6091_v21  ;;  %5030 = vmatpush.bf16.msrb.mxu1 %v6827_v20 }
 0x482   : > { %v7858_v7 = vld [vmem:[%s9018_s29 + $0xff4] sm:$0xf0]  ;;  %4999 = vmatmul.bf16.vlgmr.msra.gmra.mxu2 %v9867_v48 }
 0x483   : > { %v6538_v52 = vld [vmem:[%s9018_s29 + $0x998] sm:$0xf]  ;;  %v7339_v30 = vor.u32 %v7858_v7, %v7338_v18  ;;  %5043 = vmatpush.bf16.msrb.mxu2 %v7083_v22  ;;  %v4792_v18 = vpop.f32.mrf.mxu2 }
 0x484   : > { %v7658_v24 = vld [vmem:[%s9018_s29 + $0x9b4] sm:$0xf0]  ;;  %5012 = vmatmul.bf16.vlgmr.msra.gmra.mxu3 %v9875_v50 }
 0x485   : > { %v6794_v26 = vld [vmem:[%s9018_s29 + $0xb98] sm:$0xf]  ;;  %v6539_v39 = vor.u32 %v7658_v24, %v6538_v52  ;;  %5056 = vmatpush.bf16.msrb.mxu3 %v7339_v30  ;;  %v4805_v52 = vpop.f32.mrf.mxu3 }
 0x486   : > { %v7722_v33 = vld [vmem:[%s9018_s29 + $0xbb4] sm:$0xf0] }
 0x487   : > { %v7050_v23 = vld [vmem:[%s9018_s29 + $0xd98] sm:$0xf]  ;;  %v6795_v40 = vor.u32 %v7722_v33, %v6794_v26  ;;  %5018 = vmatpush.bf16.msrb.mxu0 %v6539_v39 }
 0x488   : > { %v7786_v35 = vld [vmem:[%s9018_s29 + $0xdb4] sm:$0xf0] }
 0x489   : > { %v7306_v36 = vld [vmem:[%s9018_s29 + $0xf98] sm:$0xf]  ;;  %v7051_v41 = vor.u32 %v7786_v35, %v7050_v23  ;;  %5031 = vmatpush.bf16.msrb.mxu1 %v6795_v40  ;;  %v4768_v23 = vpop.f32.mrf.mxu0 }
 0x48a   : > { %v7850_v37 = vld [vmem:[%s9018_s29 + $0xfb4] sm:$0xf0]  ;;  %v5996_v23 = vld [vmem:[%s9018_s29 + $0x578] sm:$0xf0] }
 0x48b   : > { %v6506_v42 = vld [vmem:[%s9018_s29 + $0x958] sm:$0xf]  ;;  %v7307_v27 = vor.u32 %v7850_v37, %v7306_v36  ;;  %5044 = vmatpush.bf16.msrb.mxu2 %v7051_v41  ;;  %v4781_v41 = vpop.f32.mrf.mxu1 }
 0x48c   : > { %v7650_v43 = vld [vmem:[%s9018_s29 + $0x974] sm:$0xf0]  ;;  %v10108_v41 = vld [vmem:[#allocation1 + $0x2d] sm:$0xff] }
 0x48d   : > { %v6762_v45 = vld [vmem:[%s9018_s29 + $0xb58] sm:$0xf]  ;;  %v6507_v34 = vor.u32 %v7650_v43, %v6506_v42  ;;  %5057 = vmatpush.bf16.msrb.mxu3 %v7307_v27 }
 0x48e   : > { %v7714_v46 = vld [vmem:[%s9018_s29 + $0xb74] sm:$0xf0] }
 0x48f   : > { %v7018_v47 = vld [vmem:[%s9018_s29 + $0xd58] sm:$0xf]  ;;  %v6763_v54 = vor.u32 %v7714_v46, %v6762_v45  ;;  %5019 = vmatpush.bf16.msrb.mxu0 %v6507_v34 }
 0x490   : > { %v7778_v3 = vld [vmem:[%s9018_s29 + $0xd74] sm:$0xf0] }
 0x491   : > { %v7274_v28 = vld [vmem:[%s9018_s29 + $0xf58] sm:$0xf]  ;;  %v7019_v48 = vor.u32 %v7778_v3, %v7018_v47  ;;  %5032 = vmatpush.bf16.msrb.mxu1 %v6763_v54 }
 0x492   : > { %v7842_v51 = vld [vmem:[%s9018_s29 + $0xf74] sm:$0xf0] }
 0x493   : > { %v6474_v49 = vld [vmem:[%s9018_s29 + $0x918] sm:$0xf]  ;;  %v7275_v50 = vor.u32 %v7842_v51, %v7274_v28  ;;  %5045 = vmatpush.bf16.msrb.mxu2 %v7019_v48 }
 0x494   : > { %v7642_v57 = vld [vmem:[%s9018_s29 + $0x934] sm:$0xf0] }
 0x495   : > { %v6730_v59 = vld [vmem:[%s9018_s29 + $0xb18] sm:$0xf]  ;;  %v6475_v62 = vor.u32 %v7642_v57, %v6474_v49  ;;  %5058 = vmatpush.bf16.msrb.mxu3 %v7275_v50 }
 0x496   : > { %v10033_v60 = vld [vmem:[%s9433_s8] sm:$0xff] }
 0x497   : > { %v1751_v29 = vperm.slane %v10033_v60, 4  ;;  %v7706_v55 = vld [vmem:[%s9018_s29 + $0xb34] sm:$0xf0]  ;;  %5020 = vmatpush.bf16.msrb.mxu0 %v6475_v62  ;;  %v7470_v62 = vld [vmem:[%s9018_s29 + $0x3dc] sm:$0xf] }
 0x498   : > { %v6986_v56 = vld [vmem:[%s9018_s29 + $0xd18] sm:$0xf]  ;;  %v6731_v0 = vor.u32 %v7706_v55, %v6730_v59  ;;  %v4794_v59 = vpop.f32.mrf.mxu2 }
 0x499   : > { %v7770_v44 = vld [vmem:[%s9018_s29 + $0xd34] sm:$0xf0]  ;;  %v4767_v25 = vadd.f32 %v4766_v63, %v1751_v29 }
 0x49a   : > { %v7242_v61 = vld [vmem:[%s9018_s29 + $0xf18] sm:$0xf]  ;;  %v6987_v1 = vor.u32 %v7770_v44, %v6986_v56  ;;  %5033 = vmatpush.bf16.msrb.mxu1 %v6731_v0  ;;  %v4807_v44 = vpop.f32.mrf.mxu3  ;;  %v5804_v0 = vld [vmem:[%s9018_s29 + $0x3f8] sm:$0xf0] }
 0x49b   : > { %v7834_v53 = vld [vmem:[%s9018_s29 + $0xf34] sm:$0xf0]  ;;  %v4780_v14 = vadd.f32 %v4779_v5, %v4767_v25  ;;  %v7598_v25 = vld [vmem:[%s9018_s29 + $0x7dc] sm:$0xf]  ;;  %v4831_v44 = vpop.f32.mrf.mxu1 }
 0x49c   : > { %v6442_v58 = vld [vmem:[%s9018_s29 + $0x8d8] sm:$0xf]  ;;  %v7243_v9 = vor.u32 %v7834_v53, %v7242_v61  ;;  %5046 = vmatpush.bf16.msrb.mxu2 %v6987_v1  ;;  %v7406_v61 = vld [vmem:[%s9018_s29 + $0x1dc] sm:$0xf] }
 0x49d   : > { %v7634_v2 = vld [vmem:[%s9018_s29 + $0x8f4] sm:$0xf0]  ;;  %v4793_v22 = vadd.f32 %v4792_v18, %v4780_v14  ;;  %v5548_v53 = vld [vmem:[%s9018_s29 + $0x1f8] sm:$0xf0] }
 0x49e   : > { %v6698_v4 = vld [vmem:[%s9018_s29 + $0xad8] sm:$0xf]  ;;  %v6443_v11 = vor.u32 %v7634_v2, %v6442_v58  ;;  %5059 = vmatpush.bf16.msrb.mxu3 %v7243_v9  ;;  %v7534_v1 = vld [vmem:[%s9018_s29 + $0x5dc] sm:$0xf] }
 0x49f   : > { %v7698_v6 = vld [vmem:[%s9018_s29 + $0xaf4] sm:$0xf0]  ;;  %v10057_v33 = vadd.f32 %v4805_v52, %v4793_v22  ;;  %v6060_v58 = vld [vmem:[%s9018_s29 + $0x5f8] sm:$0xf0] }
 0x4a0   : > { %v6954_v10 = vld [vmem:[%s9018_s29 + $0xcd8] sm:$0xf]  ;;  %v6699_v38 = vor.u32 %v7698_v6, %v6698_v4  ;;  %5021 = vmatpush.bf16.msrb.mxu0 %v6443_v11  ;;  %v6316_v5 = vld [vmem:[%s9018_s29 + $0x7f8] sm:$0xf0]  ;;  %v5551_v6 = vor.u32 %v7406_v61, %v5548_v53 }
 0x4a1   : > { %v7762_v31 = vld [vmem:[%s9018_s29 + $0xcf4] sm:$0xf0]  ;;  %v7462_v14 = vld [vmem:[%s9018_s29 + $0x39c] sm:$0xf]  ;;  %v6319_v11 = vor.u32 %v7598_v25, %v6316_v5 }
 0x4a2   : > { %v7210_v8 = vld [vmem:[%s9018_s29 + $0xed8] sm:$0xf]  ;;  %v6955_v13 = vor.u32 %v7762_v31, %v6954_v10  ;;  %5034 = vmatpush.bf16.msrb.mxu1 %v6699_v38  ;;  %v5807_v10 = vor.u32 %v7470_v62, %v5804_v0  ;;  %v6063_v31 = vor.u32 %v7534_v1, %v6060_v58  ;;  %v5772_v38 = vld [vmem:[%s9018_s29 + $0x3b8] sm:$0xf0] }
 0x4a3   : > { %v7826_v12 = vld [vmem:[%s9018_s29 + $0xef4] sm:$0xf0]  ;;  %v7454_v22 = vld [vmem:[%s9018_s29 + $0x35c] sm:$0xf] }
 0x4a4   : > { %v6410_v16 = vld [vmem:[%s9018_s29 + $0x898] sm:$0xf]  ;;  %v7211_v7 = vor.u32 %v7826_v12, %v7210_v8  ;;  %5047 = vmatpush.bf16.msrb.mxu2 %v6955_v13  ;;  %v7398_v8 = vld [vmem:[%s9018_s29 + $0x19c] sm:$0xf] }
 0x4a5   : > { %v7626_v17 = vld [vmem:[%s9018_s29 + $0x8b4] sm:$0xf0]  ;;  %v5516_v12 = vld [vmem:[%s9018_s29 + $0x1b8] sm:$0xf0] }
 0x4a6   : > { %v6666_v15 = vld [vmem:[%s9018_s29 + $0xa98] sm:$0xf]  ;;  %v6411_v30 = vor.u32 %v7626_v17, %v6410_v16  ;;  %5060 = vmatpush.bf16.msrb.mxu3 %v7211_v7  ;;  %v7526_v13 = vld [vmem:[%s9018_s29 + $0x59c] sm:$0xf]  ;;  %v5519_v18 = vor.u32 %v7398_v8, %v5516_v12  ;;  %v5775_v7 = vor.u32 %v7462_v14, %v5772_v38 }
 0x4a7   : > { %v7690_v21 = vld [vmem:[%s9018_s29 + $0xab4] sm:$0xf0]  ;;  %v6028_v16 = vld [vmem:[%s9018_s29 + $0x5b8] sm:$0xf0] }
 0x4a8   : > { %v6922_v19 = vld [vmem:[%s9018_s29 + $0xc98] sm:$0xf]  ;;  %v6667_v35 = vor.u32 %v7690_v21, %v6666_v15  ;;  %5022 = vmatpush.bf16.msrb.mxu0 %v6411_v30  ;;  %v7590_v17 = vld [vmem:[%s9018_s29 + $0x79c] sm:$0xf]  ;;  %v6031_v21 = vor.u32 %v7526_v13, %v6028_v16 }
 0x4a9   : > { %v7754_v20 = vld [vmem:[%s9018_s29 + $0xcb4] sm:$0xf0]  ;;  %v6284_v15 = vld [vmem:[%s9018_s29 + $0x7b8] sm:$0xf0] }
 0x4aa   : > { %v7178_v24 = vld [vmem:[%s9018_s29 + $0xe98] sm:$0xf]  ;;  %v6923_v36 = vor.u32 %v7754_v20, %v6922_v19  ;;  %5035 = vmatpush.bf16.msrb.mxu1 %v6667_v35  ;;  %v7390_v19 = vld [vmem:[%s9018_s29 + $0x15c] sm:$0xf]  ;;  %v6287_v52 = vor.u32 %v7590_v17, %v6284_v15 }
 0x4ab   : > { %v7818_v26 = vld [vmem:[%s9018_s29 + $0xeb4] sm:$0xf0]  ;;  %v5484_v20 = vld [vmem:[%s9018_s29 + $0x178] sm:$0xf0] }
 0x4ac   : > { %v6378_v37 = vld [vmem:[%s9018_s29 + $0x858] sm:$0xf]  ;;  %v7179_v42 = vor.u32 %v7818_v26, %v7178_v24  ;;  %5048 = vmatpush.bf16.msrb.mxu2 %v6923_v36  ;;  %v10094_v24 = vld [vmem:[#allocation1 + $0x36] sm:$0xff]  ;;  %v5740_v26 = vld [vmem:[%s9018_s29 + $0x378] sm:$0xf0] }
 0x4ad   : > { %v7618_v39 = vld [vmem:[%s9018_s29 + $0x874] sm:$0xf0]  ;;  %v7518_v30 = vld [vmem:[%s9018_s29 + $0x55c] sm:$0xf] }
 0x4ae   : > { %v6634_v40 = vld [vmem:[%s9018_s29 + $0xa58] sm:$0xf]  ;;  %v6379_v3 = vor.u32 %v7618_v39, %v6378_v37  ;;  %5061 = vmatpush.bf16.msrb.mxu3 %v7179_v42  ;;  %v7582_v35 = vld [vmem:[%s9018_s29 + $0x75c] sm:$0xf]  ;;  %v5743_v42 = vor.u32 %v7454_v22, %v5740_v26  ;;  %v4833_v22 = vpop.f32.mrf.mxu1 }
 0x4af   : > { %v7682_v43 = vld [vmem:[%s9018_s29 + $0xa74] sm:$0xf0]  ;;  %v6252_v36 = vld [vmem:[%s9018_s29 + $0x778] sm:$0xf0] }
 0x4b0   : > { %v6890_v45 = vld [vmem:[%s9018_s29 + $0xc58] sm:$0xf]  ;;  %v6635_v34 = vor.u32 %v7682_v43, %v6634_v40  ;;  %5023 = vmatpush.bf16.msrb.mxu0 %v6379_v3  ;;  %v10102_v37 = vld [vmem:[#allocation1 + $0x24] sm:$0xff]  ;;  %v5487_v40 = vor.u32 %v7390_v19, %v5484_v20  ;;  %v5999_v43 = vor.u32 %v7518_v30, %v5996_v23 }
 0x4b1   : > { %v7746_v27 = vld [vmem:[%s9018_s29 + $0xc74] sm:$0xf0]  ;;  %v5708_v3 = vld [vmem:[%s9018_s29 + $0x338] sm:$0xf0] }
 0x4b2   : > { %v7146_v46 = vld [vmem:[%s9018_s29 + $0xe58] sm:$0xf]  ;;  %v6891_v49 = vor.u32 %v7746_v27, %v6890_v45  ;;  %5036 = vmatpush.bf16.msrb.mxu1 %v6635_v34  ;;  %v7382_v45 = vld [vmem:[%s9018_s29 + $0x11c] sm:$0xf] }
 0x4b3   : > { %v7810_v47 = vld [vmem:[%s9018_s29 + $0xe74] sm:$0xf0]  ;;  %v5452_v27 = vld [vmem:[%s9018_s29 + $0x138] sm:$0xf0] }
 0x4b4   : > { %v6346_v28 = vld [vmem:[%s9018_s29 + $0x818] sm:$0xf]  ;;  %v7147_v29 = vor.u32 %v7810_v47, %v7146_v46  ;;  %5049 = vmatpush.bf16.msrb.mxu2 %v6891_v49  ;;  %v7446_v46 = vld [vmem:[%s9018_s29 + $0x31c] sm:$0xf]  ;;  %v6255_v47 = vor.u32 %v7582_v35, %v6252_v36 }
 0x4b5   : > { %v7610_v51 = vld [vmem:[%s9018_s29 + $0x834] sm:$0xf0]  ;;  %v7574_v34 = vld [vmem:[%s9018_s29 + $0x71c] sm:$0xf] }
 0x4b6   : > { %v6602_v54 = vld [vmem:[%s9018_s29 + $0xa18] sm:$0xf]  ;;  %v6347_v63 = vor.u32 %v7610_v51, %v6346_v28  ;;  %5062 = vmatpush.bf16.msrb.mxu3 %v7147_v29  ;;  %v7510_v28 = vld [vmem:[%s9018_s29 + $0x51c] sm:$0xf] }
 0x4b7   : > { %v7674_v48 = vld [vmem:[%s9018_s29 + $0xa34] sm:$0xf0]  ;;  %v5964_v51 = vld [vmem:[%s9018_s29 + $0x538] sm:$0xf0] }
 0x4b8   : > { %v6858_v57 = vld [vmem:[%s9018_s29 + $0xc18] sm:$0xf]  ;;  %v6603_v2 = vor.u32 %v7674_v48, %v6602_v54  ;;  %5024 = vmatpush.bf16.msrb.mxu0 %v6347_v63  ;;  %v6220_v49 = vld [vmem:[%s9018_s29 + $0x738] sm:$0xf0]  ;;  %v5455_v54 = vor.u32 %v7382_v45, %v5452_v27  ;;  %v4818_v48 = vpop.f32.mrf.mxu0  ;;  %v5967_v59 = vor.u32 %v7510_v28, %v5964_v51 }
 0x4b9   : > { %v7738_v50 = vld [vmem:[%s9018_s29 + $0xc34] sm:$0xf0]  ;;  %v7374_v29 = vld [vmem:[%s9018_s29 + $0xdc] sm:$0xf]  ;;  %v6223_v61 = vor.u32 %v7574_v34, %v6220_v49 }
 0x4ba   : > { %v7114_v55 = vld [vmem:[%s9018_s29 + $0xe18] sm:$0xf]  ;;  %v6859_v4 = vor.u32 %v7738_v50, %v6858_v57  ;;  %5037 = vmatpush.bf16.msrb.mxu1 %v6603_v2  ;;  %v5711_v57 = vor.u32 %v7446_v46, %v5708_v3  ;;  %v5420_v50 = vld [vmem:[%s9018_s29 + $0xf8] sm:$0xf0] }
 0x4bb   : > { %v7802_v56 = vld [vmem:[%s9018_s29 + $0xe34] sm:$0xf0]  ;;  %5025 = vmatmul.bf16.vlgmr.msrb.gmra.mxu0 %v10102_v37  ;;  %v5676_v53 = vld [vmem:[%s9018_s29 + $0x2f8] sm:$0xf0]  ;;  %v5423_v2 = vor.u32 %v7374_v29, %v5420_v50 }
 0x4bc   : > { %v7115_v9 = vor.u32 %v7802_v56, %v7114_v55  ;;  %5050 = vmatpush.bf16.msrb.mxu2 %v6859_v4  ;;  %5069 = vmatpush.bf16.msra.mxu0 %v5551_v6  ;;  %v10105_v39 = vld [vmem:[#allocation1 + $0x3f] sm:$0xff]  ;;  %v4819_v56 = vadd.f32 %v4818_v48, %v10057_v33  ;;  %v4844_v6 = vpop.f32.mrf.mxu2 }
 0x4bd   : > { %5038 = vmatmul.bf16.vlgmr.msrb.gmra.mxu1 %v10108_v41  ;;  %v7438_v55 = vld [vmem:[%s9018_s29 + $0x2dc] sm:$0xf] }
 0x4be   : > { %5063 = vmatpush.bf16.msrb.mxu3 %v7115_v9  ;;  %5082 = vmatpush.bf16.msra.mxu1 %v5807_v10  ;;  %v7502_v62 = vld [vmem:[%s9018_s29 + $0x4dc] sm:$0xf]  ;;  %v4832_v58 = vadd.f32 %v4831_v44, %v4819_v56  ;;  %v5679_v33 = vor.u32 %v7438_v55, %v5676_v53 }
 0x4bf   : > { %5051 = vmatmul.bf16.vlgmr.msrb.gmra.mxu2 %v10094_v24  ;;  %v5932_v63 = vld [vmem:[%s9018_s29 + $0x4f8] sm:$0xf0] }
 0x4c0   : > { %5095 = vmatpush.bf16.msra.mxu2 %v6063_v31  ;;  %5070 = vmatpush.bf16.msra.mxu0 %v5519_v18  ;;  %v7566_v0 = vld [vmem:[%s9018_s29 + $0x6dc] sm:$0xf]  ;;  %v5935_v4 = vor.u32 %v7502_v62, %v5932_v63  ;;  %v4845_v14 = vadd.f32 %v4844_v6, %v4832_v58  ;;  %v4820_v15 = vpop.f32.mrf.mxu0 }
 0x4c1   : > { %5064 = vmatmul.bf16.vlgmr.msrb.gmra.mxu3 %v10105_v39  ;;  %v6188_v1 = vld [vmem:[%s9018_s29 + $0x6f8] sm:$0xf0] }
 0x4c2   : > { %5108 = vmatpush.bf16.msra.mxu3 %v6319_v11  ;;  %5083 = vmatpush.bf16.msra.mxu1 %v5775_v7  ;;  %v7366_v25 = vld [vmem:[%s9018_s29 + $0x9c] sm:$0xf]  ;;  %v6191_v10 = vor.u32 %v7566_v0, %v6188_v1  ;;  %v4857_v11 = vpop.f32.mrf.mxu3 }
 0x4c3   : > { %v5388_v5 = vld [vmem:[%s9018_s29 + $0xb8] sm:$0xf0]  ;;  %v10136_v17 = vadd.f32 %v4857_v11, %v4845_v14 }
 0x4c4   : > { %5096 = vmatpush.bf16.msra.mxu2 %v6031_v21  ;;  %5071 = vmatpush.bf16.msra.mxu0 %v5487_v40  ;;  %v7430_v9 = vld [vmem:[%s9018_s29 + $0x29c] sm:$0xf]  ;;  %v5391_v16 = vor.u32 %v7366_v25, %v5388_v5  ;;  %v4846_v28 = vpop.f32.mrf.mxu2 }
 0x4c5   : > { %v5644_v31 = vld [vmem:[%s9018_s29 + $0x2b8] sm:$0xf0] }
 0x4c6   : > { %5109 = vmatpush.bf16.msra.mxu3 %v6287_v52  ;;  %5084 = vmatpush.bf16.msra.mxu1 %v5743_v42  ;;  %v7494_v8 = vld [vmem:[%s9018_s29 + $0x49c] sm:$0xf]  ;;  %v5647_v18 = vor.u32 %v7430_v9, %v5644_v31 }
 0x4c7   : > { %v5900_v12 = vld [vmem:[%s9018_s29 + $0x4b8] sm:$0xf0] }
 0x4c8   : > { %5097 = vmatpush.bf16.msra.mxu2 %v5999_v43  ;;  %5072 = vmatpush.bf16.msra.mxu0 %v5455_v54  ;;  %v7558_v38 = vld [vmem:[%s9018_s29 + $0x69c] sm:$0xf]  ;;  %v5903_v7 = vor.u32 %v7494_v8, %v5900_v12 }
 0x4c9   : > { %v6156_v13 = vld [vmem:[%s9018_s29 + $0x6b8] sm:$0xf0] }
 0x4ca   : > { %5110 = vmatpush.bf16.msra.mxu3 %v6255_v47  ;;  %5085 = vmatpush.bf16.msra.mxu1 %v5711_v57  ;;  %v7358_v21 = vld [vmem:[%s9018_s29 + $0x5c] sm:$0xf]  ;;  %v6159_v52 = vor.u32 %v7558_v38, %v6156_v13  ;;  %v4859_v48 = vpop.f32.mrf.mxu3 }
 0x4cb   : > { %v5356_v19 = vld [vmem:[%s9018_s29 + $0x78] sm:$0xf0] }
 0x4cc   : > { %5098 = vmatpush.bf16.msra.mxu2 %v5967_v59  ;;  %5073 = vmatpush.bf16.msra.mxu0 %v5423_v2  ;;  %v7422_v20 = vld [vmem:[%s9018_s29 + $0x25c] sm:$0xf]  ;;  %v5359_v40 = vor.u32 %v7358_v21, %v5356_v19 }
 0x4cd   : > { %v5612_v26 = vld [vmem:[%s9018_s29 + $0x278] sm:$0xf0] }
 0x4ce   : > { %5111 = vmatpush.bf16.msra.mxu3 %v6223_v61  ;;  %5086 = vmatpush.bf16.msra.mxu1 %v5679_v33  ;;  %v7486_v30 = vld [vmem:[%s9018_s29 + $0x45c] sm:$0xf]  ;;  %v5615_v45 = vor.u32 %v7422_v20, %v5612_v26  ;;  %v7907_v26 = vld [vmem:[#allocation1 + $0x1b] sm:$0xff] }
 0x4cf   : > { %v5868_v23 = vld [vmem:[%s9018_s29 + $0x478] sm:$0xf0] }
 0x4d0   : > { %5099 = vmatpush.bf16.msra.mxu2 %v5935_v4  ;;  %v7550_v35 = vld [vmem:[%s9018_s29 + $0x65c] sm:$0xf]  ;;  %5074 = vmatpush.bf16.msra.mxu0 %v5391_v16  ;;  %v5871_v27 = vor.u32 %v7486_v30, %v5868_v23  ;;  %v7908_v23 = vld [vmem:[#allocation1 + $0x9] sm:$0xff] }
 0x4d1   : > { %v6124_v36 = vld [vmem:[%s9018_s29 + $0x678] sm:$0xf0] }
 0x4d2   : > { %5112 = vmatpush.bf16.msra.mxu3 %v6191_v10  ;;  %v7350_v42 = vld [vmem:[%s9018_s29 + $0x1c] sm:$0xf]  ;;  %5087 = vmatpush.bf16.msra.mxu1 %v5647_v18  ;;  %v6127_v51 = vor.u32 %v7550_v35, %v6124_v36  ;;  %v7905_v18 = vld [vmem:[#allocation1 + $0x12] sm:$0xff] }
 0x4d3   : > { %v5324_v43 = vld [vmem:[%s9018_s29 + $0x38] sm:$0xf0] }
 0x4d4   : > { %5100 = vmatpush.bf16.msra.mxu2 %v5903_v7  ;;  %v7414_v46 = vld [vmem:[%s9018_s29 + $0x21c] sm:$0xf]  ;;  %5075 = vmatpush.bf16.msra.mxu0 %v5359_v40  ;;  %v5327_v50 = vor.u32 %v7350_v42, %v5324_v43 }
 0x4d5   : > { %v5580_v47 = vld [vmem:[%s9018_s29 + $0x238] sm:$0xf0] }
 0x4d6   : > { %v7478_v3 = vld [vmem:[%s9018_s29 + $0x41c] sm:$0xf]  ;;  %5113 = vmatpush.bf16.msra.mxu3 %v6159_v52  ;;  %5088 = vmatpush.bf16.msra.mxu1 %v5615_v45  ;;  %v5583_v61 = vor.u32 %v7414_v46, %v5580_v47  ;;  %v1752_v45 = vperm.slane %v10033_v60, 5 }
 0x4d7   : > { %v5836_v34 = vld [vmem:[%s9018_s29 + $0x438] sm:$0xf0] }
 0x4d8   : > { %v7542_v49 = vld [vmem:[%s9018_s29 + $0x61c] sm:$0xf]  ;;  %5101 = vmatpush.bf16.msra.mxu2 %v5871_v27  ;;  %v5839_v53 = vor.u32 %v7478_v3, %v5836_v34  ;;  %5076 = vmatpush.bf16.msra.mxu0 %v5327_v50 }
 0x4d9   : > { %v6092_v54 = vld [vmem:[%s9018_s29 + $0x638] sm:$0xf0] }
 0x4da   : > { %v7662_v57 = vld [vmem:[%s9018_s29 + $0x9dc] sm:$0xf]  ;;  %5114 = vmatpush.bf16.msra.mxu3 %v6127_v51  ;;  %v6095_v0 = vor.u32 %v7542_v49, %v6092_v54  ;;  %5089 = vmatpush.bf16.msra.mxu1 %v5583_v61  ;;  %v4870_v49 = vpop.f32.mrf.mxu0 }
 0x4db   : > { %v6572_v59 = vld [vmem:[%s9018_s29 + $0x9f8] sm:$0xf0]  ;;  %v4871_v50 = vadd.f32 %v4870_v49, %v1752_v45 }
 0x4dc   : > { %v7726_v29 = vld [vmem:[%s9018_s29 + $0xbdc] sm:$0xf]  ;;  %v6575_v1 = vor.u32 %v7662_v57, %v6572_v59  ;;  %5102 = vmatpush.bf16.msra.mxu2 %v5839_v53 }
 0x4dd   : > { %v6828_v55 = vld [vmem:[%s9018_s29 + $0xbf8] sm:$0xf0]  ;;  %5090 = vmatmul.bf16.vlgmr.msra.gmra.mxu1 %v7908_v23 }
 0x4de   : > { %v7790_v56 = vld [vmem:[%s9018_s29 + $0xddc] sm:$0xf]  ;;  %v6831_v58 = vor.u32 %v7726_v29, %v6828_v55  ;;  %5115 = vmatpush.bf16.msra.mxu3 %v6095_v0  ;;  %5121 = vmatpush.bf16.msrb.mxu0 %v6575_v1  ;;  %v4883_v55 = vpop.f32.mrf.mxu1 }
 0x4df   : > { %v7084_v44 = vld [vmem:[%s9018_s29 + $0xdf8] sm:$0xf0]  ;;  %5103 = vmatmul.bf16.vlgmr.msra.gmra.mxu2 %v7905_v18  ;;  %v4884_v0 = vadd.f32 %v4883_v55, %v4871_v50 }
 0x4e0   : > { %v7854_v62 = vld [vmem:[%s9018_s29 + $0xfdc] sm:$0xf]  ;;  %v7087_v2 = vor.u32 %v7790_v56, %v7084_v44  ;;  %5134 = vmatpush.bf16.msrb.mxu1 %v6831_v58 }
 0x4e1   : > { %v7340_v63 = vld [vmem:[%s9018_s29 + $0xff8] sm:$0xf0]  ;;  %5116 = vmatmul.bf16.vlgmr.msra.gmra.mxu3 %v7907_v26 }
 0x4e2   : > { %v7654_v33 = vld [vmem:[%s9018_s29 + $0x99c] sm:$0xf]  ;;  %v7343_v5 = vor.u32 %v7854_v62, %v7340_v63  ;;  %5147 = vmatpush.bf16.msrb.mxu2 %v7087_v2 }
 0x4e3   : > { %v6540_v4 = vld [vmem:[%s9018_s29 + $0x9b8] sm:$0xf0] }
 0x4e4   : > { %v7718_v25 = vld [vmem:[%s9018_s29 + $0xb9c] sm:$0xf]  ;;  %v6543_v12 = vor.u32 %v7654_v33, %v6540_v4  ;;  %5160 = vmatpush.bf16.msrb.mxu3 %v7343_v5  ;;  %v4896_v5 = vpop.f32.mrf.mxu2 }
 0x4e5   : > { %v6796_v9 = vld [vmem:[%s9018_s29 + $0xbb8] sm:$0xf0] }
 0x4e6   : > { %v7782_v6 = vld [vmem:[%s9018_s29 + $0xd9c] sm:$0xf]  ;;  %v6799_v14 = vor.u32 %v7718_v25, %v6796_v9  ;;  %5122 = vmatpush.bf16.msrb.mxu0 %v6543_v12  ;;  %v4909_v12 = vpop.f32.mrf.mxu3 }
 0x4e7   : > { %v7052_v10 = vld [vmem:[%s9018_s29 + $0xdb8] sm:$0xf0] }
 0x4e8   : > { %v7846_v31 = vld [vmem:[%s9018_s29 + $0xf9c] sm:$0xf]  ;;  %v7055_v11 = vor.u32 %v7782_v6, %v7052_v10  ;;  %5135 = vmatpush.bf16.msrb.mxu1 %v6799_v14 }
 0x4e9   : > { %v7308_v8 = vld [vmem:[%s9018_s29 + $0xfb8] sm:$0xf0] }
 0x4ea   : > { %v7646_v38 = vld [vmem:[%s9018_s29 + $0x95c] sm:$0xf]  ;;  %v7311_v15 = vor.u32 %v7846_v31, %v7308_v8  ;;  %5148 = vmatpush.bf16.msrb.mxu2 %v7055_v11  ;;  %v4897_v8 = vadd.f32 %v4896_v5, %v4884_v0 }
 0x4eb   : > { %v6508_v13 = vld [vmem:[%s9018_s29 + $0x978] sm:$0xf0] }
 0x4ec   : > { %v7710_v16 = vld [vmem:[%s9018_s29 + $0xb5c] sm:$0xf]  ;;  %v6511_v30 = vor.u32 %v7646_v38, %v6508_v13  ;;  %5161 = vmatpush.bf16.msrb.mxu3 %v7311_v15  ;;  %v4910_v13 = vadd.f32 %v4909_v12, %v4897_v8 }
 0x4ed   : > { %v6764_v7 = vld [vmem:[%s9018_s29 + $0xb78] sm:$0xf0] }
 0x4ee   : > { %v7774_v21 = vld [vmem:[%s9018_s29 + $0xd5c] sm:$0xf]  ;;  %v6767_v36 = vor.u32 %v7710_v16, %v6764_v7  ;;  %5123 = vmatpush.bf16.msrb.mxu0 %v6511_v30  ;;  %v4872_v16 = vpop.f32.mrf.mxu0 }
 0x4ef   : > { %v7020_v19 = vld [vmem:[%s9018_s29 + $0xd78] sm:$0xf0] }
 0x4f0   : > { %v7838_v20 = vld [vmem:[%s9018_s29 + $0xf5c] sm:$0xf]  ;;  %v7023_v40 = vor.u32 %v7774_v21, %v7020_v19  ;;  %5136 = vmatpush.bf16.msrb.mxu1 %v6767_v36 }
 0x4f1   : > { %v7276_v22 = vld [vmem:[%s9018_s29 + $0xf78] sm:$0xf0] }
 0x4f2   : > { %v7906_v52 = vld [vmem:[#allocation1] sm:$0xff]  ;;  %v7279_v27 = vor.u32 %v7838_v20, %v7276_v22  ;;  %5149 = vmatpush.bf16.msrb.mxu2 %v7023_v40  ;;  %v4885_v20 = vpop.f32.mrf.mxu1 }
 0x4f3   : > { %5077 = vmatmul.bf16.vlgmr.msra.gmra.mxu0 %v7906_v52  ;;  %v7638_v35 = vld [vmem:[%s9018_s29 + $0x91c] sm:$0xf] }
 0x4f4   : > { %v6476_v42 = vld [vmem:[%s9018_s29 + $0x938] sm:$0xf0]  ;;  %5162 = vmatpush.bf16.msrb.mxu3 %v7279_v27 }
 0x4f5   : > { %v7702_v43 = vld [vmem:[%s9018_s29 + $0xb1c] sm:$0xf]  ;;  %v6479_v34 = vor.u32 %v7638_v35, %v6476_v42 }
 0x4f6   : > { %v6732_v46 = vld [vmem:[%s9018_s29 + $0xb38] sm:$0xf0]  ;;  %v4922_v50 = vpop.f32.mrf.mxu0 }
 0x4f7   : > { %v7766_v47 = vld [vmem:[%s9018_s29 + $0xd1c] sm:$0xf]  ;;  %v6735_v54 = vor.u32 %v7702_v43, %v6732_v46  ;;  %5124 = vmatpush.bf16.msrb.mxu0 %v6479_v34  ;;  %v4898_v46 = vpop.f32.mrf.mxu2  ;;  %v4911_v34 = vpop.f32.mrf.mxu3  ;;  %v4923_v55 = vadd.f32 %v4922_v50, %v4910_v13 }
 0x4f8   : > { %v6988_v3 = vld [vmem:[%s9018_s29 + $0xd38] sm:$0xf0] }
 0x4f9   : > { %v7830_v28 = vld [vmem:[%s9018_s29 + $0xf1c] sm:$0xf]  ;;  %v6991_v48 = vor.u32 %v7766_v47, %v6988_v3  ;;  %5137 = vmatpush.bf16.msrb.mxu1 %v6735_v54 }
 0x4fa   : > { %v7244_v51 = vld [vmem:[%s9018_s29 + $0xf38] sm:$0xf0] }
 0x4fb   : > { %v7630_v57 = vld [vmem:[%s9018_s29 + $0x8dc] sm:$0xf]  ;;  %v7247_v56 = vor.u32 %v7830_v28, %v7244_v51  ;;  %5150 = vmatpush.bf16.msrb.mxu2 %v6991_v48 }
 0x4fc   : > { %v6444_v59 = vld [vmem:[%s9018_s29 + $0x8f8] sm:$0xf0] }
 0x4fd   : > { %v7694_v29 = vld [vmem:[%s9018_s29 + $0xadc] sm:$0xf]  ;;  %v6447_v1 = vor.u32 %v7630_v57, %v6444_v59  ;;  %5163 = vmatpush.bf16.msrb.mxu3 %v7247_v56  ;;  %v4935_v56 = vpop.f32.mrf.mxu1 }
 0x4fe   : > { %v6700_v44 = vld [vmem:[%s9018_s29 + $0xaf8] sm:$0xf0]  ;;  %v4924_v0 = vpop.f32.mrf.mxu0 }
 0x4ff   : > { %v7758_v61 = vld [vmem:[%s9018_s29 + $0xcdc] sm:$0xf]  ;;  %v6703_v58 = vor.u32 %v7694_v29, %v6700_v44  ;;  %5125 = vmatpush.bf16.msrb.mxu0 %v6447_v1  ;;  %v4936_v44 = vadd.f32 %v4935_v56, %v4923_v55 }
 0x500   : > { %v6956_v53 = vld [vmem:[%s9018_s29 + $0xcf8] sm:$0xf0] }
 0x501   : > { %v7822_v62 = vld [vmem:[%s9018_s29 + $0xedc] sm:$0xf]  ;;  %v6959_v2 = vor.u32 %v7758_v61, %v6956_v53  ;;  %5138 = vmatpush.bf16.msrb.mxu1 %v6703_v58  ;;  %v4948_v61 = vpop.f32.mrf.mxu2  ;;  %v5177_v58 = vmax.f32 %v10136_v17, 0.0 }
 0x502   : > { %v7212_v63 = vld [vmem:[%s9018_s29 + $0xef8] sm:$0xf0]  ;;  %v4949_v53 = vadd.f32 %v4948_v61, %v4936_v44 }
 0x503   : > { %v7622_v33 = vld [vmem:[%s9018_s29 + $0x89c] sm:$0xf]  ;;  %v7215_v9 = vor.u32 %v7822_v62, %v7212_v63  ;;  %5151 = vmatpush.bf16.msrb.mxu2 %v6959_v2  ;;  %v4961_v62 = vpop.f32.mrf.mxu3 }
 0x504   : > { %v6412_v4 = vld [vmem:[%s9018_s29 + $0x8b8] sm:$0xf0]  ;;  %v4962_v63 = vadd.f32 %v4961_v62, %v4949_v53 }
 0x505   : > { %v7686_v25 = vld [vmem:[%s9018_s29 + $0xa9c] sm:$0xf]  ;;  %v6415_v38 = vor.u32 %v7622_v33, %v6412_v4  ;;  %5164 = vmatpush.bf16.msrb.mxu3 %v7215_v9  ;;  %v4937_v1 = vpop.f32.mrf.mxu1 }
 0x506   : > { %v6668_v6 = vld [vmem:[%s9018_s29 + $0xab8] sm:$0xf0]  ;;  %v5178_v2 = vmax.f32 %v4962_v63, 0.0 }
 0x507   : > { %v7750_v10 = vld [vmem:[%s9018_s29 + $0xc9c] sm:$0xf]  ;;  %v6671_v15 = vor.u32 %v7686_v25, %v6668_v6  ;;  %5126 = vmatpush.bf16.msrb.mxu0 %v6415_v38 }
 0x508   : > { %v6924_v31 = vld [vmem:[%s9018_s29 + $0xcb8] sm:$0xf0] }
 0x509   : > { %v7814_v14 = vld [vmem:[%s9018_s29 + $0xe9c] sm:$0xf]  ;;  %v6927_v18 = vor.u32 %v7750_v10, %v6924_v31  ;;  %5139 = vmatpush.bf16.msrb.mxu1 %v6671_v15 }
 0x50a   : > { %v7180_v11 = vld [vmem:[%s9018_s29 + $0xeb8] sm:$0xf0] }
 0x50b   : > { %v7614_v7 = vld [vmem:[%s9018_s29 + $0x85c] sm:$0xf]  ;;  %v7183_v22 = vor.u32 %v7814_v14, %v7180_v11  ;;  %5152 = vmatpush.bf16.msrb.mxu2 %v6927_v18  ;;  %v4963_v33 = vpop.f32.mrf.mxu3 }
 0x50c   : > { %v6380_v21 = vld [vmem:[%s9018_s29 + $0x878] sm:$0xf0] }
 0x50d   : > { %v7678_v19 = vld [vmem:[%s9018_s29 + $0xa5c] sm:$0xf]  ;;  %v6383_v36 = vor.u32 %v7614_v7, %v6380_v21  ;;  %5165 = vmatpush.bf16.msrb.mxu3 %v7183_v22  ;;  %v4987_v25 = vpop.f32.mrf.mxu1 }
 0x50e   : > { %v6636_v52 = vld [vmem:[%s9018_s29 + $0xa78] sm:$0xf0] }
 0x50f   : > { %v7742_v26 = vld [vmem:[%s9018_s29 + $0xc5c] sm:$0xf]  ;;  %v6639_v40 = vor.u32 %v7678_v19, %v6636_v52  ;;  %5127 = vmatpush.bf16.msrb.mxu0 %v6383_v36 }
 0x510   : > { %v6892_v30 = vld [vmem:[%s9018_s29 + $0xc78] sm:$0xf0] }
 0x511   : > { %v7806_v23 = vld [vmem:[%s9018_s29 + $0xe5c] sm:$0xf]  ;;  %v6895_v42 = vor.u32 %v7742_v26, %v6892_v30  ;;  %5140 = vmatpush.bf16.msrb.mxu1 %v6639_v40 }
 0x512   : > { %v7148_v35 = vld [vmem:[%s9018_s29 + $0xe78] sm:$0xf0] }
 0x513   : > { %v7606_v43 = vld [vmem:[%s9018_s29 + $0x81c] sm:$0xf]  ;;  %v7151_v47 = vor.u32 %v7806_v23, %v7148_v35  ;;  %5153 = vmatpush.bf16.msrb.mxu2 %v6895_v42  ;;  %v5013_v10 = vpop.f32.mrf.mxu3  ;;  %v1754_v23 = vperm.slane %v10033_v60, 7 }
 0x514   : > { %v6348_v45 = vld [vmem:[%s9018_s29 + $0x838] sm:$0xf0] }
 0x515   : > { %v7670_v27 = vld [vmem:[%s9018_s29 + $0xa1c] sm:$0xf]  ;;  %v6351_v48 = vor.u32 %v7606_v43, %v6348_v45  ;;  %5166 = vmatpush.bf16.msrb.mxu3 %v7151_v47  ;;  %v4989_v12 = vpop.f32.mrf.mxu1 }
 0x516   : > { %v6604_v3 = vld [vmem:[%s9018_s29 + $0xa38] sm:$0xf0] }
 0x517   : > { %v7734_v28 = vld [vmem:[%s9018_s29 + $0xc1c] sm:$0xf]  ;;  %v6607_v57 = vor.u32 %v7670_v27, %v6604_v3  ;;  %5128 = vmatpush.bf16.msrb.mxu0 %v6351_v48 }
 0x518   : > { %v6860_v51 = vld [vmem:[%s9018_s29 + $0xc38] sm:$0xf0] }
 0x519   : > { %v7798_v49 = vld [vmem:[%s9018_s29 + $0xe1c] sm:$0xf]  ;;  %v6863_v59 = vor.u32 %v7734_v28, %v6860_v51  ;;  %5141 = vmatpush.bf16.msrb.mxu1 %v6607_v57 }
 0x51a   : > { %v7116_v54 = vld [vmem:[%s9018_s29 + $0xe38] sm:$0xf0]  ;;  %5129 = vmatmul.bf16.vlgmr.msrb.gmra.mxu0 %v10102_v37  ;;  %v10224_v37 = vpack.c.bf16 %v5178_v2, %v5177_v58 }
 0x51b   : > { %v7119_v29 = vor.u32 %v7798_v49, %v7116_v54  ;;  %5154 = vmatpush.bf16.msrb.mxu2 %v6863_v59  ;;  %v5015_v11 = vpop.f32.mrf.mxu3 }
 0x51c   : > { %5142 = vmatmul.bf16.vlgmr.msrb.gmra.mxu1 %v10108_v41  ;;  %v4950_v41 = vpop.f32.mrf.mxu2  ;;  %v5192_v56 = vrot.slane %v10224_v37, 4  ;;  %v5193_v44 = vrot.slane %v10224_v37, 7 }
 0x51d   : > { %5167 = vmatpush.bf16.msrb.mxu3 %v7119_v29 }
 0x51e   : > { %5155 = vmatmul.bf16.vlgmr.msrb.gmra.mxu2 %v10094_v24  ;;  %v1753_v24 = vperm.slane %v10033_v60, 6  ;;  %v5209_v1 = vsel %vm5206_vm3, %v5192_v56, %v5193_v44 }
 0x520   : > { %5168 = vmatmul.bf16.vlgmr.msrb.gmra.mxu3 %v10105_v39  ;;  %v4974_v39 = vpop.f32.mrf.mxu0 }
 0x521   : > { %v4975_v4 = vadd.f32 %v4974_v39, %v1753_v24 }
 0x523   : > { %v4988_v5 = vadd.f32 %v4987_v25, %v4975_v4 }
 0x524   : > { %v5000_v9 = vpop.f32.mrf.mxu2 }
 0x525   : > { %v5001_v6 = vadd.f32 %v5000_v9, %v4988_v5 }
 0x527   : > { %v5014_v31 = vadd.f32 %v5013_v10, %v5001_v6 }
 0x528   : > { %v4976_v8 = vpop.f32.mrf.mxu0 }
 0x52c   : > { %v5002_v14 = vpop.f32.mrf.mxu2 }
 0x538   : > { %v5026_v17 = vpop.f32.mrf.mxu0 }
 0x539   : > { %v5027_v43 = vadd.f32 %v5026_v17, %v5014_v31 }
 0x53a   : > { %v5039_v38 = vpop.f32.mrf.mxu1 }
 0x53b   : > { %v5040_v27 = vadd.f32 %v5039_v38, %v5027_v43 }
 0x540   : > { %v5028_v15 = vpop.f32.mrf.mxu0 }
 0x542   : > { %v5052_v13 = vpop.f32.mrf.mxu2  ;;  %v5041_v18 = vpop.f32.mrf.mxu1 }
 0x543   : > { %v5053_v51 = vadd.f32 %v5052_v13, %v5040_v27 }
 0x544   : > { %v5065_v16 = vpop.f32.mrf.mxu3 }
 0x545   : > { %v5066_v54 = vadd.f32 %v5065_v16, %v5053_v51 }
 0x547   : > { %v5179_v50 = vmax.f32 %v5066_v54, 0.0 }
 0x54a   : > { %v5054_v7 = vpop.f32.mrf.mxu2 }
 0x54c   : > { %v5067_v21 = vpop.f32.mrf.mxu3 }
 0x55a   : > { %v5091_v20 = vpop.f32.mrf.mxu1 }
 0x562   : > { %v5104_v22 = vpop.f32.mrf.mxu2  ;;  %v5093_v30 = vpop.f32.mrf.mxu1 }
 0x564   : > { %v5117_v52 = vpop.f32.mrf.mxu3 }
 0x56a   : > { %v5106_v35 = vpop.f32.mrf.mxu2 }
 0x56c   : > { %v5119_v36 = vpop.f32.mrf.mxu3 }
 0x570   : > { %v5078_v19 = vpop.f32.mrf.mxu0 }
 0x571   : > { %v5079_v40 = vadd.f32 %v5078_v19, %v1754_v23 }
 0x573   : > { %v5092_v42 = vadd.f32 %v5091_v20, %v5079_v40 }
 0x575   : > { %v5105_v45 = vadd.f32 %v5104_v22, %v5092_v42 }
 0x577   : > { %v5118_v46 = vadd.f32 %v5117_v52, %v5105_v45 }
 0x578   : > { %v5080_v26 = vpop.f32.mrf.mxu0 }
 0x597   : > { %v5130_v47 = vpop.f32.mrf.mxu0 }
 0x598   : > { %v5131_v28 = vadd.f32 %v5130_v47, %v5118_v46 }
 0x599   : > { %v5143_v3 = vpop.f32.mrf.mxu1 }
 0x59a   : > { %v5144_v34 = vadd.f32 %v5143_v3, %v5131_v28 }
 0x59f   : > { %v5132_v59 = vpop.f32.mrf.mxu0 }
 0x5a1   : > { %v5156_v49 = vpop.f32.mrf.mxu2  ;;  %v5145_v29 = vpop.f32.mrf.mxu1 }
 0x5a2   : > { %v5157_v48 = vadd.f32 %v5156_v49, %v5144_v34 }
 0x5a3   : > { %v5169_v57 = vpop.f32.mrf.mxu3 }
 0x5a4   : > { %v5170_v60 = vadd.f32 %v5169_v57, %v5157_v48 }
 0x5a6   : > { %v5180_v55 = vmax.f32 %v5170_v60, 0.0 }
 0x5a8   : > { %v5184_v61 = vpack.c.bf16 %v5180_v55, %v5179_v50 }
 0x5a9   : > { %v5158_v53 = vpop.f32.mrf.mxu2 }
 0x5aa   : > { %v5194_v62 = vrot.slane %v5184_v61, 2  ;;  %v5195_v63 = vrot.slane %v5184_v61, 5 }
 0x5ab   : > { %v5171_v0 = vpop.f32.mrf.mxu3 }
 0x5ac   : > { %v5213_v58 = vsel %vm5210_vm4, %v5194_v62, %v5195_v63 }
 0x5ad   : > { %v5215_v2 = vsel %vm5214_vm5, %v5209_v1, %v5213_v58 }
 0x5ae   : > { %v5217_v41 = vsel %vm5216_vm6, %v10005_v32, %v5215_v2 }
 0x5af   : > { %5219 = vst [vmem:[%s1230_s11] sm:$0xff] %v5217_v41 }
 0x5b0 PF: > { %p10_p9 = scmp.ge.s32.totalorder %s7970_s16, 4   ;;  %s10249_s12 = smov %s7927_s13 }
 0x5b1   : > { %s10250_s13 = smov %s7979_s19  ;;  %s10251_s14 = smov %s7970_s16 }
 0x5b2   :  { %12 = sbr.rel (!%p10_p9) target bundleno = 2 (0x2), region = 93 }

// kernel: forward.7
= control target key start
LH: loop header
LB: loop body
LE: loop exit
PB: predicated region body
PF: predicated region fallthrough
CT: control target
= control target key end

     0   :  { %s10404_s0 = inlined_call_operand.vmem [shape: bf16[2,2048], index: 0, kind: input, shape index: {}]   ;;  %s10405_s1 = inlined_call_operand.vmem [shape: bf16[2048,512], index: 1, kind: input, shape index: {}]   ;;  %s10406_s2 = inlined_call_operand.vmem [shape: f32[1,512], index: 2, kind: input, shape index: {}]   ;;  %s10407_s3 = inlined_call_operand.vmem [shape: bf16[512,128], index: 3, kind: input, shape index: {}]   ;;  %s10408_s4 = inlined_call_operand.vmem [shape: f32[1,128], index: 4, kind: input, shape index: {}]   ;;  %s10409_s5 = inlined_call_operand.hbm [shape: f32[2,128], index: 5, kind: output, shape index: {}]  }
   0x1   :  { %v4424_v0 = vld [vmem:[%s10405_s1 + $0xe0] sm:$0xf]  ;;  %v6516_v1 = vld [vmem:[%s10405_s1 + $0xec] sm:$0xf0] }
   0x2   :  { %v4552_v2 = vld [vmem:[%s10405_s1 + $0x1e0] sm:$0xf]  ;;  %v4425_v3 = vor.u32 %v6516_v1, %v4424_v0  ;;  %v6548_v4 = vld [vmem:[%s10405_s1 + $0x1ec] sm:$0xf0] }
   0x3   :  { %v4680_v5 = vld [vmem:[%s10405_s1 + $0x2e0] sm:$0xf]  ;;  %v6580_v6 = vld [vmem:[%s10405_s1 + $0x2ec] sm:$0xf0]  ;;  %v4553_v7 = vor.u32 %v6548_v4, %v4552_v2 }
   0x4   :  { %v4681_v8 = vor.u32 %v6580_v6, %v4680_v5  ;;  %v4808_v9 = vld [vmem:[%s10405_s1 + $0x3e0] sm:$0xf]  ;;  %v6612_v10 = vld [vmem:[%s10405_s1 + $0x3ec] sm:$0xf0]  ;;  %3141 = vmatpush.bf16.msra.mxu0 %v4425_v3 }
   0x5   :  { %v4408_v11 = vld [vmem:[%s10405_s1 + $0xc0] sm:$0xf]  ;;  %v4809_v12 = vor.u32 %v6612_v10, %v4808_v9  ;;  %v6512_v13 = vld [vmem:[%s10405_s1 + $0xcc] sm:$0xf0]  ;;  %3154 = vmatpush.bf16.msra.mxu1 %v4553_v7 }
   0x6   :  { %v4536_v14 = vld [vmem:[%s10405_s1 + $0x1c0] sm:$0xf]  ;;  %v6544_v15 = vld [vmem:[%s10405_s1 + $0x1cc] sm:$0xf0]  ;;  %3167 = vmatpush.bf16.msra.mxu2 %v4681_v8  ;;  %v4409_v16 = vor.u32 %v6512_v13, %v4408_v11 }
   0x7   :  { %v4537_v17 = vor.u32 %v6544_v15, %v4536_v14  ;;  %v4664_v18 = vld [vmem:[%s10405_s1 + $0x2c0] sm:$0xf]  ;;  %v6576_v19 = vld [vmem:[%s10405_s1 + $0x2cc] sm:$0xf0]  ;;  %3180 = vmatpush.bf16.msra.mxu3 %v4809_v12 }
   0x8   :  { %v4792_v20 = vld [vmem:[%s10405_s1 + $0x3c0] sm:$0xf]  ;;  %v4665_v21 = vor.u32 %v6576_v19, %v4664_v18  ;;  %v6608_v22 = vld [vmem:[%s10405_s1 + $0x3cc] sm:$0xf0]  ;;  %3142 = vmatpush.bf16.msra.mxu0 %v4409_v16 }
   0x9   :  { %v4392_v23 = vld [vmem:[%s10405_s1 + $0xa0] sm:$0xf]  ;;  %v6508_v24 = vld [vmem:[%s10405_s1 + $0xac] sm:$0xf0]  ;;  %v4793_v25 = vor.u32 %v6608_v22, %v4792_v20  ;;  %3155 = vmatpush.bf16.msra.mxu1 %v4537_v17 }
   0xa   :  { %v4520_v26 = vld [vmem:[%s10405_s1 + $0x1a0] sm:$0xf]  ;;  %v6540_v27 = vld [vmem:[%s10405_s1 + $0x1ac] sm:$0xf0]  ;;  %v4393_v29 = vor.u32 %v6508_v24, %v4392_v23  ;;  %3168 = vmatpush.bf16.msra.mxu2 %v4665_v21 }
   0xb   :  { %v4648_v28 = vld [vmem:[%s10405_s1 + $0x2a0] sm:$0xf]  ;;  %v6572_v30 = vld [vmem:[%s10405_s1 + $0x2ac] sm:$0xf0]  ;;  %v4521_v33 = vor.u32 %v6540_v27, %v4520_v26  ;;  %3181 = vmatpush.bf16.msra.mxu3 %v4793_v25 }
   0xc   :  { %v4776_v31 = vld [vmem:[%s10405_s1 + $0x3a0] sm:$0xf]  ;;  %v6604_v32 = vld [vmem:[%s10405_s1 + $0x3ac] sm:$0xf0]  ;;  %v4649_v34 = vor.u32 %v6572_v30, %v4648_v28  ;;  %3143 = vmatpush.bf16.msra.mxu0 %v4393_v29 }
   0xd   :  { %v4376_v35 = vld [vmem:[%s10405_s1 + $0x80] sm:$0xf]  ;;  %v6504_v36 = vld [vmem:[%s10405_s1 + $0x8c] sm:$0xf0]  ;;  %v4777_v38 = vor.u32 %v6604_v32, %v4776_v31  ;;  %3156 = vmatpush.bf16.msra.mxu1 %v4521_v33 }
   0xe   :  { %v4504_v37 = vld [vmem:[%s10405_s1 + $0x180] sm:$0xf]  ;;  %v6536_v39 = vld [vmem:[%s10405_s1 + $0x18c] sm:$0xf0]  ;;  %v4377_v44 = vor.u32 %v6504_v36, %v4376_v35  ;;  %3169 = vmatpush.bf16.msra.mxu2 %v4649_v34 }
   0xf   :  { %v4632_v40 = vld [vmem:[%s10405_s1 + $0x280] sm:$0xf]  ;;  %v6568_v41 = vld [vmem:[%s10405_s1 + $0x28c] sm:$0xf0]  ;;  %v4505_v45 = vor.u32 %v6536_v39, %v4504_v37  ;;  %3182 = vmatpush.bf16.msra.mxu3 %v4777_v38 }
  0x10   :  { %v4760_v42 = vld [vmem:[%s10405_s1 + $0x380] sm:$0xf]  ;;  %v6600_v43 = vld [vmem:[%s10405_s1 + $0x38c] sm:$0xf0]  ;;  %v4633_v46 = vor.u32 %v6568_v41, %v4632_v40  ;;  %3144 = vmatpush.bf16.msra.mxu0 %v4377_v44 }
  0x11   :  { %v4360_v47 = vld [vmem:[%s10405_s1 + $0x60] sm:$0xf]  ;;  %v6500_v48 = vld [vmem:[%s10405_s1 + $0x6c] sm:$0xf0]  ;;  %v4761_v50 = vor.u32 %v6600_v43, %v4760_v42  ;;  %3157 = vmatpush.bf16.msra.mxu1 %v4505_v45 }
  0x12   :  { %v4488_v49 = vld [vmem:[%s10405_s1 + $0x160] sm:$0xf]  ;;  %v6532_v51 = vld [vmem:[%s10405_s1 + $0x16c] sm:$0xf0]  ;;  %v4361_v56 = vor.u32 %v6500_v48, %v4360_v47  ;;  %3170 = vmatpush.bf16.msra.mxu2 %v4633_v46 }
  0x13   :  { %v4616_v52 = vld [vmem:[%s10405_s1 + $0x260] sm:$0xf]  ;;  %v6564_v53 = vld [vmem:[%s10405_s1 + $0x26c] sm:$0xf0]  ;;  %v4489_v57 = vor.u32 %v6532_v51, %v4488_v49  ;;  %3183 = vmatpush.bf16.msra.mxu3 %v4761_v50 }
  0x14   :  { %v4744_v54 = vld [vmem:[%s10405_s1 + $0x360] sm:$0xf]  ;;  %v6596_v55 = vld [vmem:[%s10405_s1 + $0x36c] sm:$0xf0]  ;;  %v4617_v58 = vor.u32 %v6564_v53, %v4616_v52  ;;  %3145 = vmatpush.bf16.msra.mxu0 %v4361_v56 }
  0x15   :  { %v4344_v59 = vld [vmem:[%s10405_s1 + $0x40] sm:$0xf]  ;;  %v6496_v60 = vld [vmem:[%s10405_s1 + $0x4c] sm:$0xf0]  ;;  %v4745_v62 = vor.u32 %v6596_v55, %v4744_v54  ;;  %3158 = vmatpush.bf16.msra.mxu1 %v4489_v57 }
  0x16   :  { %v4472_v61 = vld [vmem:[%s10405_s1 + $0x140] sm:$0xf]  ;;  %v6528_v63 = vld [vmem:[%s10405_s1 + $0x14c] sm:$0xf0]  ;;  %v4345_v4 = vor.u32 %v6496_v60, %v4344_v59  ;;  %3171 = vmatpush.bf16.msra.mxu2 %v4617_v58 }
  0x17   :  { %v4600_v0 = vld [vmem:[%s10405_s1 + $0x240] sm:$0xf]  ;;  %v6560_v1 = vld [vmem:[%s10405_s1 + $0x24c] sm:$0xf0]  ;;  %v4473_v5 = vor.u32 %v6528_v63, %v4472_v61  ;;  %3184 = vmatpush.bf16.msra.mxu3 %v4745_v62 }
  0x18   :  { %v4728_v2 = vld [vmem:[%s10405_s1 + $0x340] sm:$0xf]  ;;  %v6592_v3 = vld [vmem:[%s10405_s1 + $0x34c] sm:$0xf0]  ;;  %v4601_v6 = vor.u32 %v6560_v1, %v4600_v0  ;;  %3146 = vmatpush.bf16.msra.mxu0 %v4345_v4 }
  0x19   :  { %v4328_v7 = vld [vmem:[%s10405_s1 + $0x20] sm:$0xf]  ;;  %v6492_v8 = vld [vmem:[%s10405_s1 + $0x2c] sm:$0xf0]  ;;  %v4729_v10 = vor.u32 %v6592_v3, %v4728_v2  ;;  %3159 = vmatpush.bf16.msra.mxu1 %v4473_v5 }
  0x1a   :  { %v4456_v9 = vld [vmem:[%s10405_s1 + $0x120] sm:$0xf]  ;;  %v6524_v11 = vld [vmem:[%s10405_s1 + $0x12c] sm:$0xf0]  ;;  %v4329_v16 = vor.u32 %v6492_v8, %v4328_v7  ;;  %3172 = vmatpush.bf16.msra.mxu2 %v4601_v6 }
  0x1b   :  { %v4584_v12 = vld [vmem:[%s10405_s1 + $0x220] sm:$0xf]  ;;  %v6556_v13 = vld [vmem:[%s10405_s1 + $0x22c] sm:$0xf0]  ;;  %v4457_v19 = vor.u32 %v6524_v11, %v4456_v9  ;;  %3185 = vmatpush.bf16.msra.mxu3 %v4729_v10 }
  0x1c   :  { %v4712_v14 = vld [vmem:[%s10405_s1 + $0x320] sm:$0xf]  ;;  %v6588_v15 = vld [vmem:[%s10405_s1 + $0x32c] sm:$0xf0]  ;;  %v4585_v20 = vor.u32 %v6556_v13, %v4584_v12  ;;  %3147 = vmatpush.bf16.msra.mxu0 %v4329_v16 }
  0x1d   :  { %v4312_v17 = vld [vmem:[%s10405_s1] sm:$0xf]  ;;  %v6488_v18 = vld [vmem:[%s10405_s1 + $0xc] sm:$0xf0]  ;;  %v4713_v24 = vor.u32 %v6588_v15, %v4712_v14  ;;  %3160 = vmatpush.bf16.msra.mxu1 %v4457_v19 }
  0x1e   :  { %v4440_v21 = vld [vmem:[%s10405_s1 + $0x100] sm:$0xf]  ;;  %v6520_v22 = vld [vmem:[%s10405_s1 + $0x10c] sm:$0xf0]  ;;  %v4313_v31 = vor.u32 %v6488_v18, %v4312_v17  ;;  %3173 = vmatpush.bf16.msra.mxu2 %v4585_v20 }
  0x1f   :  { %v4568_v23 = vld [vmem:[%s10405_s1 + $0x200] sm:$0xf]  ;;  %v6552_v25 = vld [vmem:[%s10405_s1 + $0x20c] sm:$0xf0]  ;;  %v4441_v35 = vor.u32 %v6520_v22, %v4440_v21  ;;  %3186 = vmatpush.bf16.msra.mxu3 %v4713_v24 }
  0x20   :  { %v4696_v26 = vld [vmem:[%s10405_s1 + $0x300] sm:$0xf]  ;;  %v6584_v27 = vld [vmem:[%s10405_s1 + $0x30c] sm:$0xf0]  ;;  %v4569_v36 = vor.u32 %v6552_v25, %v4568_v23  ;;  %3148 = vmatpush.bf16.msra.mxu0 %v4313_v31 }
  0x21   :  { %v4936_v28 = vld [vmem:[%s10405_s1 + $0x4e0] sm:$0xf]  ;;  %v6644_v29 = vld [vmem:[%s10405_s1 + $0x4ec] sm:$0xf0]  ;;  %v4697_v39 = vor.u32 %v6584_v27, %v4696_v26  ;;  %3161 = vmatpush.bf16.msra.mxu1 %v4441_v35 }
  0x22   :  { %v5064_v30 = vld [vmem:[%s10405_s1 + $0x5e0] sm:$0xf]  ;;  %v6676_v32 = vld [vmem:[%s10405_s1 + $0x5ec] sm:$0xf0]  ;;  %v4937_v40 = vor.u32 %v6644_v29, %v4936_v28  ;;  %3174 = vmatpush.bf16.msra.mxu2 %v4569_v36 }
  0x23   :  { %v5192_v33 = vld [vmem:[%s10405_s1 + $0x6e0] sm:$0xf]  ;;  %v6708_v34 = vld [vmem:[%s10405_s1 + $0x6ec] sm:$0xf0]  ;;  %v5065_v41 = vor.u32 %v6676_v32, %v5064_v30  ;;  %3187 = vmatpush.bf16.msra.mxu3 %v4697_v39 }
  0x24   :  { %v5320_v37 = vld [vmem:[%s10405_s1 + $0x7e0] sm:$0xf]  ;;  %v6740_v38 = vld [vmem:[%s10405_s1 + $0x7ec] sm:$0xf0]  ;;  %v5193_v42 = vor.u32 %v6708_v34, %v5192_v33  ;;  %3193 = vmatpush.bf16.msrb.mxu0 %v4937_v40 }
  0x25   :  { %v4920_v43 = vld [vmem:[%s10405_s1 + $0x4c0] sm:$0xf]  ;;  %v6640_v44 = vld [vmem:[%s10405_s1 + $0x4cc] sm:$0xf0]  ;;  %v5321_v46 = vor.u32 %v6740_v38, %v5320_v37  ;;  %3206 = vmatpush.bf16.msrb.mxu1 %v5065_v41 }
  0x26   :  { %v5048_v45 = vld [vmem:[%s10405_s1 + $0x5c0] sm:$0xf]  ;;  %v6672_v47 = vld [vmem:[%s10405_s1 + $0x5cc] sm:$0xf0]  ;;  %v4921_v52 = vor.u32 %v6640_v44, %v4920_v43  ;;  %3219 = vmatpush.bf16.msrb.mxu2 %v5193_v42 }
  0x27   :  { %v5176_v48 = vld [vmem:[%s10405_s1 + $0x6c0] sm:$0xf]  ;;  %v6704_v49 = vld [vmem:[%s10405_s1 + $0x6cc] sm:$0xf0]  ;;  %v5049_v53 = vor.u32 %v6672_v47, %v5048_v45  ;;  %3232 = vmatpush.bf16.msrb.mxu3 %v5321_v46 }
  0x28   :  { %v5304_v50 = vld [vmem:[%s10405_s1 + $0x7c0] sm:$0xf]  ;;  %v6736_v51 = vld [vmem:[%s10405_s1 + $0x7cc] sm:$0xf0]  ;;  %v5177_v54 = vor.u32 %v6704_v49, %v5176_v48  ;;  %3194 = vmatpush.bf16.msrb.mxu0 %v4921_v52 }
  0x29   :  { %v4904_v55 = vld [vmem:[%s10405_s1 + $0x4a0] sm:$0xf]  ;;  %v6636_v56 = vld [vmem:[%s10405_s1 + $0x4ac] sm:$0xf0]  ;;  %v5305_v58 = vor.u32 %v6736_v51, %v5304_v50  ;;  %3207 = vmatpush.bf16.msrb.mxu1 %v5049_v53 }
  0x2a   :  { %v5032_v57 = vld [vmem:[%s10405_s1 + $0x5a0] sm:$0xf]  ;;  %v6668_v59 = vld [vmem:[%s10405_s1 + $0x5ac] sm:$0xf0]  ;;  %v4905_v0 = vor.u32 %v6636_v56, %v4904_v55  ;;  %3220 = vmatpush.bf16.msrb.mxu2 %v5177_v54 }
  0x2b   :  { %v5160_v60 = vld [vmem:[%s10405_s1 + $0x6a0] sm:$0xf]  ;;  %v6700_v61 = vld [vmem:[%s10405_s1 + $0x6ac] sm:$0xf0]  ;;  %v5033_v3 = vor.u32 %v6668_v59, %v5032_v57  ;;  %3233 = vmatpush.bf16.msrb.mxu3 %v5305_v58 }
  0x2c   :  { %v5288_v62 = vld [vmem:[%s10405_s1 + $0x7a0] sm:$0xf]  ;;  %v6732_v63 = vld [vmem:[%s10405_s1 + $0x7ac] sm:$0xf0]  ;;  %v5161_v4 = vor.u32 %v6700_v61, %v5160_v60  ;;  %3195 = vmatpush.bf16.msrb.mxu0 %v4905_v0  ;;  %v22_v61 = vld [vmem:[%s10404_s0 + $0x8] sm:$0xff] }
  0x2d   :  { %v4888_v1 = vld [vmem:[%s10405_s1 + $0x480] sm:$0xf]  ;;  %v6632_v5 = vld [vmem:[%s10405_s1 + $0x48c] sm:$0xf0]  ;;  %v5289_v7 = vor.u32 %v6732_v63, %v5288_v62  ;;  %3208 = vmatpush.bf16.msrb.mxu1 %v5033_v3 }
  0x2e   :  { %v21_v2 = vld [vmem:[%s10404_s0] sm:$0xff]  ;;  %v6664_v8 = vld [vmem:[%s10405_s1 + $0x58c] sm:$0xf0]  ;;  %v4889_v13 = vor.u32 %v6632_v5, %v4888_v1  ;;  %3221 = vmatpush.bf16.msrb.mxu2 %v5161_v4 }
  0x2f   :  { %v5016_v6 = vld [vmem:[%s10405_s1 + $0x580] sm:$0xf]  ;;  %546 = vst [vmem:[#allocation1] ss:$9 sm:$0xff] %v21_v2  ;;  %v6696_v10 = vld [vmem:[%s10405_s1 + $0x68c] sm:$0xf0]  ;;  %3234 = vmatpush.bf16.msrb.mxu3 %v5289_v7 }
  0x30   :  { %v5144_v9 = vld [vmem:[%s10405_s1 + $0x680] sm:$0xf]  ;;  %v6728_v12 = vld [vmem:[%s10405_s1 + $0x78c] sm:$0xf0]  ;;  %v5017_v14 = vor.u32 %v6664_v8, %v5016_v6  ;;  %3196 = vmatpush.bf16.msrb.mxu0 %v4889_v13 }
  0x31   :  { %v5272_v11 = vld [vmem:[%s10405_s1 + $0x780] sm:$0xf]  ;;  %v5145_v15 = vor.u32 %v6696_v10, %v5144_v9  ;;  %v6628_v17 = vld [vmem:[%s10405_s1 + $0x46c] sm:$0xf0] }
  0x32   :  { %v4872_v16 = vld [vmem:[%s10405_s1 + $0x460] sm:$0xf]  ;;  %v5273_v19 = vor.u32 %v6728_v12, %v5272_v11  ;;  %v6660_v20 = vld [vmem:[%s10405_s1 + $0x56c] sm:$0xf0]  ;;  %3209 = vmatpush.bf16.msrb.mxu1 %v5017_v14 }
  0x33   :  { %v5000_v18 = vld [vmem:[%s10405_s1 + $0x560] sm:$0xf]  ;;  %v6692_v22 = vld [vmem:[%s10405_s1 + $0x66c] sm:$0xf0]  ;;  %v4873_v26 = vor.u32 %v6628_v17, %v4872_v16  ;;  %3222 = vmatpush.bf16.msrb.mxu2 %v5145_v15 }
  0x34   :  { %v5128_v21 = vld [vmem:[%s10405_s1 + $0x660] sm:$0xf]  ;;  %v6724_v24 = vld [vmem:[%s10405_s1 + $0x76c] sm:$0xf0]  ;;  %v5001_v30 = vor.u32 %v6660_v20, %v5000_v18  ;;  %3235 = vmatpush.bf16.msrb.mxu3 %v5273_v19 }
  0x35   :  { %v5256_v23 = vld [vmem:[%s10405_s1 + $0x760] sm:$0xf]  ;;  %v5129_v31 = vor.u32 %v6692_v22, %v5128_v21  ;;  %v6624_v32 = vld [vmem:[%s10405_s1 + $0x44c] sm:$0xf0]  ;;  %3197 = vmatpush.bf16.msrb.mxu0 %v4873_v26 }
  0x36   :  { %v4856_v25 = vld [vmem:[%s10405_s1 + $0x440] sm:$0xf]  ;;  %v7433_v27 = vld [vmem:[#allocation1 + $0x12] sm:$0xff]  ;;  %v7445_v34 = vld [vmem:[#allocation1 + $0x9] sm:$0xff]  ;;  %v5257_v35 = vor.u32 %v6724_v24, %v5256_v23  ;;  %3210 = vmatpush.bf16.msrb.mxu1 %v5001_v30 }
  0x37   :  { %v7435_v28 = vld [vmem:[#allocation1] sm:$0xff]  ;;  %v6656_v36 = vld [vmem:[%s10405_s1 + $0x54c] sm:$0xf0]  ;;  %3175 = vmatmul.bf16.vlgmr.msra.gmra.mxu2 %v7433_v27  ;;  %v4857_v41 = vor.u32 %v6624_v32, %v4856_v25  ;;  %3162 = vmatmul.bf16.vlgmr.msra.gmra.mxu1 %v7445_v34  ;;  %v7508_v60 = vld [vmem:[#allocation1 + $0x36] sm:$0xff] }
  0x38   :  { %v7437_v29 = vld [vmem:[#allocation1 + $0x1b] sm:$0xff]  ;;  %v6688_v38 = vld [vmem:[%s10405_s1 + $0x64c] sm:$0xf0]  ;;  %3149 = vmatmul.bf16.vlgmr.msra.gmra.mxu0 %v7435_v28  ;;  %3223 = vmatpush.bf16.msrb.mxu2 %v5129_v31  ;;  %v7513_v0 = vld [vmem:[#allocation1 + $0x24] sm:$0xff] }
  0x39   :  { %v4984_v33 = vld [vmem:[%s10405_s1 + $0x540] sm:$0xf]  ;;  %v6720_v40 = vld [vmem:[%s10405_s1 + $0x74c] sm:$0xf0]  ;;  %3188 = vmatmul.bf16.vlgmr.msra.gmra.mxu3 %v7437_v29  ;;  %3198 = vmatpush.bf16.msrb.mxu0 %v4857_v41 }
  0x3a   :  { %v5112_v37 = vld [vmem:[%s10405_s1 + $0x640] sm:$0xf]  ;;  %v4985_v43 = vor.u32 %v6656_v36, %v4984_v33  ;;  %v6620_v45 = vld [vmem:[%s10405_s1 + $0x42c] sm:$0xf0]  ;;  %3236 = vmatpush.bf16.msrb.mxu3 %v5257_v35 }
  0x3b   :  { %v5240_v39 = vld [vmem:[%s10405_s1 + $0x740] sm:$0xf]  ;;  %v5113_v44 = vor.u32 %v6688_v38, %v5112_v37  ;;  %v6652_v47 = vld [vmem:[%s10405_s1 + $0x52c] sm:$0xf0] }
  0x3c   :  { %v4840_v42 = vld [vmem:[%s10405_s1 + $0x420] sm:$0xf]  ;;  %v5241_v48 = vor.u32 %v6720_v40, %v5240_v39  ;;  %v6684_v50 = vld [vmem:[%s10405_s1 + $0x62c] sm:$0xf0]  ;;  %3211 = vmatpush.bf16.msrb.mxu1 %v4985_v43 }
  0x3d   :  { %v4968_v46 = vld [vmem:[%s10405_s1 + $0x520] sm:$0xf]  ;;  %v6716_v52 = vld [vmem:[%s10405_s1 + $0x72c] sm:$0xf0]  ;;  %v4841_v55 = vor.u32 %v6620_v45, %v4840_v42  ;;  %3224 = vmatpush.bf16.msrb.mxu2 %v5113_v44 }
  0x3e   :  { %v5096_v49 = vld [vmem:[%s10405_s1 + $0x620] sm:$0xf]  ;;  %v6616_v54 = vld [vmem:[%s10405_s1 + $0x40c] sm:$0xf0]  ;;  %v4969_v62 = vor.u32 %v6652_v47, %v4968_v46  ;;  %3237 = vmatpush.bf16.msrb.mxu3 %v5241_v48 }
  0x3f   :  { %v5224_v51 = vld [vmem:[%s10405_s1 + $0x720] sm:$0xf]  ;;  %v6648_v57 = vld [vmem:[%s10405_s1 + $0x50c] sm:$0xf0]  ;;  %v5097_v63 = vor.u32 %v6684_v50, %v5096_v49  ;;  %3199 = vmatpush.bf16.msrb.mxu0 %v4841_v55 }
  0x40   :  { %v4824_v53 = vld [vmem:[%s10405_s1 + $0x400] sm:$0xf]  ;;  %v6680_v59 = vld [vmem:[%s10405_s1 + $0x60c] sm:$0xf0]  ;;  %v5225_v3 = vor.u32 %v6716_v52, %v5224_v51  ;;  %3212 = vmatpush.bf16.msrb.mxu1 %v4969_v62 }
  0x41   :  { %v4952_v56 = vld [vmem:[%s10405_s1 + $0x500] sm:$0xf]  ;;  %v7517_v2 = vld [vmem:[#allocation1 + $0x2d] sm:$0xff]  ;;  %v4825_v9 = vor.u32 %v6616_v54, %v4824_v53  ;;  %3225 = vmatpush.bf16.msrb.mxu2 %v5097_v63 }
  0x42   :  { %v5080_v58 = vld [vmem:[%s10405_s1 + $0x600] sm:$0xf]  ;;  %v6712_v5 = vld [vmem:[%s10405_s1 + $0x70c] sm:$0xf0]  ;;  %v4953_v13 = vor.u32 %v6648_v57, %v4952_v56  ;;  %3238 = vmatpush.bf16.msrb.mxu3 %v5225_v3 }
  0x43   :  { %v7515_v1 = vld [vmem:[#allocation1 + $0x3f] sm:$0xff]  ;;  %v6772_v7 = vld [vmem:[%s10405_s1 + $0x8ec] sm:$0xf0]  ;;  %v5081_v14 = vor.u32 %v6680_v59, %v5080_v58  ;;  %3200 = vmatpush.bf16.msrb.mxu0 %v4825_v9 }
  0x44   :  { %v5208_v4 = vld [vmem:[%s10405_s1 + $0x700] sm:$0xf]  ;;  %556 = vst [vmem:[#allocation1] ss:$9 sm:$0xff] %v22_v61  ;;  %v6804_v10 = vld [vmem:[%s10405_s1 + $0x9ec] sm:$0xf0]  ;;  %3213 = vmatpush.bf16.msrb.mxu1 %v4953_v13 }
  0x45   :  { %v5448_v6 = vld [vmem:[%s10405_s1 + $0x8e0] sm:$0xf]  ;;  %v6836_v12 = vld [vmem:[%s10405_s1 + $0xaec] sm:$0xf0]  ;;  %v5209_v17 = vor.u32 %v6712_v5, %v5208_v4  ;;  %3226 = vmatpush.bf16.msrb.mxu2 %v5081_v14 }
  0x46   :  { %v5576_v8 = vld [vmem:[%s10405_s1 + $0x9e0] sm:$0xf]  ;;  %v6868_v16 = vld [vmem:[%s10405_s1 + $0xbec] sm:$0xf0]  ;;  %v5449_v18 = vor.u32 %v6772_v7, %v5448_v6 }
  0x47   :  { %v5704_v11 = vld [vmem:[%s10405_s1 + $0xae0] sm:$0xf]  ;;  %v5577_v19 = vor.u32 %v6804_v10, %v5576_v8  ;;  %v6768_v22 = vld [vmem:[%s10405_s1 + $0x8cc] sm:$0xf0]  ;;  %3239 = vmatpush.bf16.msrb.mxu3 %v5209_v17  ;;  %3214 = vmatmul.bf16.vlgmr.msrb.gmra.mxu1 %v7517_v2 }
  0x48   :  { %v5832_v15 = vld [vmem:[%s10405_s1 + $0xbe0] sm:$0xf]  ;;  %v5705_v20 = vor.u32 %v6836_v12, %v5704_v11  ;;  %v6800_v25 = vld [vmem:[%s10405_s1 + $0x9cc] sm:$0xf0]  ;;  %3245 = vmatpush.bf16.msra.mxu0 %v5449_v18  ;;  %3227 = vmatmul.bf16.vlgmr.msrb.gmra.mxu2 %v7508_v60 }
  0x49   :  { %v5432_v21 = vld [vmem:[%s10405_s1 + $0x8c0] sm:$0xf]  ;;  %v5833_v24 = vor.u32 %v6868_v16, %v5832_v15  ;;  %v6832_v30 = vld [vmem:[%s10405_s1 + $0xacc] sm:$0xf0]  ;;  %3258 = vmatpush.bf16.msra.mxu1 %v5577_v19  ;;  %3201 = vmatmul.bf16.vlgmr.msrb.gmra.mxu0 %v7513_v0 }
  0x4a   :  { %v5560_v23 = vld [vmem:[%s10405_s1 + $0x9c0] sm:$0xf]  ;;  %v6864_v32 = vld [vmem:[%s10405_s1 + $0xbcc] sm:$0xf0]  ;;  %v5433_v33 = vor.u32 %v6768_v22, %v5432_v21  ;;  %3271 = vmatpush.bf16.msra.mxu2 %v5705_v20  ;;  %3240 = vmatmul.bf16.vlgmr.msrb.gmra.mxu3 %v7515_v1 }
  0x4b   :  { %v5688_v26 = vld [vmem:[%s10405_s1 + $0xac0] sm:$0xf]  ;;  %v5561_v35 = vor.u32 %v6800_v25, %v5560_v23  ;;  %v6764_v38 = vld [vmem:[%s10405_s1 + $0x8ac] sm:$0xf0]  ;;  %3284 = vmatpush.bf16.msra.mxu3 %v5833_v24 }
  0x4c   :  { %v5816_v31 = vld [vmem:[%s10405_s1 + $0xbc0] sm:$0xf]  ;;  %v5689_v36 = vor.u32 %v6832_v30, %v5688_v26  ;;  %v6796_v41 = vld [vmem:[%s10405_s1 + $0x9ac] sm:$0xf0]  ;;  %3246 = vmatpush.bf16.msra.mxu0 %v5433_v33 }
  0x4d   :  { %v5416_v37 = vld [vmem:[%s10405_s1 + $0x8a0] sm:$0xf]  ;;  %v5817_v40 = vor.u32 %v6864_v32, %v5816_v31  ;;  %v6828_v43 = vld [vmem:[%s10405_s1 + $0xaac] sm:$0xf0]  ;;  %3259 = vmatpush.bf16.msra.mxu1 %v5561_v35 }
  0x4e   :  { %v5544_v39 = vld [vmem:[%s10405_s1 + $0x9a0] sm:$0xf]  ;;  %v6860_v45 = vld [vmem:[%s10405_s1 + $0xbac] sm:$0xf0]  ;;  %v5417_v46 = vor.u32 %v6764_v38, %v5416_v37  ;;  %3272 = vmatpush.bf16.msra.mxu2 %v5689_v36 }
  0x4f   :  { %v5672_v42 = vld [vmem:[%s10405_s1 + $0xaa0] sm:$0xf]  ;;  %v5545_v47 = vor.u32 %v6796_v41, %v5544_v39  ;;  %v6760_v50 = vld [vmem:[%s10405_s1 + $0x88c] sm:$0xf0]  ;;  %3285 = vmatpush.bf16.msra.mxu3 %v5817_v40 }
  0x50   :  { %v5800_v44 = vld [vmem:[%s10405_s1 + $0xba0] sm:$0xf]  ;;  %v5673_v48 = vor.u32 %v6828_v43, %v5672_v42  ;;  %v6792_v53 = vld [vmem:[%s10405_s1 + $0x98c] sm:$0xf0]  ;;  %3247 = vmatpush.bf16.msra.mxu0 %v5417_v46 }
  0x51   :  { %v5400_v49 = vld [vmem:[%s10405_s1 + $0x880] sm:$0xf]  ;;  %v5801_v52 = vor.u32 %v6860_v45, %v5800_v44  ;;  %v6824_v55 = vld [vmem:[%s10405_s1 + $0xa8c] sm:$0xf0]  ;;  %3260 = vmatpush.bf16.msra.mxu1 %v5545_v47 }
  0x52   :  { %v5528_v51 = vld [vmem:[%s10405_s1 + $0x980] sm:$0xf]  ;;  %v6856_v57 = vld [vmem:[%s10405_s1 + $0xb8c] sm:$0xf0]  ;;  %v5401_v58 = vor.u32 %v6760_v50, %v5400_v49  ;;  %3273 = vmatpush.bf16.msra.mxu2 %v5673_v48 }
  0x53   :  { %v5656_v54 = vld [vmem:[%s10405_s1 + $0xa80] sm:$0xf]  ;;  %v5529_v59 = vor.u32 %v6792_v53, %v5528_v51  ;;  %v6756_v63 = vld [vmem:[%s10405_s1 + $0x86c] sm:$0xf0]  ;;  %3286 = vmatpush.bf16.msra.mxu3 %v5801_v52 }
  0x54   :  { %v5784_v56 = vld [vmem:[%s10405_s1 + $0xb80] sm:$0xf]  ;;  %v5657_v61 = vor.u32 %v6824_v55, %v5656_v54  ;;  %v6788_v5 = vld [vmem:[%s10405_s1 + $0x96c] sm:$0xf0]  ;;  %3248 = vmatpush.bf16.msra.mxu0 %v5401_v58 }
  0x55   :  { %v5384_v62 = vld [vmem:[%s10405_s1 + $0x860] sm:$0xf]  ;;  %v5785_v4 = vor.u32 %v6856_v57, %v5784_v56  ;;  %v6820_v7 = vld [vmem:[%s10405_s1 + $0xa6c] sm:$0xf0]  ;;  %3261 = vmatpush.bf16.msra.mxu1 %v5529_v59 }
  0x56   :  { %v5512_v3 = vld [vmem:[%s10405_s1 + $0x960] sm:$0xf]  ;;  %v6852_v9 = vld [vmem:[%s10405_s1 + $0xb6c] sm:$0xf0]  ;;  %v5385_v10 = vor.u32 %v6756_v63, %v5384_v62  ;;  %3274 = vmatpush.bf16.msra.mxu2 %v5657_v61 }
  0x57   :  { %v5640_v6 = vld [vmem:[%s10405_s1 + $0xa60] sm:$0xf]  ;;  %v5513_v11 = vor.u32 %v6788_v5, %v5512_v3  ;;  %v6752_v14 = vld [vmem:[%s10405_s1 + $0x84c] sm:$0xf0]  ;;  %3287 = vmatpush.bf16.msra.mxu3 %v5785_v4 }
  0x58   :  { %v5768_v8 = vld [vmem:[%s10405_s1 + $0xb60] sm:$0xf]  ;;  %v5641_v12 = vor.u32 %v6820_v7, %v5640_v6  ;;  %v6784_v17 = vld [vmem:[%s10405_s1 + $0x94c] sm:$0xf0]  ;;  %3249 = vmatpush.bf16.msra.mxu0 %v5385_v10 }
  0x59   :  { %v5368_v13 = vld [vmem:[%s10405_s1 + $0x840] sm:$0xf]  ;;  %v5769_v16 = vor.u32 %v6852_v9, %v5768_v8  ;;  %v6816_v19 = vld [vmem:[%s10405_s1 + $0xa4c] sm:$0xf0]  ;;  %3262 = vmatpush.bf16.msra.mxu1 %v5513_v11 }
  0x5a   :  { %v5496_v15 = vld [vmem:[%s10405_s1 + $0x940] sm:$0xf]  ;;  %v6848_v21 = vld [vmem:[%s10405_s1 + $0xb4c] sm:$0xf0]  ;;  %v5369_v22 = vor.u32 %v6752_v14, %v5368_v13  ;;  %3275 = vmatpush.bf16.msra.mxu2 %v5641_v12 }
  0x5b   :  { %v5624_v18 = vld [vmem:[%s10405_s1 + $0xa40] sm:$0xf]  ;;  %v5497_v23 = vor.u32 %v6784_v17, %v5496_v15  ;;  %v6748_v26 = vld [vmem:[%s10405_s1 + $0x82c] sm:$0xf0]  ;;  %3288 = vmatpush.bf16.msra.mxu3 %v5769_v16 }
  0x5c   :  { %v5752_v20 = vld [vmem:[%s10405_s1 + $0xb40] sm:$0xf]  ;;  %v5625_v24 = vor.u32 %v6816_v19, %v5624_v18  ;;  %v6780_v32 = vld [vmem:[%s10405_s1 + $0x92c] sm:$0xf0]  ;;  %3250 = vmatpush.bf16.msra.mxu0 %v5369_v22 }
  0x5d   :  { %v5352_v25 = vld [vmem:[%s10405_s1 + $0x820] sm:$0xf]  ;;  %v5753_v31 = vor.u32 %v6848_v21, %v5752_v20  ;;  %v6812_v35 = vld [vmem:[%s10405_s1 + $0xa2c] sm:$0xf0]  ;;  %3263 = vmatpush.bf16.msra.mxu1 %v5497_v23 }
  0x5e   :  { %v5480_v30 = vld [vmem:[%s10405_s1 + $0x920] sm:$0xf]  ;;  %v6844_v37 = vld [vmem:[%s10405_s1 + $0xb2c] sm:$0xf0]  ;;  %v5353_v38 = vor.u32 %v6748_v26, %v5352_v25  ;;  %3276 = vmatpush.bf16.msra.mxu2 %v5625_v24 }
  0x5f   :  { %v5608_v33 = vld [vmem:[%s10405_s1 + $0xa20] sm:$0xf]  ;;  %v6744_v40 = vld [vmem:[%s10405_s1 + $0x80c] sm:$0xf0]  ;;  %v5481_v41 = vor.u32 %v6780_v32, %v5480_v30  ;;  %3289 = vmatpush.bf16.msra.mxu3 %v5753_v31 }
  0x60   :  { %v5736_v36 = vld [vmem:[%s10405_s1 + $0xb20] sm:$0xf]  ;;  %v5609_v42 = vor.u32 %v6812_v35, %v5608_v33  ;;  %v6776_v44 = vld [vmem:[%s10405_s1 + $0x90c] sm:$0xf0]  ;;  %3251 = vmatpush.bf16.msra.mxu0 %v5353_v38 }
  0x61   :  { %v5336_v39 = vld [vmem:[%s10405_s1 + $0x800] sm:$0xf]  ;;  %v5737_v46 = vor.u32 %v6844_v37, %v5736_v36  ;;  %v6808_v47 = vld [vmem:[%s10405_s1 + $0xa0c] sm:$0xf0]  ;;  %3264 = vmatpush.bf16.msra.mxu1 %v5481_v41 }
  0x62   :  { %v5464_v43 = vld [vmem:[%s10405_s1 + $0x900] sm:$0xf]  ;;  %v6840_v49 = vld [vmem:[%s10405_s1 + $0xb0c] sm:$0xf0]  ;;  %v5337_v53 = vor.u32 %v6744_v40, %v5336_v39  ;;  %3277 = vmatpush.bf16.msra.mxu2 %v5609_v42 }
  0x63   :  { %v5592_v45 = vld [vmem:[%s10405_s1 + $0xa00] sm:$0xf]  ;;  %v6900_v51 = vld [vmem:[%s10405_s1 + $0xcec] sm:$0xf0]  ;;  %v5465_v57 = vor.u32 %v6776_v44, %v5464_v43  ;;  %3290 = vmatpush.bf16.msra.mxu3 %v5737_v46 }
  0x64   :  { %v5720_v48 = vld [vmem:[%s10405_s1 + $0xb00] sm:$0xf]  ;;  %v6932_v54 = vld [vmem:[%s10405_s1 + $0xdec] sm:$0xf0]  ;;  %v5593_v58 = vor.u32 %v6808_v47, %v5592_v45  ;;  %3252 = vmatpush.bf16.msra.mxu0 %v5337_v53 }
  0x65   :  { %v5960_v50 = vld [vmem:[%s10405_s1 + $0xce0] sm:$0xf]  ;;  %v6964_v56 = vld [vmem:[%s10405_s1 + $0xeec] sm:$0xf0]  ;;  %v5721_v62 = vor.u32 %v6840_v49, %v5720_v48  ;;  %3265 = vmatpush.bf16.msra.mxu1 %v5465_v57 }
  0x66   :  { %v6088_v52 = vld [vmem:[%s10405_s1 + $0xde0] sm:$0xf]  ;;  %v6996_v61 = vld [vmem:[%s10405_s1 + $0xfec] sm:$0xf0]  ;;  %v5961_v63 = vor.u32 %v6900_v51, %v5960_v50  ;;  %3278 = vmatpush.bf16.msra.mxu2 %v5593_v58 }
  0x67   :  { %v6216_v55 = vld [vmem:[%s10405_s1 + $0xee0] sm:$0xf]  ;;  %v6089_v3 = vor.u32 %v6932_v54, %v6088_v52  ;;  %v6896_v6 = vld [vmem:[%s10405_s1 + $0xccc] sm:$0xf0]  ;;  %3291 = vmatpush.bf16.msra.mxu3 %v5721_v62 }
  0x68   :  { %v6344_v59 = vld [vmem:[%s10405_s1 + $0xfe0] sm:$0xf]  ;;  %v6217_v4 = vor.u32 %v6964_v56, %v6216_v55  ;;  %v6928_v9 = vld [vmem:[%s10405_s1 + $0xdcc] sm:$0xf0]  ;;  %3297 = vmatpush.bf16.msrb.mxu0 %v5961_v63 }
  0x69   :  { %v5944_v5 = vld [vmem:[%s10405_s1 + $0xcc0] sm:$0xf]  ;;  %v6345_v8 = vor.u32 %v6996_v61, %v6344_v59  ;;  %v6960_v11 = vld [vmem:[%s10405_s1 + $0xecc] sm:$0xf0]  ;;  %3310 = vmatpush.bf16.msrb.mxu1 %v6089_v3 }
  0x6a   :  { %v6072_v7 = vld [vmem:[%s10405_s1 + $0xdc0] sm:$0xf]  ;;  %v6992_v14 = vld [vmem:[%s10405_s1 + $0xfcc] sm:$0xf0]  ;;  %v5945_v18 = vor.u32 %v6896_v6, %v5944_v5  ;;  %3323 = vmatpush.bf16.msrb.mxu2 %v6217_v4 }
  0x6b   :  { %v6200_v10 = vld [vmem:[%s10405_s1 + $0xec0] sm:$0xf]  ;;  %v559_v15 = vld [vmem:[#allocation1 + $0x12] sm:$0xff]  ;;  %v558_v16 = vld [vmem:[#allocation1 + $0x9] sm:$0xff]  ;;  %v6073_v19 = vor.u32 %v6928_v9, %v6072_v7  ;;  %3336 = vmatpush.bf16.msrb.mxu3 %v6345_v8 }
  0x6c   :  { %v557_v12 = vld [vmem:[#allocation1] sm:$0xff]  ;;  %v6201_v20 = vor.u32 %v6960_v11, %v6200_v10  ;;  %v6892_v22 = vld [vmem:[%s10405_s1 + $0xcac] sm:$0xf0]  ;;  %3279 = vmatmul.bf16.vlgmr.msra.gmra.mxu2 %v559_v15  ;;  %3266 = vmatmul.bf16.vlgmr.msra.gmra.mxu1 %v558_v16 }
  0x6d   :  { %v6328_v13 = vld [vmem:[%s10405_s1 + $0xfc0] sm:$0xf]  ;;  %3253 = vmatmul.bf16.vlgmr.msra.gmra.mxu0 %v557_v12  ;;  %v6924_v25 = vld [vmem:[%s10405_s1 + $0xdac] sm:$0xf0]  ;;  %3311 = vmatpush.bf16.msrb.mxu1 %v6073_v19 }
  0x6e   :  { %v560_v17 = vld [vmem:[#allocation1 + $0x1b] sm:$0xff]  ;;  %v6329_v24 = vor.u32 %v6992_v14, %v6328_v13  ;;  %v6956_v30 = vld [vmem:[%s10405_s1 + $0xeac] sm:$0xf0]  ;;  %3298 = vmatpush.bf16.msrb.mxu0 %v5945_v18  ;;  %3324 = vmatpush.bf16.msrb.mxu2 %v6201_v20 }
  0x6f   :  { %v5928_v21 = vld [vmem:[%s10405_s1 + $0xca0] sm:$0xf]  ;;  %v6988_v32 = vld [vmem:[%s10405_s1 + $0xfac] sm:$0xf0]  ;;  %3292 = vmatmul.bf16.vlgmr.msra.gmra.mxu3 %v560_v17 }
  0x70   :  { %v6056_v23 = vld [vmem:[%s10405_s1 + $0xda0] sm:$0xf]  ;;  %v5929_v33 = vor.u32 %v6892_v22, %v5928_v21  ;;  %v6888_v38 = vld [vmem:[%s10405_s1 + $0xc8c] sm:$0xf0]  ;;  %3337 = vmatpush.bf16.msrb.mxu3 %v6329_v24 }
  0x71   :  { %v6184_v26 = vld [vmem:[%s10405_s1 + $0xea0] sm:$0xf]  ;;  %v6057_v36 = vor.u32 %v6924_v25, %v6056_v23  ;;  %v6920_v40 = vld [vmem:[%s10405_s1 + $0xd8c] sm:$0xf0] }
  0x72   :  { %v6312_v31 = vld [vmem:[%s10405_s1 + $0xfa0] sm:$0xf]  ;;  %v6185_v37 = vor.u32 %v6956_v30, %v6184_v26  ;;  %v6952_v43 = vld [vmem:[%s10405_s1 + $0xe8c] sm:$0xf0] }
  0x73   :  { %v5912_v35 = vld [vmem:[%s10405_s1 + $0xc80] sm:$0xf]  ;;  %v6313_v41 = vor.u32 %v6988_v32, %v6312_v31  ;;  %v6984_v45 = vld [vmem:[%s10405_s1 + $0xf8c] sm:$0xf0] }
  0x74   :  { %v6040_v39 = vld [vmem:[%s10405_s1 + $0xd80] sm:$0xf] }
  0x75   :  { %v6168_v42 = vld [vmem:[%s10405_s1 + $0xe80] sm:$0xf] }
  0x76   :  { %v6296_v44 = vld [vmem:[%s10405_s1 + $0xf80] sm:$0xf] }
  0x77   :  { %10 = vsyncpa [#allocation3], 0  ;;  %3299 = vmatpush.bf16.msrb.mxu0 %v5929_v33  ;;  %v5913_v46 = vor.u32 %v6888_v38, %v5912_v35  ;;  %3312 = vmatpush.bf16.msrb.mxu1 %v6057_v36  ;;  %v6041_v47 = vor.u32 %v6920_v40, %v6040_v39  ;;  %v6169_v48 = vor.u32 %v6952_v43, %v6168_v42  ;;  %v5896_v49 = vld [vmem:[%s10405_s1 + $0xc60] sm:$0xf]  ;;  %v6884_v50 = vld [vmem:[%s10405_s1 + $0xc6c] sm:$0xf0] }
  0x78   :  { %3325 = vmatpush.bf16.msrb.mxu2 %v6185_v37  ;;  %v6024_v51 = vld [vmem:[%s10405_s1 + $0xd60] sm:$0xf]  ;;  %3338 = vmatpush.bf16.msrb.mxu3 %v6313_v41  ;;  %v6297_v52 = vor.u32 %v6984_v45, %v6296_v44  ;;  %v6916_v53 = vld [vmem:[%s10405_s1 + $0xd6c] sm:$0xf0]  ;;  %v5897_v58 = vor.u32 %v6884_v50, %v5896_v49  ;;  %v6514_v38 = vld [vmem:[%s10405_s1 + $0xe4] sm:$0xf] }
  0x79   :  { %v6152_v54 = vld [vmem:[%s10405_s1 + $0xe60] sm:$0xf]  ;;  %v6948_v55 = vld [vmem:[%s10405_s1 + $0xe6c] sm:$0xf0]  ;;  %v6025_v59 = vor.u32 %v6916_v53, %v6024_v51  ;;  %v4426_v39 = vld [vmem:[%s10405_s1 + $0xf0] sm:$0xf0] }
  0x7a   :  { %v6280_v56 = vld [vmem:[%s10405_s1 + $0xf60] sm:$0xf]  ;;  %v6980_v57 = vld [vmem:[%s10405_s1 + $0xf6c] sm:$0xf0]  ;;  %v6153_v61 = vor.u32 %v6948_v55, %v6152_v54  ;;  %v6546_v40 = vld [vmem:[%s10405_s1 + $0x1e4] sm:$0xf]  ;;  %v4429_v50 = vor.u32 %v6514_v38, %v4426_v39 }
  0x7b   :  { %3300 = vmatpush.bf16.msrb.mxu0 %v5913_v46  ;;  %3313 = vmatpush.bf16.msrb.mxu1 %v6041_v47  ;;  %v5880_v62 = vld [vmem:[%s10405_s1 + $0xc40] sm:$0xf]  ;;  %v6880_v63 = vld [vmem:[%s10405_s1 + $0xc4c] sm:$0xf0]  ;;  %v6281_v4 = vor.u32 %v6980_v57, %v6280_v56  ;;  %v4554_v42 = vld [vmem:[%s10405_s1 + $0x1f0] sm:$0xf0] }
  0x7c   :  { %3326 = vmatpush.bf16.msrb.mxu2 %v6169_v48  ;;  %v6008_v3 = vld [vmem:[%s10405_s1 + $0xd40] sm:$0xf]  ;;  %3339 = vmatpush.bf16.msrb.mxu3 %v6297_v52  ;;  %v6912_v5 = vld [vmem:[%s10405_s1 + $0xd4c] sm:$0xf0]  ;;  %v5881_v10 = vor.u32 %v6880_v63, %v5880_v62  ;;  %v6578_v43 = vld [vmem:[%s10405_s1 + $0x2e4] sm:$0xf]  ;;  %v4557_v51 = vor.u32 %v6546_v40, %v4554_v42 }
  0x7d   :  { %v6136_v6 = vld [vmem:[%s10405_s1 + $0xe40] sm:$0xf]  ;;  %v6944_v7 = vld [vmem:[%s10405_s1 + $0xe4c] sm:$0xf0]  ;;  %v6009_v11 = vor.u32 %v6912_v5, %v6008_v3  ;;  %v4682_v44 = vld [vmem:[%s10405_s1 + $0x2f0] sm:$0xf0] }
  0x7e   :  { %v6264_v8 = vld [vmem:[%s10405_s1 + $0xf40] sm:$0xf]  ;;  %v6976_v9 = vld [vmem:[%s10405_s1 + $0xf4c] sm:$0xf0]  ;;  %v6137_v12 = vor.u32 %v6944_v7, %v6136_v6  ;;  %v6610_v47 = vld [vmem:[%s10405_s1 + $0x3e4] sm:$0xf]  ;;  %v4685_v52 = vor.u32 %v6578_v43, %v4682_v44 }
  0x7f   :  { %3301 = vmatpush.bf16.msrb.mxu0 %v5897_v58  ;;  %3314 = vmatpush.bf16.msrb.mxu1 %v6025_v59  ;;  %v5864_v13 = vld [vmem:[%s10405_s1 + $0xc20] sm:$0xf]  ;;  %v6876_v14 = vld [vmem:[%s10405_s1 + $0xc2c] sm:$0xf0]  ;;  %v6265_v16 = vor.u32 %v6976_v9, %v6264_v8  ;;  %v4810_v48 = vld [vmem:[%s10405_s1 + $0x3f0] sm:$0xf0] }
  0x80   :  { %3327 = vmatpush.bf16.msrb.mxu2 %v6153_v61  ;;  %v5992_v15 = vld [vmem:[%s10405_s1 + $0xd20] sm:$0xf]  ;;  %3340 = vmatpush.bf16.msrb.mxu3 %v6281_v4  ;;  %v6908_v17 = vld [vmem:[%s10405_s1 + $0xd2c] sm:$0xf0]  ;;  %v5865_v22 = vor.u32 %v6876_v14, %v5864_v13  ;;  %v6510_v53 = vld [vmem:[%s10405_s1 + $0xc4] sm:$0xf]  ;;  %v4813_v56 = vor.u32 %v6610_v47, %v4810_v48 }
  0x81   :  { %v6120_v18 = vld [vmem:[%s10405_s1 + $0xe20] sm:$0xf]  ;;  %v6940_v19 = vld [vmem:[%s10405_s1 + $0xe2c] sm:$0xf0]  ;;  %v5993_v25 = vor.u32 %v6908_v17, %v5992_v15  ;;  %v4410_v54 = vld [vmem:[%s10405_s1 + $0xd0] sm:$0xf0] }
  0x82   :  { %v6248_v20 = vld [vmem:[%s10405_s1 + $0xf20] sm:$0xf]  ;;  %v6972_v21 = vld [vmem:[%s10405_s1 + $0xf2c] sm:$0xf0]  ;;  %v6121_v26 = vor.u32 %v6940_v19, %v6120_v18  ;;  %v6542_v55 = vld [vmem:[%s10405_s1 + $0x1c4] sm:$0xf]  ;;  %v4413_v6 = vor.u32 %v6510_v53, %v4410_v54 }
  0x83   :  { %3302 = vmatpush.bf16.msrb.mxu0 %v5881_v10  ;;  %v5848_v23 = vld [vmem:[%s10405_s1 + $0xc00] sm:$0xf]  ;;  %v6872_v24 = vld [vmem:[%s10405_s1 + $0xc0c] sm:$0xf0]  ;;  %3315 = vmatpush.bf16.msrb.mxu1 %v6009_v11  ;;  %v6249_v33 = vor.u32 %v6972_v21, %v6248_v20  ;;  %v4538_v57 = vld [vmem:[%s10405_s1 + $0x1d0] sm:$0xf0] }
  0x84   :  { %3328 = vmatpush.bf16.msrb.mxu2 %v6137_v12  ;;  %v5976_v30 = vld [vmem:[%s10405_s1 + $0xd00] sm:$0xf]  ;;  %v6904_v31 = vld [vmem:[%s10405_s1 + $0xd0c] sm:$0xf0]  ;;  %3341 = vmatpush.bf16.msrb.mxu3 %v6265_v16  ;;  %v5849_v41 = vor.u32 %v6872_v24, %v5848_v23  ;;  %v6574_v58 = vld [vmem:[%s10405_s1 + $0x2c4] sm:$0xf]  ;;  %v4541_v7 = vor.u32 %v6542_v55, %v4538_v57 }
  0x85   :  { %v6104_v32 = vld [vmem:[%s10405_s1 + $0xe00] sm:$0xf]  ;;  %v6936_v35 = vld [vmem:[%s10405_s1 + $0xe0c] sm:$0xf0]  ;;  %v5977_v45 = vor.u32 %v6904_v31, %v5976_v30  ;;  %v4666_v59 = vld [vmem:[%s10405_s1 + $0x2d0] sm:$0xf0] }
  0x86   :  { %v6232_v36 = vld [vmem:[%s10405_s1 + $0xf00] sm:$0xf]  ;;  %v6968_v37 = vld [vmem:[%s10405_s1 + $0xf0c] sm:$0xf0]  ;;  %v6105_v46 = vor.u32 %v6936_v35, %v6104_v32  ;;  %v561_v61 = vld [vmem:[#allocation1 + $0x24] sm:$0xff]  ;;  %v4669_v8 = vor.u32 %v6574_v58, %v4666_v59  ;;  %s7084_s27 = smov [#allocation2]  }
  0x87   :  { %3303 = vmatpush.bf16.msrb.mxu0 %v5865_v22  ;;  %3316 = vmatpush.bf16.msrb.mxu1 %v5993_v25  ;;  %v6233_v49 = vor.u32 %v6968_v37, %v6232_v36  ;;  %v6606_v62 = vld [vmem:[%s10405_s1 + $0x3c4] sm:$0xf]  ;;  %v4794_v63 = vld [vmem:[%s10405_s1 + $0x3d0] sm:$0xf0]  ;;  %s4299_s0 = sshll.u32 %s7084_s27, 4  ;;  %s4301_s30 = sshll.u32 %s10409_s5, 4  ;;  %s4300_s0 = int_to_ptr.vmem [resolvable:$true] %s4299_s0  ;;  %s4302_s30 = int_to_ptr.hbm [resolvable:$true] %s4301_s30 }
  0x88   :  { %3329 = vmatpush.bf16.msrb.mxu2 %v6121_v26  ;;  %3342 = vmatpush.bf16.msrb.mxu3 %v6249_v33  ;;  %v563_v3 = vld [vmem:[#allocation1 + $0x36] sm:$0xff]  ;;  %v562_v4 = vld [vmem:[#allocation1 + $0x2d] sm:$0xff]  ;;  %v564_v5 = vld [vmem:[#allocation1 + $0x3f] sm:$0xff]  ;;  %v4797_v12 = vor.u32 %v6606_v62, %v4794_v63 }
  0x89   :  { %v6506_v9 = vld [vmem:[%s10405_s1 + $0xa4] sm:$0xf]  ;;  %v4394_v10 = vld [vmem:[%s10405_s1 + $0xb0] sm:$0xf0] }
  0x8a   :  { %v6538_v11 = vld [vmem:[%s10405_s1 + $0x1a4] sm:$0xf]  ;;  %v4522_v13 = vld [vmem:[%s10405_s1 + $0x1b0] sm:$0xf0]  ;;  %v4397_v18 = vor.u32 %v6506_v9, %v4394_v10 }
  0x8b   :  { %3304 = vmatpush.bf16.msrb.mxu0 %v5849_v41  ;;  %3317 = vmatpush.bf16.msrb.mxu1 %v5977_v45  ;;  %v6570_v14 = vld [vmem:[%s10405_s1 + $0x2a4] sm:$0xf]  ;;  %v4650_v15 = vld [vmem:[%s10405_s1 + $0x2b0] sm:$0xf0]  ;;  %v4525_v19 = vor.u32 %v6538_v11, %v4522_v13 }
  0x8c   :  { %3330 = vmatpush.bf16.msrb.mxu2 %v6105_v46  ;;  %3343 = vmatpush.bf16.msrb.mxu3 %v6233_v49  ;;  %v6602_v16 = vld [vmem:[%s10405_s1 + $0x3a4] sm:$0xf]  ;;  %v4778_v17 = vld [vmem:[%s10405_s1 + $0x3b0] sm:$0xf0]  ;;  %v4653_v20 = vor.u32 %v6570_v14, %v4650_v15 }
  0x8d   :  { %v6502_v21 = vld [vmem:[%s10405_s1 + $0x84] sm:$0xf]  ;;  %v4378_v22 = vld [vmem:[%s10405_s1 + $0x90] sm:$0xf0]  ;;  %v4781_v24 = vor.u32 %v6602_v16, %v4778_v17 }
  0x8e   :  { %3305 = vmatmul.bf16.vlgmr.msrb.gmra.mxu0 %v561_v61  ;;  %3318 = vmatmul.bf16.vlgmr.msrb.gmra.mxu1 %v562_v4  ;;  %v6534_v23 = vld [vmem:[%s10405_s1 + $0x184] sm:$0xf]  ;;  %v4506_v25 = vld [vmem:[%s10405_s1 + $0x190] sm:$0xf0]  ;;  %v4381_v33 = vor.u32 %v6502_v21, %v4378_v22 }
  0x8f   :  { %3349 = vmatpush.bf16.msra.mxu0 %v4429_v50  ;;  %3362 = vmatpush.bf16.msra.mxu1 %v4557_v51  ;;  %v6566_v26 = vld [vmem:[%s10405_s1 + $0x284] sm:$0xf]  ;;  %v4634_v30 = vld [vmem:[%s10405_s1 + $0x290] sm:$0xf0]  ;;  %v4509_v35 = vor.u32 %v6534_v23, %v4506_v25 }
  0x90   :  { %3375 = vmatpush.bf16.msra.mxu2 %v4685_v52  ;;  %3388 = vmatpush.bf16.msra.mxu3 %v4813_v56  ;;  %v6598_v31 = vld [vmem:[%s10405_s1 + $0x384] sm:$0xf]  ;;  %v4762_v32 = vld [vmem:[%s10405_s1 + $0x390] sm:$0xf0]  ;;  %v4637_v36 = vor.u32 %v6566_v26, %v4634_v30 }
  0x91   :  { %3331 = vmatmul.bf16.vlgmr.msrb.gmra.mxu2 %v563_v3  ;;  %3344 = vmatmul.bf16.vlgmr.msrb.gmra.mxu3 %v564_v5  ;;  %v6498_v37 = vld [vmem:[%s10405_s1 + $0x64] sm:$0xf]  ;;  %v4362_v38 = vld [vmem:[%s10405_s1 + $0x70] sm:$0xf0]  ;;  %v4765_v40 = vor.u32 %v6598_v31, %v4762_v32 }
  0x92   :  { %v6530_v39 = vld [vmem:[%s10405_s1 + $0x164] sm:$0xf]  ;;  %v4490_v41 = vld [vmem:[%s10405_s1 + $0x170] sm:$0xf0]  ;;  %v4365_v46 = vor.u32 %v6498_v37, %v4362_v38 }
  0x93   :  { %3350 = vmatpush.bf16.msra.mxu0 %v4413_v6  ;;  %3363 = vmatpush.bf16.msra.mxu1 %v4541_v7  ;;  %v6562_v42 = vld [vmem:[%s10405_s1 + $0x264] sm:$0xf]  ;;  %v4618_v43 = vld [vmem:[%s10405_s1 + $0x270] sm:$0xf0]  ;;  %v4493_v47 = vor.u32 %v6530_v39, %v4490_v41 }
  0x94   :  { %3376 = vmatpush.bf16.msra.mxu2 %v4669_v8  ;;  %3389 = vmatpush.bf16.msra.mxu3 %v4797_v12  ;;  %v6594_v44 = vld [vmem:[%s10405_s1 + $0x364] sm:$0xf]  ;;  %v4746_v45 = vld [vmem:[%s10405_s1 + $0x370] sm:$0xf0]  ;;  %v4621_v48 = vor.u32 %v6562_v42, %v4618_v43 }
  0x95   :  { %v6494_v49 = vld [vmem:[%s10405_s1 + $0x44] sm:$0xf]  ;;  %v4346_v50 = vld [vmem:[%s10405_s1 + $0x50] sm:$0xf0]  ;;  %v4749_v52 = vor.u32 %v6594_v44, %v4746_v45 }
  0x96   :  { %v6526_v51 = vld [vmem:[%s10405_s1 + $0x144] sm:$0xf]  ;;  %v4474_v53 = vld [vmem:[%s10405_s1 + $0x150] sm:$0xf0]  ;;  %v4349_v58 = vor.u32 %v6494_v49, %v4346_v50 }
  0x97   :  { %3351 = vmatpush.bf16.msra.mxu0 %v4397_v18  ;;  %3364 = vmatpush.bf16.msra.mxu1 %v4525_v19  ;;  %v6558_v54 = vld [vmem:[%s10405_s1 + $0x244] sm:$0xf]  ;;  %v4602_v55 = vld [vmem:[%s10405_s1 + $0x250] sm:$0xf0]  ;;  %v4477_v59 = vor.u32 %v6526_v51, %v4474_v53 }
  0x98   :  { %3377 = vmatpush.bf16.msra.mxu2 %v4653_v20  ;;  %3390 = vmatpush.bf16.msra.mxu3 %v4781_v24  ;;  %v6590_v56 = vld [vmem:[%s10405_s1 + $0x344] sm:$0xf]  ;;  %v4730_v57 = vld [vmem:[%s10405_s1 + $0x350] sm:$0xf0]  ;;  %v4605_v61 = vor.u32 %v6558_v54, %v4602_v55 }
  0x99   :  { %v6490_v62 = vld [vmem:[%s10405_s1 + $0x24] sm:$0xf]  ;;  %v4330_v63 = vld [vmem:[%s10405_s1 + $0x30] sm:$0xf0]  ;;  %v4733_v4 = vor.u32 %v6590_v56, %v4730_v57 }
  0x9a   :  { %v6522_v3 = vld [vmem:[%s10405_s1 + $0x124] sm:$0xf]  ;;  %v4458_v5 = vld [vmem:[%s10405_s1 + $0x130] sm:$0xf0]  ;;  %v4333_v10 = vor.u32 %v6490_v62, %v4330_v63 }
  0x9b   :  { %3352 = vmatpush.bf16.msra.mxu0 %v4381_v33  ;;  %3365 = vmatpush.bf16.msra.mxu1 %v4509_v35  ;;  %v6554_v6 = vld [vmem:[%s10405_s1 + $0x224] sm:$0xf]  ;;  %v4586_v7 = vld [vmem:[%s10405_s1 + $0x230] sm:$0xf0]  ;;  %v4461_v13 = vor.u32 %v6522_v3, %v4458_v5 }
  0x9c   :  { %3378 = vmatpush.bf16.msra.mxu2 %v4637_v36  ;;  %3391 = vmatpush.bf16.msra.mxu3 %v4765_v40  ;;  %v6586_v8 = vld [vmem:[%s10405_s1 + $0x324] sm:$0xf]  ;;  %v4714_v9 = vld [vmem:[%s10405_s1 + $0x330] sm:$0xf0]  ;;  %v4589_v14 = vor.u32 %v6554_v6, %v4586_v7 }
  0x9d   :  { %v6486_v11 = vld [vmem:[%s10405_s1 + $0x4] sm:$0xf]  ;;  %v4314_v12 = vld [vmem:[%s10405_s1 + $0x10] sm:$0xf0]  ;;  %v4717_v18 = vor.u32 %v6586_v8, %v4714_v9 }
  0x9e   :  { %v6518_v15 = vld [vmem:[%s10405_s1 + $0x104] sm:$0xf]  ;;  %v4442_v16 = vld [vmem:[%s10405_s1 + $0x110] sm:$0xf0]  ;;  %v4317_v25 = vor.u32 %v6486_v11, %v4314_v12 }
  0x9f   :  { %3353 = vmatpush.bf16.msra.mxu0 %v4365_v46  ;;  %3366 = vmatpush.bf16.msra.mxu1 %v4493_v47  ;;  %v6550_v17 = vld [vmem:[%s10405_s1 + $0x204] sm:$0xf]  ;;  %v4570_v19 = vld [vmem:[%s10405_s1 + $0x210] sm:$0xf0]  ;;  %v4445_v32 = vor.u32 %v6518_v15, %v4442_v16 }
  0xa0   :  { %3379 = vmatpush.bf16.msra.mxu2 %v4621_v48  ;;  %3392 = vmatpush.bf16.msra.mxu3 %v4749_v52  ;;  %v6582_v20 = vld [vmem:[%s10405_s1 + $0x304] sm:$0xf]  ;;  %v4698_v21 = vld [vmem:[%s10405_s1 + $0x310] sm:$0xf0]  ;;  %v4573_v33 = vor.u32 %v6550_v17, %v4570_v19 }
  0xa1   :  { %v6642_v22 = vld [vmem:[%s10405_s1 + $0x4e4] sm:$0xf]  ;;  %v4938_v23 = vld [vmem:[%s10405_s1 + $0x4f0] sm:$0xf0]  ;;  %v4701_v37 = vor.u32 %v6582_v20, %v4698_v21 }
  0xa2   :  { %v6674_v24 = vld [vmem:[%s10405_s1 + $0x5e4] sm:$0xf]  ;;  %v5066_v26 = vld [vmem:[%s10405_s1 + $0x5f0] sm:$0xf0]  ;;  %v4941_v38 = vor.u32 %v6642_v22, %v4938_v23 }
  0xa3   :  { %3354 = vmatpush.bf16.msra.mxu0 %v4349_v58  ;;  %3367 = vmatpush.bf16.msra.mxu1 %v4477_v59  ;;  %v6706_v30 = vld [vmem:[%s10405_s1 + $0x6e4] sm:$0xf]  ;;  %v5194_v31 = vld [vmem:[%s10405_s1 + $0x6f0] sm:$0xf0]  ;;  %v5069_v39 = vor.u32 %v6674_v24, %v5066_v26 }
  0xa4   :  { %3380 = vmatpush.bf16.msra.mxu2 %v4605_v61  ;;  %3393 = vmatpush.bf16.msra.mxu3 %v4733_v4  ;;  %v6738_v35 = vld [vmem:[%s10405_s1 + $0x7e4] sm:$0xf]  ;;  %v5322_v36 = vld [vmem:[%s10405_s1 + $0x7f0] sm:$0xf0]  ;;  %v5197_v40 = vor.u32 %v6706_v30, %v5194_v31 }
  0xa5   :  { %v6638_v41 = vld [vmem:[%s10405_s1 + $0x4c4] sm:$0xf]  ;;  %v4922_v42 = vld [vmem:[%s10405_s1 + $0x4d0] sm:$0xf0]  ;;  %v5325_v44 = vor.u32 %v6738_v35, %v5322_v36 }
  0xa6   :  { %v6670_v43 = vld [vmem:[%s10405_s1 + $0x5c4] sm:$0xf]  ;;  %v5050_v45 = vld [vmem:[%s10405_s1 + $0x5d0] sm:$0xf0]  ;;  %v4925_v50 = vor.u32 %v6638_v41, %v4922_v42 }
  0xa7   :  { %3355 = vmatpush.bf16.msra.mxu0 %v4333_v10  ;;  %3368 = vmatpush.bf16.msra.mxu1 %v4461_v13  ;;  %v6702_v46 = vld [vmem:[%s10405_s1 + $0x6c4] sm:$0xf]  ;;  %v5178_v47 = vld [vmem:[%s10405_s1 + $0x6d0] sm:$0xf0]  ;;  %v5053_v51 = vor.u32 %v6670_v43, %v5050_v45 }
  0xa8   :  { %3381 = vmatpush.bf16.msra.mxu2 %v4589_v14  ;;  %3394 = vmatpush.bf16.msra.mxu3 %v4717_v18  ;;  %v6734_v48 = vld [vmem:[%s10405_s1 + $0x7c4] sm:$0xf]  ;;  %v5306_v49 = vld [vmem:[%s10405_s1 + $0x7d0] sm:$0xf0]  ;;  %v5181_v52 = vor.u32 %v6702_v46, %v5178_v47 }
  0xa9   :  { %v6634_v53 = vld [vmem:[%s10405_s1 + $0x4a4] sm:$0xf]  ;;  %v4906_v54 = vld [vmem:[%s10405_s1 + $0x4b0] sm:$0xf0]  ;;  %v5309_v56 = vor.u32 %v6734_v48, %v5306_v49 }
  0xaa   :  { %v6666_v55 = vld [vmem:[%s10405_s1 + $0x5a4] sm:$0xf]  ;;  %v5034_v57 = vld [vmem:[%s10405_s1 + $0x5b0] sm:$0xf0]  ;;  %v4909_v63 = vor.u32 %v6634_v53, %v4906_v54 }
  0xab   :  { %3356 = vmatpush.bf16.msra.mxu0 %v4317_v25  ;;  %3369 = vmatpush.bf16.msra.mxu1 %v4445_v32  ;;  %v6698_v58 = vld [vmem:[%s10405_s1 + $0x6a4] sm:$0xf]  ;;  %v5162_v59 = vld [vmem:[%s10405_s1 + $0x6b0] sm:$0xf0]  ;;  %v5037_v3 = vor.u32 %v6666_v55, %v5034_v57 }
  0xac   :  { %3382 = vmatpush.bf16.msra.mxu2 %v4573_v33  ;;  %3395 = vmatpush.bf16.msra.mxu3 %v4701_v37  ;;  %v6730_v61 = vld [vmem:[%s10405_s1 + $0x7a4] sm:$0xf]  ;;  %v5290_v62 = vld [vmem:[%s10405_s1 + $0x7b0] sm:$0xf0]  ;;  %v5165_v4 = vor.u32 %v6698_v58, %v5162_v59 }
  0xad   :  { %v6630_v5 = vld [vmem:[%s10405_s1 + $0x484] sm:$0xf]  ;;  %v4890_v6 = vld [vmem:[%s10405_s1 + $0x490] sm:$0xf0]  ;;  %v5293_v8 = vor.u32 %v6730_v61, %v5290_v62 }
  0xae   :  { %3357 = vmatmul.bf16.vlgmr.msra.gmra.mxu0 %v7435_v28  ;;  %3370 = vmatmul.bf16.vlgmr.msra.gmra.mxu1 %v7445_v34  ;;  %v6662_v7 = vld [vmem:[%s10405_s1 + $0x584] sm:$0xf]  ;;  %v5018_v9 = vld [vmem:[%s10405_s1 + $0x590] sm:$0xf0]  ;;  %v4893_v14 = vor.u32 %v6630_v5, %v4890_v6 }
  0xaf   :  { %3401 = vmatpush.bf16.msrb.mxu0 %v4941_v38  ;;  %3414 = vmatpush.bf16.msrb.mxu1 %v5069_v39  ;;  %v6694_v10 = vld [vmem:[%s10405_s1 + $0x684] sm:$0xf]  ;;  %v5146_v11 = vld [vmem:[%s10405_s1 + $0x690] sm:$0xf0]  ;;  %v5021_v15 = vor.u32 %v6662_v7, %v5018_v9 }
  0xb0   :  { %3427 = vmatpush.bf16.msrb.mxu2 %v5197_v40  ;;  %3440 = vmatpush.bf16.msrb.mxu3 %v5325_v44  ;;  %v6726_v12 = vld [vmem:[%s10405_s1 + $0x784] sm:$0xf]  ;;  %v5274_v13 = vld [vmem:[%s10405_s1 + $0x790] sm:$0xf0]  ;;  %v5149_v16 = vor.u32 %v6694_v10, %v5146_v11  ;;  %v535_v40 = vld [vmem:[%s10406_s2] sm:$0xf] }
  0xb1   :  { %3383 = vmatmul.bf16.vlgmr.msra.gmra.mxu2 %v7433_v27  ;;  %3396 = vmatmul.bf16.vlgmr.msra.gmra.mxu3 %v7437_v29  ;;  %v6626_v17 = vld [vmem:[%s10405_s1 + $0x464] sm:$0xf]  ;;  %v4874_v18 = vld [vmem:[%s10405_s1 + $0x470] sm:$0xf0]  ;;  %v5277_v20 = vor.u32 %v6726_v12, %v5274_v13  ;;  %v537_v49 = vperm.slane %v535_v40, 0 }
  0xb2   :  { %v6658_v19 = vld [vmem:[%s10405_s1 + $0x564] sm:$0xf]  ;;  %v5002_v21 = vld [vmem:[%s10405_s1 + $0x570] sm:$0xf0]  ;;  %v4877_v26 = vor.u32 %v6626_v17, %v4874_v18 }
  0xb3   :  { %3402 = vmatpush.bf16.msrb.mxu0 %v4925_v50  ;;  %3415 = vmatpush.bf16.msrb.mxu1 %v5053_v51  ;;  %v6690_v22 = vld [vmem:[%s10405_s1 + $0x664] sm:$0xf]  ;;  %v5130_v23 = vld [vmem:[%s10405_s1 + $0x670] sm:$0xf0]  ;;  %v5005_v31 = vor.u32 %v6658_v19, %v5002_v21 }
  0xb4   :  { %3428 = vmatpush.bf16.msrb.mxu2 %v5181_v52  ;;  %3441 = vmatpush.bf16.msrb.mxu3 %v5309_v56  ;;  %v6722_v24 = vld [vmem:[%s10405_s1 + $0x764] sm:$0xf]  ;;  %v5258_v25 = vld [vmem:[%s10405_s1 + $0x770] sm:$0xf0]  ;;  %v5133_v32 = vor.u32 %v6690_v22, %v5130_v23  ;;  %v3163_v6 = vpop.f32.mrf.mxu1 }
  0xb5   :  { %v6622_v30 = vld [vmem:[%s10405_s1 + $0x444] sm:$0xf]  ;;  %v4858_v33 = vld [vmem:[%s10405_s1 + $0x450] sm:$0xf0]  ;;  %v5261_v37 = vor.u32 %v6722_v24, %v5258_v25  ;;  %v3150_v59 = vpop.f32.mrf.mxu0 }
  0xb6   :  { %v6654_v35 = vld [vmem:[%s10405_s1 + $0x544] sm:$0xf]  ;;  %v4986_v36 = vld [vmem:[%s10405_s1 + $0x550] sm:$0xf0]  ;;  %v4861_v43 = vor.u32 %v6622_v30, %v4858_v33  ;;  %v3151_v5 = vadd.f32 %v3150_v59, %v537_v49 }
  0xb7   :  { %3403 = vmatpush.bf16.msrb.mxu0 %v4909_v63  ;;  %3416 = vmatpush.bf16.msrb.mxu1 %v5037_v3  ;;  %v6686_v38 = vld [vmem:[%s10405_s1 + $0x644] sm:$0xf]  ;;  %v5114_v39 = vld [vmem:[%s10405_s1 + $0x650] sm:$0xf0]  ;;  %v4989_v45 = vor.u32 %v6654_v35, %v4986_v36 }
  0xb8   :  { %3429 = vmatpush.bf16.msrb.mxu2 %v5165_v4  ;;  %3442 = vmatpush.bf16.msrb.mxu3 %v5293_v8  ;;  %v6718_v41 = vld [vmem:[%s10405_s1 + $0x744] sm:$0xf]  ;;  %v5242_v42 = vld [vmem:[%s10405_s1 + $0x750] sm:$0xf0]  ;;  %v5117_v46 = vor.u32 %v6686_v38, %v5114_v39 }
  0xb9   :  { %v6618_v44 = vld [vmem:[%s10405_s1 + $0x424] sm:$0xf]  ;;  %v4842_v47 = vld [vmem:[%s10405_s1 + $0x430] sm:$0xf0]  ;;  %v5245_v50 = vor.u32 %v6718_v41, %v5242_v42 }
  0xba   :  { %v6650_v48 = vld [vmem:[%s10405_s1 + $0x524] sm:$0xf]  ;;  %v4970_v51 = vld [vmem:[%s10405_s1 + $0x530] sm:$0xf0]  ;;  %v4845_v56 = vor.u32 %v6618_v44, %v4842_v47  ;;  %v3176_v23 = vpop.f32.mrf.mxu2 }
  0xbb   :  { %3404 = vmatpush.bf16.msrb.mxu0 %v4893_v14  ;;  %3417 = vmatpush.bf16.msrb.mxu1 %v5021_v15  ;;  %v6682_v52 = vld [vmem:[%s10405_s1 + $0x624] sm:$0xf]  ;;  %v5098_v53 = vld [vmem:[%s10405_s1 + $0x630] sm:$0xf0]  ;;  %v4973_v61 = vor.u32 %v6650_v48, %v4970_v51  ;;  %v3164_v14 = vadd.f32 %v3163_v6, %v3151_v5 }
  0xbc   :  { %3430 = vmatpush.bf16.msrb.mxu2 %v5149_v16  ;;  %3443 = vmatpush.bf16.msrb.mxu3 %v5277_v20  ;;  %v6714_v54 = vld [vmem:[%s10405_s1 + $0x724] sm:$0xf]  ;;  %v5226_v55 = vld [vmem:[%s10405_s1 + $0x730] sm:$0xf0]  ;;  %v5101_v62 = vor.u32 %v6682_v52, %v5098_v53  ;;  %v3189_v30 = vpop.f32.mrf.mxu3 }
  0xbd   :  { %v6614_v57 = vld [vmem:[%s10405_s1 + $0x404] sm:$0xf]  ;;  %v4826_v58 = vld [vmem:[%s10405_s1 + $0x410] sm:$0xf0]  ;;  %v5229_v7 = vor.u32 %v6714_v54, %v5226_v55  ;;  %v3152_v42 = vpop.f32.mrf.mxu0 }
  0xbe   :  { %v6646_v63 = vld [vmem:[%s10405_s1 + $0x504] sm:$0xf]  ;;  %v4954_v3 = vld [vmem:[%s10405_s1 + $0x510] sm:$0xf0]  ;;  %v4829_v15 = vor.u32 %v6614_v57, %v4826_v58 }
  0xbf   :  { %3405 = vmatpush.bf16.msrb.mxu0 %v4877_v26  ;;  %3418 = vmatpush.bf16.msrb.mxu1 %v5005_v31  ;;  %v6678_v4 = vld [vmem:[%s10405_s1 + $0x604] sm:$0xf]  ;;  %v5082_v8 = vld [vmem:[%s10405_s1 + $0x610] sm:$0xf0]  ;;  %v4957_v19 = vor.u32 %v6646_v63, %v4954_v3  ;;  %v3177_v26 = vadd.f32 %v3176_v23, %v3164_v14 }
  0xc0   :  { %3431 = vmatpush.bf16.msrb.mxu2 %v5133_v32  ;;  %3444 = vmatpush.bf16.msrb.mxu3 %v5261_v37  ;;  %v6710_v9 = vld [vmem:[%s10405_s1 + $0x704] sm:$0xf]  ;;  %v5210_v10 = vld [vmem:[%s10405_s1 + $0x710] sm:$0xf0]  ;;  %v5085_v20 = vor.u32 %v6678_v4, %v5082_v8 }
  0xc1   :  { %v6770_v11 = vld [vmem:[%s10405_s1 + $0x8e4] sm:$0xf]  ;;  %v5450_v12 = vld [vmem:[%s10405_s1 + $0x8f0] sm:$0xf0]  ;;  %v5213_v24 = vor.u32 %v6710_v9, %v5210_v10  ;;  %v3190_v41 = vadd.f32 %v3189_v30, %v3177_v26 }
  0xc2   :  { %v6802_v13 = vld [vmem:[%s10405_s1 + $0x9e4] sm:$0xf]  ;;  %v5578_v16 = vld [vmem:[%s10405_s1 + $0x9f0] sm:$0xf0]  ;;  %v5453_v25 = vor.u32 %v6770_v11, %v5450_v12  ;;  %v3178_v58 = vpop.f32.mrf.mxu2 }
  0xc3   :  { %3406 = vmatpush.bf16.msrb.mxu0 %v4861_v43  ;;  %3419 = vmatpush.bf16.msrb.mxu1 %v4989_v45  ;;  %v6834_v17 = vld [vmem:[%s10405_s1 + $0xae4] sm:$0xf]  ;;  %v5706_v18 = vld [vmem:[%s10405_s1 + $0xaf0] sm:$0xf0]  ;;  %v5581_v31 = vor.u32 %v6802_v13, %v5578_v16  ;;  %v3165_v45 = vpop.f32.mrf.mxu1 }
  0xc4   :  { %3432 = vmatpush.bf16.msrb.mxu2 %v5117_v46  ;;  %3445 = vmatpush.bf16.msrb.mxu3 %v5245_v50  ;;  %v6866_v21 = vld [vmem:[%s10405_s1 + $0xbe4] sm:$0xf]  ;;  %v5834_v22 = vld [vmem:[%s10405_s1 + $0xbf0] sm:$0xf0]  ;;  %v5709_v32 = vor.u32 %v6834_v17, %v5706_v18 }
  0xc5   :  { %v6766_v33 = vld [vmem:[%s10405_s1 + $0x8c4] sm:$0xf]  ;;  %v5434_v35 = vld [vmem:[%s10405_s1 + $0x8d0] sm:$0xf0]  ;;  %v5837_v37 = vor.u32 %v6866_v21, %v5834_v22 }
  0xc6   :  { %v6798_v36 = vld [vmem:[%s10405_s1 + $0x9c4] sm:$0xf]  ;;  %v5562_v38 = vld [vmem:[%s10405_s1 + $0x9d0] sm:$0xf0]  ;;  %v5437_v46 = vor.u32 %v6766_v33, %v5434_v35  ;;  %v3202_v13 = vpop.f32.mrf.mxu0 }
  0xc7   :  { %3407 = vmatpush.bf16.msrb.mxu0 %v4845_v56  ;;  %3420 = vmatpush.bf16.msrb.mxu1 %v4973_v61  ;;  %v6830_v39 = vld [vmem:[%s10405_s1 + $0xac4] sm:$0xf]  ;;  %v5690_v40 = vld [vmem:[%s10405_s1 + $0xad0] sm:$0xf0]  ;;  %v5565_v47 = vor.u32 %v6798_v36, %v5562_v38  ;;  %v3191_v61 = vpop.f32.mrf.mxu3 }
  0xc8   :  { %3433 = vmatpush.bf16.msrb.mxu2 %v5101_v62  ;;  %3446 = vmatpush.bf16.msrb.mxu3 %v5229_v7  ;;  %v6862_v43 = vld [vmem:[%s10405_s1 + $0xbc4] sm:$0xf]  ;;  %v5818_v44 = vld [vmem:[%s10405_s1 + $0xbd0] sm:$0xf0]  ;;  %v5693_v48 = vor.u32 %v6830_v39, %v5690_v40 }
  0xc9   :  { %v6762_v49 = vld [vmem:[%s10405_s1 + $0x8a4] sm:$0xf]  ;;  %v5418_v50 = vld [vmem:[%s10405_s1 + $0x8b0] sm:$0xf0]  ;;  %v5821_v52 = vor.u32 %v6862_v43, %v5818_v44 }
  0xca   :  { %v6794_v51 = vld [vmem:[%s10405_s1 + $0x9a4] sm:$0xf]  ;;  %v5546_v53 = vld [vmem:[%s10405_s1 + $0x9b0] sm:$0xf0]  ;;  %v5421_v59 = vor.u32 %v6762_v49, %v5418_v50 }
  0xcb   :  { %3408 = vmatpush.bf16.msrb.mxu0 %v4829_v15  ;;  %3421 = vmatpush.bf16.msrb.mxu1 %v4957_v19  ;;  %v6826_v54 = vld [vmem:[%s10405_s1 + $0xaa4] sm:$0xf]  ;;  %v5674_v55 = vld [vmem:[%s10405_s1 + $0xab0] sm:$0xf0]  ;;  %v5549_v62 = vor.u32 %v6794_v51, %v5546_v53  ;;  %v3203_v19 = vadd.f32 %v3202_v13, %v3190_v41  ;;  %v3228_v38 = vpop.f32.mrf.mxu2 }
  0xcc   :  { %3434 = vmatpush.bf16.msrb.mxu2 %v5085_v20  ;;  %3447 = vmatpush.bf16.msrb.mxu3 %v5213_v24  ;;  %v6858_v56 = vld [vmem:[%s10405_s1 + $0xba4] sm:$0xf]  ;;  %v5802_v57 = vld [vmem:[%s10405_s1 + $0xbb0] sm:$0xf0]  ;;  %v5677_v63 = vor.u32 %v6826_v54, %v5674_v55  ;;  %v3215_v20 = vpop.f32.mrf.mxu1 }
  0xcd   :  { %v6758_v3 = vld [vmem:[%s10405_s1 + $0x884] sm:$0xf]  ;;  %v5402_v4 = vld [vmem:[%s10405_s1 + $0x890] sm:$0xf0]  ;;  %v5805_v6 = vor.u32 %v6858_v56, %v5802_v57  ;;  %v3216_v30 = vadd.f32 %v3215_v20, %v3203_v19 }
  0xce   :  { %3409 = vmatmul.bf16.vlgmr.msrb.gmra.mxu0 %v7513_v0  ;;  %3422 = vmatmul.bf16.vlgmr.msrb.gmra.mxu1 %v7517_v2  ;;  %v6790_v5 = vld [vmem:[%s10405_s1 + $0x984] sm:$0xf]  ;;  %v5530_v7 = vld [vmem:[%s10405_s1 + $0x990] sm:$0xf0]  ;;  %v5405_v12 = vor.u32 %v6758_v3, %v5402_v4  ;;  %v3204_v49 = vpop.f32.mrf.mxu0 }
  0xcf   :  { %3453 = vmatpush.bf16.msra.mxu0 %v5453_v25  ;;  %3466 = vmatpush.bf16.msra.mxu1 %v5581_v31  ;;  %v6822_v8 = vld [vmem:[%s10405_s1 + $0xa84] sm:$0xf]  ;;  %v5658_v9 = vld [vmem:[%s10405_s1 + $0xa90] sm:$0xf0]  ;;  %v5533_v14 = vor.u32 %v6790_v5, %v5530_v7  ;;  %v3229_v43 = vadd.f32 %v3228_v38, %v3216_v30  ;;  %v3241_v44 = vpop.f32.mrf.mxu3 }
  0xd0   :  { %3479 = vmatpush.bf16.msra.mxu2 %v5709_v32  ;;  %3492 = vmatpush.bf16.msra.mxu3 %v5837_v37  ;;  %v6854_v10 = vld [vmem:[%s10405_s1 + $0xb84] sm:$0xf]  ;;  %v5786_v11 = vld [vmem:[%s10405_s1 + $0xb90] sm:$0xf0]  ;;  %v5661_v15 = vor.u32 %v6822_v8, %v5658_v9 }
  0xd1   :  { %3435 = vmatmul.bf16.vlgmr.msrb.gmra.mxu2 %v7508_v60  ;;  %3448 = vmatmul.bf16.vlgmr.msrb.gmra.mxu3 %v7515_v1  ;;  %v6754_v16 = vld [vmem:[%s10405_s1 + $0x864] sm:$0xf]  ;;  %v5386_v17 = vld [vmem:[%s10405_s1 + $0x870] sm:$0xf0]  ;;  %v5789_v21 = vor.u32 %v6854_v10, %v5786_v11 }
  0xd2   :  { %v6786_v18 = vld [vmem:[%s10405_s1 + $0x964] sm:$0xf]  ;;  %v5514_v22 = vld [vmem:[%s10405_s1 + $0x970] sm:$0xf0]  ;;  %v5389_v31 = vor.u32 %v6754_v16, %v5386_v17 }
  0xd3   :  { %3454 = vmatpush.bf16.msra.mxu0 %v5437_v46  ;;  %3467 = vmatpush.bf16.msra.mxu1 %v5565_v47  ;;  %v6818_v23 = vld [vmem:[%s10405_s1 + $0xa64] sm:$0xf]  ;;  %v5642_v24 = vld [vmem:[%s10405_s1 + $0xa70] sm:$0xf0]  ;;  %v5517_v32 = vor.u32 %v6786_v18, %v5514_v22  ;;  %v3230_v10 = vpop.f32.mrf.mxu2 }
  0xd4   :  { %3480 = vmatpush.bf16.msra.mxu2 %v5693_v48  ;;  %3493 = vmatpush.bf16.msra.mxu3 %v5821_v52  ;;  %v6850_v25 = vld [vmem:[%s10405_s1 + $0xb64] sm:$0xf]  ;;  %v5770_v26 = vld [vmem:[%s10405_s1 + $0xb70] sm:$0xf0]  ;;  %v5645_v33 = vor.u32 %v6818_v23, %v5642_v24  ;;  %v8452_v48 = vadd.f32 %v3241_v44, %v3229_v43  ;;  %v3217_v55 = vpop.f32.mrf.mxu1 }
  0xd5   :  { %v6750_v35 = vld [vmem:[%s10405_s1 + $0x844] sm:$0xf]  ;;  %v5370_v36 = vld [vmem:[%s10405_s1 + $0x850] sm:$0xf0]  ;;  %v5773_v39 = vor.u32 %v6850_v25, %v5770_v26 }
  0xd6   :  { %v6782_v37 = vld [vmem:[%s10405_s1 + $0x944] sm:$0xf]  ;;  %v5498_v40 = vld [vmem:[%s10405_s1 + $0x950] sm:$0xf0]  ;;  %v5373_v47 = vor.u32 %v6750_v35, %v5370_v36 }
  0xd7   :  { %3455 = vmatpush.bf16.msra.mxu0 %v5421_v59  ;;  %3468 = vmatpush.bf16.msra.mxu1 %v5549_v62  ;;  %v6814_v41 = vld [vmem:[%s10405_s1 + $0xa44] sm:$0xf]  ;;  %v5626_v42 = vld [vmem:[%s10405_s1 + $0xa50] sm:$0xf0]  ;;  %v5501_v50 = vor.u32 %v6782_v37, %v5498_v40 }
  0xd8   :  { %3481 = vmatpush.bf16.msra.mxu2 %v5677_v63  ;;  %3494 = vmatpush.bf16.msra.mxu3 %v5805_v6  ;;  %v6846_v45 = vld [vmem:[%s10405_s1 + $0xb44] sm:$0xf]  ;;  %v5754_v46 = vld [vmem:[%s10405_s1 + $0xb50] sm:$0xf0]  ;;  %v5629_v51 = vor.u32 %v6814_v41, %v5626_v42 }
  0xd9   :  { %v6746_v52 = vld [vmem:[%s10405_s1 + $0x824] sm:$0xf]  ;;  %v5354_v53 = vld [vmem:[%s10405_s1 + $0x830] sm:$0xf0]  ;;  %v5757_v56 = vor.u32 %v6846_v45, %v5754_v46 }
  0xda   :  { %v6778_v54 = vld [vmem:[%s10405_s1 + $0x924] sm:$0xf]  ;;  %v5482_v57 = vld [vmem:[%s10405_s1 + $0x930] sm:$0xf0]  ;;  %v5357_v63 = vor.u32 %v6746_v52, %v5354_v53 }
  0xdb   :  { %3456 = vmatpush.bf16.msra.mxu0 %v5405_v12  ;;  %3469 = vmatpush.bf16.msra.mxu1 %v5533_v14  ;;  %v6810_v58 = vld [vmem:[%s10405_s1 + $0xa24] sm:$0xf]  ;;  %v5610_v59 = vld [vmem:[%s10405_s1 + $0xa30] sm:$0xf0]  ;;  %v5485_v5 = vor.u32 %v6778_v54, %v5482_v57  ;;  %v7034_v57 = vld [vmem:[#allocation1 + $0x9] sm:$0xff] }
  0xdc   :  { %3482 = vmatpush.bf16.msra.mxu2 %v5661_v15  ;;  %3495 = vmatpush.bf16.msra.mxu3 %v5789_v21  ;;  %v6842_v61 = vld [vmem:[%s10405_s1 + $0xb24] sm:$0xf]  ;;  %v5738_v62 = vld [vmem:[%s10405_s1 + $0xb30] sm:$0xf0]  ;;  %v5613_v6 = vor.u32 %v6810_v58, %v5610_v59  ;;  %v3243_v15 = vpop.f32.mrf.mxu3 }
  0xdd   :  { %v6742_v3 = vld [vmem:[%s10405_s1 + $0x804] sm:$0xf]  ;;  %v5338_v4 = vld [vmem:[%s10405_s1 + $0x810] sm:$0xf0]  ;;  %v5741_v11 = vor.u32 %v6842_v61, %v5738_v62  ;;  %v7035_v61 = vld [vmem:[#allocation1 + $0x1b] sm:$0xff] }
  0xde   :  { %v6774_v7 = vld [vmem:[%s10405_s1 + $0x904] sm:$0xf]  ;;  %v5466_v8 = vld [vmem:[%s10405_s1 + $0x910] sm:$0xf0]  ;;  %v5341_v19 = vor.u32 %v6742_v3, %v5338_v4 }
  0xdf   :  { %3457 = vmatpush.bf16.msra.mxu0 %v5389_v31  ;;  %3470 = vmatpush.bf16.msra.mxu1 %v5517_v32  ;;  %v6806_v9 = vld [vmem:[%s10405_s1 + $0xa04] sm:$0xf]  ;;  %v5594_v12 = vld [vmem:[%s10405_s1 + $0xa10] sm:$0xf0]  ;;  %v5469_v23 = vor.u32 %v6774_v7, %v5466_v8 }
  0xe0   :  { %3483 = vmatpush.bf16.msra.mxu2 %v5645_v33  ;;  %3496 = vmatpush.bf16.msra.mxu3 %v5773_v39  ;;  %v6838_v13 = vld [vmem:[%s10405_s1 + $0xb04] sm:$0xf]  ;;  %v5722_v14 = vld [vmem:[%s10405_s1 + $0xb10] sm:$0xf0]  ;;  %v5597_v24 = vor.u32 %v6806_v9, %v5594_v12 }
  0xe1   :  { %v6898_v16 = vld [vmem:[%s10405_s1 + $0xce4] sm:$0xf]  ;;  %v5962_v17 = vld [vmem:[%s10405_s1 + $0xcf0] sm:$0xf0]  ;;  %v5725_v30 = vor.u32 %v6838_v13, %v5722_v14 }
  0xe2   :  { %v6930_v18 = vld [vmem:[%s10405_s1 + $0xde4] sm:$0xf]  ;;  %v6090_v20 = vld [vmem:[%s10405_s1 + $0xdf0] sm:$0xf0]  ;;  %v5965_v31 = vor.u32 %v6898_v16, %v5962_v17 }
  0xe3   :  { %3458 = vmatpush.bf16.msra.mxu0 %v5373_v47  ;;  %3471 = vmatpush.bf16.msra.mxu1 %v5501_v50  ;;  %v6962_v21 = vld [vmem:[%s10405_s1 + $0xee4] sm:$0xf]  ;;  %v6218_v22 = vld [vmem:[%s10405_s1 + $0xef0] sm:$0xf0]  ;;  %v6093_v32 = vor.u32 %v6930_v18, %v6090_v20 }
  0xe4   :  { %3484 = vmatpush.bf16.msra.mxu2 %v5629_v51  ;;  %3497 = vmatpush.bf16.msra.mxu3 %v5757_v56  ;;  %v6994_v25 = vld [vmem:[%s10405_s1 + $0xfe4] sm:$0xf]  ;;  %v6346_v26 = vld [vmem:[%s10405_s1 + $0xff0] sm:$0xf0]  ;;  %v6221_v33 = vor.u32 %v6962_v21, %v6218_v22 }
  0xe5   :  { %v6894_v35 = vld [vmem:[%s10405_s1 + $0xcc4] sm:$0xf]  ;;  %v5946_v36 = vld [vmem:[%s10405_s1 + $0xcd0] sm:$0xf0]  ;;  %v6349_v38 = vor.u32 %v6994_v25, %v6346_v26 }
  0xe6   :  { %v6926_v37 = vld [vmem:[%s10405_s1 + $0xdc4] sm:$0xf]  ;;  %v6074_v39 = vld [vmem:[%s10405_s1 + $0xdd0] sm:$0xf0]  ;;  %v5949_v44 = vor.u32 %v6894_v35, %v5946_v36 }
  0xe7   :  { %3459 = vmatpush.bf16.msra.mxu0 %v5357_v63  ;;  %3472 = vmatpush.bf16.msra.mxu1 %v5485_v5  ;;  %v6958_v40 = vld [vmem:[%s10405_s1 + $0xec4] sm:$0xf]  ;;  %v6202_v41 = vld [vmem:[%s10405_s1 + $0xed0] sm:$0xf0]  ;;  %v6077_v45 = vor.u32 %v6926_v37, %v6074_v39 }
  0xe8   :  { %3485 = vmatpush.bf16.msra.mxu2 %v5613_v6  ;;  %3498 = vmatpush.bf16.msra.mxu3 %v5741_v11  ;;  %v6990_v42 = vld [vmem:[%s10405_s1 + $0xfc4] sm:$0xf]  ;;  %v6330_v43 = vld [vmem:[%s10405_s1 + $0xfd0] sm:$0xf0]  ;;  %v6205_v46 = vor.u32 %v6958_v40, %v6202_v41 }
  0xe9   :  { %v6890_v47 = vld [vmem:[%s10405_s1 + $0xca4] sm:$0xf]  ;;  %v5930_v49 = vld [vmem:[%s10405_s1 + $0xcb0] sm:$0xf0]  ;;  %v6333_v52 = vor.u32 %v6990_v42, %v6330_v43  ;;  %v3267_v16 = vpop.f32.mrf.mxu1 }
  0xea   :  { %v6922_v50 = vld [vmem:[%s10405_s1 + $0xda4] sm:$0xf]  ;;  %v6058_v53 = vld [vmem:[%s10405_s1 + $0xdb0] sm:$0xf0]  ;;  %v5933_v62 = vor.u32 %v6890_v47, %v5930_v49  ;;  %v3254_v11 = vpop.f32.mrf.mxu0 }
  0xeb   :  { %3460 = vmatpush.bf16.msra.mxu0 %v5341_v19  ;;  %3473 = vmatpush.bf16.msra.mxu1 %v5469_v23  ;;  %v7032_v51 = vld [vmem:[#allocation1] sm:$0xff]  ;;  %v6186_v55 = vld [vmem:[%s10405_s1 + $0xeb0] sm:$0xf0]  ;;  %v6061_v63 = vor.u32 %v6922_v50, %v6058_v53  ;;  %v3255_v14 = vadd.f32 %v3254_v11, %v8452_v48 }
  0xec   :  { %3486 = vmatpush.bf16.msra.mxu2 %v5597_v24  ;;  %3499 = vmatpush.bf16.msra.mxu3 %v5725_v30  ;;  %v6954_v54 = vld [vmem:[%s10405_s1 + $0xea4] sm:$0xf]  ;;  %v7033_v56 = vld [vmem:[#allocation1 + $0x12] sm:$0xff] }
  0xed   :  { %v6986_v58 = vld [vmem:[%s10405_s1 + $0xfa4] sm:$0xf]  ;;  %v6314_v59 = vld [vmem:[%s10405_s1 + $0xfb0] sm:$0xf0]  ;;  %v6189_v3 = vor.u32 %v6954_v54, %v6186_v55  ;;  %v3268_v22 = vadd.f32 %v3267_v16, %v3255_v14  ;;  %v4432_v16 = vld [vmem:[%s10405_s1 + $0xe8] sm:$0xf] }
  0xee   :  { %3461 = vmatmul.bf16.vlgmr.msra.gmra.mxu0 %v7032_v51  ;;  %3474 = vmatmul.bf16.vlgmr.msra.gmra.mxu1 %v7034_v57  ;;  %v6886_v4 = vld [vmem:[%s10405_s1 + $0xc84] sm:$0xf]  ;;  %v5914_v5 = vld [vmem:[%s10405_s1 + $0xc90] sm:$0xf0]  ;;  %v6317_v7 = vor.u32 %v6986_v58, %v6314_v59 }
  0xef   :  { %3505 = vmatpush.bf16.msrb.mxu0 %v5965_v31  ;;  %3518 = vmatpush.bf16.msrb.mxu1 %v6093_v32  ;;  %v6918_v6 = vld [vmem:[%s10405_s1 + $0xd84] sm:$0xf]  ;;  %v6042_v8 = vld [vmem:[%s10405_s1 + $0xd90] sm:$0xf0]  ;;  %v5917_v15 = vor.u32 %v6886_v4, %v5914_v5  ;;  %v3280_v39 = vpop.f32.mrf.mxu2 }
  0xf0   :  { %3531 = vmatpush.bf16.msrb.mxu2 %v6221_v33  ;;  %3544 = vmatpush.bf16.msrb.mxu3 %v6349_v38  ;;  %v6950_v9 = vld [vmem:[%s10405_s1 + $0xe84] sm:$0xf]  ;;  %v6170_v10 = vld [vmem:[%s10405_s1 + $0xe90] sm:$0xf0]  ;;  %v6045_v17 = vor.u32 %v6918_v6, %v6042_v8  ;;  %v3281_v43 = vadd.f32 %v3280_v39, %v3268_v22  ;;  %v6581_v22 = vld [vmem:[%s10405_s1 + $0x2f4] sm:$0xf0] }
  0xf1   :  { %3487 = vmatmul.bf16.vlgmr.msra.gmra.mxu2 %v7033_v56  ;;  %3500 = vmatmul.bf16.vlgmr.msra.gmra.mxu3 %v7035_v61  ;;  %v6982_v12 = vld [vmem:[%s10405_s1 + $0xf84] sm:$0xf]  ;;  %v6298_v13 = vld [vmem:[%s10405_s1 + $0xf90] sm:$0xf0]  ;;  %v6173_v18 = vor.u32 %v6950_v9, %v6170_v10  ;;  %v3269_v50 = vpop.f32.mrf.mxu1  ;;  %v6545_v39 = vld [vmem:[%s10405_s1 + $0x1d4] sm:$0xf0] }
  0xf2   :  { %v6882_v19 = vld [vmem:[%s10405_s1 + $0xc64] sm:$0xf]  ;;  %v5898_v20 = vld [vmem:[%s10405_s1 + $0xc70] sm:$0xf0]  ;;  %v6301_v48 = vor.u32 %v6982_v12, %v6298_v13  ;;  %v3256_v47 = vpop.f32.mrf.mxu0  ;;  %v4528_v50 = vld [vmem:[%s10405_s1 + $0x1a8] sm:$0xf] }
  0xf3   :  { %3506 = vmatpush.bf16.msrb.mxu0 %v5949_v44  ;;  %3519 = vmatpush.bf16.msrb.mxu1 %v6077_v45  ;;  %v6914_v21 = vld [vmem:[%s10405_s1 + $0xd64] sm:$0xf]  ;;  %v6026_v23 = vld [vmem:[%s10405_s1 + $0xd70] sm:$0xf0]  ;;  %v5901_v31 = vor.u32 %v6882_v19, %v5898_v20  ;;  %v3293_v44 = vpop.f32.mrf.mxu3  ;;  %v4400_v47 = vld [vmem:[%s10405_s1 + $0xa8] sm:$0xf] }
  0xf4   :  { %3532 = vmatpush.bf16.msrb.mxu2 %v6205_v46  ;;  %3545 = vmatpush.bf16.msrb.mxu3 %v6333_v52  ;;  %v6946_v24 = vld [vmem:[%s10405_s1 + $0xe64] sm:$0xf]  ;;  %v6154_v25 = vld [vmem:[%s10405_s1 + $0xe70] sm:$0xf0]  ;;  %v6029_v32 = vor.u32 %v6914_v21, %v6026_v23  ;;  %v8647_v51 = vadd.f32 %v3293_v44, %v3281_v43  ;;  %v6549_v21 = vld [vmem:[%s10405_s1 + $0x1f4] sm:$0xf0] }
  0xf5   :  { %v6978_v26 = vld [vmem:[%s10405_s1 + $0xf64] sm:$0xf]  ;;  %v6282_v30 = vld [vmem:[%s10405_s1 + $0xf70] sm:$0xf0]  ;;  %v6157_v33 = vor.u32 %v6946_v24, %v6154_v25  ;;  %v4816_v25 = vld [vmem:[%s10405_s1 + $0x3e8] sm:$0xf] }
  0xf6   :  { %v6878_v35 = vld [vmem:[%s10405_s1 + $0xc44] sm:$0xf]  ;;  %v5882_v36 = vld [vmem:[%s10405_s1 + $0xc50] sm:$0xf0]  ;;  %v6285_v38 = vor.u32 %v6978_v26, %v6282_v30  ;;  %v6613_v26 = vld [vmem:[%s10405_s1 + $0x3f4] sm:$0xf0] }
  0xf7   :  { %3507 = vmatpush.bf16.msrb.mxu0 %v5933_v62  ;;  %3520 = vmatpush.bf16.msrb.mxu1 %v6061_v63  ;;  %v6910_v37 = vld [vmem:[%s10405_s1 + $0xd44] sm:$0xf]  ;;  %v6010_v40 = vld [vmem:[%s10405_s1 + $0xd50] sm:$0xf0]  ;;  %v5885_v49 = vor.u32 %v6878_v35, %v5882_v36  ;;  %v4416_v35 = vld [vmem:[%s10405_s1 + $0xc8] sm:$0xf] }
  0xf8   :  { %3533 = vmatpush.bf16.msrb.mxu2 %v6189_v3  ;;  %3546 = vmatpush.bf16.msrb.mxu3 %v6317_v7  ;;  %v6942_v41 = vld [vmem:[%s10405_s1 + $0xe44] sm:$0xf]  ;;  %v6138_v42 = vld [vmem:[%s10405_s1 + $0xe50] sm:$0xf0]  ;;  %v6013_v52 = vor.u32 %v6910_v37, %v6010_v40  ;;  %v6513_v36 = vld [vmem:[%s10405_s1 + $0xd4] sm:$0xf0] }
  0xf9   :  { %v6974_v45 = vld [vmem:[%s10405_s1 + $0xf44] sm:$0xf]  ;;  %v6266_v46 = vld [vmem:[%s10405_s1 + $0xf50] sm:$0xf0]  ;;  %v6141_v53 = vor.u32 %v6942_v41, %v6138_v42  ;;  %v4544_v37 = vld [vmem:[%s10405_s1 + $0x1c8] sm:$0xf]  ;;  %v4417_v44 = vor.u32 %v6513_v36, %v4416_v35 }
  0xfa   :  { %v6874_v54 = vld [vmem:[%s10405_s1 + $0xc24] sm:$0xf]  ;;  %v5866_v55 = vld [vmem:[%s10405_s1 + $0xc30] sm:$0xf0]  ;;  %v6269_v57 = vor.u32 %v6974_v45, %v6266_v46  ;;  %v4672_v40 = vld [vmem:[%s10405_s1 + $0x2c8] sm:$0xf]  ;;  %v4545_v45 = vor.u32 %v6545_v39, %v4544_v37 }
  0xfb   :  { %3508 = vmatpush.bf16.msrb.mxu0 %v5917_v15  ;;  %3521 = vmatpush.bf16.msrb.mxu1 %v6045_v17  ;;  %v6906_v56 = vld [vmem:[%s10405_s1 + $0xd24] sm:$0xf]  ;;  %v5994_v58 = vld [vmem:[%s10405_s1 + $0xd30] sm:$0xf0]  ;;  %v5869_v3 = vor.u32 %v6874_v54, %v5866_v55  ;;  %v3282_v15 = vpop.f32.mrf.mxu2  ;;  %v6517_v17 = vld [vmem:[%s10405_s1 + $0xf4] sm:$0xf0]  ;;  %v3295_v19 = vpop.f32.mrf.mxu3 }
  0xfc   :  { %3534 = vmatpush.bf16.msrb.mxu2 %v6173_v18  ;;  %3547 = vmatpush.bf16.msrb.mxu3 %v6301_v48  ;;  %v6938_v59 = vld [vmem:[%s10405_s1 + $0xe24] sm:$0xf]  ;;  %v6122_v61 = vld [vmem:[%s10405_s1 + $0xe30] sm:$0xf0]  ;;  %v5997_v6 = vor.u32 %v6906_v56, %v5994_v58  ;;  %v4560_v18 = vld [vmem:[%s10405_s1 + $0x1e8] sm:$0xf] }
  0xfd   :  { %v6970_v62 = vld [vmem:[%s10405_s1 + $0xf24] sm:$0xf]  ;;  %v6250_v63 = vld [vmem:[%s10405_s1 + $0xf30] sm:$0xf0]  ;;  %v6125_v7 = vor.u32 %v6938_v59, %v6122_v61  ;;  %v4688_v48 = vld [vmem:[%s10405_s1 + $0x2e8] sm:$0xf] }
  0xfe   :  { %v6870_v4 = vld [vmem:[%s10405_s1 + $0xc04] sm:$0xf]  ;;  %v5850_v5 = vld [vmem:[%s10405_s1 + $0xc10] sm:$0xf0]  ;;  %v6253_v11 = vor.u32 %v6970_v62, %v6250_v63  ;;  %v6577_v41 = vld [vmem:[%s10405_s1 + $0x2d4] sm:$0xf0] }
  0xff   :  { %3509 = vmatpush.bf16.msrb.mxu0 %v5901_v31  ;;  %3522 = vmatpush.bf16.msrb.mxu1 %v6029_v32  ;;  %v6902_v8 = vld [vmem:[%s10405_s1 + $0xd04] sm:$0xf]  ;;  %v5978_v9 = vld [vmem:[%s10405_s1 + $0xd10] sm:$0xf0]  ;;  %v5853_v20 = vor.u32 %v6870_v4, %v5850_v5  ;;  %v4433_v31 = vor.u32 %v6517_v17, %v4432_v16  ;;  %v4561_v32 = vor.u32 %v6549_v21, %v4560_v18  ;;  %v4800_v42 = vld [vmem:[%s10405_s1 + $0x3c8] sm:$0xf] }
 0x100   :  { %3535 = vmatpush.bf16.msrb.mxu2 %v6157_v33  ;;  %3548 = vmatpush.bf16.msrb.mxu3 %v6285_v38  ;;  %v6934_v10 = vld [vmem:[%s10405_s1 + $0xe04] sm:$0xf]  ;;  %v6106_v12 = vld [vmem:[%s10405_s1 + $0xe10] sm:$0xf0]  ;;  %v5981_v23 = vor.u32 %v6902_v8, %v5978_v9  ;;  %v4689_v33 = vor.u32 %v6581_v22, %v4688_v48  ;;  %v4817_v38 = vor.u32 %v6613_v26, %v4816_v25  ;;  %v6609_v43 = vld [vmem:[%s10405_s1 + $0x3d4] sm:$0xf0] }
 0x101   :  { %v6966_v13 = vld [vmem:[%s10405_s1 + $0xf04] sm:$0xf]  ;;  %v6234_v14 = vld [vmem:[%s10405_s1 + $0xf10] sm:$0xf0]  ;;  %v6109_v24 = vor.u32 %v6934_v10, %v6106_v12  ;;  %v4673_v46 = vor.u32 %v6577_v41, %v4672_v40  ;;  %v6541_v54 = vld [vmem:[%s10405_s1 + $0x1b4] sm:$0xf0] }
 0x102   :  { %v6237_v30 = vor.u32 %v6966_v13, %v6234_v14  ;;  %v4656_v55 = vld [vmem:[%s10405_s1 + $0x2a8] sm:$0xf]  ;;  %v6573_v56 = vld [vmem:[%s10405_s1 + $0x2b4] sm:$0xf0]  ;;  %v7038_v58 = vld [vmem:[#allocation1 + $0x2d] sm:$0xff] }
 0x103   :  { %3510 = vmatpush.bf16.msrb.mxu0 %v5885_v49  ;;  %3523 = vmatpush.bf16.msrb.mxu1 %v6013_v52  ;;  %v6509_v49 = vld [vmem:[%s10405_s1 + $0xb4] sm:$0xf0]  ;;  %v7036_v52 = vld [vmem:[#allocation1 + $0x24] sm:$0xff]  ;;  %v4657_v4 = vor.u32 %v6573_v56, %v4656_v55 }
 0x104   :  { %3536 = vmatpush.bf16.msrb.mxu2 %v6141_v53  ;;  %3549 = vmatpush.bf16.msrb.mxu3 %v6269_v57  ;;  %v4801_v53 = vor.u32 %v6609_v43, %v4800_v42  ;;  %v7037_v57 = vld [vmem:[#allocation1 + $0x36] sm:$0xff]  ;;  %v4784_v59 = vld [vmem:[%s10405_s1 + $0x3a8] sm:$0xf]  ;;  %v7039_v62 = vld [vmem:[#allocation1 + $0x3f] sm:$0xff]  ;;  %v4401_v63 = vor.u32 %v6509_v49, %v4400_v47 }
 0x105   :  { %v6605_v61 = vld [vmem:[%s10405_s1 + $0x3b4] sm:$0xf0]  ;;  %v4384_v5 = vld [vmem:[%s10405_s1 + $0x88] sm:$0xf] }
 0x106   :  { %v4785_v8 = vor.u32 %v6605_v61, %v4784_v59  ;;  %v6537_v9 = vld [vmem:[%s10405_s1 + $0x194] sm:$0xf0]  ;;  %v4640_v10 = vld [vmem:[%s10405_s1 + $0x288] sm:$0xf] }
 0x107   :  { %3511 = vmatpush.bf16.msrb.mxu0 %v5869_v3  ;;  %3524 = vmatpush.bf16.msrb.mxu1 %v5997_v6  ;;  %v4529_v3 = vor.u32 %v6541_v54, %v4528_v50  ;;  %v6505_v6 = vld [vmem:[%s10405_s1 + $0x94] sm:$0xf0]  ;;  %v4768_v13 = vld [vmem:[%s10405_s1 + $0x388] sm:$0xf] }
 0x108   :  { %3537 = vmatpush.bf16.msrb.mxu2 %v6125_v7  ;;  %3550 = vmatpush.bf16.msrb.mxu3 %v6253_v11  ;;  %v4512_v7 = vld [vmem:[%s10405_s1 + $0x188] sm:$0xf]  ;;  %v6569_v11 = vld [vmem:[%s10405_s1 + $0x294] sm:$0xf0]  ;;  %v4385_v16 = vor.u32 %v6505_v6, %v4384_v5 }
 0x109   :  { %v6601_v14 = vld [vmem:[%s10405_s1 + $0x394] sm:$0xf0]  ;;  %v4513_v18 = vor.u32 %v6537_v9, %v4512_v7  ;;  %v4641_v19 = vor.u32 %v6569_v11, %v4640_v10  ;;  %v4496_v48 = vld [vmem:[%s10405_s1 + $0x168] sm:$0xf] }
 0x10a   :  { %v6501_v21 = vld [vmem:[%s10405_s1 + $0x74] sm:$0xf0]  ;;  %v4752_v26 = vld [vmem:[%s10405_s1 + $0x368] sm:$0xf] }
 0x10b   :  { %3512 = vmatpush.bf16.msrb.mxu0 %v5853_v20  ;;  %3525 = vmatpush.bf16.msrb.mxu1 %v5981_v23  ;;  %v3306_v12 = vpop.f32.mrf.mxu0  ;;  %v3319_v17 = vpop.f32.mrf.mxu1  ;;  %v4368_v20 = vld [vmem:[%s10405_s1 + $0x68] sm:$0xf]  ;;  %v6533_v23 = vld [vmem:[%s10405_s1 + $0x174] sm:$0xf0] }
 0x10c   :  { %3538 = vmatpush.bf16.msrb.mxu2 %v6109_v24  ;;  %3551 = vmatpush.bf16.msrb.mxu3 %v6237_v30  ;;  %v3307_v15 = vadd.f32 %v3306_v12, %v8647_v51  ;;  %v4769_v51 = vor.u32 %v6601_v14, %v4768_v13  ;;  %v4624_v24 = vld [vmem:[%s10405_s1 + $0x268] sm:$0xf]  ;;  %v6565_v25 = vld [vmem:[%s10405_s1 + $0x274] sm:$0xf0] }
 0x10d   :  { %v6597_v30 = vld [vmem:[%s10405_s1 + $0x374] sm:$0xf0]  ;;  %v4352_v35 = vld [vmem:[%s10405_s1 + $0x48] sm:$0xf] }
 0x10e   :  { %3513 = vmatmul.bf16.vlgmr.msrb.gmra.mxu0 %v7036_v52  ;;  %3526 = vmatmul.bf16.vlgmr.msrb.gmra.mxu1 %v7038_v58  ;;  %v3320_v22 = vadd.f32 %v3319_v17, %v3307_v15  ;;  %v6497_v36 = vld [vmem:[%s10405_s1 + $0x54] sm:$0xf0]  ;;  %v4480_v37 = vld [vmem:[%s10405_s1 + $0x148] sm:$0xf] }
 0x10f   :  { %3557 = vmatpush.bf16.msra.mxu0 %v4433_v31  ;;  %3570 = vmatpush.bf16.msra.mxu1 %v4561_v32  ;;  %v4369_v31 = vor.u32 %v6501_v21, %v4368_v20  ;;  %v4497_v32 = vor.u32 %v6533_v23, %v4496_v48  ;;  %v6529_v40 = vld [vmem:[%s10405_s1 + $0x154] sm:$0xf0]  ;;  %v4608_v41 = vld [vmem:[%s10405_s1 + $0x248] sm:$0xf]  ;;  %v4353_v49 = vor.u32 %v6497_v36, %v4352_v35 }
 0x110   :  { %3583 = vmatpush.bf16.msra.mxu2 %v4689_v33  ;;  %3596 = vmatpush.bf16.msra.mxu3 %v4817_v38  ;;  %v4625_v33 = vor.u32 %v6565_v25, %v4624_v24  ;;  %v4753_v38 = vor.u32 %v6597_v30, %v4752_v26  ;;  %v6561_v42 = vld [vmem:[%s10405_s1 + $0x254] sm:$0xf0]  ;;  %v4336_v55 = vld [vmem:[%s10405_s1 + $0x28] sm:$0xf] }
 0x111   :  { %3539 = vmatmul.bf16.vlgmr.msrb.gmra.mxu2 %v7037_v57  ;;  %3552 = vmatmul.bf16.vlgmr.msrb.gmra.mxu3 %v7039_v62  ;;  %v4609_v54 = vor.u32 %v6561_v42, %v4608_v41  ;;  %v6493_v56 = vld [vmem:[%s10405_s1 + $0x34] sm:$0xf0]  ;;  %v4464_v57 = vld [vmem:[%s10405_s1 + $0x128] sm:$0xf] }
 0x112   :  { %v6525_v59 = vld [vmem:[%s10405_s1 + $0x134] sm:$0xf0]  ;;  %v4592_v61 = vld [vmem:[%s10405_s1 + $0x228] sm:$0xf] }
 0x113   :  { %3558 = vmatpush.bf16.msra.mxu0 %v4417_v44  ;;  %3571 = vmatpush.bf16.msra.mxu1 %v4545_v45  ;;  %v4736_v45 = vld [vmem:[%s10405_s1 + $0x348] sm:$0xf]  ;;  %v3308_v47 = vpop.f32.mrf.mxu0  ;;  %v3321_v50 = vpop.f32.mrf.mxu1  ;;  %v6557_v62 = vld [vmem:[%s10405_s1 + $0x234] sm:$0xf0]  ;;  %v4465_v7 = vor.u32 %v6525_v59, %v4464_v57 }
 0x114   :  { %3584 = vmatpush.bf16.msra.mxu2 %v4673_v46  ;;  %3597 = vmatpush.bf16.msra.mxu3 %v4801_v53  ;;  %v3332_v39 = vpop.f32.mrf.mxu2  ;;  %v3345_v44 = vpop.f32.mrf.mxu3  ;;  %v6593_v46 = vld [vmem:[%s10405_s1 + $0x354] sm:$0xf0]  ;;  %v4481_v53 = vor.u32 %v6529_v40, %v4480_v37  ;;  %v4320_v5 = vld [vmem:[%s10405_s1 + $0x8] sm:$0xf] }
 0x115   :  { %v3333_v43 = vadd.f32 %v3332_v39, %v3320_v22  ;;  %v4737_v58 = vor.u32 %v6593_v46, %v4736_v45  ;;  %v6489_v6 = vld [vmem:[%s10405_s1 + $0x14] sm:$0xf0]  ;;  %v4448_v9 = vld [vmem:[%s10405_s1 + $0x108] sm:$0xf] }
 0x116   :  { %v6521_v10 = vld [vmem:[%s10405_s1 + $0x114] sm:$0xf0]  ;;  %v4576_v11 = vld [vmem:[%s10405_s1 + $0x208] sm:$0xf]  ;;  %v4321_v21 = vor.u32 %v6489_v6, %v4320_v5  ;;  %v7040_v5 = vld [vmem:[%s10406_s2] sm:$0xf] }
 0x117   :  { %3559 = vmatpush.bf16.msra.mxu0 %v4401_v63  ;;  %3572 = vmatpush.bf16.msra.mxu1 %v4529_v3  ;;  %v8842_v52 = vadd.f32 %v3345_v44, %v3333_v43  ;;  %v4720_v63 = vld [vmem:[%s10405_s1 + $0x328] sm:$0xf]  ;;  %v6589_v3 = vld [vmem:[%s10405_s1 + $0x334] sm:$0xf0]  ;;  %v4449_v23 = vor.u32 %v6521_v10, %v4448_v9  ;;  %v538_v6 = vperm.slane %v7040_v5, 1 }
 0x118   :  { %3585 = vmatpush.bf16.msra.mxu2 %v4657_v4  ;;  %3598 = vmatpush.bf16.msra.mxu3 %v4785_v8  ;;  %v4337_v4 = vor.u32 %v6493_v56, %v4336_v55  ;;  %v4593_v8 = vor.u32 %v6557_v62, %v4592_v61  ;;  %v4721_v12 = vor.u32 %v6589_v3, %v4720_v63  ;;  %v6553_v13 = vld [vmem:[%s10405_s1 + $0x214] sm:$0xf0]  ;;  %v4704_v14 = vld [vmem:[%s10405_s1 + $0x308] sm:$0xf] }
 0x119   :  { %v6585_v15 = vld [vmem:[%s10405_s1 + $0x314] sm:$0xf0]  ;;  %v4944_v17 = vld [vmem:[%s10405_s1 + $0x4e8] sm:$0xf]  ;;  %v4577_v24 = vor.u32 %v6553_v13, %v4576_v11 }
 0x11a   :  { %v6677_v48 = vld [vmem:[%s10405_s1 + $0x5f4] sm:$0xf0]  ;;  %v5328_v25 = vld [vmem:[%s10405_s1 + $0x7e8] sm:$0xf]  ;;  %v4705_v30 = vor.u32 %v6585_v15, %v4704_v14 }
 0x11b   :  { %3560 = vmatpush.bf16.msra.mxu0 %v4385_v16  ;;  %3573 = vmatpush.bf16.msra.mxu1 %v4513_v18  ;;  %v6645_v18 = vld [vmem:[%s10405_s1 + $0x4f4] sm:$0xf0]  ;;  %v4928_v35 = vld [vmem:[%s10405_s1 + $0x4c8] sm:$0xf] }
 0x11c   :  { %3586 = vmatpush.bf16.msra.mxu2 %v4641_v19  ;;  %3599 = vmatpush.bf16.msra.mxu3 %v4769_v51  ;;  %v3334_v16 = vpop.f32.mrf.mxu2  ;;  %v5072_v19 = vld [vmem:[%s10405_s1 + $0x5e8] sm:$0xf]  ;;  %v3347_v20 = vpop.f32.mrf.mxu3  ;;  %v6709_v22 = vld [vmem:[%s10405_s1 + $0x6f4] sm:$0xf0] }
 0x11d   :  { %v5200_v51 = vld [vmem:[%s10405_s1 + $0x6e8] sm:$0xf]  ;;  %v6741_v26 = vld [vmem:[%s10405_s1 + $0x7f4] sm:$0xf0] }
 0x11e   :  { %v6641_v36 = vld [vmem:[%s10405_s1 + $0x4d4] sm:$0xf0]  ;;  %v5056_v37 = vld [vmem:[%s10405_s1 + $0x5c8] sm:$0xf] }
 0x11f   :  { %3561 = vmatpush.bf16.msra.mxu0 %v4369_v31  ;;  %3574 = vmatpush.bf16.msra.mxu1 %v4497_v32  ;;  %v4945_v31 = vor.u32 %v6645_v18, %v4944_v17  ;;  %v5073_v32 = vor.u32 %v6677_v48, %v5072_v19  ;;  %v6673_v39 = vld [vmem:[%s10405_s1 + $0x5d4] sm:$0xf0]  ;;  %v5184_v40 = vld [vmem:[%s10405_s1 + $0x6c8] sm:$0xf]  ;;  %v4929_v44 = vor.u32 %v6641_v36, %v4928_v35 }
 0x120   :  { %3587 = vmatpush.bf16.msra.mxu2 %v4625_v33  ;;  %3600 = vmatpush.bf16.msra.mxu3 %v4753_v38  ;;  %v5201_v33 = vor.u32 %v6709_v22, %v5200_v51  ;;  %v5329_v38 = vor.u32 %v6741_v26, %v5328_v25  ;;  %v6705_v41 = vld [vmem:[%s10405_s1 + $0x6d4] sm:$0xf0]  ;;  %v5312_v42 = vld [vmem:[%s10405_s1 + $0x7c8] sm:$0xf]  ;;  %v5057_v45 = vor.u32 %v6673_v39, %v5056_v37 }
 0x121   :  { %v6737_v43 = vld [vmem:[%s10405_s1 + $0x7d4] sm:$0xf0]  ;;  %v5185_v46 = vor.u32 %v6705_v41, %v5184_v40  ;;  %v4912_v47 = vld [vmem:[%s10405_s1 + $0x4a8] sm:$0xf] }
 0x122   :  { %v5040_v50 = vld [vmem:[%s10405_s1 + $0x5a8] sm:$0xf]  ;;  %v6701_v56 = vld [vmem:[%s10405_s1 + $0x6b4] sm:$0xf0] }
 0x123   :  { %3562 = vmatpush.bf16.msra.mxu0 %v4353_v49  ;;  %3575 = vmatpush.bf16.msra.mxu1 %v4481_v53  ;;  %v6637_v49 = vld [vmem:[%s10405_s1 + $0x4b4] sm:$0xf0]  ;;  %v5313_v53 = vor.u32 %v6737_v43, %v5312_v42  ;;  %v5168_v55 = vld [vmem:[%s10405_s1 + $0x6a8] sm:$0xf] }
 0x124   :  { %3588 = vmatpush.bf16.msra.mxu2 %v4609_v54  ;;  %3601 = vmatpush.bf16.msra.mxu3 %v4737_v58  ;;  %v6669_v54 = vld [vmem:[%s10405_s1 + $0x5b4] sm:$0xf0]  ;;  %v5296_v57 = vld [vmem:[%s10405_s1 + $0x7a8] sm:$0xf]  ;;  %v4913_v59 = vor.u32 %v6637_v49, %v4912_v47  ;;  %v5169_v63 = vor.u32 %v6701_v56, %v5168_v55 }
 0x125   :  { %v6733_v58 = vld [vmem:[%s10405_s1 + $0x7b4] sm:$0xf0]  ;;  %v4896_v61 = vld [vmem:[%s10405_s1 + $0x488] sm:$0xf]  ;;  %v5041_v62 = vor.u32 %v6669_v54, %v5040_v50 }
 0x126   :  { %v6633_v3 = vld [vmem:[%s10405_s1 + $0x494] sm:$0xf0]  ;;  %v5152_v9 = vld [vmem:[%s10405_s1 + $0x688] sm:$0xf] }
 0x127   :  { %3563 = vmatpush.bf16.msra.mxu0 %v4337_v4  ;;  %3576 = vmatpush.bf16.msra.mxu1 %v4465_v7  ;;  %v5024_v4 = vld [vmem:[%s10405_s1 + $0x588] sm:$0xf]  ;;  %v5297_v7 = vor.u32 %v6733_v58, %v5296_v57  ;;  %v6697_v10 = vld [vmem:[%s10405_s1 + $0x694] sm:$0xf0]  ;;  %v4897_v13 = vor.u32 %v6633_v3, %v4896_v61 }
 0x128   :  { %3589 = vmatpush.bf16.msra.mxu2 %v4593_v8  ;;  %3602 = vmatpush.bf16.msra.mxu3 %v4721_v12  ;;  %v6665_v8 = vld [vmem:[%s10405_s1 + $0x594] sm:$0xf0]  ;;  %v5280_v11 = vld [vmem:[%s10405_s1 + $0x788] sm:$0xf]  ;;  %v5153_v16 = vor.u32 %v6697_v10, %v5152_v9 }
 0x129   :  { %v6729_v12 = vld [vmem:[%s10405_s1 + $0x794] sm:$0xf0]  ;;  %v5025_v15 = vor.u32 %v6665_v8, %v5024_v4  ;;  %v4880_v17 = vld [vmem:[%s10405_s1 + $0x468] sm:$0xf] }
 0x12a   :  { %v6629_v18 = vld [vmem:[%s10405_s1 + $0x474] sm:$0xf0]  ;;  %v5008_v19 = vld [vmem:[%s10405_s1 + $0x568] sm:$0xf]  ;;  %v5281_v48 = vor.u32 %v6729_v12, %v5280_v11 }
 0x12b   :  { %3564 = vmatpush.bf16.msra.mxu0 %v4321_v21  ;;  %3577 = vmatpush.bf16.msra.mxu1 %v4449_v23  ;;  %v3358_v14 = vpop.f32.mrf.mxu0  ;;  %v3371_v21 = vpop.f32.mrf.mxu1  ;;  %v6661_v51 = vld [vmem:[%s10405_s1 + $0x574] sm:$0xf0]  ;;  %v5136_v22 = vld [vmem:[%s10405_s1 + $0x668] sm:$0xf] }
 0x12c   :  { %3590 = vmatpush.bf16.msra.mxu2 %v4577_v24  ;;  %3603 = vmatpush.bf16.msra.mxu3 %v4705_v30  ;;  %v3359_v20 = vadd.f32 %v3358_v14, %v538_v6  ;;  %v6693_v23 = vld [vmem:[%s10405_s1 + $0x674] sm:$0xf0]  ;;  %v5264_v24 = vld [vmem:[%s10405_s1 + $0x768] sm:$0xf]  ;;  %v4881_v30 = vor.u32 %v6629_v18, %v4880_v17 }
 0x12d   :  { %v6725_v25 = vld [vmem:[%s10405_s1 + $0x774] sm:$0xf0]  ;;  %v4992_v36 = vld [vmem:[%s10405_s1 + $0x548] sm:$0xf] }
 0x12e   :  { %3565 = vmatmul.bf16.vlgmr.msra.gmra.mxu0 %v7435_v28  ;;  %3578 = vmatmul.bf16.vlgmr.msra.gmra.mxu1 %v7445_v34  ;;  %v3372_v26 = vadd.f32 %v3371_v21, %v3359_v20  ;;  %v6625_v35 = vld [vmem:[%s10405_s1 + $0x454] sm:$0xf0]  ;;  %v5120_v40 = vld [vmem:[%s10405_s1 + $0x648] sm:$0xf] }
 0x12f   :  { %3609 = vmatpush.bf16.msrb.mxu0 %v4945_v31  ;;  %3622 = vmatpush.bf16.msrb.mxu1 %v5073_v32  ;;  %v5009_v31 = vor.u32 %v6661_v51, %v5008_v19  ;;  %v5137_v32 = vor.u32 %v6693_v23, %v5136_v22  ;;  %v6657_v39 = vld [vmem:[%s10405_s1 + $0x554] sm:$0xf0]  ;;  %v4848_v54 = vld [vmem:[%s10405_s1 + $0x428] sm:$0xf] }
 0x130   :  { %3635 = vmatpush.bf16.msrb.mxu2 %v5201_v33  ;;  %3648 = vmatpush.bf16.msrb.mxu3 %v5329_v38  ;;  %v4864_v33 = vld [vmem:[%s10405_s1 + $0x448] sm:$0xf]  ;;  %v5265_v38 = vor.u32 %v6725_v25, %v5264_v24  ;;  %v6689_v41 = vld [vmem:[%s10405_s1 + $0x654] sm:$0xf0]  ;;  %v4993_v50 = vor.u32 %v6657_v39, %v4992_v36 }
 0x131   :  { %3591 = vmatmul.bf16.vlgmr.msra.gmra.mxu2 %v7433_v27  ;;  %3604 = vmatmul.bf16.vlgmr.msra.gmra.mxu3 %v7437_v29  ;;  %v6621_v55 = vld [vmem:[%s10405_s1 + $0x434] sm:$0xf0]  ;;  %v4976_v56 = vld [vmem:[%s10405_s1 + $0x528] sm:$0xf] }
 0x132   :  { %v5104_v61 = vld [vmem:[%s10405_s1 + $0x628] sm:$0xf]  ;;  %v6717_v3 = vld [vmem:[%s10405_s1 + $0x734] sm:$0xf0]  ;;  %v4849_v4 = vor.u32 %v6621_v55, %v4848_v54 }
 0x133   :  { %3610 = vmatpush.bf16.msrb.mxu0 %v4929_v44  ;;  %3623 = vmatpush.bf16.msrb.mxu1 %v5057_v45  ;;  %v5248_v44 = vld [vmem:[%s10405_s1 + $0x748] sm:$0xf]  ;;  %v6721_v45 = vld [vmem:[%s10405_s1 + $0x754] sm:$0xf0]  ;;  %v3360_v49 = vpop.f32.mrf.mxu0  ;;  %v3373_v57 = vpop.f32.mrf.mxu1 }
 0x134   :  { %3636 = vmatpush.bf16.msrb.mxu2 %v5185_v46  ;;  %3649 = vmatpush.bf16.msrb.mxu3 %v5313_v53  ;;  %v3384_v37 = vpop.f32.mrf.mxu2  ;;  %v3397_v43 = vpop.f32.mrf.mxu3  ;;  %v4865_v46 = vor.u32 %v6625_v35, %v4864_v33  ;;  %v5121_v53 = vor.u32 %v6689_v41, %v5120_v40  ;;  %v5249_v58 = vor.u32 %v6721_v45, %v5248_v44  ;;  %v4832_v5 = vld [vmem:[%s10405_s1 + $0x408] sm:$0xf]  ;;  %v6617_v6 = vld [vmem:[%s10405_s1 + $0x414] sm:$0xf0] }
 0x135   :  { %v3385_v42 = vadd.f32 %v3384_v37, %v3372_v26  ;;  %v4960_v9 = vld [vmem:[%s10405_s1 + $0x508] sm:$0xf]  ;;  %v6649_v10 = vld [vmem:[%s10405_s1 + $0x514] sm:$0xf0]  ;;  %v4833_v21 = vor.u32 %v6617_v6, %v4832_v5 }
 0x136   :  { %v5088_v11 = vld [vmem:[%s10405_s1 + $0x608] sm:$0xf]  ;;  %v6681_v14 = vld [vmem:[%s10405_s1 + $0x614] sm:$0xf0]  ;;  %v4961_v23 = vor.u32 %v6649_v10, %v4960_v9 }
 0x137   :  { %3611 = vmatpush.bf16.msrb.mxu0 %v4913_v59  ;;  %3624 = vmatpush.bf16.msrb.mxu1 %v5041_v62  ;;  %v9043_v47 = vadd.f32 %v3397_v43, %v3385_v42  ;;  %v6653_v59 = vld [vmem:[%s10405_s1 + $0x534] sm:$0xf0]  ;;  %v5456_v18 = vld [vmem:[%s10405_s1 + $0x8e8] sm:$0xf]  ;;  %v5089_v24 = vor.u32 %v6681_v14, %v5088_v11 }
 0x138   :  { %3637 = vmatpush.bf16.msrb.mxu2 %v5169_v63  ;;  %3650 = vmatpush.bf16.msrb.mxu3 %v5297_v7  ;;  %v6685_v62 = vld [vmem:[%s10405_s1 + $0x634] sm:$0xf0]  ;;  %v5232_v63 = vld [vmem:[%s10405_s1 + $0x728] sm:$0xf]  ;;  %v4977_v7 = vor.u32 %v6653_v59, %v4976_v56 }
 0x139   :  { %v5105_v8 = vor.u32 %v6685_v62, %v5104_v61  ;;  %v6773_v19 = vld [vmem:[%s10405_s1 + $0x8f4] sm:$0xf0]  ;;  %v5584_v20 = vld [vmem:[%s10405_s1 + $0x9e8] sm:$0xf] }
 0x13a   :  { %v5712_v51 = vld [vmem:[%s10405_s1 + $0xae8] sm:$0xf]  ;;  %v6837_v22 = vld [vmem:[%s10405_s1 + $0xaf4] sm:$0xf0] }
 0x13b   :  { %3612 = vmatpush.bf16.msrb.mxu0 %v4897_v13  ;;  %3625 = vmatpush.bf16.msrb.mxu1 %v5025_v15  ;;  %v5233_v13 = vor.u32 %v6717_v3, %v5232_v63  ;;  %v5216_v15 = vld [vmem:[%s10405_s1 + $0x708] sm:$0xf]  ;;  %v6869_v26 = vld [vmem:[%s10405_s1 + $0xbf4] sm:$0xf0]  ;;  %v5713_v33 = vor.u32 %v6837_v22, %v5712_v51 }
 0x13c   :  { %3638 = vmatpush.bf16.msrb.mxu2 %v5153_v16  ;;  %3651 = vmatpush.bf16.msrb.mxu3 %v5281_v48  ;;  %v3386_v12 = vpop.f32.mrf.mxu2  ;;  %v6713_v16 = vld [vmem:[%s10405_s1 + $0x714] sm:$0xf0]  ;;  %v3399_v17 = vpop.f32.mrf.mxu3  ;;  %v5840_v25 = vld [vmem:[%s10405_s1 + $0xbe8] sm:$0xf] }
 0x13d   :  { %v6805_v48 = vld [vmem:[%s10405_s1 + $0x9f4] sm:$0xf0]  ;;  %v5440_v35 = vld [vmem:[%s10405_s1 + $0x8c8] sm:$0xf] }
 0x13e   :  { %v6769_v36 = vld [vmem:[%s10405_s1 + $0x8d4] sm:$0xf0]  ;;  %v5568_v37 = vld [vmem:[%s10405_s1 + $0x9c8] sm:$0xf] }
 0x13f   :  { %3613 = vmatpush.bf16.msrb.mxu0 %v4881_v30  ;;  %3626 = vmatpush.bf16.msrb.mxu1 %v5009_v31  ;;  %v5217_v30 = vor.u32 %v6713_v16, %v5216_v15  ;;  %v5457_v31 = vor.u32 %v6773_v19, %v5456_v18  ;;  %v6801_v39 = vld [vmem:[%s10405_s1 + $0x9d4] sm:$0xf0]  ;;  %v5696_v40 = vld [vmem:[%s10405_s1 + $0xac8] sm:$0xf]  ;;  %v5441_v44 = vor.u32 %v6769_v36, %v5440_v35 }
 0x140   :  { %3639 = vmatpush.bf16.msrb.mxu2 %v5137_v32  ;;  %3652 = vmatpush.bf16.msrb.mxu3 %v5265_v38  ;;  %v5585_v32 = vor.u32 %v6805_v48, %v5584_v20  ;;  %v5841_v38 = vor.u32 %v6869_v26, %v5840_v25  ;;  %v6833_v41 = vld [vmem:[%s10405_s1 + $0xad4] sm:$0xf0]  ;;  %v5824_v42 = vld [vmem:[%s10405_s1 + $0xbc8] sm:$0xf]  ;;  %v5569_v45 = vor.u32 %v6801_v39, %v5568_v37 }
 0x141   :  { %v6865_v43 = vld [vmem:[%s10405_s1 + $0xbd4] sm:$0xf0]  ;;  %v5424_v49 = vld [vmem:[%s10405_s1 + $0x8a8] sm:$0xf] }
 0x142   :  { %v5825_v54 = vor.u32 %v6865_v43, %v5824_v42  ;;  %v6797_v55 = vld [vmem:[%s10405_s1 + $0x9b4] sm:$0xf0]  ;;  %v5680_v56 = vld [vmem:[%s10405_s1 + $0xaa8] sm:$0xf] }
 0x143   :  { %3614 = vmatpush.bf16.msrb.mxu0 %v4865_v46  ;;  %3627 = vmatpush.bf16.msrb.mxu1 %v4993_v50  ;;  %v5697_v46 = vor.u32 %v6833_v41, %v5696_v40  ;;  %v6765_v50 = vld [vmem:[%s10405_s1 + $0x8b4] sm:$0xf0]  ;;  %v5408_v3 = vld [vmem:[%s10405_s1 + $0x888] sm:$0xf] }
 0x144   :  { %3640 = vmatpush.bf16.msrb.mxu2 %v5121_v53  ;;  %3653 = vmatpush.bf16.msrb.mxu3 %v5249_v58  ;;  %v5552_v53 = vld [vmem:[%s10405_s1 + $0x9a8] sm:$0xf]  ;;  %v6829_v57 = vld [vmem:[%s10405_s1 + $0xab4] sm:$0xf0]  ;;  %v5425_v61 = vor.u32 %v6765_v50, %v5424_v49 }
 0x145   :  { %v5808_v58 = vld [vmem:[%s10405_s1 + $0xba8] sm:$0xf]  ;;  %v6861_v59 = vld [vmem:[%s10405_s1 + $0xbb4] sm:$0xf0]  ;;  %v5553_v62 = vor.u32 %v6797_v55, %v5552_v53  ;;  %v5681_v63 = vor.u32 %v6829_v57, %v5680_v56 }
 0x146   :  { %v5536_v5 = vld [vmem:[%s10405_s1 + $0x988] sm:$0xf]  ;;  %v5809_v6 = vor.u32 %v6861_v59, %v5808_v58  ;;  %v6825_v9 = vld [vmem:[%s10405_s1 + $0xa94] sm:$0xf0] }
 0x147   :  { %3615 = vmatpush.bf16.msrb.mxu0 %v4849_v4  ;;  %3628 = vmatpush.bf16.msrb.mxu1 %v4977_v7  ;;  %v6761_v4 = vld [vmem:[%s10405_s1 + $0x894] sm:$0xf0]  ;;  %v5792_v10 = vld [vmem:[%s10405_s1 + $0xb88] sm:$0xf] }
 0x148   :  { %3641 = vmatpush.bf16.msrb.mxu2 %v5105_v8  ;;  %3654 = vmatpush.bf16.msrb.mxu3 %v5233_v13  ;;  %v6793_v7 = vld [vmem:[%s10405_s1 + $0x994] sm:$0xf0]  ;;  %v5664_v8 = vld [vmem:[%s10405_s1 + $0xa88] sm:$0xf]  ;;  %v5409_v12 = vor.u32 %v6761_v4, %v5408_v3 }
 0x149   :  { %v6857_v11 = vld [vmem:[%s10405_s1 + $0xb94] sm:$0xf0]  ;;  %v5537_v14 = vor.u32 %v6793_v7, %v5536_v5  ;;  %v5665_v15 = vor.u32 %v6825_v9, %v5664_v8  ;;  %v5392_v16 = vld [vmem:[%s10405_s1 + $0x868] sm:$0xf] }
 0x14a   :  { %v6757_v17 = vld [vmem:[%s10405_s1 + $0x874] sm:$0xf0]  ;;  %v5520_v18 = vld [vmem:[%s10405_s1 + $0x968] sm:$0xf] }
 0x14b   :  { %3616 = vmatpush.bf16.msrb.mxu0 %v4833_v21  ;;  %3629 = vmatpush.bf16.msrb.mxu1 %v4961_v23  ;;  %v3410_v13 = vpop.f32.mrf.mxu0  ;;  %v3423_v20 = vpop.f32.mrf.mxu1  ;;  %v5793_v21 = vor.u32 %v6857_v11, %v5792_v10  ;;  %v6789_v48 = vld [vmem:[%s10405_s1 + $0x974] sm:$0xf0]  ;;  %v5648_v51 = vld [vmem:[%s10405_s1 + $0xa68] sm:$0xf]  ;;  %v5393_v25 = vor.u32 %v6757_v17, %v5392_v16 }
 0x14c   :  { %3642 = vmatpush.bf16.msrb.mxu2 %v5089_v24  ;;  %3655 = vmatpush.bf16.msrb.mxu3 %v5217_v30  ;;  %v3411_v19 = vadd.f32 %v3410_v13, %v9043_v47  ;;  %v6821_v22 = vld [vmem:[%s10405_s1 + $0xa74] sm:$0xf0]  ;;  %v5776_v23 = vld [vmem:[%s10405_s1 + $0xb68] sm:$0xf]  ;;  %v5521_v26 = vor.u32 %v6789_v48, %v5520_v18 }
 0x14d   :  { %v6853_v47 = vld [vmem:[%s10405_s1 + $0xb74] sm:$0xf0]  ;;  %v5649_v30 = vor.u32 %v6821_v22, %v5648_v51  ;;  %v5760_v42 = vld [vmem:[%s10405_s1 + $0xb48] sm:$0xf] }
 0x14e   :  { %3617 = vmatmul.bf16.vlgmr.msrb.gmra.mxu0 %v7513_v0  ;;  %3630 = vmatmul.bf16.vlgmr.msrb.gmra.mxu1 %v7517_v2  ;;  %v3424_v24 = vadd.f32 %v3423_v20, %v3411_v19  ;;  %v5777_v36 = vor.u32 %v6853_v47, %v5776_v23  ;;  %v6785_v37 = vld [vmem:[%s10405_s1 + $0x954] sm:$0xf0]  ;;  %v5360_v53 = vld [vmem:[%s10405_s1 + $0x828] sm:$0xf] }
 0x14f   :  { %3661 = vmatpush.bf16.msra.mxu0 %v5457_v31  ;;  %3674 = vmatpush.bf16.msra.mxu1 %v5585_v32  ;;  %v5376_v31 = vld [vmem:[%s10405_s1 + $0x848] sm:$0xf]  ;;  %v6753_v32 = vld [vmem:[%s10405_s1 + $0x854] sm:$0xf0] }
 0x150   :  { %3687 = vmatpush.bf16.msra.mxu2 %v5713_v33  ;;  %3700 = vmatpush.bf16.msra.mxu3 %v5841_v38  ;;  %v5504_v33 = vld [vmem:[%s10405_s1 + $0x948] sm:$0xf]  ;;  %v6817_v39 = vld [vmem:[%s10405_s1 + $0xa54] sm:$0xf0] }
 0x151   :  { %3643 = vmatmul.bf16.vlgmr.msrb.gmra.mxu2 %v7508_v60  ;;  %3656 = vmatmul.bf16.vlgmr.msrb.gmra.mxu3 %v7515_v1  ;;  %v5632_v38 = vld [vmem:[%s10405_s1 + $0xa48] sm:$0xf]  ;;  %v6849_v43 = vld [vmem:[%s10405_s1 + $0xb54] sm:$0xf0]  ;;  %v5505_v49 = vor.u32 %v6785_v37, %v5504_v33 }
 0x152   :  { %v5633_v50 = vor.u32 %v6817_v39, %v5632_v38  ;;  %v5488_v55 = vld [vmem:[%s10405_s1 + $0x928] sm:$0xf]  ;;  %v5761_v57 = vor.u32 %v6849_v43, %v5760_v42  ;;  %v6781_v58 = vld [vmem:[%s10405_s1 + $0x934] sm:$0xf0] }
 0x153   :  { %3662 = vmatpush.bf16.msra.mxu0 %v5441_v44  ;;  %3675 = vmatpush.bf16.msra.mxu1 %v5569_v45  ;;  %v5377_v44 = vor.u32 %v6753_v32, %v5376_v31  ;;  %v3425_v56 = vpop.f32.mrf.mxu1  ;;  %v5616_v59 = vld [vmem:[%s10405_s1 + $0xa28] sm:$0xf]  ;;  %v6745_v5 = vld [vmem:[%s10405_s1 + $0x814] sm:$0xf0] }
 0x154   :  { %3688 = vmatpush.bf16.msra.mxu2 %v5697_v46  ;;  %3701 = vmatpush.bf16.msra.mxu3 %v5825_v54  ;;  %v3436_v35 = vpop.f32.mrf.mxu2  ;;  %v3449_v41 = vpop.f32.mrf.mxu3  ;;  %v6749_v54 = vld [vmem:[%s10405_s1 + $0x834] sm:$0xf0]  ;;  %v5344_v4 = vld [vmem:[%s10405_s1 + $0x808] sm:$0xf] }
 0x155   :  { %v3437_v40 = vadd.f32 %v3436_v35, %v3424_v24  ;;  %v3412_v46 = vpop.f32.mrf.mxu0  ;;  %v5361_v3 = vor.u32 %v6749_v54, %v5360_v53  ;;  %v5472_v8 = vld [vmem:[%s10405_s1 + $0x908] sm:$0xf]  ;;  %v6777_v9 = vld [vmem:[%s10405_s1 + $0x914] sm:$0xf0]  ;;  %v5345_v20 = vor.u32 %v6745_v5, %v5344_v4  ;;  %v7041_v53 = vld [vmem:[#allocation1] sm:$0xff] }
 0x156   :  { %v5600_v10 = vld [vmem:[%s10405_s1 + $0xa08] sm:$0xf]  ;;  %v6809_v13 = vld [vmem:[%s10405_s1 + $0xa14] sm:$0xf0]  ;;  %v5473_v22 = vor.u32 %v6777_v9, %v5472_v8 }
 0x157   :  { %3663 = vmatpush.bf16.msra.mxu0 %v5425_v61  ;;  %3676 = vmatpush.bf16.msra.mxu1 %v5553_v62  ;;  %v9242_v45 = vadd.f32 %v3449_v41, %v3437_v40  ;;  %v6813_v61 = vld [vmem:[%s10405_s1 + $0xa34] sm:$0xf0]  ;;  %v5744_v62 = vld [vmem:[%s10405_s1 + $0xb28] sm:$0xf]  ;;  %v5601_v23 = vor.u32 %v6809_v13, %v5600_v10 }
 0x158   :  { %3689 = vmatpush.bf16.msra.mxu2 %v5681_v63  ;;  %3702 = vmatpush.bf16.msra.mxu3 %v5809_v6  ;;  %v6845_v63 = vld [vmem:[%s10405_s1 + $0xb34] sm:$0xf0]  ;;  %v5489_v6 = vor.u32 %v6781_v58, %v5488_v55  ;;  %v5617_v7 = vor.u32 %v6813_v61, %v5616_v59  ;;  %v5968_v17 = vld [vmem:[%s10405_s1 + $0xce8] sm:$0xf] }
 0x159   :  { %v6901_v18 = vld [vmem:[%s10405_s1 + $0xcf4] sm:$0xf0]  ;;  %v6096_v19 = vld [vmem:[%s10405_s1 + $0xde8] sm:$0xf] }
 0x15a   :  { %v6224_v48 = vld [vmem:[%s10405_s1 + $0xee8] sm:$0xf]  ;;  %v6965_v51 = vld [vmem:[%s10405_s1 + $0xef4] sm:$0xf0] }
 0x15b   :  { %3664 = vmatpush.bf16.msra.mxu0 %v5409_v12  ;;  %3677 = vmatpush.bf16.msra.mxu1 %v5537_v14  ;;  %v5745_v12 = vor.u32 %v6845_v63, %v5744_v62  ;;  %v5728_v14 = vld [vmem:[%s10405_s1 + $0xb08] sm:$0xf]  ;;  %v6997_v24 = vld [vmem:[%s10405_s1 + $0xff4] sm:$0xf0]  ;;  %v6225_v31 = vor.u32 %v6965_v51, %v6224_v48 }
 0x15c   :  { %3690 = vmatpush.bf16.msra.mxu2 %v5665_v15  ;;  %3703 = vmatpush.bf16.msra.mxu3 %v5793_v21  ;;  %v3438_v11 = vpop.f32.mrf.mxu2  ;;  %v6841_v15 = vld [vmem:[%s10405_s1 + $0xb14] sm:$0xf0]  ;;  %v3451_v16 = vpop.f32.mrf.mxu3  ;;  %v6352_v47 = vld [vmem:[%s10405_s1 + $0xfe8] sm:$0xf] }
 0x15d   :  { %v6933_v21 = vld [vmem:[%s10405_s1 + $0xdf4] sm:$0xf0]  ;;  %v5952_v32 = vld [vmem:[%s10405_s1 + $0xcc8] sm:$0xf] }
 0x15e   :  { %v6897_v33 = vld [vmem:[%s10405_s1 + $0xcd4] sm:$0xf0]  ;;  %v6080_v35 = vld [vmem:[%s10405_s1 + $0xdc8] sm:$0xf] }
 0x15f   :  { %3665 = vmatpush.bf16.msra.mxu0 %v5393_v25  ;;  %3678 = vmatpush.bf16.msra.mxu1 %v5521_v26  ;;  %v5729_v25 = vor.u32 %v6841_v15, %v5728_v14  ;;  %v5969_v26 = vor.u32 %v6901_v18, %v5968_v17  ;;  %v6929_v37 = vld [vmem:[%s10405_s1 + $0xdd4] sm:$0xf0]  ;;  %v6208_v38 = vld [vmem:[%s10405_s1 + $0xec8] sm:$0xf]  ;;  %v5953_v42 = vor.u32 %v6897_v33, %v5952_v32 }
 0x160   :  { %3691 = vmatpush.bf16.msra.mxu2 %v5649_v30  ;;  %3704 = vmatpush.bf16.msra.mxu3 %v5777_v36  ;;  %v6097_v30 = vor.u32 %v6933_v21, %v6096_v19  ;;  %v6353_v36 = vor.u32 %v6997_v24, %v6352_v47  ;;  %v6961_v39 = vld [vmem:[%s10405_s1 + $0xed4] sm:$0xf0]  ;;  %v6336_v40 = vld [vmem:[%s10405_s1 + $0xfc8] sm:$0xf]  ;;  %v6081_v43 = vor.u32 %v6929_v37, %v6080_v35 }
 0x161   :  { %v6993_v41 = vld [vmem:[%s10405_s1 + $0xfd4] sm:$0xf0]  ;;  %v5936_v46 = vld [vmem:[%s10405_s1 + $0xca8] sm:$0xf] }
 0x162   :  { %v6337_v54 = vor.u32 %v6993_v41, %v6336_v40  ;;  %v6925_v55 = vld [vmem:[%s10405_s1 + $0xdb4] sm:$0xf0]  ;;  %v6192_v56 = vld [vmem:[%s10405_s1 + $0xea8] sm:$0xf] }
 0x163   :  { %3666 = vmatpush.bf16.msra.mxu0 %v5377_v44  ;;  %3679 = vmatpush.bf16.msra.mxu1 %v5505_v49  ;;  %v6209_v44 = vor.u32 %v6961_v39, %v6208_v38  ;;  %v6893_v49 = vld [vmem:[%s10405_s1 + $0xcb4] sm:$0xf0]  ;;  %v7043_v59 = vld [vmem:[#allocation1 + $0x9] sm:$0xff] }
 0x164   :  { %3692 = vmatpush.bf16.msra.mxu2 %v5633_v50  ;;  %3705 = vmatpush.bf16.msra.mxu3 %v5761_v57  ;;  %v6064_v50 = vld [vmem:[%s10405_s1 + $0xda8] sm:$0xf]  ;;  %v6957_v57 = vld [vmem:[%s10405_s1 + $0xeb4] sm:$0xf0] }
 0x165   :  { %v7042_v58 = vld [vmem:[#allocation1 + $0x12] sm:$0xff]  ;;  %v6320_v61 = vld [vmem:[%s10405_s1 + $0xfa8] sm:$0xf]  ;;  %v7044_v63 = vld [vmem:[#allocation1 + $0x1b] sm:$0xff]  ;;  %v6065_v4 = vor.u32 %v6925_v55, %v6064_v50  ;;  %v6193_v5 = vor.u32 %v6957_v57, %v6192_v56 }
 0x166   :  { %v6989_v62 = vld [vmem:[%s10405_s1 + $0xfb4] sm:$0xf0]  ;;  %v6048_v8 = vld [vmem:[%s10405_s1 + $0xd88] sm:$0xf] }
 0x167   :  { %3667 = vmatpush.bf16.msra.mxu0 %v5361_v3  ;;  %3680 = vmatpush.bf16.msra.mxu1 %v5489_v6  ;;  %v5937_v3 = vor.u32 %v6893_v49, %v5936_v46  ;;  %v5920_v6 = vld [vmem:[%s10405_s1 + $0xc88] sm:$0xf]  ;;  %v6321_v9 = vor.u32 %v6989_v62, %v6320_v61  ;;  %v6921_v10 = vld [vmem:[%s10405_s1 + $0xd94] sm:$0xf0] }
 0x168   :  { %3693 = vmatpush.bf16.msra.mxu2 %v5617_v7  ;;  %3706 = vmatpush.bf16.msra.mxu3 %v5745_v12  ;;  %v6889_v7 = vld [vmem:[%s10405_s1 + $0xc94] sm:$0xf0]  ;;  %v6176_v11 = vld [vmem:[%s10405_s1 + $0xe88] sm:$0xf]  ;;  %v6049_v19 = vor.u32 %v6921_v10, %v6048_v8 }
 0x169   :  { %v6953_v12 = vld [vmem:[%s10405_s1 + $0xe94] sm:$0xf0]  ;;  %v6304_v14 = vld [vmem:[%s10405_s1 + $0xf88] sm:$0xf]  ;;  %v5921_v17 = vor.u32 %v6889_v7, %v5920_v6 }
 0x16a   :  { %v6985_v15 = vld [vmem:[%s10405_s1 + $0xf94] sm:$0xf0]  ;;  %v5904_v21 = vld [vmem:[%s10405_s1 + $0xc68] sm:$0xf] }
 0x16b   :  { %3668 = vmatpush.bf16.msra.mxu0 %v5345_v20  ;;  %3681 = vmatpush.bf16.msra.mxu1 %v5473_v22  ;;  %v3462_v13 = vpop.f32.mrf.mxu0  ;;  %v3475_v18 = vpop.f32.mrf.mxu1  ;;  %v6177_v20 = vor.u32 %v6953_v12, %v6176_v11  ;;  %v6885_v48 = vld [vmem:[%s10405_s1 + $0xc74] sm:$0xf0]  ;;  %v6032_v51 = vld [vmem:[%s10405_s1 + $0xd68] sm:$0xf] }
 0x16c   :  { %3694 = vmatpush.bf16.msra.mxu2 %v5601_v23  ;;  %3707 = vmatpush.bf16.msra.mxu3 %v5729_v25  ;;  %v3463_v16 = vadd.f32 %v3462_v13, %v9242_v45  ;;  %v6305_v45 = vor.u32 %v6985_v15, %v6304_v14  ;;  %v6917_v23 = vld [vmem:[%s10405_s1 + $0xd74] sm:$0xf0]  ;;  %v6160_v47 = vld [vmem:[%s10405_s1 + $0xe68] sm:$0xf] }
 0x16d   :  { %v6949_v24 = vld [vmem:[%s10405_s1 + $0xe74] sm:$0xf0]  ;;  %v6288_v25 = vld [vmem:[%s10405_s1 + $0xf68] sm:$0xf] }
 0x16e   :  { %3669 = vmatmul.bf16.vlgmr.msra.gmra.mxu0 %v7041_v53  ;;  %3682 = vmatmul.bf16.vlgmr.msra.gmra.mxu1 %v7043_v59  ;;  %v3476_v22 = vadd.f32 %v3475_v18, %v3463_v16  ;;  %v6161_v32 = vor.u32 %v6949_v24, %v6160_v47  ;;  %v5888_v33 = vld [vmem:[%s10405_s1 + $0xc48] sm:$0xf]  ;;  %v6881_v35 = vld [vmem:[%s10405_s1 + $0xc54] sm:$0xf0] }
 0x16f   :  { %3713 = vmatpush.bf16.msrb.mxu0 %v5969_v26  ;;  %3726 = vmatpush.bf16.msrb.mxu1 %v6097_v30  ;;  %v6981_v26 = vld [vmem:[%s10405_s1 + $0xf74] sm:$0xf0]  ;;  %v5905_v30 = vor.u32 %v6885_v48, %v5904_v21  ;;  %v6144_v40 = vld [vmem:[%s10405_s1 + $0xe48] sm:$0xf]  ;;  %v5889_v50 = vor.u32 %v6881_v35, %v5888_v33  ;;  %v6547_v21 = vld [vmem:[%s10405_s1 + $0x1ec] sm:$0xf] }
 0x170   :  { %3739 = vmatpush.bf16.msrb.mxu2 %v6225_v31  ;;  %3752 = vmatpush.bf16.msrb.mxu3 %v6353_v36  ;;  %v6033_v31 = vor.u32 %v6917_v23, %v6032_v51  ;;  %v6016_v36 = vld [vmem:[%s10405_s1 + $0xd48] sm:$0xf]  ;;  %v6289_v37 = vor.u32 %v6981_v26, %v6288_v25  ;;  %v6913_v39 = vld [vmem:[%s10405_s1 + $0xd54] sm:$0xf0]  ;;  %v4690_v23 = vld [vmem:[%s10405_s1 + $0x2f8] sm:$0xf0] }
 0x171   :  { %3695 = vmatmul.bf16.vlgmr.msra.gmra.mxu2 %v7042_v58  ;;  %3708 = vmatmul.bf16.vlgmr.msra.gmra.mxu3 %v7044_v63  ;;  %v6945_v41 = vld [vmem:[%s10405_s1 + $0xe54] sm:$0xf0]  ;;  %v6017_v55 = vor.u32 %v6913_v39, %v6016_v36  ;;  %v5872_v57 = vld [vmem:[%s10405_s1 + $0xc28] sm:$0xf]  ;;  %v6611_v25 = vld [vmem:[%s10405_s1 + $0x3ec] sm:$0xf] }
 0x172   :  { %v6977_v46 = vld [vmem:[%s10405_s1 + $0xf54] sm:$0xf0]  ;;  %v6145_v56 = vor.u32 %v6945_v41, %v6144_v40  ;;  %v6000_v59 = vld [vmem:[%s10405_s1 + $0xd28] sm:$0xf]  ;;  %v4818_v26 = vld [vmem:[%s10405_s1 + $0x3f8] sm:$0xf0] }
 0x173   :  { %3714 = vmatpush.bf16.msrb.mxu0 %v5953_v42  ;;  %3727 = vmatpush.bf16.msrb.mxu1 %v6081_v43  ;;  %v3464_v49 = vpop.f32.mrf.mxu0  ;;  %v3477_v53 = vpop.f32.mrf.mxu1  ;;  %v6877_v58 = vld [vmem:[%s10405_s1 + $0xc34] sm:$0xf0]  ;;  %v6128_v63 = vld [vmem:[%s10405_s1 + $0xe28] sm:$0xf]  ;;  %v6511_v35 = vld [vmem:[%s10405_s1 + $0xcc] sm:$0xf] }
 0x174   :  { %3740 = vmatpush.bf16.msrb.mxu2 %v6209_v44  ;;  %3753 = vmatpush.bf16.msrb.mxu3 %v6337_v54  ;;  %v3488_v38 = vpop.f32.mrf.mxu2  ;;  %v3501_v43 = vpop.f32.mrf.mxu3  ;;  %v6272_v44 = vld [vmem:[%s10405_s1 + $0xf48] sm:$0xf]  ;;  %v6909_v62 = vld [vmem:[%s10405_s1 + $0xd34] sm:$0xf0]  ;;  %v5873_v6 = vor.u32 %v6877_v58, %v5872_v57  ;;  %v4418_v36 = vld [vmem:[%s10405_s1 + $0xd8] sm:$0xf0] }
 0x175   :  { %v3489_v42 = vadd.f32 %v3488_v38, %v3476_v22  ;;  %v6273_v61 = vor.u32 %v6977_v46, %v6272_v44  ;;  %v5856_v7 = vld [vmem:[%s10405_s1 + $0xc08] sm:$0xf]  ;;  %v6873_v8 = vld [vmem:[%s10405_s1 + $0xc14] sm:$0xf0]  ;;  %v6579_v22 = vld [vmem:[%s10405_s1 + $0x2ec] sm:$0xf]  ;;  %v4821_v38 = vor.u32 %v6611_v25, %v4818_v26  ;;  %v4421_v44 = vor.u32 %v6511_v35, %v4418_v36 }
 0x176   :  { %v5984_v11 = vld [vmem:[%s10405_s1 + $0xd08] sm:$0xf]  ;;  %v6905_v12 = vld [vmem:[%s10405_s1 + $0xd14] sm:$0xf0]  ;;  %v5857_v51 = vor.u32 %v6873_v8, %v5856_v7  ;;  %v4693_v33 = vor.u32 %v6579_v22, %v4690_v23  ;;  %v4546_v39 = vld [vmem:[%s10405_s1 + $0x1d8] sm:$0xf0] }
 0x177   :  { %3715 = vmatpush.bf16.msrb.mxu0 %v5937_v3  ;;  %3728 = vmatpush.bf16.msrb.mxu1 %v6065_v4  ;;  %v9437_v54 = vadd.f32 %v3501_v43, %v3489_v42  ;;  %v6941_v3 = vld [vmem:[%s10405_s1 + $0xe34] sm:$0xf0]  ;;  %v6256_v4 = vld [vmem:[%s10405_s1 + $0xf28] sm:$0xf]  ;;  %v5985_v47 = vor.u32 %v6905_v12, %v5984_v11  ;;  %v6575_v40 = vld [vmem:[%s10405_s1 + $0x2cc] sm:$0xf] }
 0x178   :  { %3741 = vmatpush.bf16.msrb.mxu2 %v6193_v5  ;;  %3754 = vmatpush.bf16.msrb.mxu3 %v6321_v9  ;;  %v6973_v5 = vld [vmem:[%s10405_s1 + $0xf34] sm:$0xf0]  ;;  %v6001_v9 = vor.u32 %v6909_v62, %v6000_v59  ;;  %v6129_v10 = vor.u32 %v6941_v3, %v6128_v63  ;;  %v6112_v13 = vld [vmem:[%s10405_s1 + $0xe08] sm:$0xf]  ;;  %v4674_v41 = vld [vmem:[%s10405_s1 + $0x2d8] sm:$0xf0] }
 0x179   :  { %v6257_v14 = vor.u32 %v6973_v5, %v6256_v4  ;;  %v6937_v15 = vld [vmem:[%s10405_s1 + $0xe14] sm:$0xf0]  ;;  %v6240_v16 = vld [vmem:[%s10405_s1 + $0xf08] sm:$0xf]  ;;  %v6607_v42 = vld [vmem:[%s10405_s1 + $0x3cc] sm:$0xf]  ;;  %v4677_v49 = vor.u32 %v6575_v40, %v4674_v41 }
 0x17a   :  { %v6113_v24 = vor.u32 %v6937_v15, %v6112_v13  ;;  %v4802_v43 = vld [vmem:[%s10405_s1 + $0x3d8] sm:$0xf0]  ;;  %v6571_v59 = vld [vmem:[%s10405_s1 + $0x2ac] sm:$0xf] }
 0x17b   :  { %3716 = vmatpush.bf16.msrb.mxu0 %v5921_v17  ;;  %3729 = vmatpush.bf16.msrb.mxu1 %v6049_v19  ;;  %v6969_v17 = vld [vmem:[%s10405_s1 + $0xf14] sm:$0xf0]  ;;  %v6515_v19 = vld [vmem:[%s10405_s1 + $0xec] sm:$0xf]  ;;  %v4402_v53 = vld [vmem:[%s10405_s1 + $0xb8] sm:$0xf0]  ;;  %v4805_v57 = vor.u32 %v6607_v42, %v4802_v43 }
 0x17c   :  { %3742 = vmatpush.bf16.msrb.mxu2 %v6177_v20  ;;  %3755 = vmatpush.bf16.msrb.mxu3 %v6305_v45  ;;  %v3490_v18 = vpop.f32.mrf.mxu2  ;;  %v4434_v20 = vld [vmem:[%s10405_s1 + $0xf8] sm:$0xf0]  ;;  %v3503_v48 = vpop.f32.mrf.mxu3  ;;  %v7047_v63 = vld [vmem:[#allocation1 + $0x2d] sm:$0xff] }
 0x17d   :  { %v4562_v45 = vld [vmem:[%s10405_s1 + $0x1f8] sm:$0xf0]  ;;  %v6603_v3 = vld [vmem:[%s10405_s1 + $0x3ac] sm:$0xf] }
 0x17e   :  { %v4530_v58 = vld [vmem:[%s10405_s1 + $0x1b8] sm:$0xf0]  ;;  %v6535_v11 = vld [vmem:[%s10405_s1 + $0x18c] sm:$0xf] }
 0x17f   :  { %3717 = vmatpush.bf16.msrb.mxu0 %v5905_v30  ;;  %3730 = vmatpush.bf16.msrb.mxu1 %v6033_v31  ;;  %v6241_v30 = vor.u32 %v6969_v17, %v6240_v16  ;;  %v4437_v31 = vor.u32 %v6515_v19, %v4434_v20  ;;  %v7046_v62 = vld [vmem:[#allocation1 + $0x36] sm:$0xff]  ;;  %v7048_v5 = vld [vmem:[#allocation1 + $0x3f] sm:$0xff]  ;;  %v6599_v17 = vld [vmem:[%s10405_s1 + $0x38c] sm:$0xf] }
 0x180   :  { %3743 = vmatpush.bf16.msrb.mxu2 %v6161_v32  ;;  %3756 = vmatpush.bf16.msrb.mxu3 %v6289_v37  ;;  %v4565_v32 = vor.u32 %v6547_v21, %v4562_v45  ;;  %v6543_v37 = vld [vmem:[%s10405_s1 + $0x1cc] sm:$0xf]  ;;  %v4786_v4 = vld [vmem:[%s10405_s1 + $0x3b8] sm:$0xf0] }
 0x181   :  { %v4549_v46 = vor.u32 %v6543_v37, %v4546_v39  ;;  %v4789_v12 = vor.u32 %v6603_v3, %v4786_v4  ;;  %v4514_v13 = vld [vmem:[%s10405_s1 + $0x198] sm:$0xf0]  ;;  %v6499_v45 = vld [vmem:[%s10405_s1 + $0x6c] sm:$0xf] }
 0x182   :  { %v4642_v15 = vld [vmem:[%s10405_s1 + $0x298] sm:$0xf0]  ;;  %v4517_v48 = vor.u32 %v6535_v11, %v4514_v13  ;;  %v6531_v23 = vld [vmem:[%s10405_s1 + $0x16c] sm:$0xf] }
 0x183   :  { %3718 = vmatpush.bf16.msrb.mxu0 %v5889_v50  ;;  %3731 = vmatpush.bf16.msrb.mxu1 %v6017_v55  ;;  %v6507_v50 = vld [vmem:[%s10405_s1 + $0xac] sm:$0xf]  ;;  %v4770_v18 = vld [vmem:[%s10405_s1 + $0x398] sm:$0xf0] }
 0x184   :  { %3744 = vmatpush.bf16.msrb.mxu2 %v6145_v56  ;;  %3757 = vmatpush.bf16.msrb.mxu3 %v6273_v61  ;;  %v6539_v55 = vld [vmem:[%s10405_s1 + $0x1ac] sm:$0xf]  ;;  %v7045_v56 = vld [vmem:[#allocation1 + $0x24] sm:$0xff]  ;;  %v4658_v61 = vld [vmem:[%s10405_s1 + $0x2b8] sm:$0xf0] }
 0x185   :  { %v4533_v7 = vor.u32 %v6539_v55, %v4530_v58  ;;  %v4661_v8 = vor.u32 %v6571_v59, %v4658_v61  ;;  %v4370_v22 = vld [vmem:[%s10405_s1 + $0x78] sm:$0xf0]  ;;  %v6563_v25 = vld [vmem:[%s10405_s1 + $0x26c] sm:$0xf] }
 0x186   :  { %v4626_v26 = vld [vmem:[%s10405_s1 + $0x278] sm:$0xf0]  ;;  %v6495_v36 = vld [vmem:[%s10405_s1 + $0x4c] sm:$0xf] }
 0x187   :  { %3719 = vmatpush.bf16.msrb.mxu0 %v5873_v6  ;;  %3732 = vmatpush.bf16.msrb.mxu1 %v6001_v9  ;;  %v4405_v6 = vor.u32 %v6507_v50, %v4402_v53  ;;  %v6503_v9 = vld [vmem:[%s10405_s1 + $0x8c] sm:$0xf]  ;;  %v4629_v35 = vor.u32 %v6563_v25, %v4626_v26  ;;  %v4354_v37 = vld [vmem:[%s10405_s1 + $0x58] sm:$0xf0] }
 0x188   :  { %3745 = vmatpush.bf16.msrb.mxu2 %v6129_v10  ;;  %3758 = vmatpush.bf16.msrb.mxu3 %v6257_v14  ;;  %v4386_v10 = vld [vmem:[%s10405_s1 + $0x98] sm:$0xf0]  ;;  %v6567_v14 = vld [vmem:[%s10405_s1 + $0x28c] sm:$0xf]  ;;  %v4357_v55 = vor.u32 %v6495_v36, %v4354_v37 }
 0x189   :  { %v4389_v20 = vor.u32 %v6503_v9, %v4386_v10  ;;  %v4482_v41 = vld [vmem:[%s10405_s1 + $0x158] sm:$0xf0]  ;;  %v6559_v42 = vld [vmem:[%s10405_s1 + $0x24c] sm:$0xf] }
 0x18a   :  { %v4610_v43 = vld [vmem:[%s10405_s1 + $0x258] sm:$0xf0]  ;;  %v6491_v61 = vld [vmem:[%s10405_s1 + $0x2c] sm:$0xf] }
 0x18b   :  { %3720 = vmatpush.bf16.msrb.mxu0 %v5857_v51  ;;  %3733 = vmatpush.bf16.msrb.mxu1 %v5985_v47  ;;  %v3514_v16 = vpop.f32.mrf.mxu0  ;;  %v3527_v21 = vpop.f32.mrf.mxu1  ;;  %v4645_v51 = vor.u32 %v6567_v14, %v4642_v15  ;;  %v4738_v50 = vld [vmem:[%s10405_s1 + $0x358] sm:$0xf0]  ;;  %v4613_v59 = vor.u32 %v6559_v42, %v4610_v43  ;;  %v6487_v10 = vld [vmem:[%s10405_s1 + $0xc] sm:$0xf] }
 0x18c   :  { %3746 = vmatpush.bf16.msrb.mxu2 %v6113_v24  ;;  %3759 = vmatpush.bf16.msrb.mxu3 %v6241_v30  ;;  %v3515_v19 = vadd.f32 %v3514_v16, %v9437_v54  ;;  %v4773_v54 = vor.u32 %v6599_v17, %v4770_v18  ;;  %v4498_v24 = vld [vmem:[%s10405_s1 + $0x178] sm:$0xf0]  ;;  %v6595_v30 = vld [vmem:[%s10405_s1 + $0x36c] sm:$0xf] }
 0x18d   :  { %v4466_v4 = vld [vmem:[%s10405_s1 + $0x138] sm:$0xf0]  ;;  %v6519_v14 = vld [vmem:[%s10405_s1 + $0x10c] sm:$0xf] }
 0x18e   :  { %3721 = vmatmul.bf16.vlgmr.msrb.gmra.mxu0 %v7045_v56  ;;  %3734 = vmatmul.bf16.vlgmr.msrb.gmra.mxu1 %v7047_v63  ;;  %v3528_v47 = vadd.f32 %v3527_v21, %v3515_v19  ;;  %v6523_v63 = vld [vmem:[%s10405_s1 + $0x12c] sm:$0xf]  ;;  %v4322_v11 = vld [vmem:[%s10405_s1 + $0x18] sm:$0xf0] }
 0x18f   :  { %3765 = vmatpush.bf16.msra.mxu0 %v4437_v31  ;;  %3778 = vmatpush.bf16.msra.mxu1 %v4565_v32  ;;  %v4754_v31 = vld [vmem:[%s10405_s1 + $0x378] sm:$0xf0]  ;;  %v4373_v32 = vor.u32 %v6499_v45, %v4370_v22  ;;  %v6551_v16 = vld [vmem:[%s10405_s1 + $0x20c] sm:$0xf] }
 0x190   :  { %3791 = vmatpush.bf16.msra.mxu2 %v4693_v33  ;;  %3804 = vmatpush.bf16.msra.mxu3 %v4821_v38  ;;  %v4501_v33 = vor.u32 %v6531_v23, %v4498_v24  ;;  %v6527_v38 = vld [vmem:[%s10405_s1 + $0x14c] sm:$0xf]  ;;  %v4757_v39 = vor.u32 %v6595_v30, %v4754_v31  ;;  %v4450_v15 = vld [vmem:[%s10405_s1 + $0x118] sm:$0xf0]  ;;  %v4325_v23 = vor.u32 %v6487_v10, %v4322_v11 }
 0x191   :  { %3747 = vmatmul.bf16.vlgmr.msrb.gmra.mxu2 %v7046_v62  ;;  %3760 = vmatmul.bf16.vlgmr.msrb.gmra.mxu3 %v7048_v5  ;;  %v4485_v58 = vor.u32 %v6527_v38, %v4482_v41  ;;  %v4338_v62 = vld [vmem:[%s10405_s1 + $0x38] sm:$0xf0]  ;;  %v6555_v5 = vld [vmem:[%s10405_s1 + $0x22c] sm:$0xf]  ;;  %v4453_v25 = vor.u32 %v6519_v14, %v4450_v15 }
 0x192   :  { %v4341_v9 = vor.u32 %v6491_v61, %v4338_v62  ;;  %v4578_v18 = vld [vmem:[%s10405_s1 + $0x218] sm:$0xf0]  ;;  %v6583_v19 = vld [vmem:[%s10405_s1 + $0x30c] sm:$0xf] }
 0x193   :  { %3766 = vmatpush.bf16.msra.mxu0 %v4421_v44  ;;  %3779 = vmatpush.bf16.msra.mxu1 %v4549_v46  ;;  %v3516_v53 = vpop.f32.mrf.mxu0  ;;  %v3529_v56 = vpop.f32.mrf.mxu1  ;;  %v6675_v45 = vld [vmem:[%s10405_s1 + $0x5ec] sm:$0xf]  ;;  %v5202_v24 = vld [vmem:[%s10405_s1 + $0x6f8] sm:$0xf0]  ;;  %v4581_v26 = vor.u32 %v6551_v16, %v4578_v18 }
 0x194   :  { %3792 = vmatpush.bf16.msra.mxu2 %v4677_v49  ;;  %3805 = vmatpush.bf16.msra.mxu3 %v4805_v57  ;;  %v3540_v40 = vpop.f32.mrf.mxu2  ;;  %v3553_v46 = vpop.f32.mrf.mxu3  ;;  %v6591_v49 = vld [vmem:[%s10405_s1 + $0x34c] sm:$0xf]  ;;  %v5330_v31 = vld [vmem:[%s10405_s1 + $0x7f8] sm:$0xf0] }
 0x195   :  { %v3541_v44 = vadd.f32 %v3540_v40, %v3528_v47  ;;  %v4741_v3 = vor.u32 %v6591_v49, %v4738_v50  ;;  %v6707_v47 = vld [vmem:[%s10405_s1 + $0x6ec] sm:$0xf]  ;;  %v4930_v38 = vld [vmem:[%s10405_s1 + $0x4d8] sm:$0xf0] }
 0x196   :  { %v6739_v30 = vld [vmem:[%s10405_s1 + $0x7ec] sm:$0xf]  ;;  %v5205_v36 = vor.u32 %v6707_v47, %v5202_v24  ;;  %v5058_v41 = vld [vmem:[%s10405_s1 + $0x5d8] sm:$0xf0] }
 0x197   :  { %3767 = vmatpush.bf16.msra.mxu0 %v4405_v6  ;;  %3780 = vmatpush.bf16.msra.mxu1 %v4533_v7  ;;  %v9632_v57 = vadd.f32 %v3553_v46, %v3541_v44  ;;  %v4594_v6 = vld [vmem:[%s10405_s1 + $0x238] sm:$0xf0]  ;;  %v6587_v7 = vld [vmem:[%s10405_s1 + $0x32c] sm:$0xf]  ;;  %v5333_v40 = vor.u32 %v6739_v30, %v5330_v31 }
 0x198   :  { %3793 = vmatpush.bf16.msra.mxu2 %v4661_v8  ;;  %3806 = vmatpush.bf16.msra.mxu3 %v4789_v12  ;;  %v4722_v8 = vld [vmem:[%s10405_s1 + $0x338] sm:$0xf0]  ;;  %v4469_v12 = vor.u32 %v6523_v63, %v4466_v4  ;;  %v4597_v13 = vor.u32 %v6555_v5, %v4594_v6  ;;  %v6639_v37 = vld [vmem:[%s10405_s1 + $0x4cc] sm:$0xf] }
 0x199   :  { %v4725_v17 = vor.u32 %v6587_v7, %v4722_v8  ;;  %v6703_v42 = vld [vmem:[%s10405_s1 + $0x6cc] sm:$0xf]  ;;  %v5186_v43 = vld [vmem:[%s10405_s1 + $0x6d8] sm:$0xf0]  ;;  %v4933_v49 = vor.u32 %v6639_v37, %v4930_v38 }
 0x19a   :  { %v6735_v44 = vld [vmem:[%s10405_s1 + $0x7cc] sm:$0xf]  ;;  %v5314_v46 = vld [vmem:[%s10405_s1 + $0x7d8] sm:$0xf0]  ;;  %v5189_v53 = vor.u32 %v6703_v42, %v5186_v43 }
 0x19b   :  { %3768 = vmatpush.bf16.msra.mxu0 %v4389_v20  ;;  %3781 = vmatpush.bf16.msra.mxu1 %v4517_v48  ;;  %v4706_v20 = vld [vmem:[%s10405_s1 + $0x318] sm:$0xf0]  ;;  %v6643_v48 = vld [vmem:[%s10405_s1 + $0x4ec] sm:$0xf] }
 0x19c   :  { %3794 = vmatpush.bf16.msra.mxu2 %v4645_v51  ;;  %3807 = vmatpush.bf16.msra.mxu3 %v4773_v54  ;;  %v3542_v21 = vpop.f32.mrf.mxu2  ;;  %v4946_v51 = vld [vmem:[%s10405_s1 + $0x4f8] sm:$0xf0]  ;;  %v3555_v22 = vpop.f32.mrf.mxu3  ;;  %v6699_v62 = vld [vmem:[%s10405_s1 + $0x6ac] sm:$0xf] }
 0x19d   :  { %v5074_v54 = vld [vmem:[%s10405_s1 + $0x5f8] sm:$0xf0]  ;;  %v6631_v6 = vld [vmem:[%s10405_s1 + $0x48c] sm:$0xf] }
 0x19e   :  { %v4914_v56 = vld [vmem:[%s10405_s1 + $0x4b8] sm:$0xf0]  ;;  %v6695_v11 = vld [vmem:[%s10405_s1 + $0x68c] sm:$0xf] }
 0x19f   :  { %3769 = vmatpush.bf16.msra.mxu0 %v4373_v32  ;;  %3782 = vmatpush.bf16.msra.mxu1 %v4501_v33  ;;  %v4709_v32 = vor.u32 %v6583_v19, %v4706_v20  ;;  %v4949_v33 = vor.u32 %v6643_v48, %v4946_v51  ;;  %v5042_v61 = vld [vmem:[%s10405_s1 + $0x5b8] sm:$0xf0]  ;;  %v6627_v19 = vld [vmem:[%s10405_s1 + $0x46c] sm:$0xf] }
 0x1a0   :  { %3795 = vmatpush.bf16.msra.mxu2 %v4629_v35  ;;  %3808 = vmatpush.bf16.msra.mxu3 %v4757_v39  ;;  %v5077_v35 = vor.u32 %v6675_v45, %v5074_v54  ;;  %v6671_v39 = vld [vmem:[%s10405_s1 + $0x5cc] sm:$0xf]  ;;  %v5170_v63 = vld [vmem:[%s10405_s1 + $0x6b8] sm:$0xf0] }
 0x1a1   :  { %v5061_v50 = vor.u32 %v6671_v39, %v5058_v41  ;;  %v5298_v4 = vld [vmem:[%s10405_s1 + $0x7b8] sm:$0xf0]  ;;  %v5173_v7 = vor.u32 %v6699_v62, %v5170_v63  ;;  %v6659_v21 = vld [vmem:[%s10405_s1 + $0x56c] sm:$0xf] }
 0x1a2   :  { %v4898_v8 = vld [vmem:[%s10405_s1 + $0x498] sm:$0xf0]  ;;  %v6723_v47 = vld [vmem:[%s10405_s1 + $0x76c] sm:$0xf] }
 0x1a3   :  { %3770 = vmatpush.bf16.msra.mxu0 %v4357_v55  ;;  %3783 = vmatpush.bf16.msra.mxu1 %v4485_v58  ;;  %v6635_v55 = vld [vmem:[%s10405_s1 + $0x4ac] sm:$0xf]  ;;  %v5026_v10 = vld [vmem:[%s10405_s1 + $0x598] sm:$0xf0]  ;;  %v4901_v15 = vor.u32 %v6631_v6, %v4898_v8 }
 0x1a4   :  { %3796 = vmatpush.bf16.msra.mxu2 %v4613_v59  ;;  %3809 = vmatpush.bf16.msra.mxu3 %v4741_v3  ;;  %v6667_v58 = vld [vmem:[%s10405_s1 + $0x5ac] sm:$0xf]  ;;  %v5317_v59 = vor.u32 %v6735_v44, %v5314_v46  ;;  %v4917_v5 = vor.u32 %v6635_v55, %v4914_v56  ;;  %v5282_v14 = vld [vmem:[%s10405_s1 + $0x798] sm:$0xf0] }
 0x1a5   :  { %v6731_v3 = vld [vmem:[%s10405_s1 + $0x7ac] sm:$0xf]  ;;  %v4882_v20 = vld [vmem:[%s10405_s1 + $0x478] sm:$0xf0] }
 0x1a6   :  { %v5010_v22 = vld [vmem:[%s10405_s1 + $0x578] sm:$0xf0]  ;;  %v6687_v39 = vld [vmem:[%s10405_s1 + $0x64c] sm:$0xf] }
 0x1a7   :  { %3771 = vmatpush.bf16.msra.mxu0 %v4341_v9  ;;  %3784 = vmatpush.bf16.msra.mxu1 %v4469_v12  ;;  %v5154_v12 = vld [vmem:[%s10405_s1 + $0x698] sm:$0xf0]  ;;  %v5013_v30 = vor.u32 %v6659_v21, %v5010_v22  ;;  %v6719_v43 = vld [vmem:[%s10405_s1 + $0x74c] sm:$0xf] }
 0x1a8   :  { %3797 = vmatpush.bf16.msra.mxu2 %v4597_v13  ;;  %3810 = vmatpush.bf16.msra.mxu3 %v4725_v17  ;;  %v6727_v13 = vld [vmem:[%s10405_s1 + $0x78c] sm:$0xf]  ;;  %v5157_v18 = vor.u32 %v6695_v11, %v5154_v12  ;;  %v5138_v54 = vld [vmem:[%s10405_s1 + $0x678] sm:$0xf0] }
 0x1a9   :  { %v5285_v45 = vor.u32 %v6727_v13, %v5282_v14  ;;  %v5266_v24 = vld [vmem:[%s10405_s1 + $0x778] sm:$0xf0]  ;;  %v6619_v56 = vld [vmem:[%s10405_s1 + $0x42c] sm:$0xf] }
 0x1aa   :  { %v5269_v37 = vor.u32 %v6723_v47, %v5266_v24  ;;  %v4994_v38 = vld [vmem:[%s10405_s1 + $0x558] sm:$0xf0]  ;;  %v6679_v11 = vld [vmem:[%s10405_s1 + $0x60c] sm:$0xf] }
 0x1ab   :  { %3772 = vmatpush.bf16.msra.mxu0 %v4325_v23  ;;  %3785 = vmatpush.bf16.msra.mxu1 %v4453_v25  ;;  %v3566_v16 = vpop.f32.mrf.mxu0  ;;  %v3579_v51 = vpop.f32.mrf.mxu1  ;;  %v6691_v23 = vld [vmem:[%s10405_s1 + $0x66c] sm:$0xf]  ;;  %v5250_v44 = vld [vmem:[%s10405_s1 + $0x758] sm:$0xf0] }
 0x1ac   :  { %3798 = vmatpush.bf16.msra.mxu2 %v4581_v26  ;;  %3811 = vmatpush.bf16.msra.mxu3 %v4709_v32  ;;  %v4885_v26 = vor.u32 %v6627_v19, %v4882_v20  ;;  %v5141_v31 = vor.u32 %v6691_v23, %v5138_v54  ;;  %v6623_v32 = vld [vmem:[%s10405_s1 + $0x44c] sm:$0xf]  ;;  %v5253_v62 = vor.u32 %v6719_v43, %v5250_v44  ;;  %v4978_v63 = vld [vmem:[%s10405_s1 + $0x538] sm:$0xf0] }
 0x1ad   :  { %v5234_v6 = vld [vmem:[%s10405_s1 + $0x738] sm:$0xf0]  ;;  %v6803_v20 = vld [vmem:[%s10405_s1 + $0x9ec] sm:$0xf] }
 0x1ae   :  { %3773 = vmatmul.bf16.vlgmr.msra.gmra.mxu0 %v7435_v28  ;;  %3786 = vmatmul.bf16.vlgmr.msra.gmra.mxu1 %v7445_v34  ;;  %v6663_v28 = vld [vmem:[%s10405_s1 + $0x58c] sm:$0xf]  ;;  %v5301_v34 = vor.u32 %v6731_v3, %v5298_v4  ;;  %v5106_v4 = vld [vmem:[%s10405_s1 + $0x638] sm:$0xf0] }
 0x1af   :  { %3817 = vmatpush.bf16.msrb.mxu0 %v4949_v33  ;;  %3830 = vmatpush.bf16.msrb.mxu1 %v5077_v35  ;;  %v5029_v17 = vor.u32 %v6663_v28, %v5026_v10  ;;  %v4866_v33 = vld [vmem:[%s10405_s1 + $0x458] sm:$0xf0]  ;;  %v6655_v35 = vld [vmem:[%s10405_s1 + $0x54c] sm:$0xf] }
 0x1b0   :  { %3843 = vmatpush.bf16.msrb.mxu2 %v5205_v36  ;;  %3856 = vmatpush.bf16.msrb.mxu3 %v5333_v40  ;;  %v5122_v40 = vld [vmem:[%s10405_s1 + $0x658] sm:$0xf0]  ;;  %v4869_v46 = vor.u32 %v6623_v32, %v4866_v33  ;;  %v6683_v3 = vld [vmem:[%s10405_s1 + $0x62c] sm:$0xf] }
 0x1b1   :  { %3799 = vmatmul.bf16.vlgmr.msra.gmra.mxu2 %v7433_v27  ;;  %3812 = vmatmul.bf16.vlgmr.msra.gmra.mxu3 %v7437_v29  ;;  %v5045_v27 = vor.u32 %v6667_v58, %v5042_v61  ;;  %v9770_v29 = vld [vmem:[%s10406_s2] sm:$0xf]  ;;  %v5125_v55 = vor.u32 %v6687_v39, %v5122_v40  ;;  %v4850_v58 = vld [vmem:[%s10405_s1 + $0x438] sm:$0xf0]  ;;  %v6867_v54 = vld [vmem:[%s10405_s1 + $0xbec] sm:$0xf] }
 0x1b2   :  { %v539_v9 = vperm.slane %v9770_v29, 2  ;;  %v4834_v8 = vld [vmem:[%s10405_s1 + $0x418] sm:$0xf0]  ;;  %v6799_v33 = vld [vmem:[%s10405_s1 + $0x9cc] sm:$0xf] }
 0x1b3   :  { %3818 = vmatpush.bf16.msrb.mxu0 %v4933_v49  ;;  %3831 = vmatpush.bf16.msrb.mxu1 %v5061_v50  ;;  %v3568_v50 = vpop.f32.mrf.mxu0  ;;  %v3581_v61 = vpop.f32.mrf.mxu1  ;;  %v4962_v10 = vld [vmem:[%s10405_s1 + $0x518] sm:$0xf0]  ;;  %v6863_v39 = vld [vmem:[%s10405_s1 + $0xbcc] sm:$0xf] }
 0x1b4   :  { %3844 = vmatpush.bf16.msrb.mxu2 %v5189_v53  ;;  %3857 = vmatpush.bf16.msrb.mxu3 %v5317_v59  ;;  %v3567_v48 = vadd.f32 %v3566_v16, %v539_v9  ;;  %v3592_v36 = vpop.f32.mrf.mxu2  ;;  %v3605_v42 = vpop.f32.mrf.mxu3  ;;  %v4997_v53 = vor.u32 %v6655_v35, %v4994_v38  ;;  %v6651_v59 = vld [vmem:[%s10405_s1 + $0x52c] sm:$0xf]  ;;  %v5109_v9 = vor.u32 %v6683_v3, %v5106_v4  ;;  %v5090_v14 = vld [vmem:[%s10405_s1 + $0x618] sm:$0xf0] }
 0x1b5   :  { %v4981_v28 = vor.u32 %v6651_v59, %v4978_v63  ;;  %v5218_v16 = vld [vmem:[%s10405_s1 + $0x718] sm:$0xf0]  ;;  %v5093_v23 = vor.u32 %v6679_v11, %v5090_v14  ;;  %v6763_v44 = vld [vmem:[%s10405_s1 + $0x8ac] sm:$0xf] }
 0x1b6   :  { %v3580_v25 = vadd.f32 %v3579_v51, %v3567_v48  ;;  %v5458_v19 = vld [vmem:[%s10405_s1 + $0x8f8] sm:$0xf0]  ;;  %v6835_v51 = vld [vmem:[%s10405_s1 + $0xaec] sm:$0xf] }
 0x1b7   :  { %3819 = vmatpush.bf16.msrb.mxu0 %v4917_v5  ;;  %3832 = vmatpush.bf16.msrb.mxu1 %v5045_v27  ;;  %v6715_v5 = vld [vmem:[%s10405_s1 + $0x72c] sm:$0xf]  ;;  %v4853_v27 = vor.u32 %v6619_v56, %v4850_v58  ;;  %v5586_v48 = vld [vmem:[%s10405_s1 + $0x9f8] sm:$0xf0] }
 0x1b8   :  { %3845 = vmatpush.bf16.msrb.mxu2 %v5173_v7  ;;  %3858 = vmatpush.bf16.msrb.mxu3 %v5301_v34  ;;  %v3593_v41 = vadd.f32 %v3592_v36, %v3580_v25  ;;  %v6615_v7 = vld [vmem:[%s10405_s1 + $0x40c] sm:$0xf]  ;;  %v5237_v13 = vor.u32 %v6715_v5, %v5234_v6  ;;  %v5842_v47 = vld [vmem:[%s10405_s1 + $0xbf8] sm:$0xf0] }
 0x1b9   :  { %v6647_v34 = vld [vmem:[%s10405_s1 + $0x50c] sm:$0xf]  ;;  %v4837_v21 = vor.u32 %v6615_v7, %v4834_v8  ;;  %v5442_v32 = vld [vmem:[%s10405_s1 + $0x8d8] sm:$0xf0]  ;;  %v5845_v35 = vor.u32 %v6867_v54, %v5842_v47 }
 0x1ba   :  { %v9836_v49 = vadd.f32 %v3605_v42, %v3593_v41  ;;  %v4965_v22 = vor.u32 %v6647_v34, %v4962_v10  ;;  %v5570_v36 = vld [vmem:[%s10405_s1 + $0x9d8] sm:$0xf0]  ;;  %v6795_v50 = vld [vmem:[%s10405_s1 + $0x9ac] sm:$0xf] }
 0x1bb   :  { %3820 = vmatpush.bf16.msrb.mxu0 %v4901_v15  ;;  %3833 = vmatpush.bf16.msrb.mxu1 %v5029_v17  ;;  %v6711_v15 = vld [vmem:[%s10405_s1 + $0x70c] sm:$0xf]  ;;  %v5698_v38 = vld [vmem:[%s10405_s1 + $0xad8] sm:$0xf0]  ;;  %v5573_v42 = vor.u32 %v6799_v33, %v5570_v36 }
 0x1bc   :  { %3846 = vmatpush.bf16.msrb.mxu2 %v5157_v18  ;;  %3859 = vmatpush.bf16.msrb.mxu3 %v5285_v45  ;;  %v3594_v12 = vpop.f32.mrf.mxu2  ;;  %v3607_v17 = vpop.f32.mrf.mxu3  ;;  %v6771_v18 = vld [vmem:[%s10405_s1 + $0x8ec] sm:$0xf]  ;;  %v5714_v45 = vld [vmem:[%s10405_s1 + $0xaf8] sm:$0xf0]  ;;  %v5221_v24 = vor.u32 %v6711_v15, %v5218_v16 }
 0x1bd   :  { %v5461_v25 = vor.u32 %v6771_v18, %v5458_v19  ;;  %v5826_v40 = vld [vmem:[%s10405_s1 + $0xbd8] sm:$0xf0]  ;;  %v6827_v56 = vld [vmem:[%s10405_s1 + $0xaac] sm:$0xf] }
 0x1be   :  { %v5682_v58 = vld [vmem:[%s10405_s1 + $0xab8] sm:$0xf0]  ;;  %v6859_v59 = vld [vmem:[%s10405_s1 + $0xbac] sm:$0xf] }
 0x1bf   :  { %3821 = vmatpush.bf16.msrb.mxu0 %v4885_v26  ;;  %3834 = vmatpush.bf16.msrb.mxu1 %v5013_v30  ;;  %v5589_v26 = vor.u32 %v6803_v20, %v5586_v48  ;;  %v5717_v30 = vor.u32 %v6835_v51, %v5714_v45  ;;  %v5685_v63 = vor.u32 %v6827_v56, %v5682_v58  ;;  %v6759_v3 = vld [vmem:[%s10405_s1 + $0x88c] sm:$0xf]  ;;  %v5410_v4 = vld [vmem:[%s10405_s1 + $0x898] sm:$0xf0] }
 0x1c0   :  { %3847 = vmatpush.bf16.msrb.mxu2 %v5141_v31  ;;  %3860 = vmatpush.bf16.msrb.mxu3 %v5269_v37  ;;  %v6767_v31 = vld [vmem:[%s10405_s1 + $0x8cc] sm:$0xf]  ;;  %v5666_v6 = vld [vmem:[%s10405_s1 + $0xa98] sm:$0xf0]  ;;  %v5413_v8 = vor.u32 %v6759_v3, %v5410_v4 }
 0x1c1   :  { %v6831_v37 = vld [vmem:[%s10405_s1 + $0xacc] sm:$0xf]  ;;  %v5445_v41 = vor.u32 %v6767_v31, %v5442_v32  ;;  %v5794_v7 = vld [vmem:[%s10405_s1 + $0xb98] sm:$0xf0] }
 0x1c2   :  { %v5701_v43 = vor.u32 %v6831_v37, %v5698_v38  ;;  %v6823_v5 = vld [vmem:[%s10405_s1 + $0xa8c] sm:$0xf]  ;;  %v5394_v11 = vld [vmem:[%s10405_s1 + $0x878] sm:$0xf0] }
 0x1c3   :  { %3822 = vmatpush.bf16.msrb.mxu0 %v4869_v46  ;;  %3835 = vmatpush.bf16.msrb.mxu1 %v4997_v53  ;;  %v5426_v46 = vld [vmem:[%s10405_s1 + $0x8b8] sm:$0xf0]  ;;  %v5829_v53 = vor.u32 %v6863_v39, %v5826_v40  ;;  %v5669_v34 = vor.u32 %v6823_v5, %v5666_v6  ;;  %v6755_v10 = vld [vmem:[%s10405_s1 + $0x86c] sm:$0xf] }
 0x1c4   :  { %3848 = vmatpush.bf16.msrb.mxu2 %v5125_v55  ;;  %3861 = vmatpush.bf16.msrb.mxu3 %v5253_v62  ;;  %v5554_v55 = vld [vmem:[%s10405_s1 + $0x9b8] sm:$0xf0]  ;;  %v5429_v61 = vor.u32 %v6763_v44, %v5426_v46  ;;  %v6787_v12 = vld [vmem:[%s10405_s1 + $0x96c] sm:$0xf]  ;;  %v5397_v20 = vor.u32 %v6755_v10, %v5394_v11 }
 0x1c5   :  { %v5557_v62 = vor.u32 %v6795_v50, %v5554_v55  ;;  %v5522_v15 = vld [vmem:[%s10405_s1 + $0x978] sm:$0xf0]  ;;  %v6819_v16 = vld [vmem:[%s10405_s1 + $0xa6c] sm:$0xf] }
 0x1c6   :  { %v5650_v17 = vld [vmem:[%s10405_s1 + $0xa78] sm:$0xf0]  ;;  %v6851_v18 = vld [vmem:[%s10405_s1 + $0xb6c] sm:$0xf] }
 0x1c7   :  { %3823 = vmatpush.bf16.msrb.mxu0 %v4853_v27  ;;  %3836 = vmatpush.bf16.msrb.mxu1 %v4981_v28  ;;  %v6855_v27 = vld [vmem:[%s10405_s1 + $0xb8c] sm:$0xf]  ;;  %v5778_v19 = vld [vmem:[%s10405_s1 + $0xb78] sm:$0xf0]  ;;  %v5653_v48 = vor.u32 %v6819_v16, %v5650_v17 }
 0x1c8   :  { %3849 = vmatpush.bf16.msrb.mxu2 %v5109_v9  ;;  %3862 = vmatpush.bf16.msrb.mxu3 %v5237_v13  ;;  %v5797_v14 = vor.u32 %v6855_v27, %v5794_v7  ;;  %v6751_v51 = vld [vmem:[%s10405_s1 + $0x84c] sm:$0xf]  ;;  %v5378_v45 = vld [vmem:[%s10405_s1 + $0x858] sm:$0xf0]  ;;  %v5781_v54 = vor.u32 %v6851_v18, %v5778_v19 }
 0x1c9   :  { %v5506_v47 = vld [vmem:[%s10405_s1 + $0x958] sm:$0xf0]  ;;  %v5381_v32 = vor.u32 %v6751_v51, %v5378_v45  ;;  %v6747_v37 = vld [vmem:[%s10405_s1 + $0x82c] sm:$0xf] }
 0x1ca   :  { %v5762_v31 = vld [vmem:[%s10405_s1 + $0xb58] sm:$0xf0]  ;;  %v6779_v39 = vld [vmem:[%s10405_s1 + $0x92c] sm:$0xf] }
 0x1cb   :  { %3824 = vmatpush.bf16.msrb.mxu0 %v4837_v21  ;;  %3837 = vmatpush.bf16.msrb.mxu1 %v4965_v22  ;;  %v9986_v28 = vpop.f32.mrf.mxu0  ;;  %v9997_v13 = vpop.f32.mrf.mxu1  ;;  %v5525_v21 = vor.u32 %v6787_v12, %v5522_v15  ;;  %v6783_v22 = vld [vmem:[%s10405_s1 + $0x94c] sm:$0xf]  ;;  %v5362_v38 = vld [vmem:[%s10405_s1 + $0x838] sm:$0xf0] }
 0x1cc   :  { %3850 = vmatpush.bf16.msrb.mxu2 %v5093_v23  ;;  %3863 = vmatpush.bf16.msrb.mxu3 %v5221_v24  ;;  %v6815_v24 = vld [vmem:[%s10405_s1 + $0xa4c] sm:$0xf]  ;;  %v5618_v44 = vld [vmem:[%s10405_s1 + $0xa38] sm:$0xf0] }
 0x1cd   :  { %v6843_v46 = vld [vmem:[%s10405_s1 + $0xb2c] sm:$0xf]  ;;  %v5746_v50 = vld [vmem:[%s10405_s1 + $0xb38] sm:$0xf0] }
 0x1ce   :  { %3825 = vmatmul.bf16.vlgmr.msrb.gmra.mxu0 %v7513_v0  ;;  %3838 = vmatmul.bf16.vlgmr.msrb.gmra.mxu1 %v7517_v2  ;;  %v6791_v0 = vld [vmem:[%s10405_s1 + $0x98c] sm:$0xf]  ;;  %v5538_v2 = vld [vmem:[%s10405_s1 + $0x998] sm:$0xf0]  ;;  %v5749_v3 = vor.u32 %v6843_v46, %v5746_v50 }
 0x1cf   :  { %3869 = vmatpush.bf16.msra.mxu0 %v5461_v25  ;;  %3882 = vmatpush.bf16.msra.mxu1 %v5589_v26  ;;  %v5541_v9 = vor.u32 %v6791_v0, %v5538_v2  ;;  %v5634_v25 = vld [vmem:[%s10405_s1 + $0xa58] sm:$0xf0]  ;;  %v6743_v55 = vld [vmem:[%s10405_s1 + $0x80c] sm:$0xf] }
 0x1d0   :  { %3895 = vmatpush.bf16.msra.mxu2 %v5717_v30  ;;  %3908 = vmatpush.bf16.msra.mxu3 %v5845_v35  ;;  %v6847_v30 = vld [vmem:[%s10405_s1 + $0xb4c] sm:$0xf]  ;;  %v5509_v35 = vor.u32 %v6783_v22, %v5506_v47  ;;  %v5637_v36 = vor.u32 %v6815_v24, %v5634_v25  ;;  %v5346_v56 = vld [vmem:[%s10405_s1 + $0x818] sm:$0xf0] }
 0x1d1   :  { %3851 = vmatmul.bf16.vlgmr.msrb.gmra.mxu2 %v7508_v60  ;;  %v5810_v60 = vld [vmem:[%s10405_s1 + $0xbb8] sm:$0xf0]  ;;  %3864 = vmatmul.bf16.vlgmr.msrb.gmra.mxu3 %v7515_v1  ;;  %v6839_v0 = vld [vmem:[%s10405_s1 + $0xb0c] sm:$0xf]  ;;  %v5349_v7 = vor.u32 %v6743_v55, %v5346_v56 }
 0x1d2   :  { %v5813_v1 = vor.u32 %v6859_v59, %v5810_v60  ;;  %v6775_v60 = vld [vmem:[%s10405_s1 + $0x90c] sm:$0xf]  ;;  %v5602_v4 = vld [vmem:[%s10405_s1 + $0xa18] sm:$0xf0] }
 0x1d3   :  { %3870 = vmatpush.bf16.msra.mxu0 %v5445_v41  ;;  %3883 = vmatpush.bf16.msra.mxu1 %v5573_v42  ;;  %v3620_v33 = vpop.f32.mrf.mxu0  ;;  %v3633_v40 = vpop.f32.mrf.mxu1  ;;  %v5765_v41 = vor.u32 %v6847_v30, %v5762_v31  ;;  %v5490_v42 = vld [vmem:[%s10405_s1 + $0x938] sm:$0xf0]  ;;  %v6899_v5 = vld [vmem:[%s10405_s1 + $0xcec] sm:$0xf] }
 0x1d4   :  { %3896 = vmatpush.bf16.msra.mxu2 %v5701_v43  ;;  %3909 = vmatpush.bf16.msra.mxu3 %v5829_v53  ;;  %v10023_v23 = vpop.f32.mrf.mxu2  ;;  %v10034_v26 = vpop.f32.mrf.mxu3  ;;  %v6811_v43 = vld [vmem:[%s10405_s1 + $0xa2c] sm:$0xf]  ;;  %v5365_v53 = vor.u32 %v6747_v37, %v5362_v38  ;;  %v5493_v58 = vor.u32 %v6779_v39, %v5490_v42  ;;  %v5970_v6 = vld [vmem:[%s10405_s1 + $0xcf8] sm:$0xf0]  ;;  %v7051_v40 = vld [vmem:[#allocation1 + $0x12] sm:$0xff] }
 0x1d5   :  { %v5621_v59 = vor.u32 %v6811_v43, %v5618_v44  ;;  %v6931_v27 = vld [vmem:[%s10405_s1 + $0xdec] sm:$0xf]  ;;  %v5973_v16 = vor.u32 %v6899_v5, %v5970_v6  ;;  %v6082_v51 = vld [vmem:[%s10405_s1 + $0xdd8] sm:$0xf0] }
 0x1d6   :  { %v6995_v12 = vld [vmem:[%s10405_s1 + $0xfec] sm:$0xf]  ;;  %v6210_v22 = vld [vmem:[%s10405_s1 + $0xed8] sm:$0xf0] }
 0x1d7   :  { %3871 = vmatpush.bf16.msra.mxu0 %v5429_v61  ;;  %3884 = vmatpush.bf16.msra.mxu1 %v5557_v62  ;;  %v5474_v61 = vld [vmem:[%s10405_s1 + $0x918] sm:$0xf0]  ;;  %v6807_v62 = vld [vmem:[%s10405_s1 + $0xa0c] sm:$0xf] }
 0x1d8   :  { %3897 = vmatpush.bf16.msra.mxu2 %v5685_v63  ;;  %3910 = vmatpush.bf16.msra.mxu3 %v5813_v1  ;;  %v5730_v1 = vld [vmem:[%s10405_s1 + $0xb18] sm:$0xf0]  ;;  %v5477_v10 = vor.u32 %v6775_v60, %v5474_v61  ;;  %v5605_v11 = vor.u32 %v6807_v62, %v5602_v4  ;;  %v6895_v19 = vld [vmem:[%s10405_s1 + $0xccc] sm:$0xf] }
 0x1d9   :  { %v5733_v15 = vor.u32 %v6839_v0, %v5730_v1  ;;  %v6959_v45 = vld [vmem:[%s10405_s1 + $0xecc] sm:$0xf]  ;;  %v6338_v47 = vld [vmem:[%s10405_s1 + $0xfd8] sm:$0xf0] }
 0x1da   :  { %v6213_v30 = vor.u32 %v6959_v45, %v6210_v22  ;;  %v6891_v31 = vld [vmem:[%s10405_s1 + $0xcac] sm:$0xf]  ;;  %v6066_v37 = vld [vmem:[%s10405_s1 + $0xdb8] sm:$0xf0] }
 0x1db   :  { %3872 = vmatpush.bf16.msra.mxu0 %v5413_v8  ;;  %3885 = vmatpush.bf16.msra.mxu1 %v5541_v9  ;;  %v6098_v8 = vld [vmem:[%s10405_s1 + $0xdf8] sm:$0xf0]  ;;  %v6963_v9 = vld [vmem:[%s10405_s1 + $0xeec] sm:$0xf] }
 0x1dc   :  { %3898 = vmatpush.bf16.msra.mxu2 %v5669_v34  ;;  %3911 = vmatpush.bf16.msra.mxu3 %v5797_v14  ;;  %v3646_v63 = vpop.f32.mrf.mxu2  ;;  %v3659_v2 = vpop.f32.mrf.mxu3  ;;  %v6226_v34 = vld [vmem:[%s10405_s1 + $0xef8] sm:$0xf0]  ;;  %v6101_v17 = vor.u32 %v6931_v27, %v6098_v8  ;;  %v6923_v33 = vld [vmem:[%s10405_s1 + $0xdac] sm:$0xf] }
 0x1dd   :  { %v6354_v14 = vld [vmem:[%s10405_s1 + $0xff8] sm:$0xf0]  ;;  %v6229_v18 = vor.u32 %v6963_v9, %v6226_v34  ;;  %v6955_v38 = vld [vmem:[%s10405_s1 + $0xeac] sm:$0xf]  ;;  %v6069_v50 = vor.u32 %v6923_v33, %v6066_v37 }
 0x1de   :  { %v6194_v39 = vld [vmem:[%s10405_s1 + $0xeb8] sm:$0xf0]  ;;  %v6987_v42 = vld [vmem:[%s10405_s1 + $0xfac] sm:$0xf] }
 0x1df   :  { %3873 = vmatpush.bf16.msra.mxu0 %v5397_v20  ;;  %3886 = vmatpush.bf16.msra.mxu1 %v5525_v21  ;;  %v5954_v20 = vld [vmem:[%s10405_s1 + $0xcd8] sm:$0xf0]  ;;  %v6927_v21 = vld [vmem:[%s10405_s1 + $0xdcc] sm:$0xf] }
 0x1e0   :  { %3899 = vmatpush.bf16.msra.mxu2 %v5653_v48  ;;  %3912 = vmatpush.bf16.msra.mxu3 %v5781_v54  ;;  %v6357_v48 = vor.u32 %v6995_v12, %v6354_v14  ;;  %v6991_v54 = vld [vmem:[%s10405_s1 + $0xfcc] sm:$0xf]  ;;  %v5957_v24 = vor.u32 %v6895_v19, %v5954_v20  ;;  %v6085_v25 = vor.u32 %v6927_v21, %v6082_v51  ;;  %v6322_v43 = vld [vmem:[%s10405_s1 + $0xfb8] sm:$0xf0] }
 0x1e1   :  { %v7053_v44 = vld [vmem:[#allocation1 + $0x1b] sm:$0xff]  ;;  %v6887_v55 = vld [vmem:[%s10405_s1 + $0xc8c] sm:$0xf] }
 0x1e2   :  { %v5922_v56 = vld [vmem:[%s10405_s1 + $0xc98] sm:$0xf0]  ;;  %v6951_v61 = vld [vmem:[%s10405_s1 + $0xe8c] sm:$0xf] }
 0x1e3   :  { %3874 = vmatpush.bf16.msra.mxu0 %v5381_v32  ;;  %3887 = vmatpush.bf16.msra.mxu1 %v5509_v35  ;;  %v5938_v32 = vld [vmem:[%s10405_s1 + $0xcb8] sm:$0xf0]  ;;  %v7050_v35 = vld [vmem:[#allocation1] sm:$0xff]  ;;  %v5925_v0 = vor.u32 %v6887_v55, %v5922_v56  ;;  %v6883_v6 = vld [vmem:[%s10405_s1 + $0xc6c] sm:$0xf] }
 0x1e4   :  { %3900 = vmatpush.bf16.msra.mxu2 %v5637_v36  ;;  %3913 = vmatpush.bf16.msra.mxu3 %v5765_v41  ;;  %v6341_v36 = vor.u32 %v6991_v54, %v6338_v47  ;;  %v7052_v41 = vld [vmem:[#allocation1 + $0x9] sm:$0xff]  ;;  %v5941_v46 = vor.u32 %v6891_v31, %v5938_v32  ;;  %v6050_v60 = vld [vmem:[%s10405_s1 + $0xd98] sm:$0xf0] }
 0x1e5   :  { %v6178_v62 = vld [vmem:[%s10405_s1 + $0xe98] sm:$0xf0]  ;;  %v6947_v34 = vld [vmem:[%s10405_s1 + $0xe6c] sm:$0xf] }
 0x1e6   :  { %v6306_v4 = vld [vmem:[%s10405_s1 + $0xf98] sm:$0xf0]  ;;  %v6181_v5 = vor.u32 %v6951_v61, %v6178_v62  ;;  %v6911_v19 = vld [vmem:[%s10405_s1 + $0xd4c] sm:$0xf] }
 0x1e7   :  { %3875 = vmatpush.bf16.msra.mxu0 %v5365_v53  ;;  %3888 = vmatpush.bf16.msra.mxu1 %v5493_v58  ;;  %v6197_v53 = vor.u32 %v6955_v38, %v6194_v39  ;;  %v6919_v58 = vld [vmem:[%s10405_s1 + $0xd8c] sm:$0xf]  ;;  %v5906_v27 = vld [vmem:[%s10405_s1 + $0xc78] sm:$0xf0] }
 0x1e8   :  { %3901 = vmatpush.bf16.msra.mxu2 %v5621_v59  ;;  %3914 = vmatpush.bf16.msra.mxu3 %v5749_v3  ;;  %v6325_v59 = vor.u32 %v6987_v42, %v6322_v43  ;;  %v6983_v3 = vld [vmem:[%s10405_s1 + $0xf8c] sm:$0xf]  ;;  %v6053_v2 = vor.u32 %v6919_v58, %v6050_v60  ;;  %v6034_v9 = vld [vmem:[%s10405_s1 + $0xd78] sm:$0xf0]  ;;  %v5909_v14 = vor.u32 %v6883_v6, %v5906_v27 }
 0x1e9   :  { %v6309_v8 = vor.u32 %v6983_v3, %v6306_v4  ;;  %v6290_v12 = vld [vmem:[%s10405_s1 + $0xf78] sm:$0xf0]  ;;  %v6943_v51 = vld [vmem:[%s10405_s1 + $0xe4c] sm:$0xf] }
 0x1ea   :  { %v6146_v45 = vld [vmem:[%s10405_s1 + $0xe58] sm:$0xf0]  ;;  %v6975_v54 = vld [vmem:[%s10405_s1 + $0xf4c] sm:$0xf] }
 0x1eb   :  { %3876 = vmatpush.bf16.msra.mxu0 %v5349_v7  ;;  %3889 = vmatpush.bf16.msra.mxu1 %v5477_v10  ;;  %v10180_v63 = vpop.f32.mrf.mxu0  ;;  %v10188_v1 = vpop.f32.mrf.mxu1  ;;  %v6915_v7 = vld [vmem:[%s10405_s1 + $0xd6c] sm:$0xf]  ;;  %v6162_v10 = vld [vmem:[%s10405_s1 + $0xe78] sm:$0xf0]  ;;  %v6149_v33 = vor.u32 %v6943_v51, %v6146_v45  ;;  %v7010_v51 = vld [vmem:[%s10407_s3 + $0x60] sm:$0xff] }
 0x1ec   :  { %3902 = vmatpush.bf16.msra.mxu2 %v5605_v11  ;;  %3915 = vmatpush.bf16.msra.mxu3 %v5733_v15  ;;  %v6979_v11 = vld [vmem:[%s10405_s1 + $0xf6c] sm:$0xf]  ;;  %v6037_v15 = vor.u32 %v6915_v7, %v6034_v9  ;;  %v6274_v47 = vld [vmem:[%s10405_s1 + $0xf58] sm:$0xf0]  ;;  %v7018_v45 = vld [vmem:[%s10407_s3 + $0xa0] sm:$0xff] }
 0x1ed   :  { %v6293_v20 = vor.u32 %v6979_v11, %v6290_v12  ;;  %v6907_v37 = vld [vmem:[%s10405_s1 + $0xd2c] sm:$0xf]  ;;  %v6130_v39 = vld [vmem:[%s10405_s1 + $0xe38] sm:$0xf0]  ;;  %v7054_v11 = vld [vmem:[#allocation1 + $0x24] sm:$0xff] }
 0x1ee   :  { %3877 = vmatmul.bf16.vlgmr.msra.gmra.mxu0 %v7050_v35  ;;  %3890 = vmatmul.bf16.vlgmr.msra.gmra.mxu1 %v7052_v41  ;;  %v6875_v35 = vld [vmem:[%s10405_s1 + $0xc2c] sm:$0xf]  ;;  %v6258_v41 = vld [vmem:[%s10405_s1 + $0xf38] sm:$0xf0] }
 0x1ef   :  { %3921 = vmatpush.bf16.msrb.mxu0 %v5973_v16  ;;  %3934 = vmatpush.bf16.msrb.mxu1 %v6101_v17  ;;  %v6165_v16 = vor.u32 %v6947_v34, %v6162_v10  ;;  %v6879_v17 = vld [vmem:[%s10405_s1 + $0xc4c] sm:$0xf]  ;;  %v5986_v56 = vld [vmem:[%s10405_s1 + $0xd18] sm:$0xf0]  ;;  %v7004_v34 = vld [vmem:[%s10407_s3 + $0x30] sm:$0xff] }
 0x1f0   :  { %3947 = vmatpush.bf16.msrb.mxu2 %v6229_v18  ;;  %3960 = vmatpush.bf16.msrb.mxu3 %v6357_v48  ;;  %v5890_v18 = vld [vmem:[%s10405_s1 + $0xc58] sm:$0xf0]  ;;  %v6939_v38 = vld [vmem:[%s10405_s1 + $0xe2c] sm:$0xf]  ;;  %v7012_v10 = vld [vmem:[%s10407_s3 + $0x70] sm:$0xff] }
 0x1f1   :  { %3903 = vmatmul.bf16.vlgmr.msra.gmra.mxu2 %v7051_v40  ;;  %3916 = vmatmul.bf16.vlgmr.msra.gmra.mxu3 %v7053_v44  ;;  %v6018_v48 = vld [vmem:[%s10405_s1 + $0xd58] sm:$0xf0]  ;;  %v6971_v40 = vld [vmem:[%s10405_s1 + $0xf2c] sm:$0xf] }
 0x1f2   :  { %v6021_v32 = vor.u32 %v6911_v19, %v6018_v48  ;;  %v6903_v55 = vld [vmem:[%s10405_s1 + $0xd0c] sm:$0xf]  ;;  %v6242_v62 = vld [vmem:[%s10405_s1 + $0xf18] sm:$0xf0] }
 0x1f3   :  { %3922 = vmatpush.bf16.msrb.mxu0 %v5957_v24  ;;  %3935 = vmatpush.bf16.msrb.mxu1 %v6085_v25  ;;  %v3672_v24 = vpop.f32.mrf.mxu0  ;;  %v3619_v25 = vadd.f32 %v9986_v28, %v9836_v49  ;;  %v3685_v31 = vpop.f32.mrf.mxu1  ;;  %v6277_v49 = vor.u32 %v6975_v54, %v6274_v47  ;;  %v6002_v28 = vld [vmem:[%s10405_s1 + $0xd38] sm:$0xf0]  ;;  %v6935_v58 = vld [vmem:[%s10405_s1 + $0xe0c] sm:$0xf] }
 0x1f4   :  { %3948 = vmatpush.bf16.msrb.mxu2 %v6213_v30  ;;  %3961 = vmatpush.bf16.msrb.mxu3 %v6341_v36  ;;  %v10223_v21 = vpop.f32.mrf.mxu2  ;;  %v10234_v22 = vpop.f32.mrf.mxu3  ;;  %v5893_v30 = vor.u32 %v6879_v17, %v5890_v18  ;;  %v5874_v36 = vld [vmem:[%s10405_s1 + $0xc38] sm:$0xf0]  ;;  %v6005_v44 = vor.u32 %v6907_v37, %v6002_v28  ;;  %v6967_v61 = vld [vmem:[%s10405_s1 + $0xf0c] sm:$0xf]  ;;  %v7016_v37 = vld [vmem:[%s10407_s3 + $0x90] sm:$0xff] }
 0x1f5   :  { %v3632_v42 = vadd.f32 %v9997_v13, %v3619_v25  ;;  %v5877_v43 = vor.u32 %v6875_v35, %v5874_v36  ;;  %v6261_v13 = vor.u32 %v6971_v40, %v6258_v41  ;;  %v6245_v6 = vor.u32 %v6967_v61, %v6242_v62  ;;  %v7005_v27 = vld [vmem:[%s10407_s3 + $0x38] sm:$0xff]  ;;  %v7055_v12 = vld [vmem:[#allocation1 + $0x2d] sm:$0xff] }
 0x1f6   :  { %v7013_v7 = vld [vmem:[%s10407_s3 + $0x78] sm:$0xff]  ;;  %v7011_v17 = vld [vmem:[%s10407_s3 + $0x68] sm:$0xff]  ;;  %v7008_v36 = vld [vmem:[%s10407_s3 + $0x50] sm:$0xff] }
 0x1f7   :  { %3923 = vmatpush.bf16.msrb.mxu0 %v5941_v46  ;;  %3936 = vmatpush.bf16.msrb.mxu1 %v6069_v50  ;;  %v6133_v46 = vor.u32 %v6939_v38, %v6130_v39  ;;  %v6871_v50 = vld [vmem:[%s10405_s1 + $0xc0c] sm:$0xf]  ;;  %v3645_v4 = vadd.f32 %v10023_v23, %v3632_v42  ;;  %v7021_v23 = vld [vmem:[%s10407_s3 + $0xb8] sm:$0xff] }
 0x1f8   :  { %3949 = vmatpush.bf16.msrb.mxu2 %v6197_v53  ;;  %3962 = vmatpush.bf16.msrb.mxu3 %v6325_v59  ;;  %v5858_v53 = vld [vmem:[%s10405_s1 + $0xc18] sm:$0xf0]  ;;  %v7019_v18 = vld [vmem:[%s10407_s3 + $0xa8] sm:$0xff] }
 0x1f9   :  { %v6114_v59 = vld [vmem:[%s10405_s1 + $0xe18] sm:$0xf0]  ;;  %v6999_v28 = vld [vmem:[%s10407_s3 + $0x8] sm:$0xff] }
 0x1fa   :  { %v7001_v47 = vld [vmem:[%s10407_s3 + $0x18] sm:$0xff]  ;;  %v7007_v38 = vld [vmem:[%s10407_s3 + $0x48] sm:$0xff] }
 0x1fb   :  { %3924 = vmatpush.bf16.msrb.mxu0 %v5925_v0  ;;  %3937 = vmatpush.bf16.msrb.mxu1 %v6053_v2  ;;  %v5861_v0 = vor.u32 %v6871_v50, %v5858_v53  ;;  %v5989_v2 = vor.u32 %v6903_v55, %v5986_v56  ;;  %v7009_v24 = vld [vmem:[%s10407_s3 + $0x58] sm:$0xff]  ;;  %v7015_v39 = vld [vmem:[%s10407_s3 + $0x88] sm:$0xff]  ;;  %v7014_v50 = vld [vmem:[%s10407_s3 + $0x80] sm:$0xff]  ;;  %v3974_v53 = vmax.f32 %v9632_v57, 0.0 }
 0x1fc   :  { %3950 = vmatpush.bf16.msrb.mxu2 %v6181_v5  ;;  %3963 = vmatpush.bf16.msrb.mxu3 %v6309_v8  ;;  %v3698_v60 = vpop.f32.mrf.mxu2  ;;  %v3711_v3 = vpop.f32.mrf.mxu3  ;;  %v6117_v5 = vor.u32 %v6935_v58, %v6114_v59  ;;  %v3658_v8 = vadd.f32 %v10034_v26, %v3645_v4  ;;  %v7020_v26 = vld [vmem:[%s10407_s3 + $0xb0] sm:$0xff]  ;;  %v7017_v25 = vld [vmem:[%s10407_s3 + $0x98] sm:$0xff] }
 0x1fd   :  { %v3978_v56 = vpack.c.bf16 %v3974_v53, %v3974_v53  ;;  %v7031_v53 = vld [vmem:[%s10408_s4] ss:$0 sm:$0xff] }
 0x1fe   :  { %v3671_v9 = vadd.f32 %v10180_v63, %v3658_v8  ;;  %v7056_v63 = vld [vmem:[#allocation1 + $0x36] sm:$0xff] }
 0x1ff   :  { %3925 = vmatpush.bf16.msrb.mxu0 %v5909_v14  ;;  %3938 = vmatpush.bf16.msrb.mxu1 %v6037_v15  ;;  %v7057_v14 = vld [vmem:[#allocation1 + $0x3f] sm:$0xff] }
 0x200   :  { %3951 = vmatpush.bf16.msrb.mxu2 %v6165_v16  ;;  %3964 = vmatpush.bf16.msrb.mxu3 %v6293_v20  ;;  %v3684_v15 = vadd.f32 %v10188_v1, %v3671_v9  ;;  %v7003_v16 = vld [vmem:[%s10407_s3 + $0x28] sm:$0xff]  ;;  %v7002_v1 = vld [vmem:[%s10407_s3 + $0x20] sm:$0xff] }
 0x202   :  { %v3697_v19 = vadd.f32 %v10223_v21, %v3684_v15  ;;  %v7025_v15 = vld [vmem:[%s10407_s3 + $0xd8] sm:$0xff] }
 0x203   :  { %3926 = vmatpush.bf16.msrb.mxu0 %v5893_v30  ;;  %3939 = vmatpush.bf16.msrb.mxu1 %v6021_v32 }
 0x204   :  { %3952 = vmatpush.bf16.msrb.mxu2 %v6149_v33  ;;  %3965 = vmatpush.bf16.msrb.mxu3 %v6277_v49  ;;  %v3710_v54 = vadd.f32 %v10234_v22, %v3697_v19  ;;  %v7000_v33 = vld [vmem:[%s10407_s3 + $0x10] sm:$0xff]  ;;  %v7023_v19 = vld [vmem:[%s10407_s3 + $0xc8] sm:$0xff] }
 0x207   :  { %3927 = vmatpush.bf16.msrb.mxu0 %v5877_v43  ;;  %3940 = vmatpush.bf16.msrb.mxu1 %v6005_v44  ;;  %v6998_v43 = vld [vmem:[%s10407_s3] sm:$0xff]  ;;  %v3973_v44 = vmax.f32 %v8842_v52, 0.0  ;;  %v540_v52 = vperm.slane %v9770_v29, 3  ;;  %v7029_v29 = vld [vmem:[%s10407_s3 + $0xf8] sm:$0xff] }
 0x208   :  { %3953 = vmatpush.bf16.msrb.mxu2 %v6133_v46  ;;  %3966 = vmatpush.bf16.msrb.mxu3 %v6261_v13  ;;  %v7006_v46 = vld [vmem:[%s10407_s3 + $0x40] sm:$0xff] }
 0x209   :  { %v3977_v13 = vpack.c.bf16 %v3973_v44, %v3973_v44 }
 0x20b   :  { %3928 = vmatpush.bf16.msrb.mxu0 %v5861_v0  ;;  %3941 = vmatpush.bf16.msrb.mxu1 %v5989_v2  ;;  %v3722_v20 = vpop.f32.mrf.mxu0  ;;  %v3735_v48 = vpop.f32.mrf.mxu1 }
 0x20c   :  { %3954 = vmatpush.bf16.msrb.mxu2 %v6117_v5  ;;  %3967 = vmatpush.bf16.msrb.mxu3 %v6245_v6  ;;  %v3723_v21 = vadd.f32 %v3722_v20, %v3710_v54  ;;  %v7022_v54 = vld [vmem:[%s10407_s3 + $0xc0] sm:$0xff] }
 0x20e   :  { %3929 = vmatmul.bf16.vlgmr.msrb.gmra.mxu0 %v7054_v11  ;;  %3942 = vmatmul.bf16.vlgmr.msrb.gmra.mxu1 %v7055_v12  ;;  %v3736_v22 = vadd.f32 %v3735_v48, %v3723_v21  ;;  %v7027_v12 = vld [vmem:[%s10407_s3 + $0xe8] sm:$0xff] }
 0x20f   :  { %4241 = vmatpush.bf16.msra.mxu0 %v7005_v27  ;;  %4254 = vmatpush.bf16.msra.mxu1 %v7013_v7 }
 0x210   :  { %4267 = vmatpush.bf16.msra.mxu2 %v7021_v23  ;;  %3968 = vmatmul.bf16.vlgmr.msrb.gmra.mxu3 %v7057_v14  ;;  %v7026_v14 = vld [vmem:[%s10407_s3 + $0xe0] sm:$0xff] }
 0x211   :  { %3955 = vmatmul.bf16.vlgmr.msrb.gmra.mxu2 %v7056_v63  ;;  %4280 = vmatpush.bf16.msra.mxu3 %v7029_v29 }
 0x213   :  { %4242 = vmatpush.bf16.msra.mxu0 %v7004_v34  ;;  %4255 = vmatpush.bf16.msra.mxu1 %v7012_v10  ;;  %v3724_v32 = vpop.f32.mrf.mxu0  ;;  %v3737_v35 = vpop.f32.mrf.mxu1 }
 0x214   :  { %4268 = vmatpush.bf16.msra.mxu2 %v7020_v26  ;;  %v3748_v30 = vpop.f32.mrf.mxu2  ;;  %v3761_v31 = vpop.f32.mrf.mxu3  ;;  %v7028_v26 = vld [vmem:[%s10407_s3 + $0xf0] sm:$0xff] }
 0x215   :  { %v3749_v49 = vadd.f32 %v3748_v30, %v3736_v22  ;;  %4281 = vmatpush.bf16.msra.mxu3 %v7028_v26 }
 0x217   :  { %4243 = vmatpush.bf16.msra.mxu0 %v7003_v16  ;;  %4256 = vmatpush.bf16.msra.mxu1 %v7011_v17  ;;  %v3762_v40 = vadd.f32 %v3761_v31, %v3749_v49 }
 0x218   :  { %4269 = vmatpush.bf16.msra.mxu2 %v7019_v18  ;;  %v7024_v18 = vld [vmem:[%s10407_s3 + $0xd0] sm:$0xff] }
 0x219   :  { %v3975_v55 = vmax.f32 %v3762_v40, 0.0  ;;  %4282 = vmatpush.bf16.msra.mxu3 %v7027_v12 }
 0x21b   :  { %4244 = vmatpush.bf16.msra.mxu0 %v7002_v1  ;;  %4257 = vmatpush.bf16.msra.mxu1 %v7010_v51  ;;  %v3979_v58 = vpack.c.bf16 %v3975_v55, %v3975_v55 }
 0x21c   :  { %4270 = vmatpush.bf16.msra.mxu2 %v7018_v45  ;;  %v3750_v41 = vpop.f32.mrf.mxu2  ;;  %v3763_v42 = vpop.f32.mrf.mxu3 }
 0x21d   :  { %4283 = vmatpush.bf16.msra.mxu3 %v7026_v14 }
 0x21f   :  { %4245 = vmatpush.bf16.msra.mxu0 %v7001_v47  ;;  %4258 = vmatpush.bf16.msra.mxu1 %v7009_v24 }
 0x220   :  { %4271 = vmatpush.bf16.msra.mxu2 %v7017_v25 }
 0x221   :  { %4284 = vmatpush.bf16.msra.mxu3 %v7025_v15 }
 0x223   :  { %4246 = vmatpush.bf16.msra.mxu0 %v7000_v33  ;;  %4259 = vmatpush.bf16.msra.mxu1 %v7008_v36 }
 0x224   :  { %4272 = vmatpush.bf16.msra.mxu2 %v7016_v37 }
 0x225   :  { %4285 = vmatpush.bf16.msra.mxu3 %v7024_v18 }
 0x227   :  { %4247 = vmatpush.bf16.msra.mxu0 %v6999_v28  ;;  %4260 = vmatpush.bf16.msra.mxu1 %v7007_v38 }
 0x228   :  { %4273 = vmatpush.bf16.msra.mxu2 %v7015_v39 }
 0x229   :  { %4286 = vmatpush.bf16.msra.mxu3 %v7023_v19 }
 0x22b   :  { %4248 = vmatpush.bf16.msra.mxu0 %v6998_v43  ;;  %4261 = vmatpush.bf16.msra.mxu1 %v7006_v46  ;;  %v3774_v59 = vpop.f32.mrf.mxu0  ;;  %v3787_v61 = vpop.f32.mrf.mxu1 }
 0x22c   :  { %4274 = vmatpush.bf16.msra.mxu2 %v7014_v50  ;;  %v3775_v60 = vadd.f32 %v3774_v59, %v540_v52 }
 0x22d   :  { %4287 = vmatpush.bf16.msra.mxu3 %v7022_v54 }
 0x22e   :  { %4249 = vmatmul.bf16.vlgmr.msra.gmra.mxu0 %v3977_v13  ;;  %4262 = vmatmul.bf16.vlgmr.msra.gmra.mxu1 %v3978_v56  ;;  %v3788_v62 = vadd.f32 %v3787_v61, %v3775_v60 }
 0x22f   :  { %4275 = vmatmul.bf16.vlgmr.msra.gmra.mxu2 %v3979_v58 }
 0x233   :  { %v3776_v2 = vpop.f32.mrf.mxu0  ;;  %v3789_v5 = vpop.f32.mrf.mxu1 }
 0x234   :  { %v3800_v3 = vpop.f32.mrf.mxu2  ;;  %v3813_v0 = vpop.f32.mrf.mxu3 }
 0x235   :  { %v3801_v4 = vadd.f32 %v3800_v3, %v3788_v62 }
 0x237   :  { %v3814_v57 = vadd.f32 %v3813_v0, %v3801_v4 }
 0x23c   :  { %v3802_v6 = vpop.f32.mrf.mxu2  ;;  %v3815_v27 = vpop.f32.mrf.mxu3 }
 0x24b   :  { %v3826_v7 = vpop.f32.mrf.mxu0  ;;  %v3839_v23 = vpop.f32.mrf.mxu1 }
 0x24c   :  { %v3827_v20 = vadd.f32 %v3826_v7, %v3814_v57 }
 0x24e   :  { %v3840_v21 = vadd.f32 %v3839_v23, %v3827_v20 }
 0x253   :  { %v3828_v34 = vpop.f32.mrf.mxu0  ;;  %v3841_v10 = vpop.f32.mrf.mxu1 }
 0x254   :  { %v3852_v8 = vpop.f32.mrf.mxu2  ;;  %v3865_v9 = vpop.f32.mrf.mxu3 }
 0x255   :  { %v3853_v47 = vadd.f32 %v3852_v8, %v3840_v21 }
 0x257   :  { %v3866_v30 = vadd.f32 %v3865_v9, %v3853_v47 }
 0x25c   :  { %v3854_v11 = vpop.f32.mrf.mxu2  ;;  %v3867_v63 = vpop.f32.mrf.mxu3 }
 0x26b   :  { %v3878_v16 = vpop.f32.mrf.mxu0  ;;  %v3891_v17 = vpop.f32.mrf.mxu1 }
 0x26c   :  { %v3879_v31 = vadd.f32 %v3878_v16, %v3866_v30 }
 0x26e   :  { %v3892_v32 = vadd.f32 %v3891_v17, %v3879_v31 }
 0x273   :  { %v3880_v51 = vpop.f32.mrf.mxu0  ;;  %v3893_v45 = vpop.f32.mrf.mxu1 }
 0x274   :  { %v3904_v1 = vpop.f32.mrf.mxu2  ;;  %v3917_v48 = vpop.f32.mrf.mxu3 }
 0x275   :  { %v3905_v22 = vadd.f32 %v3904_v1, %v3892_v32 }
 0x277   :  { %v3918_v33 = vadd.f32 %v3917_v48, %v3905_v22 }
 0x27c   :  { %v3906_v24 = vpop.f32.mrf.mxu2  ;;  %v3919_v25 = vpop.f32.mrf.mxu3 }
 0x28b   :  { %v3930_v35 = vpop.f32.mrf.mxu0  ;;  %v3943_v36 = vpop.f32.mrf.mxu1 }
 0x28c   :  { %v3931_v37 = vadd.f32 %v3930_v35, %v3918_v33 }
 0x28e   :  { %v3944_v49 = vadd.f32 %v3943_v36, %v3931_v37 }
 0x293   :  { %v3969_v38 = vpop.f32.mrf.mxu3  ;;  %v3932_v40 = vpop.f32.mrf.mxu0 }
 0x294   :  { %v3956_v28 = vpop.f32.mrf.mxu2  ;;  %v3945_v41 = vpop.f32.mrf.mxu1 }
 0x295   :  { %v3957_v39 = vadd.f32 %v3956_v28, %v3944_v49 }
 0x297   :  { %v3970_v42 = vadd.f32 %v3969_v38, %v3957_v39 }
 0x299   :  { %v3976_v43 = vmax.f32 %v3970_v42, 0.0 }
 0x29b   :  { %v3980_v44 = vpack.c.bf16 %v3976_v43, %v3976_v43  ;;  %v3971_v50 = vpop.f32.mrf.mxu3 }
 0x29c   :  { %v3958_v46 = vpop.f32.mrf.mxu2 }
 0x29d   :  { %4288 = vmatmul.bf16.vlgmr.msra.gmra.mxu3 %v3980_v44 }
 0x2ab   :  { %v4250_v55 = vpop.f32.mrf.mxu0  ;;  %v4263_v56 = vpop.f32.mrf.mxu1 }
 0x2ac   :  { %v4251_v13 = vadd.f32 %v7031_v53, %v4250_v55 }
 0x2ae   :  { %v4264_v58 = vadd.f32 %v4263_v56, %v4251_v13 }
 0x2b2   :  { %v4276_v52 = vpop.f32.mrf.mxu2 }
 0x2b3   :  { %v4277_v59 = vadd.f32 %v4276_v52, %v4264_v58  ;;  %v4252_v60 = vpop.f32.mrf.mxu0  ;;  %v4265_v61 = vpop.f32.mrf.mxu1 }
 0x2ba   :  { %v4278_v62 = vpop.f32.mrf.mxu2 }
 0x320   :  { %v4289_v3 = vpop.f32.mrf.mxu3 }
 0x321   :  { %v4290_v4 = vadd.f32 %v4289_v3, %v4277_v59 }
 0x323   :  { %4293 = vst [vmem:[#allocation2] sm:$0x3] %v4290_v4 }
 0x324   :  { %4304 = dma.vmem_to_hbm [thread:$0]  %s4300_s0, 32, %s4302_s30, [#allocation3]  }
 0x328   :  { %v4291_v0 = vpop.f32.mrf.mxu3 }
 0x329   :  { %7082 = dma.done.wait [#allocation3], 32  }
 0x32a   :  { %7083 = vsyncadd [#allocation3], 4294967264 }
 0x32b   :  { %4309 = vsyncpa [#allocation3], 1 }

</bundles_post_ra>
